<compile_context>
chip_gen: v7x
topology: tpu7x:2x2x1
jax: 0.10.0
libtpu: 0.0.40
codegen_flags: <defaults>
</compile_context>

<pallas_src>
import jax
import jax.numpy as jnp
from jax import lax
from jax.experimental import pallas as pl
from jax.experimental.pallas import tpu as pltpu

_VMEM = pl.BlockSpec(memory_space=pltpu.MemorySpace.VMEM)


# ----------------------------------------------------------------------------
# Fused kernel: conv1 + ReLU -> conv2 + ReLU -> BatchNorm (batch statistics).
# Layout inside the kernel is NHWC; conv weights arrive pre-reshaped to
# (3, 3*Cin, Cout) bf16 with K ordered dx-major, cin-minor.
# ----------------------------------------------------------------------------
def _bottom_fused_kernel(x_ref, w1_ref, b1_ref, w2_ref, b2_ref, g_ref, bt_ref,
                         o_ref, p1_ref, p2_ref):
    N, H, W, Cin = x_ref.shape
    Cout = o_ref.shape[-1]
    M = N * H * W

    def write_dx_expanded(p_ref, v):
        """Build the dx-expanded, H-padded im2col buffer (bf16) once per conv.

        p_ref : (N, H+2, W, 3*C) bf16 scratch
        v     : (N, H,   W,   C) f32 conv input (un-padded)
        p_ref[n, h+1, w, dx*C + c] = v[n, h, w-1+dx, c], zero outside.

        Only the H-halo rows (0 and H+1) are zero-filled; interior rows are
        fully overwritten and the W-halo zeros are part of the shift concat.
        The f32->bf16 cast happens exactly once, at this write.
        """
        C = v.shape[-1]
        zc = jnp.zeros((N, H, 1, C), v.dtype)
        left = jnp.concatenate([zc, v[:, :, :W - 1, :]], axis=2)   # tap w-1
        right = jnp.concatenate([v[:, :, 1:, :], zc], axis=2)      # tap w+1
        patch = jnp.concatenate([left, v, right], axis=-1)         # (N,H,W,3C)
        zrow = jnp.zeros((N, 1, W, 3 * C), jnp.bfloat16)
        p_ref[:, 0:1, :, :] = zrow
        p_ref[:, H + 1:H + 2, :, :] = zrow
        p_ref[:, 1:H + 1, :, :] = patch.astype(jnp.bfloat16)

    def conv3x3_bias_relu(p_ref, w_ref, b_ref):
        """3x3 conv + bias + ReLU from the dx-expanded buffer.

        dx is already folded into K, so the conv is 3 MXU pushes (K = 3*C);
        the per-dy slice is along a leading dim (no relayout) and the reshape
        is layout-free because W is a multiple of 8.
        """
        C3 = p_ref.shape[-1]
        acc = jnp.zeros((M, Cout), jnp.float32)
        for dy in range(3):                                   # static unroll
            patch = p_ref[:, dy:dy + H, :, :].reshape(M, C3)  # bf16 (M, 3*C)
            acc = acc + jnp.dot(patch, w_ref[dy],
                                preferred_element_type=jnp.float32)
        return jnp.maximum(acc + b_ref[...], 0.0)             # (M, Cout) f32

    # -------- conv1 + ReLU (padding folded into the scratch build) ----------
    write_dx_expanded(p1_ref, x_ref[...])
    h1 = conv3x3_bias_relu(p1_ref, w1_ref, b1_ref)

    # conv1 output feeds conv2's im2col buffer without leaving VMEM.
    write_dx_expanded(p2_ref, h1.reshape(N, H, W, Cout))

    # -------- conv2 + ReLU, written straight into the output ----------------
    o_ref[...] = conv3x3_bias_relu(p2_ref, w2_ref, b2_ref).reshape(N, H, W, Cout)

    # -------- fused BatchNorm (train mode: batch stats, biased var, eps=1e-5)
    # Centered (two-pass) variance; normalize o_ref in place.
    a2 = o_ref[...].reshape(M, Cout)
    inv_m = 1.0 / float(M)
    mean = jnp.sum(a2, axis=0, keepdims=True) * inv_m          # (1, Cout)
    centered = a2 - mean
    var = jnp.sum(centered * centered, axis=0, keepdims=True) * inv_m
    scale = g_ref[...] * lax.rsqrt(var + 1e-5)                 # (1, Cout)
    y = centered * scale + bt_ref[...]
    o_ref[...] = y.reshape(N, H, W, Cout).astype(o_ref.dtype)


# ----------------------------------------------------------------------------
# Wrapper: weight reshape/cast + pallas_call plumbing (whole-tensor VMEM; the
# demo shapes use ~2.4 MiB of VMEM, well under every chip's scoped default).
# ----------------------------------------------------------------------------
def bottom_forward_nhwc(x_nhwc, params):
    N, H, W, Cin = x_nhwc.shape
    Cout = params["w2"].shape[-1]

    # K ordered dx-major, cin-minor to match the kernel's channel-concat;
    # MXU operands in bf16.
    w1 = params["w1"].reshape(3, 3 * Cin, Cout).astype(jnp.bfloat16)
    w2 = params["w2"].reshape(3, 3 * Cout, Cout).astype(jnp.bfloat16)
    b1 = params["b1"].reshape(1, Cout)
    b2 = params["b2"].reshape(1, Cout)
    gamma = params["gamma"].reshape(1, Cout)
    beta = params["beta"].reshape(1, Cout)

    # TODO(synk): for the full-size mpunet Bottom (C=1024, larger H/W):
    #   * tile over (N, H) with a 1-row halo and mark that axis "parallel"
    #     (v7x dual TensorCore), reduction/stats axis "arbitrary";
    #   * two-phase BN (per-channel sum / centered-sumsq stats pass, then a
    #     normalize pass) so the fusion survives tiling;
    #   * plan weight residency: w1/w2 are ~18 MiB bf16 each -> tile over Cout
    #     or stream per-dy weight slabs; budget VMEM against 64 MiB on v7x;
    #   * raise vmem_limit_bytes via pltpu.CompilerParams (32 MiB scoped
    #     default on v6e, 16 MiB on v5e) so activation tiles can stay large.
    return pl.pallas_call(
        _bottom_fused_kernel,
        out_shape=jax.ShapeDtypeStruct((N, H, W, Cout), jnp.float32),
        in_specs=[_VMEM] * 7,
        out_specs=_VMEM,
        scratch_shapes=[
            pltpu.VMEM((N, H + 2, W, 3 * Cin), jnp.bfloat16),   # im2col(x)
            pltpu.VMEM((N, H + 2, W, 3 * Cout), jnp.bfloat16),  # im2col(relu(conv1))
        ],
    )(x_nhwc, w1, b1, w2, b2, gamma, beta)


def bottom_forward(x_nchw, params):
    """Bottom.forward on a PyTorch-layout (NCHW) input."""
    # TODO(synk): in the real model keep the surrounding graph NHWC so these
    # two full-tensor HBM transposes disappear.
    x = jnp.transpose(x_nchw, (0, 2, 3, 1))      # NCHW -> NHWC
    y = bottom_forward_nhwc(x, params)
    return jnp.transpose(y, (0, 3, 1, 2))        # NHWC -> NCHW


# ----------------------------------------------------------------------------
# Pure-JAX reference with the same bf16-operand / f32-accumulate convolution
# (isolates kernel-structure errors from the deliberate bf16 MXU choice).
# ----------------------------------------------------------------------------
def bottom_reference(x_nchw, params):
    x = jnp.transpose(x_nchw, (0, 2, 3, 1))
    dn = ("NHWC", "HWIO", "NHWC")

    def conv_relu(h, w, b):
        c = lax.conv_general_dilated(
            h.astype(jnp.bfloat16), w.astype(jnp.bfloat16), (1, 1), "SAME",
            dimension_numbers=dn, preferred_element_type=jnp.float32)
        return jnp.maximum(c + b[None, None, None, :], 0.0)

    h = conv_relu(x, params["w1"], params["b1"])
    h = conv_relu(h, params["w2"], params["b2"])
    mean = jnp.mean(h, axis=(0, 1, 2), keepdims=True)
    var = jnp.mean((h - mean) ** 2, axis=(0, 1, 2), keepdims=True)
    y = (h - mean) * lax.rsqrt(var + 1e-5) * params["gamma"] + params["beta"]
    return jnp.transpose(y, (0, 3, 1, 2))


# ----------------------------------------------------------------------------
# Deterministic parameter init matching the module's shapes (stored as HWIO):
#   conv1: [3,3,Cin,Cout] + bias[Cout]; conv2: [3,3,Cout,Cout] + bias;
#   BatchNorm2d: gamma[Cout]=1, beta[Cout]=0.
# ----------------------------------------------------------------------------
def init_params(key, cin, cout):
    k1, k2, k3, k4 = jax.random.split(key, 4)
    s1 = (9 * cin) ** -0.5
    s2 = (9 * cout) ** -0.5
    return {
        "w1": s1 * jax.random.normal(k1, (3, 3, cin, cout), jnp.float32),
        "b1": 0.1 * jax.random.normal(k2, (cout,), jnp.float32),
        "w2": s2 * jax.random.normal(k3, (3, 3, cout, cout), jnp.float32),
        "b2": 0.1 * jax.random.normal(k4, (cout,), jnp.float32),
        "gamma": jnp.ones((cout,), jnp.float32),
        "beta": jnp.zeros((cout,), jnp.float32),
    }


if __name__ == "__main__":
    # Scaled-down Bottom shapes (the real module defaults to 1024 channels);
    # C = 128 keeps the channel axis lane-dense.
    N, CIN, COUT, H, W = 2, 128, 128, 16, 16

    key = jax.random.PRNGKey(0)
    kx, kp = jax.random.split(key)
    x = jax.random.normal(kx, (N, CIN, H, W), jnp.float32)   # NCHW like PyTorch
    params = init_params(kp, CIN, COUT)

    out = jax.block_until_ready(bottom_forward(x, params))
    ref = jax.block_until_ready(bottom_reference(x, params))

    assert out.shape == (N, COUT, H, W), out.shape
    err = float(jnp.max(jnp.abs(out - ref)))
    assert err < 1e-2, err
    print("KERNEL_OK")
</pallas_src>

<mosaic_0001>
module attributes {stable_mosaic.version = 11 : i64} {
  func.func @_bottom_fused_kernel(%arg0: memref<2x16x16x128xf32, #tpu.memory_space<vmem>>, %arg1: memref<3x384x128xbf16, #tpu.memory_space<vmem>>, %arg2: memref<1x128xf32, #tpu.memory_space<vmem>>, %arg3: memref<3x384x128xbf16, #tpu.memory_space<vmem>>, %arg4: memref<1x128xf32, #tpu.memory_space<vmem>>, %arg5: memref<1x128xf32, #tpu.memory_space<vmem>>, %arg6: memref<1x128xf32, #tpu.memory_space<vmem>>, %arg7: memref<2x16x16x128xf32, #tpu.memory_space<vmem>>, %arg8: memref<2x18x16x384xbf16, #tpu.memory_space<vmem>>, %arg9: memref<2x18x16x384xbf16, #tpu.memory_space<vmem>>) attributes {dimension_semantics = [], scalar_prefetch = 0 : i64, scratch_operands = 2 : i64, tpu.core_type = #tpu.core_type<tc>} {
    %c0 = arith.constant 0 : index
    %c0_0 = arith.constant 0 : index
    %c0_1 = arith.constant 0 : index
    %c0_2 = arith.constant 0 : index
    %0 = vector.load %arg0[%c0, %c0_0, %c0_1, %c0_2] : memref<2x16x16x128xf32, #tpu.memory_space<vmem>>, vector<2x16x16x128xf32>
    %cst = arith.constant 0.000000e+00 : f32
    %1 = vector.broadcast %cst : f32 to vector<2x16x1x128xf32>
    %2 = vector.extract_strided_slice %0 {offsets = [0, 0, 0, 0], sizes = [2, 16, 15, 128], strides = [1, 1, 1, 1]} : vector<2x16x16x128xf32> to vector<2x16x15x128xf32>
    %3 = tpu.concatenate %1, %2 in 2 : vector<2x16x1x128xf32>, vector<2x16x15x128xf32> -> vector<2x16x16x128xf32>
    %4 = vector.extract_strided_slice %0 {offsets = [0, 0, 1, 0], sizes = [2, 16, 15, 128], strides = [1, 1, 1, 1]} : vector<2x16x16x128xf32> to vector<2x16x15x128xf32>
    %5 = tpu.concatenate %4, %1 in 2 : vector<2x16x15x128xf32>, vector<2x16x1x128xf32> -> vector<2x16x16x128xf32>
    %6 = tpu.concatenate %3, %0, %5 in 3 : vector<2x16x16x128xf32>, vector<2x16x16x128xf32>, vector<2x16x16x128xf32> -> vector<2x16x16x384xf32>
    %cst_3 = arith.constant 0.000000e+00 : bf16
    %7 = vector.broadcast %cst_3 : bf16 to vector<2x1x16x384xbf16>
    %c0_4 = arith.constant 0 : index
    %c0_5 = arith.constant 0 : index
    %c0_6 = arith.constant 0 : index
    %c0_7 = arith.constant 0 : index
    %8 = vector.load %arg8[%c0_4, %c0_5, %c0_6, %c0_7] : memref<2x18x16x384xbf16, #tpu.memory_space<vmem>>, vector<2x1x16x384xbf16>
    tpu.vector_store %arg8[%c0_4, %c0_5, %c0_6, %c0_7], %7 {strides = array<i32>} : memref<2x18x16x384xbf16, #tpu.memory_space<vmem>>, vector<2x1x16x384xbf16>,
    %c0_8 = arith.constant 0 : index
    %c17 = arith.constant 17 : index
    %c0_9 = arith.constant 0 : index
    %c0_10 = arith.constant 0 : index
    %9 = vector.load %arg8[%c0_8, %c17, %c0_9, %c0_10] : memref<2x18x16x384xbf16, #tpu.memory_space<vmem>>, vector<2x1x16x384xbf16>
    tpu.vector_store %arg8[%c0_8, %c17, %c0_9, %c0_10], %7 {strides = array<i32>} : memref<2x18x16x384xbf16, #tpu.memory_space<vmem>>, vector<2x1x16x384xbf16>,
    %10 = arith.truncf %6 : vector<2x16x16x384xf32> to vector<2x16x16x384xbf16>
    %c0_11 = arith.constant 0 : index
    %c1 = arith.constant 1 : index
    %c0_12 = arith.constant 0 : index
    %c0_13 = arith.constant 0 : index
    %11 = vector.load %arg8[%c0_11, %c1, %c0_12, %c0_13] : memref<2x18x16x384xbf16, #tpu.memory_space<vmem>>, vector<2x16x16x384xbf16>
    tpu.vector_store %arg8[%c0_11, %c1, %c0_12, %c0_13], %10 {strides = array<i32>} : memref<2x18x16x384xbf16, #tpu.memory_space<vmem>>, vector<2x16x16x384xbf16>,
    %cst_14 = arith.constant 0.000000e+00 : f32
    %12 = vector.broadcast %cst_14 : f32 to vector<512x128xf32>
    %c0_15 = arith.constant 0 : index
    %c0_16 = arith.constant 0 : index
    %c0_17 = arith.constant 0 : index
    %c0_18 = arith.constant 0 : index
    %13 = vector.load %arg8[%c0_15, %c0_16, %c0_17, %c0_18] : memref<2x18x16x384xbf16, #tpu.memory_space<vmem>>, vector<2x16x16x384xbf16>
    %14 = vector.shape_cast %13 : vector<2x16x16x384xbf16> to vector<512x384xbf16>
    %c0_19 = arith.constant 0 : index
    %c0_20 = arith.constant 0 : index
    %c0_21 = arith.constant 0 : index
    %15 = vector.load %arg1[%c0_19, %c0_20, %c0_21] : memref<3x384x128xbf16, #tpu.memory_space<vmem>>, vector<1x384x128xbf16>
    %16 = vector.shape_cast %15 : vector<1x384x128xbf16> to vector<384x128xbf16>
    %cst_22 = arith.constant dense<0.000000e+00> : vector<512x128xf32>
    %17 = tpu.matmul %14, %16, %cst_22 {dimension_numbers = #tpu.dot_dimension_numbers<[1], [0], [0], [1], [0, 0, 1, 1], [], []>} : vector<512x384xbf16>, vector<384x128xbf16>, vector<512x128xf32> -> vector<512x128xf32>
    %18 = arith.addf %12, %17 : vector<512x128xf32>
    %c0_23 = arith.constant 0 : index
    %c1_24 = arith.constant 1 : index
    %c0_25 = arith.constant 0 : index
    %c0_26 = arith.constant 0 : index
    %19 = vector.load %arg8[%c0_23, %c1_24, %c0_25, %c0_26] : memref<2x18x16x384xbf16, #tpu.memory_space<vmem>>, vector<2x16x16x384xbf16>
    %20 = vector.shape_cast %19 : vector<2x16x16x384xbf16> to vector<512x384xbf16>
    %c1_27 = arith.constant 1 : index
    %c0_28 = arith.constant 0 : index
    %c0_29 = arith.constant 0 : index
    %21 = vector.load %arg1[%c1_27, %c0_28, %c0_29] : memref<3x384x128xbf16, #tpu.memory_space<vmem>>, vector<1x384x128xbf16>
    %22 = vector.shape_cast %21 : vector<1x384x128xbf16> to vector<384x128xbf16>
    %cst_30 = arith.constant dense<0.000000e+00> : vector<512x128xf32>
    %23 = tpu.matmul %20, %22, %cst_30 {dimension_numbers = #tpu.dot_dimension_numbers<[1], [0], [0], [1], [0, 0, 1, 1], [], []>} : vector<512x384xbf16>, vector<384x128xbf16>, vector<512x128xf32> -> vector<512x128xf32>
    %24 = arith.addf %18, %23 : vector<512x128xf32>
    %c0_31 = arith.constant 0 : index
    %c2 = arith.constant 2 : index
    %c0_32 = arith.constant 0 : index
    %c0_33 = arith.constant 0 : index
    %25 = vector.load %arg8[%c0_31, %c2, %c0_32, %c0_33] : memref<2x18x16x384xbf16, #tpu.memory_space<vmem>>, vector<2x16x16x384xbf16>
    %26 = vector.shape_cast %25 : vector<2x16x16x384xbf16> to vector<512x384xbf16>
    %c2_34 = arith.constant 2 : index
    %c0_35 = arith.constant 0 : index
    %c0_36 = arith.constant 0 : index
    %27 = vector.load %arg1[%c2_34, %c0_35, %c0_36] : memref<3x384x128xbf16, #tpu.memory_space<vmem>>, vector<1x384x128xbf16>
    %28 = vector.shape_cast %27 : vector<1x384x128xbf16> to vector<384x128xbf16>
    %cst_37 = arith.constant dense<0.000000e+00> : vector<512x128xf32>
    %29 = tpu.matmul %26, %28, %cst_37 {dimension_numbers = #tpu.dot_dimension_numbers<[1], [0], [0], [1], [0, 0, 1, 1], [], []>} : vector<512x384xbf16>, vector<384x128xbf16>, vector<512x128xf32> -> vector<512x128xf32>
    %30 = arith.addf %24, %29 : vector<512x128xf32>
    %c0_38 = arith.constant 0 : index
    %c0_39 = arith.constant 0 : index
    %31 = vector.load %arg2[%c0_38, %c0_39] : memref<1x128xf32, #tpu.memory_space<vmem>>, vector<1x128xf32>
    %32 = vector.broadcast %31 : vector<1x128xf32> to vector<512x128xf32>
    %33 = arith.addf %30, %32 : vector<512x128xf32>
    %cst_40 = arith.constant 0.000000e+00 : f32
    %34 = vector.broadcast %cst_40 : f32 to vector<512x128xf32>
    %35 = arith.maximumf %33, %34 : vector<512x128xf32>
    %36 = vector.shape_cast %35 : vector<512x128xf32> to vector<2x16x16x128xf32>
    %cst_41 = arith.constant 0.000000e+00 : f32
    %37 = vector.broadcast %cst_41 : f32 to vector<2x16x1x128xf32>
    %38 = vector.extract_strided_slice %36 {offsets = [0, 0, 0, 0], sizes = [2, 16, 15, 128], strides = [1, 1, 1, 1]} : vector<2x16x16x128xf32> to vector<2x16x15x128xf32>
    %39 = tpu.concatenate %37, %38 in 2 : vector<2x16x1x128xf32>, vector<2x16x15x128xf32> -> vector<2x16x16x128xf32>
    %40 = vector.extract_strided_slice %36 {offsets = [0, 0, 1, 0], sizes = [2, 16, 15, 128], strides = [1, 1, 1, 1]} : vector<2x16x16x128xf32> to vector<2x16x15x128xf32>
    %41 = tpu.concatenate %40, %37 in 2 : vector<2x16x15x128xf32>, vector<2x16x1x128xf32> -> vector<2x16x16x128xf32>
    %42 = tpu.concatenate %39, %36, %41 in 3 : vector<2x16x16x128xf32>, vector<2x16x16x128xf32>, vector<2x16x16x128xf32> -> vector<2x16x16x384xf32>
    %cst_42 = arith.constant 0.000000e+00 : bf16
    %43 = vector.broadcast %cst_42 : bf16 to vector<2x1x16x384xbf16>
    %c0_43 = arith.constant 0 : index
    %c0_44 = arith.constant 0 : index
    %c0_45 = arith.constant 0 : index
    %c0_46 = arith.constant 0 : index
    %44 = vector.load %arg9[%c0_43, %c0_44, %c0_45, %c0_46] : memref<2x18x16x384xbf16, #tpu.memory_space<vmem>>, vector<2x1x16x384xbf16>
    tpu.vector_store %arg9[%c0_43, %c0_44, %c0_45, %c0_46], %43 {strides = array<i32>} : memref<2x18x16x384xbf16, #tpu.memory_space<vmem>>, vector<2x1x16x384xbf16>,
    %c0_47 = arith.constant 0 : index
    %c17_48 = arith.constant 17 : index
    %c0_49 = arith.constant 0 : index
    %c0_50 = arith.constant 0 : index
    %45 = vector.load %arg9[%c0_47, %c17_48, %c0_49, %c0_50] : memref<2x18x16x384xbf16, #tpu.memory_space<vmem>>, vector<2x1x16x384xbf16>
    tpu.vector_store %arg9[%c0_47, %c17_48, %c0_49, %c0_50], %43 {strides = array<i32>} : memref<2x18x16x384xbf16, #tpu.memory_space<vmem>>, vector<2x1x16x384xbf16>,
    %46 = arith.truncf %42 : vector<2x16x16x384xf32> to vector<2x16x16x384xbf16>
    %c0_51 = arith.constant 0 : index
    %c1_52 = arith.constant 1 : index
    %c0_53 = arith.constant 0 : index
    %c0_54 = arith.constant 0 : index
    %47 = vector.load %arg9[%c0_51, %c1_52, %c0_53, %c0_54] : memref<2x18x16x384xbf16, #tpu.memory_space<vmem>>, vector<2x16x16x384xbf16>
    tpu.vector_store %arg9[%c0_51, %c1_52, %c0_53, %c0_54], %46 {strides = array<i32>} : memref<2x18x16x384xbf16, #tpu.memory_space<vmem>>, vector<2x16x16x384xbf16>,
    %cst_55 = arith.constant 0.000000e+00 : f32
    %48 = vector.broadcast %cst_55 : f32 to vector<512x128xf32>
    %c0_56 = arith.constant 0 : index
    %c0_57 = arith.constant 0 : index
    %c0_58 = arith.constant 0 : index
    %c0_59 = arith.constant 0 : index
    %49 = vector.load %arg9[%c0_56, %c0_57, %c0_58, %c0_59] : memref<2x18x16x384xbf16, #tpu.memory_space<vmem>>, vector<2x16x16x384xbf16>
    %50 = vector.shape_cast %49 : vector<2x16x16x384xbf16> to vector<512x384xbf16>
    %c0_60 = arith.constant 0 : index
    %c0_61 = arith.constant 0 : index
    %c0_62 = arith.constant 0 : index
    %51 = vector.load %arg3[%c0_60, %c0_61, %c0_62] : memref<3x384x128xbf16, #tpu.memory_space<vmem>>, vector<1x384x128xbf16>
    %52 = vector.shape_cast %51 : vector<1x384x128xbf16> to vector<384x128xbf16>
    %cst_63 = arith.constant dense<0.000000e+00> : vector<512x128xf32>
    %53 = tpu.matmul %50, %52, %cst_63 {dimension_numbers = #tpu.dot_dimension_numbers<[1], [0], [0], [1], [0, 0, 1, 1], [], []>} : vector<512x384xbf16>, vector<384x128xbf16>, vector<512x128xf32> -> vector<512x128xf32>
    %54 = arith.addf %48, %53 : vector<512x128xf32>
    %c0_64 = arith.constant 0 : index
    %c1_65 = arith.constant 1 : index
    %c0_66 = arith.constant 0 : index
    %c0_67 = arith.constant 0 : index
    %55 = vector.load %arg9[%c0_64, %c1_65, %c0_66, %c0_67] : memref<2x18x16x384xbf16, #tpu.memory_space<vmem>>, vector<2x16x16x384xbf16>
    %56 = vector.shape_cast %55 : vector<2x16x16x384xbf16> to vector<512x384xbf16>
    %c1_68 = arith.constant 1 : index
    %c0_69 = arith.constant 0 : index
    %c0_70 = arith.constant 0 : index
    %57 = vector.load %arg3[%c1_68, %c0_69, %c0_70] : memref<3x384x128xbf16, #tpu.memory_space<vmem>>, vector<1x384x128xbf16>
    %58 = vector.shape_cast %57 : vector<1x384x128xbf16> to vector<384x128xbf16>
    %cst_71 = arith.constant dense<0.000000e+00> : vector<512x128xf32>
    %59 = tpu.matmul %56, %58, %cst_71 {dimension_numbers = #tpu.dot_dimension_numbers<[1], [0], [0], [1], [0, 0, 1, 1], [], []>} : vector<512x384xbf16>, vector<384x128xbf16>, vector<512x128xf32> -> vector<512x128xf32>
    %60 = arith.addf %54, %59 : vector<512x128xf32>
    %c0_72 = arith.constant 0 : index
    %c2_73 = arith.constant 2 : index
    %c0_74 = arith.constant 0 : index
    %c0_75 = arith.constant 0 : index
    %61 = vector.load %arg9[%c0_72, %c2_73, %c0_74, %c0_75] : memref<2x18x16x384xbf16, #tpu.memory_space<vmem>>, vector<2x16x16x384xbf16>
    %62 = vector.shape_cast %61 : vector<2x16x16x384xbf16> to vector<512x384xbf16>
    %c2_76 = arith.constant 2 : index
    %c0_77 = arith.constant 0 : index
    %c0_78 = arith.constant 0 : index
    %63 = vector.load %arg3[%c2_76, %c0_77, %c0_78] : memref<3x384x128xbf16, #tpu.memory_space<vmem>>, vector<1x384x128xbf16>
    %64 = vector.shape_cast %63 : vector<1x384x128xbf16> to vector<384x128xbf16>
    %cst_79 = arith.constant dense<0.000000e+00> : vector<512x128xf32>
    %65 = tpu.matmul %62, %64, %cst_79 {dimension_numbers = #tpu.dot_dimension_numbers<[1], [0], [0], [1], [0, 0, 1, 1], [], []>} : vector<512x384xbf16>, vector<384x128xbf16>, vector<512x128xf32> -> vector<512x128xf32>
    %66 = arith.addf %60, %65 : vector<512x128xf32>
    %c0_80 = arith.constant 0 : index
    %c0_81 = arith.constant 0 : index
    %67 = vector.load %arg4[%c0_80, %c0_81] : memref<1x128xf32, #tpu.memory_space<vmem>>, vector<1x128xf32>
    %68 = vector.broadcast %67 : vector<1x128xf32> to vector<512x128xf32>
    %69 = arith.addf %66, %68 : vector<512x128xf32>
    %cst_82 = arith.constant 0.000000e+00 : f32
    %70 = vector.broadcast %cst_82 : f32 to vector<512x128xf32>
    %71 = arith.maximumf %69, %70 : vector<512x128xf32>
    %72 = vector.shape_cast %71 : vector<512x128xf32> to vector<2x16x16x128xf32>
    %c0_83 = arith.constant 0 : index
    %c0_84 = arith.constant 0 : index
    %c0_85 = arith.constant 0 : index
    %c0_86 = arith.constant 0 : index
    %73 = vector.load %arg7[%c0_83, %c0_84, %c0_85, %c0_86] : memref<2x16x16x128xf32, #tpu.memory_space<vmem>>, vector<2x16x16x128xf32>
    tpu.vector_store %arg7[%c0_83, %c0_84, %c0_85, %c0_86], %72 {strides = array<i32>} : memref<2x16x16x128xf32, #tpu.memory_space<vmem>>, vector<2x16x16x128xf32>,
    %c0_87 = arith.constant 0 : index
    %c0_88 = arith.constant 0 : index
    %c0_89 = arith.constant 0 : index
    %c0_90 = arith.constant 0 : index
    %74 = vector.load %arg7[%c0_87, %c0_88, %c0_89, %c0_90] : memref<2x16x16x128xf32, #tpu.memory_space<vmem>>, vector<2x16x16x128xf32>
    %75 = vector.shape_cast %74 : vector<2x16x16x128xf32> to vector<512x128xf32>
    %cst_91 = arith.constant dense<0.000000e+00> : vector<128xf32>
    %76 = vector.multi_reduction <add>, %75, %cst_91 [0] : vector<512x128xf32> to vector<128xf32>
    %77 = vector.shape_cast %76 : vector<128xf32> to vector<1x128xf32>
    %cst_92 = arith.constant 0.001953125 : f32
    %78 = vector.broadcast %cst_92 : f32 to vector<1x128xf32>
    %79 = arith.mulf %77, %78 : vector<1x128xf32>
    %80 = vector.broadcast %79 : vector<1x128xf32> to vector<512x128xf32>
    %81 = arith.subf %75, %80 : vector<512x128xf32>
    %82 = arith.mulf %81, %81 : vector<512x128xf32>
    %cst_93 = arith.constant dense<0.000000e+00> : vector<128xf32>
    %83 = vector.multi_reduction <add>, %82, %cst_93 [0] : vector<512x128xf32> to vector<128xf32>
    %84 = vector.shape_cast %83 : vector<128xf32> to vector<1x128xf32>
    %cst_94 = arith.constant 0.001953125 : f32
    %85 = vector.broadcast %cst_94 : f32 to vector<1x128xf32>
    %86 = arith.mulf %84, %85 : vector<1x128xf32>
    %c0_95 = arith.constant 0 : index
    %c0_96 = arith.constant 0 : index
    %87 = vector.load %arg5[%c0_95, %c0_96] : memref<1x128xf32, #tpu.memory_space<vmem>>, vector<1x128xf32>
    %cst_97 = arith.constant 9.99999974E-6 : f32
    %88 = vector.broadcast %cst_97 : f32 to vector<1x128xf32>
    %89 = arith.addf %86, %88 : vector<1x128xf32>
    %90 = math.rsqrt %89 : vector<1x128xf32>
    %91 = arith.mulf %87, %90 : vector<1x128xf32>
    %92 = vector.broadcast %91 : vector<1x128xf32> to vector<512x128xf32>
    %93 = arith.mulf %81, %92 : vector<512x128xf32>
    %c0_98 = arith.constant 0 : index
    %c0_99 = arith.constant 0 : index
    %94 = vector.load %arg6[%c0_98, %c0_99] : memref<1x128xf32, #tpu.memory_space<vmem>>, vector<1x128xf32>
    %95 = vector.broadcast %94 : vector<1x128xf32> to vector<512x128xf32>
    %96 = arith.addf %93, %95 : vector<512x128xf32>
    %97 = vector.shape_cast %96 : vector<512x128xf32> to vector<2x16x16x128xf32>
    %c0_100 = arith.constant 0 : index
    %c0_101 = arith.constant 0 : index
    %c0_102 = arith.constant 0 : index
    %c0_103 = arith.constant 0 : index
    %98 = vector.load %arg7[%c0_100, %c0_101, %c0_102, %c0_103] : memref<2x16x16x128xf32, #tpu.memory_space<vmem>>, vector<2x16x16x128xf32>
    tpu.vector_store %arg7[%c0_100, %c0_101, %c0_102, %c0_103], %97 {strides = array<i32>} : memref<2x16x16x128xf32, #tpu.memory_space<vmem>>, vector<2x16x16x128xf32>,
    return
  }
}

</mosaic_0001>

<bundles_post_ra>
// kernel: tpu_custom_call.1
= control target key start
LH: loop header
LB: loop body
LE: loop exit
PB: predicated region body
PF: predicated region fallthrough
CT: control target
= control target key end

     0   :  { %12 = vsyncpa [#allocation5], 0  ;;  %s15413_s0 = inlined_call_operand.hbm [shape: f32[2,16,16,128], index: 0, kind: input, shape index: {}]   ;;  %s15414_s1 = inlined_call_operand.hbm [shape: bf16[3,384,128], index: 1, kind: input, shape index: {}]   ;;  %s15415_s2 = inlined_call_operand.vmem [shape: f32[1,128], index: 2, kind: input, shape index: {}]   ;;  %s15416_s3 = inlined_call_operand.hbm [shape: bf16[3,384,128], index: 3, kind: input, shape index: {}]   ;;  %s15417_s4 = inlined_call_operand.vmem [shape: f32[1,128], index: 4, kind: input, shape index: {}]   ;;  %s15418_s5 = inlined_call_operand.vmem [shape: f32[1,128], index: 5, kind: input, shape index: {}]   ;;  %s15419_s6 = inlined_call_operand.vmem [shape: f32[1,128], index: 6, kind: input, shape index: {}]   ;;  %s15420_s7 = inlined_call_operand.hbm [shape: f32[2,16,16,128], index: 7, kind: output, shape index: {}]  }
   0x1   :  { %13 = vsyncpa [#allocation8], 0 }
   0x2   :  { %14 = vsyncpa [#allocation6], 0  ;;  %s10076_s24 = smov [#allocation7]   ;;  %s9982_s28 = scalar_lea.hbm %s15414_s1, 9216 }
   0x3   :  { %s32_s25 = sshll.u32 %s10076_s24, 4  ;;  %p9983_p0 = scmp.ne.s32.totalorder %s15414_s1, %s9982_s28  ;;  %s33_s25 = int_to_ptr.vmem [resolvable:$true] %s32_s25 }
   0x4   :  { %p9986_p1 = scmp.lt.u32.totalorder %s9982_s28, %s15414_s1 }
   0x6   :  { %p9988_p2 = pnand %p9986_p1, %p9983_p0 }
   0x8   :  { %9991 = shalt.err (!%p9988_p2)
}
   0x9   :  { %s9992_s10 = scalar_lea.vmem %s33_s25, 9216  ;;  %p9997_p4 = scmp.lt.s32.totalorder %s33_s25, %s33_s25 }
   0xa   :  { %p9993_p3 = scmp.ne.s32.totalorder %s33_s25, %s9992_s10  ;;  %p9998_p5 = scmp.lt.s32.totalorder %s9992_s10, %s9992_s10 }
   0xc   :  { %p9999_p6 = por %p9998_p5, %p9997_p4 }
   0xe   :  { %p10000_p7 = pnand %p9999_p6, %p9993_p3 }
  0x10   :  { %10003 = shalt.err (!%p10000_p7)
}
  0x11   :  { %s10077_s11 = smov 64   ;;  %s10078_s12 = smov 4  }
  0x12   :  { %38 = dma.hbm_to_vmem [thread:$0]  %s15414_s1, 9216, %s33_s25, [#allocation8], %s10077_s11, %s10077_s11, %s10078_s12  }
  0x13   :  { %s10079_s15 = smov [#allocation4]   ;;  %s10004_s19 = scalar_lea.hbm %s15413_s0, 8192 }
  0x14   :  { %s20_s16 = sshll.u32 %s10079_s15, 4  ;;  %p10005_p8 = scmp.ne.s32.totalorder %s15413_s0, %s10004_s19  ;;  %s21_s16 = int_to_ptr.vmem [resolvable:$true] %s20_s16 }
  0x15   :  { %p10008_p9 = scmp.lt.u32.totalorder %s10004_s19, %s15413_s0 }
  0x17   :  { %p10010_p10 = pnand %p10008_p9, %p10005_p8 }
  0x19   :  { %10013 = shalt.err (!%p10010_p10)
}
  0x1a   :  { %s10014_s24 = scalar_lea.vmem %s21_s16, 8192  ;;  %p10019_p12 = scmp.lt.s32.totalorder %s21_s16, %s21_s16 }
  0x1b   :  { %p10015_p11 = scmp.ne.s32.totalorder %s21_s16, %s10014_s24  ;;  %p10020_p13 = scmp.lt.s32.totalorder %s10014_s24, %s10014_s24 }
  0x1d   :  { %p10021_p0 = por %p10020_p13, %p10019_p12 }
  0x1f   :  { %p10022_p1 = pnand %p10021_p0, %p10015_p11 }
  0x21   :  { %10025 = shalt.err (!%p10022_p1)
}
  0x22   :  { %s10080_s1 = smov 128   ;;  %s10081_s25 = smov 8  }
  0x23   :  { %26 = dma.hbm_to_vmem [thread:$0]  %s15413_s0, 8192, %s21_s16, [#allocation5], %s10080_s1, %s10080_s1, %s10081_s25  }
  0x24   :  { %s10082_s28 = smov [#allocation9]   ;;  %s10026_s9 = scalar_lea.hbm %s15416_s3, 9216 }
  0x25   :  { %s46_s29 = sshll.u32 %s10082_s28, 4  ;;  %p10027_p2 = scmp.ne.s32.totalorder %s15416_s3, %s10026_s9  ;;  %s47_s29 = int_to_ptr.vmem [resolvable:$true] %s46_s29 }
  0x26   :  { %p10030_p3 = scmp.lt.u32.totalorder %s10026_s9, %s15416_s3 }
  0x28   :  { %p10032_p4 = pnand %p10030_p3, %p10027_p2 }
  0x2a   :  { %10035 = shalt.err (!%p10032_p4)
}
  0x2b   :  { %s10036_s17 = scalar_lea.vmem %s47_s29, 9216  ;;  %p10041_p6 = scmp.lt.s32.totalorder %s47_s29, %s47_s29 }
  0x2c   :  { %p10037_p5 = scmp.ne.s32.totalorder %s47_s29, %s10036_s17  ;;  %p10042_p7 = scmp.lt.s32.totalorder %s10036_s17, %s10036_s17 }
  0x2e   :  { %p10043_p8 = por %p10042_p7, %p10041_p6 }
  0x30   :  { %p10044_p9 = pnand %p10043_p8, %p10037_p5 }
  0x32   :  { %10047 = shalt.err (!%p10044_p9)
}
  0x33   :  { %52 = dma.hbm_to_vmem [thread:$0]  %s15416_s3, 9216, %s47_s29, [#allocation8], %s10077_s11, %s10077_s11, %s10078_s12  }
  0x34   :  { %10070 = dma.done.wait [#allocation5], 8192  }
  0x35   :  { %10071 = vsyncadd [#allocation5], 4294959104 }
  0x36   :  { %10072 = dma.done.wait [#allocation8], 18432  }
  0x37   :  { %10073 = vsyncadd [#allocation8], 4294948864  ;;  %v15427_v0 = vmov 0   ;;  %v9831_v1 = vld [vmem:[#allocation7 + $0xc0] sm:$0xff]   ;;  %v9833_v3 = vld [vmem:[#allocation7 + $0xc8] sm:$0xff]   ;;  %vm390_vm0 = vcmask 1046528  }
  0x38   :  { %1222 = vmatprep.subr.bf16.mxu0 %v15427_v0  ;;  %v9832_v2 = vld [vmem:[#allocation7 + $0x140] sm:$0xff]   ;;  %v9834_v4 = vld [vmem:[#allocation7 + $0x148] sm:$0xff]   ;;  %v9836_v5 = vld [vmem:[#allocation7 + $0x150] sm:$0xff]   ;;  %vm10084_vm1 = vmmov 1   ;;  %vm197_vm3 = vcmask 1040384  }
  0x39   :  { %1223 = vmatpush1.bf16.msra.mxu0 %v9831_v1  ;;  %9341 = vmatprep.subr.bf16.mxu1 %v9832_v2  ;;  %v9835_v6 = vld [vmem:[#allocation7 + $0xd0] sm:$0xff]   ;;  %v9838_v7 = vld [vmem:[#allocation7 + $0x158] sm:$0xff]   ;;  %v9840_v9 = vld [vmem:[#allocation7 + $0x160] sm:$0xff]  }
  0x3a   :  { %1224 = vmatprep.subr.bf16.mxu0 %v15427_v0  ;;  %9342 = vmatpush3.bf16.msra.mxu1 %v9832_v2  ;;  %v9837_v8 = vld [vmem:[#allocation7 + $0xd8] sm:$0xff]   ;;  %v9839_v10 = vld [vmem:[#allocation7 + $0xe0] sm:$0xff]   ;;  %v10178_v12 = vld [vmem:[#allocation4 + $0x8] sm:$0xff] }
  0x3b   :  { %9343 = vmatprep.subr.bf16.mxu1 %v9834_v4  ;;  %v10176_v11 = vld [vmem:[#allocation4] sm:$0xff]  ;;  %v9842_v13 = vld [vmem:[#allocation7 + $0x168] sm:$0xff]   ;;  %v392_v15 = vrot.slane %v10178_v12, 1  ;;  %vm10190_vm2 = vmpackc.low %vm390_vm0, %vm10084_vm1 }
  0x3c   :  { %v391_v14 = vrot.slane %v10176_v11, 1  ;;  %v10184_v16 = vpack.c.bf16 %v10178_v12, %v10176_v11  ;;  %v9841_v17 = vld [vmem:[#allocation7 + $0xe8] sm:$0xff]   ;;  %v9843_v20 = vld [vmem:[#allocation7 + $0xf0] sm:$0xff]   ;;  %v10199_v24 = vld [vmem:[#allocation4 + $0x18] sm:$0xff] }
  0x3d   :  { %1225 = vmatpush1.bf16.msra.mxu0 %v9833_v3  ;;  %v9844_v21 = vld [vmem:[#allocation7 + $0x170] sm:$0xff]   ;;  %v10201_v25 = vld [vmem:[#allocation4 + $0x20] sm:$0xff]  ;;  %v10206_v26 = vld [vmem:[#allocation4 + $0x28] sm:$0xff]  ;;  %v395_v28 = vrot.slane %v10199_v24, 1 }
  0x3e   :  { %1226 = vmatprep.subr.bf16.mxu0 %v15427_v0  ;;  %9344 = vmatpush3.bf16.msra.mxu1 %v9834_v4  ;;  %15801 = vst [vmem:[#allocation14_spill] sm:$0xff] %v10184_v16  ;;  %v393_v18 = vsel %vm390_vm0, %v391_v14, %v392_v15  ;;  %v10197_v23 = vld [vmem:[#allocation4 + $0x10] sm:$0xff]  ;;  %v9846_v29 = vld [vmem:[#allocation7 + $0x178] sm:$0xff]   ;;  %v397_v30 = vrot.slane %v10201_v25, 1  ;;  %v398_v31 = vrot.slane %v10206_v26, 1  ;;  %v9847_v33 = vld [vmem:[#allocation7 + $0x100] sm:$0xff]  }
  0x3f   :  { %9345 = vmatprep.subr.bf16.mxu1 %v9836_v5  ;;  %1254 = vmatprep.mubr.bf16.mxu0 %v10184_v16  ;;  %v10195_v22 = vpack.c.bf16 %v392_v15, %v393_v18  ;;  %v394_v27 = vrot.slane %v10197_v23, 1  ;;  %v9845_v32 = vld [vmem:[#allocation7 + $0xf8] sm:$0xff]   ;;  %v10216_v36 = vld [vmem:[#allocation4 + $0x30] sm:$0xff]  ;;  %v10220_v38 = vld [vmem:[#allocation4 + $0x40] sm:$0xff] }
  0x40   :  { %v399_v35 = vsel %vm390_vm0, %v397_v30, %v398_v31  ;;  %v10218_v37 = vld [vmem:[#allocation4 + $0x38] sm:$0xff]  ;;  %v10222_v39 = vld [vmem:[#allocation4 + $0x48] sm:$0xff]  ;;  %v400_v43 = vrot.slane %v10216_v36, 1  ;;  %v9855_v45 = vld [vmem:[#allocation7] sm:$0xff]   ;;  %v403_v46 = vrot.slane %v10220_v38, 1 }
  0x41   :  { %1227 = vmatpush1.bf16.msra.mxu0 %v9835_v6  ;;  %15804 = vst [vmem:[#allocation15_spill] sm:$0xff] %v10195_v22  ;;  %9357 = vmatprep.mubr.msk.bf16.mxu1 %vm10190_vm2, %v10195_v22  ;;  %v396_v34 = vsel %vm390_vm0, %v394_v27, %v395_v28  ;;  %v9848_v41 = vld [vmem:[#allocation7 + $0x108] sm:$0xff]   ;;  %v10227_v42 = vpack.c.bf16 %v398_v31, %v399_v35  ;;  %v401_v44 = vrot.slane %v10218_v37, 1  ;;  %v404_v47 = vrot.slane %v10222_v39, 1  ;;  %v10234_v48 = vld [vmem:[#allocation4 + $0x50] sm:$0xff]  ;;  %v10236_v49 = vld [vmem:[#allocation4 + $0x58] sm:$0xff] }
  0x42   :  { %1228 = vmatprep.subr.bf16.mxu0 %v15427_v0  ;;  %9346 = vmatpush3.bf16.msra.mxu1 %v9836_v5  ;;  %v10225_v40 = vpack.c.bf16 %v395_v28, %v396_v34  ;;  %v10238_v50 = vld [vmem:[#allocation4 + $0x80] sm:$0xff]  ;;  %v10244_v51 = vld [vmem:[#allocation4 + $0x88] sm:$0xff]  ;;  %v9849_v58 = vld [vmem:[#allocation7 + $0x110] sm:$0xff]   ;;  %v406_v61 = vrot.slane %v10234_v48, 1  ;;  %v407_v62 = vrot.slane %v10236_v49, 1 }
  0x43   :  { %9347 = vmatprep.subr.bf16.mxu1 %v9838_v7  ;;  %15806 = vst [vmem:[#allocation17_spill] sm:$0xff] %v10227_v42  ;;  %v402_v52 = vsel %vm390_vm0, %v400_v43, %v401_v44  ;;  %v10250_v53 = vld [vmem:[#allocation4 + $0x60] sm:$0xff]  ;;  %v10252_v54 = vld [vmem:[#allocation4 + $0x68] sm:$0xff]  ;;  %v10256_v56 = vpack.c.bf16 %v10244_v51, %v10238_v50  ;;  %v405_v59 = vsel %vm390_vm0, %v403_v46, %v404_v47  ;;  %v10264_v63 = vld [vmem:[#allocation4 + $0x70] sm:$0xff] }
  0x44   :  { %15805 = vst [vmem:[#allocation16_spill] sm:$0xff] %v10225_v40  ;;  %v9857_v55 = vld [vmem:[#allocation7 + $0x8] sm:$0xff]   ;;  %v10268_v2 = vpack.c.bf16 %v401_v44, %v402_v52  ;;  %v409_v3 = vrot.slane %v10250_v53, 1  ;;  %v410_v4 = vrot.slane %v10252_v54, 1  ;;  %v10272_v5 = vld [vmem:[#allocation4 + $0x78] sm:$0xff]  ;;  %v10274_v6 = vld [vmem:[#allocation4 + $0x90] sm:$0xff]  ;;  %v408_v28 = vsel %vm390_vm0, %v406_v61, %v407_v62 }
  0x45   :  { %1229 = vmatpush1.bf16.msra.mxu0 %v9837_v8  ;;  %15807 = vst [vmem:[#allocation18_spill] sm:$0xff] %v10256_v56  ;;  %v10282_v14 = vld [vmem:[#allocation4 + $0xa0] sm:$0xff]  ;;  %v10284_v15 = vld [vmem:[#allocation4 + $0xa8] sm:$0xff]  ;;  %v9850_v27 = vld [vmem:[#allocation7 + $0x118] sm:$0xff]   ;;  %v15422_v52 = vrot.slane %v10244_v51, 1  ;;  %v15824_v44 = vrot.slane %v10178_v12, 7 }
  0x46   :  { %1230 = vmatprep.subr.bf16.mxu0 %v15427_v0  ;;  %9348 = vmatpush3.bf16.msra.mxu1 %v9838_v7  ;;  %15808 = vst [vmem:[#allocation19_spill] sm:$0xff] %v10268_v2  ;;  %v10276_v7 = vld [vmem:[#allocation4 + $0x98] sm:$0xff]  ;;  %v10299_v31 = vpack.c.bf16 %v10284_v15, %v10282_v14  ;;  %v9851_v46 = vld [vmem:[#allocation7 + $0x120] sm:$0xff]   ;;  %vm10335_vm4 = vmneg %vm197_vm3  ;;  %v228_v34 = vrot.slane %v10282_v14, 7  ;;  %v229_v35 = vrot.slane %v10284_v15, 7 }
  0x47   :  { %9349 = vmatprep.subr.bf16.mxu1 %v9840_v9  ;;  %v9859_v43 = vld [vmem:[#allocation7 + $0x18] sm:$0xff]   ;;  %v10352_v30 = vld [vmem:[#allocation4 + $0xd0] sm:$0xff]  ;;  %v10361_v1 = vld [vmem:[#allocation4 + $0xe0] sm:$0xff] }
  0x48   :  { %15811 = vst [vmem:[#allocation22_spill] sm:$0xff] %v10299_v31  ;;  %v10359_v18 = vld [vmem:[#allocation4 + $0xd8] sm:$0xff]  ;;  %vm10400_vm5 = vmpackc.low %vm10084_vm1, %vm10335_vm4  ;;  %v10407_v57 = vld [vmem:[#allocation4 + $0x110] sm:$0xff] }
  0x49   :  { %1231 = vmatpush1.bf16.msra.mxu0 %v9839_v10  ;;  %v9858_v10 = vld [vmem:[#allocation7 + $0x10] sm:$0xff]   ;;  %v10449_v12 = vld [vmem:[#allocation4 + $0x140] sm:$0xff]  ;;  %v9861_v56 = vld [vmem:[#allocation7 + $0x88] sm:$0xff]  }
  0x4a   :  { %1232 = vmatprep.subr.bf16.mxu0 %v15427_v0  ;;  %9350 = vmatpush3.bf16.msra.mxu1 %v9840_v9  ;;  %v10279_v9 = vpack.c.bf16 %v404_v47, %v405_v59  ;;  %v415_v47 = vrot.slane %v10238_v50, 1  ;;  %v9860_v59 = vld [vmem:[#allocation7 + $0x20] sm:$0xff]  }
  0x4b   :  { %9351 = vmatprep.subr.bf16.mxu1 %v9842_v13  ;;  %v10484_v31 = vld [vmem:[#allocation4 + $0x160] sm:$0xff] }
  0x4c   :  { %15809 = vst [vmem:[#allocation20_spill] sm:$0xff] %v10279_v9 }
  0x4d   :  { %1233 = vmatpush1.bf16.msra.mxu0 %v9841_v17 }
  0x4e   :  { %1234 = vmatprep.subr.bf16.mxu0 %v15427_v0  ;;  %9352 = vmatpush3.bf16.msra.mxu1 %v9842_v13  ;;  %v222_v13 = vrot.slane %v10238_v50, 7 }
  0x4f   :  { %9353 = vmatprep.subr.bf16.mxu1 %v9844_v21 }
  0x51   :  { %1235 = vmatpush1.bf16.msra.mxu0 %v9843_v20  ;;  %v223_v20 = vrot.slane %v10244_v51, 7 }
  0x52   :  { %1236 = vmatprep.subr.bf16.mxu0 %v15427_v0  ;;  %9354 = vmatpush3.bf16.msra.mxu1 %v9844_v21  ;;  %v10292_v21 = vpack.c.bf16 %v10276_v7, %v10274_v6 }
  0x53   :  { %9355 = vmatprep.subr.bf16.mxu1 %v9846_v29 }
  0x54   :  { %15810 = vst [vmem:[#allocation21_spill] sm:$0xff] %v10292_v21  ;;  %v15837_v21 = vrot.slane %v10284_v15, 1 }
  0x55   :  { %1237 = vmatpush1.bf16.msra.mxu0 %v9845_v32  ;;  %v412_v32 = vrot.slane %v10264_v63, 1 }
  0x56   :  { %1238 = vmatprep.subr.bf16.mxu0 %v15427_v0  ;;  %9356 = vmatpush3.bf16.msra.mxu1 %v9846_v29  ;;  %v10350_v29 = vld [vmem:[#allocation4 + $0xc8] sm:$0xff] }
  0x57   :  { %1944 = vmatprep.subr.bf16.mxu1 %v15427_v0  ;;  %v235_v16 = vrot.slane %v10350_v29, 7 }
  0x59   :  { %1239 = vmatpush1.bf16.msra.mxu0 %v9847_v33  ;;  %9358 = vmatmul.mubr.msk.bf16.vlgmr.msra.gmra.mrb[0].mxu1 %vm10190_vm2, %v10225_v40  ;;  %v15421_v33 = vrot.slane %v10272_v5, 1  ;;  %v10439_v40 = vld [vmem:[#allocation4 + $0x130] sm:$0xff] }
  0x5a   :  { %1240 = vmatprep.subr.bf16.mxu0 %v15427_v0  ;;  %9361 = vmatprep.mubr.msk.bf16.mxu1 %vm10190_vm2, %v10227_v42 }
  0x5b   :  { %1945 = vmatpush1.bf16.msra.mxu1 %v9855_v45  ;;  %v224_v45 = vsel %vm197_vm3, %v222_v13, %v223_v20  ;;  %v10346_v20 = vld [vmem:[#allocation4 + $0xc0] sm:$0xff] }
  0x5c   :  { %1946 = vmatprep.subr.bf16.mxu1 %v15427_v0  ;;  %v10323_v61 = vpack.c.bf16 %v224_v45, %v222_v13  ;;  %v10382_v13 = vld [vmem:[#allocation4 + $0xf0] sm:$0xff]  ;;  %v234_v42 = vrot.slane %v10346_v20, 7 }
  0x5d   :  { %1241 = vmatpush1.bf16.msra.mxu0 %v9848_v41  ;;  %v411_v41 = vsel %vm390_vm0, %v409_v3, %v410_v4  ;;  %v10325_v3 = vpack.c.bf16 %v407_v62, %v408_v28  ;;  %v226_v28 = vrot.slane %v10276_v7, 7  ;;  %v10374_v62 = vld [vmem:[#allocation4 + $0xe8] sm:$0xff] }
  0x5e   :  { %1242 = vmatprep.subr.bf16.mxu0 %v15427_v0  ;;  %15812 = vst [vmem:[#allocation23_spill] sm:$0xff] %v10323_v61  ;;  %v10343_v45 = vpack.c.bf16 %v410_v4, %v411_v41  ;;  %v9852_v41 = vld [vmem:[#allocation7 + $0x128] sm:$0xff]  }
  0x5f   :  { %1947 = vmatpush1.bf16.msra.mxu1 %v9857_v55  ;;  %v10317_v55 = vld [vmem:[#allocation4 + $0xb0] sm:$0xff]  ;;  %15813 = vst [vmem:[#allocation24_spill] sm:$0xff] %v10325_v3 }
  0x60   :  { %1948 = vmatprep.subr.bf16.mxu1 %v15427_v0  ;;  %15817 = vst [vmem:[#allocation26_spill] sm:$0xff] %v10343_v45  ;;  %v231_v60 = vrot.slane %v10317_v55, 7 }
  0x61   :  { %1243 = vmatpush1.bf16.msra.mxu0 %v9849_v58  ;;  %9362 = vmatmul.mubr.msk.bf16.gmra.mrb[4].mxu1 %vm10190_vm2, %v10268_v2  ;;  %v10319_v58 = vld [vmem:[#allocation4 + $0xb8] sm:$0xff]  ;;  %v9856_v2 = vld [vmem:[#allocation7 + $0x80] sm:$0xff]  }
  0x62   :  { %1244 = vmatprep.subr.bf16.mxu0 %v15427_v0  ;;  %9365 = vmatprep.mubr.msk.bf16.mxu1 %vm10190_vm2, %v10279_v9  ;;  %v10331_v50 = vpack.c.bf16 %v10319_v58, %v10317_v55 }
  0x63   :  { %1949 = vmatpush1.bf16.msra.mxu1 %v9858_v10  ;;  %v9862_v10 = vld [vmem:[#allocation7 + $0x28] sm:$0xff]  }
  0x64   :  { %1950 = vmatprep.subr.bf16.mxu1 %v15427_v0  ;;  %15814 = vst [vmem:[#allocation25_spill] sm:$0xff] %v10331_v50  ;;  %v10470_v50 = vld [vmem:[#allocation4 + $0x150] sm:$0xff] }
  0x65   :  { %1245 = vmatpush1.bf16.msra.mxu0 %v9850_v27  ;;  %v225_v27 = vrot.slane %v10274_v6, 7 }
  0x66   :  { %1246 = vmatprep.subr.bf16.mxu0 %v15427_v0 }
  0x67   :  { %1951 = vmatpush1.bf16.msra.mxu1 %v9859_v43  ;;  %v227_v4 = vsel %vm197_vm3, %v225_v27, %v226_v28  ;;  %v417_v28 = vsel %vm390_vm0, %v415_v47, %v15422_v52  ;;  %v10421_v52 = vld [vmem:[#allocation4 + $0x118] sm:$0xff]  ;;  %v232_v47 = vrot.slane %v10319_v58, 7 }
  0x68   :  { %1952 = vmatprep.subr.bf16.mxu1 %v15427_v0  ;;  %v10363_v8 = vpack.c.bf16 %v227_v4, %v225_v27  ;;  %v9853_v27 = vld [vmem:[#allocation7 + $0x130] sm:$0xff]   ;;  %v10392_v4 = vld [vmem:[#allocation4 + $0x100] sm:$0xff] }
  0x69   :  { %1247 = vmatpush1.bf16.msra.mxu0 %v9851_v46  ;;  %9366 = vmatmul.mubr.msk.bf16.gmra.mrb[8].mxu1 %vm10190_vm2, %v10325_v3  ;;  %v414_v46 = vsel %vm390_vm0, %v412_v32, %v15421_v33  ;;  %v230_v32 = vsel %vm197_vm3, %v228_v34, %v229_v35  ;;  %v10390_v33 = vld [vmem:[#allocation4 + $0xf8] sm:$0xff]  ;;  %v233_v22 = vsel %vm197_vm3, %v231_v60, %v232_v47  ;;  %v9865_v47 = vld [vmem:[#allocation7 + $0x40] sm:$0xff]  }
  0x6a   :  { %15818 = vst [vmem:[#allocation27_spill] sm:$0xff] %v10363_v8  ;;  %1248 = vmatprep.subr.bf16.mxu0 %v15427_v0  ;;  %9369 = vmatprep.mubr.msk.bf16.mxu1 %vm10190_vm2, %v10343_v45  ;;  %v10395_v17 = vpack.c.bf16 %v230_v32, %v228_v34  ;;  %v15822_v34 = vrot.slane %v10272_v5, 1  ;;  %v15825_v32 = vrot.slane %v10176_v11, 7  ;;  %v10425_v45 = vpack.c.bf16 %v10350_v29, %v10346_v20  ;;  %v9854_v3 = vld [vmem:[#allocation7 + $0x138] sm:$0xff]  }
  0x6b   :  { %1953 = vmatpush1.bf16.msra.mxu1 %v9860_v59  ;;  %v10405_v59 = vld [vmem:[#allocation4 + $0x108] sm:$0xff]  ;;  %v10486_v8 = vpack.c.bf16 %v233_v22, %v231_v60  ;;  %v15844_v22 = vrot.slane %v10197_v23, 7 }
  0x6c   :  { %1954 = vmatprep.subr.bf16.mxu1 %v15427_v0  ;;  %15819 = vst [vmem:[#allocation28_spill] sm:$0xff] %v10395_v17  ;;  %v200_v43 = vsel %vm197_vm3, %v15825_v32, %v15824_v44  ;;  %15826 = vst [vmem:[#allocation30_spill] sm:$0xff] %v10425_v45  ;;  %v10435_v44 = vld [vmem:[#allocation4 + $0x128] sm:$0xff]  ;;  %v9863_v32 = vld [vmem:[#allocation7 + $0x30] sm:$0xff]  }
  0x6d   :  { %1249 = vmatpush1.bf16.msra.mxu0 %v9852_v41  ;;  %v10413_v41 = vpack.c.bf16 %v15822_v34, %v414_v46  ;;  %v10433_v34 = vld [vmem:[#allocation4 + $0x120] sm:$0xff]  ;;  %v10451_v46 = vld [vmem:[#allocation4 + $0x148] sm:$0xff]  ;;  %v10472_v17 = vld [vmem:[#allocation4 + $0x158] sm:$0xff]  ;;  %15836 = vst [vmem:[#allocation35_spill] sm:$0xff] %v10486_v8 }
  0x6e   :  { %1250 = vmatprep.subr.bf16.mxu0 %v15427_v0  ;;  %v15827_v0 = vrot.slane %v10244_v51, 1  ;;  %v15829_v51 = vmov 0   ;;  %v9864_v45 = vld [vmem:[#allocation7 + $0x38] sm:$0xff]   ;;  %v10523_v8 = vld [vmem:[#allocation4 + $0x188] sm:$0xff] }
  0x6f   :  { %15823 = vst [vmem:[#allocation29_spill] sm:$0xff] %v10413_v41  ;;  %1955 = vmatpush1.bf16.msra.mxu1 %v9862_v10 }
  0x70   :  { %v10429_v9 = vpack.c.bf16 %v15827_v0, %v417_v28  ;;  %1956 = vmatprep.subr.bf16.mxu1 %v15829_v51  ;;  %v10444_v0 = vpack.c.bf16 %v10359_v18, %v10352_v30  ;;  %v10447_v28 = vld [vmem:[#allocation4 + $0x138] sm:$0xff] }
  0x71   :  { %1251 = vmatpush1.bf16.msra.mxu0 %v9853_v27  ;;  %9370 = vmatmul.mubr.msk.bf16.gmra.mrb[12].mxu1 %vm10190_vm2, %v10413_v41  ;;  %v15831_v27 = vrot.slane %v10176_v11, 7  ;;  %v15834_v11 = vrot.slane %v10276_v7, 1 }
  0x72   :  { %15828 = vst [vmem:[#allocation31_spill] sm:$0xff] %v10429_v9  ;;  %15830 = vst [vmem:[#allocation32_spill] sm:$0xff] %v10444_v0  ;;  %1252 = vmatprep.subr.bf16.mxu0 %v15829_v51  ;;  %v10466_v0 = vpack.c.bf16 %v10199_v24, %v10197_v23  ;;  %9373 = vmatprep.mubr.msk.bf16.mxu1 %vm10190_vm2, %v10429_v9  ;;  %v15838_v9 = vrot.slane %v10282_v14, 1  ;;  %v10505_v14 = vld [vmem:[#allocation4 + $0x170] sm:$0xff] }
  0x73   :  { %v10462_v10 = vpack.c.bf16 %v200_v43, %v15831_v27  ;;  %v15835_v43 = vrot.slane %v10274_v6, 1  ;;  %1957 = vmatpush1.bf16.msra.mxu1 %v9863_v32  ;;  %v236_v32 = vsel %vm197_vm3, %v234_v42, %v235_v16  ;;  %v15841_v16 = vrot.slane %v10276_v7, 1 }
  0x74   :  { %15833 = vst [vmem:[#allocation34_spill] sm:$0xff] %v10466_v0  ;;  %v423_v61 = vsel %vm390_vm0, %v15838_v9, %v15837_v21  ;;  %1958 = vmatprep.subr.bf16.mxu1 %v15829_v51  ;;  %v10507_v21 = vld [vmem:[#allocation4 + $0x178] sm:$0xff]  ;;  %v10509_v6 = vpack.c.bf16 %v236_v32, %v234_v42  ;;  %v237_v42 = vrot.slane %v10352_v30, 7  ;;  %v15845_v32 = vrot.slane %v10284_v15, 1  ;;  %v9866_v15 = vld [vmem:[#allocation7 + $0x90] sm:$0xff]   ;;  %v9867_v9 = vld [vmem:[#allocation7 + $0x48] sm:$0xff]  }
  0x75   :  { %15832 = vst [vmem:[#allocation33_spill] sm:$0xff] %v10462_v10  ;;  %v420_v27 = vsel %vm390_vm0, %v15835_v43, %v15834_v11  ;;  %v10495_v11 = vld [vmem:[#allocation4 + $0x168] sm:$0xff]  ;;  %v10500_v43 = vpack.c.bf16 %v10374_v62, %v10361_v1  ;;  %1253 = vmatpush1.bf16.msra.mxu0 %v9854_v3  ;;  %v15843_v3 = vrot.slane %v10199_v24, 7  ;;  %v10532_v24 = vpack.c.bf16 %v10390_v33, %v10382_v13 }
  0x76   :  { %15840 = vst [vmem:[#allocation37_spill] sm:$0xff] %v10509_v6  ;;  %9421 = vmatprep.subr.bf16.mxu0 %v9856_v2  ;;  %v10513_v41 = vpack.c.bf16 %v15841_v16, %v420_v27  ;;  %v10528_v6 = vpack.c.bf16 %v15845_v32, %v423_v61  ;;  %v10536_v7 = vpack.c.bf16 %v10405_v59, %v10392_v4  ;;  %v238_v61 = vrot.slane %v10359_v18, 7  ;;  %v10553_v27 = vld [vmem:[#allocation4 + $0x190] sm:$0xff] }
  0x77   :  { %15839 = vst [vmem:[#allocation36_spill] sm:$0xff] %v10500_v43  ;;  %v203_v60 = vsel %vm197_vm3, %v15844_v22, %v15843_v3  ;;  %v10521_v43 = vld [vmem:[#allocation4 + $0x180] sm:$0xff]  ;;  %1959 = vmatpush1.bf16.msra.mxu1 %v9864_v45  ;;  %15847 = vst [vmem:[#allocation40_spill] sm:$0xff] %v10532_v24  ;;  %v15849_v45 = vmov %v15844_v22  ;;  %v10555_v22 = vld [vmem:[#allocation4 + $0x198] sm:$0xff]  ;;  %v15853_v32 = vrot.slane %v10319_v58, 1  ;;  %v15854_v3 = vrot.slane %v10317_v55, 1 }
  0x78   :  { %15842 = vst [vmem:[#allocation38_spill] sm:$0xff] %v10513_v41  ;;  %15846 = vst [vmem:[#allocation39_spill] sm:$0xff] %v10528_v6  ;;  %7816 = vmatmul.mubr.msk.bf16.vlgmr.msra.gmra.mrb[0].mxu0 %vm10400_vm5, %v10462_v10  ;;  %1960 = vmatprep.subr.bf16.mxu1 %v15829_v51  ;;  %v10549_v16 = vpack.c.bf16 %v203_v60, %v15849_v45  ;;  %v239_v23 = vsel %vm197_vm3, %v237_v42, %v238_v61  ;;  %v240_v60 = vrot.slane %v10361_v1, 7 }
  0x79   :  { %15848 = vst [vmem:[#allocation41_spill] sm:$0xff] %v10536_v7  ;;  %9422 = vmatpush3.bf16.msra.mxu0 %v9856_v2  ;;  %1262 = vmatprep.mubr.bf16.mxu0 %v10466_v0  ;;  %15851 = vst [vmem:[#allocation43_spill] sm:$0xff] %v10553_v27  ;;  %v10565_v45 = vpack.c.bf16 %v10421_v52, %v10407_v57  ;;  %v426_v2 = vsel %vm390_vm0, %v15854_v3, %v15853_v32  ;;  %v15856_v61 = vrot.slane %v10346_v20, 1  ;;  %v9868_v20 = vld [vmem:[#allocation7 + $0x50] sm:$0xff]  }
  0x7a   :  { %15850 = vst [vmem:[#allocation42_spill] sm:$0xff] %v10549_v16  ;;  %9374 = vmatmul.mubr.msk.bf16.gmra.mrb[16].mxu1 %vm10190_vm2, %v10513_v41  ;;  %9423 = vmatprep.subr.bf16.mxu0 %v9861_v56  ;;  %v15855_v41 = vrot.slane %v10350_v29, 1  ;;  %v10580_v24 = vpack.c.bf16 %v239_v23, %v237_v42  ;;  %v243_v55 = vrot.slane %v10382_v13, 7  ;;  %v10589_v3 = vpack.c.bf16 %v10206_v26, %v10201_v25 }
  0x7b   :  { %15852 = vst [vmem:[#allocation44_spill] sm:$0xff] %v10565_v45  ;;  %9377 = vmatprep.mubr.msk.bf16.mxu1 %vm10190_vm2, %v10528_v6  ;;  %1961 = vmatpush1.bf16.msra.mxu1 %v9865_v47  ;;  %v241_v6 = vrot.slane %v10374_v62, 7  ;;  %v246_v47 = vrot.slane %v10392_v4, 7  ;;  %v15859_v42 = vmov %v15853_v32  ;;  %v15860_v23 = vrot.slane %v10350_v29, 1  ;;  %v9874_v45 = vld [vmem:[#allocation7 + $0x98] sm:$0xff]  }
  0x7c   :  { %v429_v7 = vsel %vm390_vm0, %v15856_v61, %v15855_v41  ;;  %15857 = vst [vmem:[#allocation45_spill] sm:$0xff] %v10580_v24  ;;  %1962 = vmatprep.subr.bf16.mxu1 %v15829_v51  ;;  %15858 = vst [vmem:[#allocation46_spill] sm:$0xff] %v10589_v3  ;;  %v244_v41 = vrot.slane %v10390_v33, 7  ;;  %v10595_v32 = vpack.c.bf16 %v15859_v42, %v426_v2  ;;  %v247_v10 = vrot.slane %v10405_v59, 7 }
  0x7d   :  { %9424 = vmatpush3.bf16.msra.mxu0 %v9861_v56  ;;  %v10599_v61 = vpack.c.bf16 %v15860_v23, %v429_v7  ;;  %v242_v0 = vsel %vm197_vm3, %v240_v60, %v241_v6  ;;  %v249_v27 = vrot.slane %v10407_v57, 7  ;;  %v250_v58 = vrot.slane %v10421_v52, 7 }
  0x7e   :  { %9425 = vmatprep.subr.bf16.mxu0 %v9866_v15  ;;  %v10603_v56 = vpack.c.bf16 %v242_v0, %v240_v60  ;;  %v245_v24 = vsel %vm197_vm3, %v243_v55, %v244_v41  ;;  %v248_v6 = vsel %vm197_vm3, %v246_v47, %v247_v10  ;;  %v15864_v0 = vrot.slane %v10206_v26, 7  ;;  %v9876_v10 = vld [vmem:[#allocation7 + $0xa0] sm:$0xff]  }
  0x7f   :  { %15861 = vst [vmem:[#allocation47_spill] sm:$0xff] %v10599_v61  ;;  %1963 = vmatpush1.bf16.msra.mxu1 %v9867_v9  ;;  %v10612_v29 = vpack.c.bf16 %v245_v24, %v243_v55  ;;  %v15865_v9 = vrot.slane %v10201_v25, 7  ;;  %v10621_v2 = vpack.c.bf16 %v248_v6, %v246_v47  ;;  %v251_v60 = vsel %vm197_vm3, %v249_v27, %v250_v58  ;;  %v9869_v24 = vld [vmem:[#allocation7 + $0x58] sm:$0xff]  }
  0x80   :  { %15862 = vst [vmem:[#allocation48_spill] sm:$0xff] %v10603_v56  ;;  %7820 = vmatmul.mubr.msk.bf16.gmra.mrb[4].mxu0 %vm10400_vm5, %v10549_v16  ;;  %1964 = vmatprep.subr.bf16.mxu1 %v15829_v51  ;;  %v10627_v55 = vpack.c.bf16 %v251_v60, %v249_v27  ;;  %v10631_v26 = vpack.c.bf16 %v10435_v44, %v10433_v34  ;;  %v252_v41 = vrot.slane %v10433_v34, 7  ;;  %v15868_v47 = vrot.slane %v10359_v18, 1 }
  0x81   :  { %15863 = vst [vmem:[#allocation49_spill] sm:$0xff] %v10612_v29  ;;  %1270 = vmatprep.mubr.bf16.mxu0 %v10589_v3  ;;  %v206_v7 = vsel %vm197_vm3, %v15865_v9, %v15864_v0  ;;  %9426 = vmatpush3.bf16.msra.mxu0 %v9866_v15  ;;  %v253_v15 = vrot.slane %v10435_v44, 7  ;;  %v15869_v42 = vrot.slane %v10352_v30, 1  ;;  %v15870_v27 = vmov %v15865_v9 }
  0x82   :  { %9378 = vmatmul.mubr.msk.bf16.gmra.mrb[20].mxu1 %vm10190_vm2, %v10595_v32  ;;  %9427 = vmatprep.subr.bf16.mxu0 %v9874_v45  ;;  %15866 = vst [vmem:[#allocation50_spill] sm:$0xff] %v10627_v55  ;;  %15867 = vst [vmem:[#allocation51_spill] sm:$0xff] %v10631_v26  ;;  %v10645_v58 = vpack.c.bf16 %v206_v7, %v15870_v27  ;;  %v15872_v6 = vrot.slane %v10374_v62, 1  ;;  %v15873_v0 = vrot.slane %v10361_v1, 1  ;;  %v15876_v25 = vrot.slane %v10359_v18, 1 }
  0x83   :  { %9381 = vmatprep.mubr.msk.bf16.mxu1 %vm10190_vm2, %v10599_v61  ;;  %v432_v23 = vsel %vm390_vm0, %v15869_v42, %v15868_v47  ;;  %1965 = vmatpush1.bf16.msra.mxu1 %v9868_v20  ;;  %v254_v60 = vsel %vm197_vm3, %v252_v41, %v253_v15  ;;  %v10656_v30 = vpack.c.bf16 %v10218_v37, %v10216_v36  ;;  %v9870_v47 = vld [vmem:[#allocation7 + $0x60] sm:$0xff]   ;;  %v15881_v18 = vrot.slane %v10216_v36, 7  ;;  %v9871_v15 = vld [vmem:[#allocation7 + $0x68] sm:$0xff]   ;;  %v15982_v61 = vld [vmem:[#allocation33_spill] sm:$0xff] }
  0x84   :  { %15871 = vst [vmem:[#allocation52_spill] sm:$0xff] %v10645_v58  ;;  %v435_v9 = vsel %vm390_vm0, %v15873_v0, %v15872_v6  ;;  %1966 = vmatprep.subr.bf16.mxu1 %v15829_v51  ;;  %v10658_v20 = vpack.c.bf16 %v254_v60, %v252_v41  ;;  %v10662_v7 = vpack.c.bf16 %v15876_v25, %v432_v23  ;;  %v256_v23 = vrot.slane %v10447_v28, 7 }
  0x85   :  { %15874 = vst [vmem:[#allocation53_spill] sm:$0xff] %v10656_v30  ;;  %9428 = vmatpush3.bf16.msra.mxu0 %v9874_v45  ;;  %v15878_v1 = vmov %v15872_v6  ;;  %v15880_v45 = vrot.slane %v10218_v37, 7  ;;  %v10683_v62 = vpack.c.bf16 %v10447_v28, %v10439_v40  ;;  %v15883_v37 = vrot.slane %v10390_v33, 1 }
  0x86   :  { %15875 = vst [vmem:[#allocation54_spill] sm:$0xff] %v10658_v20  ;;  %15877 = vst [vmem:[#allocation55_spill] sm:$0xff] %v10662_v7  ;;  %9429 = vmatprep.subr.bf16.mxu0 %v9876_v10  ;;  %v10666_v42 = vpack.c.bf16 %v15878_v1, %v435_v9  ;;  %v15885_v6 = vmov %v15881_v18  ;;  %v15887_v9 = vrot.slane %v10405_v59, 1  ;;  %v15888_v60 = vrot.slane %v10392_v4, 1 }
  0x87   :  { %1967 = vmatpush1.bf16.msra.mxu1 %v9869_v24  ;;  %v209_v41 = vsel %vm197_vm3, %v15881_v18, %v15880_v45  ;;  %15882 = vst [vmem:[#allocation57_spill] sm:$0xff] %v10683_v62  ;;  %v255_v24 = vrot.slane %v10439_v40, 7  ;;  %v10710_v45 = vld [vmem:[#allocation4 + $0x1a0] sm:$0xff]  ;;  %v15891_v18 = vmov %v15883_v37 }
  0x88   :  { %15879 = vst [vmem:[#allocation56_spill] sm:$0xff] %v10666_v42  ;;  %7824 = vmatmul.mubr.msk.bf16.gmra.mrb[8].mxu0 %vm10400_vm5, %v10645_v58  ;;  %1968 = vmatprep.subr.bf16.mxu1 %v15829_v51  ;;  %v10697_v0 = vpack.c.bf16 %v209_v41, %v15885_v6  ;;  %v441_v25 = vsel %vm390_vm0, %v15888_v60, %v15887_v9  ;;  %v15893_v4 = vmov %v15887_v9  ;;  %v259_v6 = vrot.slane %v10451_v46, 7 }
  0x89   :  { %1278 = vmatprep.mubr.bf16.mxu0 %v10656_v30  ;;  %9430 = vmatpush3.bf16.msra.mxu0 %v9876_v10  ;;  %v15884_v10 = vrot.slane %v10382_v13, 1  ;;  %v257_v1 = vsel %vm197_vm3, %v255_v24, %v256_v23  ;;  %v10708_v13 = vpack.c.bf16 %v10222_v39, %v10220_v38  ;;  %v15896_v23 = vrot.slane %v10220_v38, 7 }
  0x8a   :  { %9382 = vmatmul.mubr.msk.bf16.gmra.mrb[24].mxu1 %vm10190_vm2, %v10662_v7  ;;  %15886 = vst [vmem:[#allocation58_spill] sm:$0xff] %v10697_v0  ;;  %v10712_v36 = vpack.c.bf16 %v257_v1, %v255_v24  ;;  %v15895_v24 = vrot.slane %v10222_v39, 7  ;;  %v15898_v39 = vrot.slane %v10421_v52, 1  ;;  %v15899_v9 = vrot.slane %v10407_v57, 1  ;;  %v15973_v7 = vld [vmem:[#allocation25_spill] sm:$0xff] }
  0x8b   :  { %9385 = vmatprep.mubr.msk.bf16.mxu1 %vm10190_vm2, %v10666_v42  ;;  %v438_v27 = vsel %vm390_vm0, %v15884_v10, %v15883_v37  ;;  %1969 = vmatpush1.bf16.msra.mxu1 %v9870_v47  ;;  %15889 = vst [vmem:[#allocation59_spill] sm:$0xff] %v10708_v13  ;;  %v9872_v47 = vld [vmem:[#allocation7 + $0x70] sm:$0xff]   ;;  %v10720_v37 = vpack.c.bf16 %v15893_v4, %v441_v25  ;;  %v10750_v25 = vld [vmem:[#allocation4 + $0x1a8] sm:$0xff]  ;;  %v15900_v1 = vmov %v15896_v23  ;;  %v15902_v4 = vrot.slane %v10435_v44, 1 }
  0x8c   :  { %1970 = vmatprep.subr.bf16.mxu1 %v15829_v51  ;;  %15890 = vst [vmem:[#allocation60_spill] sm:$0xff] %v10712_v36  ;;  %v10716_v41 = vpack.c.bf16 %v15891_v18, %v438_v27  ;;  %v212_v33 = vsel %vm197_vm3, %v15896_v23, %v15895_v24  ;;  %v10738_v10 = vpack.c.bf16 %v10451_v46, %v10449_v12  ;;  %v258_v27 = vrot.slane %v10449_v12, 7  ;;  %v15968_v42 = vld [vmem:[#allocation27_spill] sm:$0xff] }
  0x8d   :  { %15894 = vst [vmem:[#allocation62_spill] sm:$0xff] %v10720_v37  ;;  %v444_v60 = vsel %vm390_vm0, %v15899_v9, %v15898_v39  ;;  %v10754_v18 = vpack.c.bf16 %v212_v33, %v15900_v1  ;;  %v15903_v24 = vrot.slane %v10433_v34, 1  ;;  %v10765_v57 = vpack.c.bf16 %v10236_v49, %v10234_v48 }
  0x8e   :  { %15892 = vst [vmem:[#allocation61_spill] sm:$0xff] %v10716_v41  ;;  %15897 = vst [vmem:[#allocation63_spill] sm:$0xff] %v10738_v10  ;;  %v260_v59 = vsel %vm197_vm3, %v258_v27, %v259_v6  ;;  %v15906_v38 = vrot.slane %v10421_v52, 1  ;;  %v15908_v33 = vmov %v15902_v4  ;;  %v9879_v6 = vld [vmem:[#allocation7 + $0xa8] sm:$0xff]   ;;  %v15910_v52 = vrot.slane %v10236_v49, 7 }
  0x8f   :  { %1971 = vmatpush1.bf16.msra.mxu1 %v9871_v15  ;;  %v9873_v15 = vld [vmem:[#allocation7 + $0x78] sm:$0xff]   ;;  %15901 = vst [vmem:[#allocation64_spill] sm:$0xff] %v10754_v18  ;;  %v447_v23 = vsel %vm390_vm0, %v15903_v24, %v15902_v4  ;;  %15904 = vst [vmem:[#allocation65_spill] sm:$0xff] %v10765_v57  ;;  %v10767_v39 = vpack.c.bf16 %v260_v59, %v258_v27  ;;  %v15911_v59 = vrot.slane %v10234_v48, 7  ;;  %9431 = vmatprep.subr.bf16.mxu0 %v9879_v6 }
  0x90   :  { %7828 = vmatmul.mubr.msk.bf16.gmra.mrb[12].mxu0 %vm10400_vm5, %v10697_v0  ;;  %1972 = vmatprep.subr.bf16.mxu1 %v15829_v51  ;;  %v10775_v9 = vpack.c.bf16 %v15908_v33, %v447_v23  ;;  %v261_v27 = vrot.slane %v10470_v50, 7  ;;  %v15913_v49 = vrot.slane %v10447_v28, 1  ;;  %v15914_v1 = vrot.slane %v10439_v40, 1  ;;  %v10819_v40 = vld [vmem:[#allocation4 + $0x1b0] sm:$0xff] }
  0x91   :  { %1286 = vmatprep.mubr.bf16.mxu0 %v10708_v13  ;;  %15905 = vst [vmem:[#allocation66_spill] sm:$0xff] %v10767_v39  ;;  %v215_v44 = vsel %vm197_vm3, %v15911_v59, %v15910_v52  ;;  %9432 = vmatpush3.bf16.msra.mxu0 %v9879_v6  ;;  %v15915_v24 = vmov %v15911_v59  ;;  %v15918_v33 = vrot.slane %v10449_v12, 1  ;;  %v10817_v34 = vpack.c.bf16 %v10252_v54, %v10250_v53 }
  0x92   :  { %9386 = vmatmul.mubr.msk.bf16.gmra.mrb[28].mxu1 %vm10190_vm2, %v10716_v41  ;;  %15909 = vst [vmem:[#allocation68_spill] sm:$0xff] %v10775_v9  ;;  %v450_v4 = vsel %vm390_vm0, %v15914_v1, %v15913_v49  ;;  %v10807_v23 = vpack.c.bf16 %v215_v44, %v15915_v24  ;;  %v15921_v48 = vrot.slane %v10447_v28, 1  ;;  %v15925_v12 = vrot.slane %v10252_v54, 7 }
  0x93   :  { %9389 = vmatprep.mubr.msk.bf16.mxu1 %vm10190_vm2, %v10720_v37  ;;  %1973 = vmatpush1.bf16.msra.mxu1 %v9872_v47  ;;  %v10771_v47 = vpack.c.bf16 %v15906_v38, %v444_v60  ;;  %v262_v60 = vrot.slane %v10472_v17, 7  ;;  %v15917_v38 = vrot.slane %v10451_v46, 1  ;;  %15919 = vst [vmem:[#allocation71_spill] sm:$0xff] %v10817_v34  ;;  %v472_v46 = vrot.slane %v10819_v40, 1  ;;  %v9882_v37 = vld [vmem:[#allocation7 + $0xb0] sm:$0xff]  }
  0x94   :  { %1974 = vmatprep.subr.bf16.mxu1 %v15829_v51  ;;  %15916 = vst [vmem:[#allocation70_spill] sm:$0xff] %v10807_v23  ;;  %v10825_v6 = vpack.c.bf16 %v15921_v48, %v450_v4  ;;  %v10846_v28 = vpack.c.bf16 %v10495_v11, %v10484_v31  ;;  %v264_v4 = vrot.slane %v10484_v31, 7  ;;  %v265_v24 = vrot.slane %v10495_v11, 7  ;;  %9433 = vmatprep.subr.bf16.mxu0 %v9882_v37 }
  0x95   :  { %15907 = vst [vmem:[#allocation67_spill] sm:$0xff] %v10771_v47  ;;  %v453_v52 = vsel %vm390_vm0, %v15918_v33, %v15917_v38  ;;  %v263_v59 = vsel %vm197_vm3, %v261_v27, %v262_v60  ;;  %v15923_v44 = vmov %v15917_v38  ;;  %v15926_v60 = vrot.slane %v10250_v53, 7  ;;  %9434 = vmatpush3.bf16.msra.mxu0 %v9882_v37 }
  0x96   :  { %v10821_v49 = vpack.c.bf16 %v263_v59, %v261_v27  ;;  %15922 = vst [vmem:[#allocation73_spill] sm:$0xff] %v10825_v6  ;;  %v10829_v1 = vpack.c.bf16 %v15923_v44, %v453_v52  ;;  %15927 = vst [vmem:[#allocation75_spill] sm:$0xff] %v10846_v28  ;;  %v15928_v54 = vrot.slane %v10472_v17, 1  ;;  %v15929_v38 = vrot.slane %v10470_v50, 1 }
  0x97   :  { %1975 = vmatpush1.bf16.msra.mxu1 %v9873_v15  ;;  %v10793_v15 = vpack.c.bf16 %v10472_v17, %v10470_v50  ;;  %v218_v27 = vsel %vm197_vm3, %v15926_v60, %v15925_v12  ;;  %v15930_v52 = vmov %v15926_v60  ;;  %v15932_v48 = vrot.slane %v10495_v11, 1 }
  0x98   :  { %7832 = vmatmul.mubr.msk.bf16.gmra.mrb[16].mxu0 %vm10400_vm5, %v10754_v18  ;;  %2812 = vmatprep.subr.bf16.mxu1 %v15829_v51  ;;  %15920 = vst [vmem:[#allocation72_spill] sm:$0xff] %v10821_v49  ;;  %15924 = vst [vmem:[#allocation74_spill] sm:$0xff] %v10829_v1  ;;  %v456_v33 = vsel %vm390_vm0, %v15929_v38, %v15928_v54  ;;  %v10860_v59 = vpack.c.bf16 %v218_v27, %v15930_v52  ;;  %v15933_v44 = vrot.slane %v10484_v31, 1 }
  0x99   :  { %1294 = vmatprep.mubr.bf16.mxu0 %v10765_v57  ;;  %15912 = vst [vmem:[#allocation69_spill] sm:$0xff] %v10793_v15  ;;  %v266_v60 = vsel %vm197_vm3, %v264_v4, %v265_v24  ;;  %v10870_v41 = vpack.c.bf16 %v10272_v5, %v10264_v63  ;;  %v15936_v50 = vmov %v15928_v54  ;;  %v15938_v53 = vmov %v15932_v48 }
  0x9a   :  { %9390 = vmatmul.mubr.msk.bf16.gmra.mrb[32].mxu1 %vm10190_vm2, %v10771_v47  ;;  %15931 = vst [vmem:[#allocation76_spill] sm:$0xff] %v10860_v59  ;;  %v459_v12 = vsel %vm390_vm0, %v15933_v44, %v15932_v48  ;;  %v10876_v54 = vpack.c.bf16 %v15936_v50, %v456_v33  ;;  %v15940_v31 = vrot.slane %v10272_v5, 7  ;;  %v15941_v24 = vrot.slane %v10264_v63, 7 }
  0x9b   :  { %9393 = vmatprep.mubr.msk.bf16.mxu1 %vm10190_vm2, %v10775_v9  ;;  %15934 = vst [vmem:[#allocation77_spill] sm:$0xff] %v10870_v41  ;;  %v10880_v27 = vpack.c.bf16 %v15938_v53, %v459_v12  ;;  %v10896_v17 = vpack.c.bf16 %v10507_v21, %v10505_v14  ;;  %v267_v11 = vrot.slane %v10505_v14, 7  ;;  %v268_v38 = vrot.slane %v10507_v21, 7 }
  0x9c   :  { %15937 = vst [vmem:[#allocation79_spill] sm:$0xff] %v10876_v54  ;;  %v15943_v5 = vrot.slane %v10507_v21, 1  ;;  %v15944_v33 = vrot.slane %v10505_v14, 1  ;;  %v15945_v48 = vmov %v15941_v24  ;;  %v15947_v12 = vrot.slane %v10523_v8, 1  ;;  %v10924_v14 = vld [vmem:[#allocation4 + $0x1d0] sm:$0xff] }
  0x9d   :  { %15939 = vst [vmem:[#allocation80_spill] sm:$0xff] %v10880_v27  ;;  %15942 = vst [vmem:[#allocation81_spill] sm:$0xff] %v10896_v17  ;;  %v269_v53 = vsel %vm197_vm3, %v267_v11, %v268_v38  ;;  %v15950_v63 = vrot.slane %v10507_v21, 1  ;;  %v15954_v38 = vld [vmem:[#allocation18_spill] sm:$0xff]  ;;  %v478_v8 = vrot.slane %v10924_v14, 1 }
  0x9e   :  { %v462_v52 = vsel %vm390_vm0, %v15944_v33, %v15943_v5  ;;  %v10926_v5 = vpack.c.bf16 %v269_v53, %v267_v11  ;;  %v10955_v53 = vld [vmem:[#allocation4 + $0x1d8] sm:$0xff] }
  0xa0   :  { %7836 = vmatmul.mubr.msk.bf16.gmra.mrb[20].mxu0 %vm10400_vm5, %v10807_v23  ;;  %15949 = vst [vmem:[#allocation83_spill] sm:$0xff] %v10926_v5 }
  0xa1   :  { %1302 = vmatprep.mubr.bf16.mxu0 %v10817_v34 }
  0xa2   :  { %9394 = vmatmul.mubr.msk.bf16.gmra.mrb[36].mxu1 %vm10190_vm2, %v10825_v6  ;;  %v10964_v6 = vld [vmem:[#allocation4 + $0x1e8] sm:$0xff] }
  0xa3   :  { %9397 = vmatprep.mubr.msk.bf16.mxu1 %vm10190_vm2, %v10829_v1  ;;  %v10872_v1 = vpack.c.bf16 %v266_v60, %v264_v4  ;;  %v221_v4 = vsel %vm197_vm3, %v15941_v24, %v15940_v31  ;;  %v15948_v60 = vrot.slane %v10521_v43, 1  ;;  %v10918_v31 = vld [vmem:[#allocation4 + $0x1b8] sm:$0xff]  ;;  %v10920_v24 = vld [vmem:[#allocation4 + $0x1c0] sm:$0xff]  ;;  %v15952_v43 = vmov %v15947_v12 }
  0xa4   :  { %v10910_v44 = vpack.c.bf16 %v221_v4, %v15945_v48  ;;  %v10930_v4 = vpack.c.bf16 %v15950_v63, %v462_v52  ;;  %v473_v11 = vrot.slane %v10918_v31, 1  ;;  %v475_v21 = vrot.slane %v10920_v24, 1 }
  0xa5   :  { %15935 = vst [vmem:[#allocation78_spill] sm:$0xff] %v10872_v1  ;;  %v465_v50 = vsel %vm390_vm0, %v15948_v60, %v15947_v12  ;;  %v15955_v48 = vrot.slane %v10555_v22, 1  ;;  %v15956_v12 = vld [vmem:[#allocation43_spill] sm:$0xff]  ;;  %v15958_v63 = vrot.slane %v10750_v25, 1 }
  0xa6   :  { %15946 = vst [vmem:[#allocation82_spill] sm:$0xff] %v10910_v44  ;;  %15951 = vst [vmem:[#allocation84_spill] sm:$0xff] %v10930_v4  ;;  %v10934_v33 = vpack.c.bf16 %v15952_v43, %v465_v50  ;;  %v15957_v60 = vrot.slane %v15956_v12, 1  ;;  %v15959_v43 = vrot.slane %v10710_v45, 1 }
  0xa7   :  { %v15962_v12 = vmov %v15958_v63 }
  0xa8   :  { %7840 = vmatmul.mubr.msk.bf16.gmra.mrb[24].mxu0 %vm10400_vm5, %v10860_v59  ;;  %15953 = vst [vmem:[#allocation85_spill] sm:$0xff] %v10934_v33  ;;  %v468_v50 = vsel %vm390_vm0, %v15957_v60, %v15955_v48  ;;  %v479_v60 = vrot.slane %v10955_v53, 1 }
  0xa9   :  { %1310 = vmatprep.mubr.bf16.mxu0 %v10870_v41 }
  0xaa   :  { %9398 = vmatmul.mubr.msk.bf16.gmra.mrb[40].mxu1 %vm10190_vm2, %v10876_v54  ;;  %v10962_v54 = vld [vmem:[#allocation4 + $0x1e0] sm:$0xff]  ;;  %v480_v37 = vsel %vm390_vm0, %v478_v8, %v479_v60 }
  0xab   :  { %9401 = vmatprep.mubr.msk.bf16.mxu1 %vm10190_vm2, %v10880_v27  ;;  %v10922_v27 = vld [vmem:[#allocation4 + $0x1c8] sm:$0xff]  ;;  %v481_v22 = vrot.slane %v10962_v54, 1 }
  0xac   :  { %v476_v52 = vrot.slane %v10922_v27, 1 }
  0xb0   :  { %7844 = vmatmul.mubr.msk.bf16.gmra.mrb[28].mxu0 %vm10400_vm5, %v10910_v44 }
  0xb1   :  { %1318 = vmatprep.mubr.bf16.mxu0 %v15954_v38 }
  0xb2   :  { %9402 = vmatmul.mubr.msk.bf16.gmra.mrb[44].mxu1 %vm10190_vm2, %v10930_v4  ;;  %v471_v4 = vsel %vm390_vm0, %v15959_v43, %v15958_v63  ;;  %v15965_v63 = vld [vmem:[#allocation21_spill] sm:$0xff] }
  0xb3   :  { %9405 = vmatprep.mubr.msk.bf16.mxu1 %vm10190_vm2, %v10934_v33  ;;  %v15960_v33 = vmov %v15955_v48  ;;  %v10972_v47 = vpack.c.bf16 %v15962_v12, %v471_v4  ;;  %v15964_v48 = vld [vmem:[#allocation23_spill] sm:$0xff]  ;;  %v474_v4 = vsel %vm390_vm0, %v472_v46, %v473_v11  ;;  %v11002_v46 = vld [vmem:[#allocation4 + $0x1f8] sm:$0xff] }
  0xb4   :  { %v10968_v9 = vpack.c.bf16 %v15960_v33, %v468_v50  ;;  %v482_v33 = vrot.slane %v10964_v6, 1  ;;  %v477_v50 = vsel %vm390_vm0, %v475_v21, %v476_v52  ;;  %v10989_v43 = vpack.c.bf16 %v473_v11, %v474_v4 }
  0xb5   :  { %15963 = vst [vmem:[#allocation86_spill] sm:$0xff] %v10972_v47  ;;  %v10991_v12 = vpack.c.bf16 %v476_v52, %v477_v50  ;;  %v11009_v21 = vpack.c.bf16 %v479_v60, %v480_v37  ;;  %v485_v50 = vrot.slane %v11002_v46, 1  ;;  %v9875_v37 = vld [vmem:[#allocation7 + $0x180] sm:$0xff]  }
  0xb6   :  { %15961 = vst [vmem:[#allocation43_spill] sm:$0xff] %v10968_v9  ;;  %15966 = vst [vmem:[#allocation87_spill] sm:$0xff] %v10989_v43  ;;  %v483_v11 = vsel %vm390_vm0, %v481_v22, %v482_v33  ;;  %v15975_v22 = vld [vmem:[#allocation35_spill] sm:$0xff] }
  0xb7   :  { %15967 = vst [vmem:[#allocation88_spill] sm:$0xff] %v10991_v12  ;;  %15970 = vst [vmem:[#allocation89_spill] sm:$0xff] %v11009_v21  ;;  %v11011_v52 = vpack.c.bf16 %v482_v33, %v483_v11  ;;  %v15976_v33 = vld [vmem:[#allocation30_spill] sm:$0xff]  ;;  %v15977_v11 = vld [vmem:[#allocation37_spill] sm:$0xff] }
  0xb8   :  { %7848 = vmatmul.mubr.msk.bf16.gmra.mrb[32].mxu0 %vm10400_vm5, %v15964_v48 }
  0xb9   :  { %1326 = vmatprep.mubr.bf16.mxu0 %v15965_v63  ;;  %15971 = vst [vmem:[#allocation90_spill] sm:$0xff] %v11011_v52 }
  0xba   :  { %9406 = vmatmul.mubr.msk.bf16.gmra.mrb[48].mxu1 %vm10190_vm2, %v10968_v9  ;;  %v15969_v9 = vld [vmem:[#allocation22_spill] sm:$0xff] }
  0xbb   :  { %9409 = vmatprep.mubr.msk.bf16.mxu1 %vm10190_vm2, %v10972_v47  ;;  %v11000_v47 = vld [vmem:[#allocation4 + $0x1f0] sm:$0xff] }
  0xbc   :  { %v484_v4 = vrot.slane %v11000_v47, 1 }
  0xbe   :  { %v486_v8 = vsel %vm390_vm0, %v484_v4, %v485_v50  ;;  %v9885_v4 = vld [vmem:[#allocation7 + $0xb8] sm:$0xff]  }
  0xbf   :  { %v11026_v60 = vpack.c.bf16 %v485_v50, %v486_v8  ;;  %v15978_v50 = vld [vmem:[#allocation32_spill] sm:$0xff]  ;;  %9435 = vmatprep.subr.bf16.mxu0 %v9885_v4  ;;  %v15979_v8 = vld [vmem:[#allocation14_spill] sm:$0xff] }
  0xc0   :  { %7852 = vmatmul.mubr.msk.bf16.gmra.mrb[36].mxu0 %vm10400_vm5, %v15968_v42 }
  0xc1   :  { %1334 = vmatprep.mubr.bf16.mxu0 %v15969_v9  ;;  %15974 = vst [vmem:[#allocation91_spill] sm:$0xff] %v11026_v60  ;;  %9436 = vmatpush3.bf16.msra.mxu0 %v9885_v4  ;;  %v15984_v4 = vld [vmem:[#allocation40_spill] sm:$0xff] }
  0xc2   :  { %9410 = vmatmul.mubr.msk.bf16.gmra.mrb[52].mxu1 %vm10190_vm2, %v10989_v43  ;;  %v15972_v43 = vld [vmem:[#allocation28_spill] sm:$0xff] }
  0xc3   :  { %9413 = vmatprep.mubr.msk.bf16.mxu1 %vm10190_vm2, %v10991_v12  ;;  %v15981_v12 = vld [vmem:[#allocation36_spill] sm:$0xff] }
  0xc8   :  { %7856 = vmatmul.mubr.msk.bf16.gmra.mrb[40].mxu0 %vm10400_vm5, %v15972_v43 }
  0xc9   :  { %1342 = vmatprep.mubr.bf16.mxu0 %v15973_v7 }
  0xca   :  { %9414 = vmatmul.mubr.msk.bf16.gmra.mrb[56].mxu1 %vm10190_vm2, %v11009_v21  ;;  %v15980_v21 = vld [vmem:[#allocation45_spill] sm:$0xff] }
  0xcb   :  { %9417 = vmatprep.mubr.msk.bf16.mxu1 %vm10190_vm2, %v11011_v52  ;;  %v9877_v52 = vld [vmem:[#allocation7 + $0x188] sm:$0xff]  }
  0xd0   :  { %7860 = vmatmul.mubr.msk.bf16.gmra.mrb[44].mxu0 %vm10400_vm5, %v15975_v22 }
  0xd1   :  { %1350 = vmatprep.mubr.bf16.mxu0 %v15976_v33 }
  0xd2   :  { %9418 = vmatmul.mubr.msk.bf16.gmra.mrb[60].mxu1 %vm10190_vm2, %v11026_v60  ;;  %v9878_v60 = vld [vmem:[#allocation7 + $0x190] sm:$0xff]  }
  0xd3   :  { %1976 = vmatprep.mubr.bf16.mxu1 %v15829_v51 }
  0xd8   :  { %7864 = vmatmul.mubr.msk.bf16.gmra.mrb[48].mxu0 %vm10400_vm5, %v15977_v11 }
  0xd9   :  { %1358 = vmatprep.mubr.bf16.mxu0 %v15978_v50 }
  0xda   :  { %1977 = vmatmul.mubr.bf16.vlgmr.msra.gmra.mrb[64].mxu1 %v15829_v51 }
  0xdb   :  { %1984 = vmatprep.mubr.bf16.mxu1 %v15979_v8  ;;  %2813 = vmatpush1.bf16.msra.mxu1 %v9875_v37  ;;  %v15983_v8 = vld [vmem:[#allocation34_spill] sm:$0xff]  ;;  %v9880_v37 = vld [vmem:[#allocation7 + $0x198] sm:$0xff]  }
  0xdc   :  { %2814 = vmatprep.subr.bf16.mxu1 %v15829_v51 }
  0xdf   :  { %2815 = vmatpush1.bf16.msra.mxu1 %v9877_v52  ;;  %v9881_v52 = vld [vmem:[#allocation7 + $0x1a0] sm:$0xff]  }
  0xe0   :  { %7868 = vmatmul.mubr.msk.bf16.gmra.mrb[52].mxu0 %vm10400_vm5, %v15980_v21  ;;  %2816 = vmatprep.subr.bf16.mxu1 %v15829_v51 }
  0xe1   :  { %1366 = vmatprep.mubr.bf16.mxu0 %v15981_v12 }
  0xe2   :  { %8040 = vmatmul.mubr.msk.bf16.gmra.mrb[68].mxu1 %vm10400_vm5, %v15982_v61  ;;  %v9883_v61 = vld [vmem:[#allocation7 + $0x1a8] sm:$0xff]  }
  0xe3   :  { %1992 = vmatprep.mubr.bf16.mxu1 %v15983_v8  ;;  %2817 = vmatpush1.bf16.msra.mxu1 %v9878_v60  ;;  %v9884_v60 = vld [vmem:[#allocation7 + $0x1b0] sm:$0xff]  }
  0xe4   :  { %2818 = vmatprep.subr.bf16.mxu1 %v15829_v51 }
  0xe7   :  { %2819 = vmatpush1.bf16.msra.mxu1 %v9880_v37  ;;  %v15985_v37 = vld [vmem:[#allocation41_spill] sm:$0xff] }
  0xe8   :  { %7872 = vmatmul.mubr.msk.bf16.gmra.mrb[56].mxu0 %vm10400_vm5, %v10603_v56  ;;  %2820 = vmatprep.subr.bf16.mxu1 %v15829_v51 }
  0xe9   :  { %1374 = vmatprep.mubr.bf16.mxu0 %v15984_v4  ;;  %v15986_v4 = vld [vmem:[#allocation44_spill] sm:$0xff] }
  0xea   :  { %8044 = vmatmul.mubr.msk.bf16.gmra.mrb[72].mxu1 %vm10400_vm5, %v10549_v16 }
  0xeb   :  { %2000 = vmatprep.mubr.bf16.mxu1 %v10589_v3  ;;  %2821 = vmatpush1.bf16.msra.mxu1 %v9881_v52  ;;  %v9886_v52 = vld [vmem:[#allocation7 + $0x1b8] sm:$0xff]  }
  0xec   :  { %2822 = vmatprep.subr.bf16.mxu1 %v15829_v51 }
  0xef   :  { %2823 = vmatpush1.bf16.msra.mxu1 %v9883_v61  ;;  %v9887_v61 = vld [vmem:[#allocation7 + $0x1c0] sm:$0xff]  }
  0xf0   :  { %7876 = vmatmul.mubr.msk.bf16.gmra.mrb[60].mxu0 %vm10400_vm5, %v10612_v29  ;;  %2824 = vmatprep.subr.bf16.mxu1 %v15829_v51  ;;  %v11077_v29 = vld [vmem:[#allocation7 + $0x200] sm:$0xff]  }
  0xf1   :  { %1382 = vmatprep.mubr.bf16.mxu0 %v15985_v37  ;;  %9501 = vmatprep.subr.bf16.mxu0 %v11077_v29 }
  0xf2   :  { %8048 = vmatmul.mubr.msk.bf16.gmra.mrb[76].mxu1 %vm10400_vm5, %v10645_v58 }
  0xf3   :  { %2008 = vmatprep.mubr.bf16.mxu1 %v10656_v30  ;;  %2825 = vmatpush1.bf16.msra.mxu1 %v9884_v60  ;;  %v9889_v60 = vld [vmem:[#allocation7 + $0x1c8] sm:$0xff]  }
  0xf4   :  { %2826 = vmatprep.subr.bf16.mxu1 %v15829_v51 }
  0xf7   :  { %2827 = vmatpush1.bf16.msra.mxu1 %v9886_v52  ;;  %v9891_v52 = vld [vmem:[#allocation7 + $0x1d0] sm:$0xff]  }
  0xf8   :  { %7880 = vmatmul.mubr.msk.bf16.gmra.mrb[64].mxu0 %vm10400_vm5, %v10621_v2  ;;  %2828 = vmatprep.subr.bf16.mxu1 %v15829_v51 }
  0xf9   :  { %1390 = vmatprep.mubr.bf16.mxu0 %v15986_v4 }
  0xfa   :  { %8052 = vmatmul.mubr.msk.bf16.gmra.mrb[80].mxu1 %vm10400_vm5, %v10697_v0  ;;  %v9895_v0 = vld [vmem:[#allocation7 + $0x1e0] sm:$0xff]  }
  0xfb   :  { %2016 = vmatprep.mubr.bf16.mxu1 %v10708_v13  ;;  %2829 = vmatpush1.bf16.msra.mxu1 %v9887_v61  ;;  %v9893_v61 = vld [vmem:[#allocation7 + $0x1d8] sm:$0xff]  }
  0xfc   :  { %2830 = vmatprep.subr.bf16.mxu1 %v15829_v51 }
  0xff   :  { %2831 = vmatpush1.bf16.msra.mxu1 %v9889_v60  ;;  %v9977_v60 = vld [vmem:[#allocation4 + $0x180] sm:$0xff] }
 0x100   :  { %7884 = vmatmul.mubr.msk.bf16.gmra.mrb[68].mxu0 %vm10400_vm5, %v10627_v55  ;;  %2832 = vmatprep.subr.bf16.mxu1 %v15829_v51 }
 0x101   :  { %1398 = vmatprep.mubr.bf16.mxu0 %v10631_v26 }
 0x102   :  { %8056 = vmatmul.mubr.msk.bf16.gmra.mrb[84].mxu1 %vm10400_vm5, %v10754_v18 }
 0x103   :  { %2024 = vmatprep.mubr.bf16.mxu1 %v10765_v57  ;;  %2833 = vmatpush1.bf16.msra.mxu1 %v9891_v52  ;;  %v9978_v52 = vld [vmem:[#allocation4 + $0x188] sm:$0xff] }
 0x104   :  { %2834 = vmatprep.subr.bf16.mxu1 %v15829_v51 }
 0x107   :  { %2835 = vmatpush1.bf16.msra.mxu1 %v9893_v61 }
 0x108   :  { %7888 = vmatmul.mubr.msk.bf16.gmra.mrb[72].mxu0 %vm10400_vm5, %v10658_v20  ;;  %2836 = vmatprep.subr.bf16.mxu1 %v15829_v51 }
 0x109   :  { %1406 = vmatprep.mubr.bf16.mxu0 %v10683_v62 }
 0x10a   :  { %8060 = vmatmul.mubr.msk.bf16.gmra.mrb[88].mxu1 %vm10400_vm5, %v10807_v23 }
 0x10b   :  { %2032 = vmatprep.mubr.bf16.mxu1 %v10817_v34  ;;  %2837 = vmatpush1.bf16.msra.mxu1 %v9895_v0  ;;  %v276_v0 = vrot.slane %v10710_v45, 7 }
 0x10c   :  { %2838 = vmatprep.subr.bf16.mxu1 %v15829_v51 }
 0x110   :  { %7892 = vmatmul.mubr.msk.bf16.gmra.mrb[76].mxu0 %vm10400_vm5, %v10712_v36 }
 0x111   :  { %1414 = vmatprep.mubr.bf16.mxu0 %v10738_v10 }
 0x112   :  { %8064 = vmatmul.mubr.msk.bf16.gmra.mrb[92].mxu1 %vm10400_vm5, %v10860_v59 }
 0x113   :  { %2040 = vmatprep.mubr.bf16.mxu1 %v10870_v41 }
 0x118   :  { %7896 = vmatmul.mubr.msk.bf16.gmra.mrb[80].mxu0 %vm10400_vm5, %v10767_v39 }
 0x119   :  { %1422 = vmatprep.mubr.bf16.mxu0 %v10793_v15 }
 0x11a   :  { %8068 = vmatmul.mubr.msk.bf16.gmra.mrb[96].mxu1 %vm10400_vm5, %v10910_v44 }
 0x11b   :  { %2048 = vmatprep.mubr.bf16.mxu1 %v15954_v38  ;;  %v271_v38 = vrot.slane %v9978_v52, 7 }
 0x120   :  { %7900 = vmatmul.mubr.msk.bf16.gmra.mrb[84].mxu0 %vm10400_vm5, %v10821_v49 }
 0x121   :  { %1430 = vmatprep.mubr.bf16.mxu0 %v10846_v28 }
 0x122   :  { %8072 = vmatmul.mubr.msk.bf16.gmra.mrb[100].mxu1 %vm10400_vm5, %v15964_v48  ;;  %v11137_v48 = vpack.c.bf16 %v9978_v52, %v9977_v60  ;;  %v9979_v52 = vld [vmem:[#allocation4 + $0x190] sm:$0xff] }
 0x123   :  { %2056 = vmatprep.mubr.bf16.mxu1 %v15965_v63  ;;  %v270_v63 = vrot.slane %v9977_v60, 7  ;;  %v273_v23 = vrot.slane %v9979_v52, 7 }
 0x124   :  { %15987 = vst [vmem:[#allocation14_spill] sm:$0xff] %v11137_v48 }
 0x128   :  { %7904 = vmatmul.mubr.msk.bf16.gmra.mrb[88].mxu0 %vm10400_vm5, %v10872_v1 }
 0x129   :  { %1438 = vmatprep.mubr.bf16.mxu0 %v10896_v17 }
 0x12a   :  { %8076 = vmatmul.mubr.msk.bf16.gmra.mrb[104].mxu1 %vm10400_vm5, %v15968_v42  ;;  %v9980_v42 = vld [vmem:[#allocation4 + $0x198] sm:$0xff] }
 0x12b   :  { %2064 = vmatprep.mubr.bf16.mxu1 %v15969_v9  ;;  %v272_v9 = vsel %vm197_vm3, %v270_v63, %v271_v38  ;;  %v11154_v34 = vpack.c.bf16 %v9980_v42, %v9979_v52  ;;  %v274_v57 = vrot.slane %v9980_v42, 7  ;;  %v277_v52 = vrot.slane %v10750_v25, 7 }
 0x12c   :  { %v11139_v44 = vpop.f32.mrb[0].mxu1  ;;  %v11152_v60 = vpack.c.bf16 %v272_v9, %v270_v63  ;;  %v11178_v63 = vpack.c.bf16 %v10750_v25, %v10710_v45  ;;  %v11203_v25 = vpack.c.bf16 %v10918_v31, %v10819_v40 }
 0x12d   :  { %v1545_v41 = vpop.f32.mrb[1].mxu1  ;;  %15989 = vst [vmem:[#allocation41_spill] sm:$0xff] %v11154_v34  ;;  %v275_v9 = vsel %vm197_vm3, %v273_v23, %v274_v57 }
 0x12e   :  { %v11141_v61 = vpop.f32.mrb[2].mxu1  ;;  %15988 = vst [vmem:[#allocation33_spill] sm:$0xff] %v11152_v60  ;;  %v11174_v42 = vpack.c.bf16 %v275_v9, %v273_v23  ;;  %15991 = vst [vmem:[#allocation93_spill] sm:$0xff] %v11178_v63  ;;  %v278_v9 = vsel %vm197_vm3, %v276_v0, %v277_v52  ;;  %v9897_v52 = vld [vmem:[#allocation7 + $0x1e8] sm:$0xff]  }
 0x12f   :  { %v1548_v59 = vpop.f32.mrb[3].mxu1  ;;  %v11199_v45 = vpack.c.bf16 %v278_v9, %v276_v0  ;;  %15993 = vst [vmem:[#allocation95_spill] sm:$0xff] %v11203_v25  ;;  %2839 = vmatpush1.bf16.msra.mxu1 %v9897_v52  ;;  %v11231_v52 = vpack.c.bf16 %v10922_v27, %v10920_v24 }
 0x130   :  { %7908 = vmatmul.mubr.msk.bf16.gmra.mrb[92].mxu0 %vm10400_vm5, %v10926_v5  ;;  %15990 = vst [vmem:[#allocation92_spill] sm:$0xff] %v11174_v42  ;;  %2840 = vmatprep.subr.bf16.mxu1 %v15829_v51 }
 0x131   :  { %1446 = vmatprep.mubr.bf16.mxu0 %v11137_v48  ;;  %15992 = vst [vmem:[#allocation94_spill] sm:$0xff] %v11199_v45  ;;  %15995 = vst [vmem:[#allocation97_spill] sm:$0xff] %v11231_v52 }
 0x132   :  { %8080 = vmatmul.mubr.msk.bf16.gmra.mrb[108].mxu1 %vm10400_vm5, %v15972_v43 }
 0x133   :  { %2072 = vmatprep.mubr.bf16.mxu1 %v15973_v7 }
 0x134   :  { %v11156_v18 = vpop.f32.mrb[4].mxu1 }
 0x135   :  { %v11158_v13 = vpop.f32.mrb[5].mxu1 }
 0x136   :  { %v11160_v38 = vpop.f32.mrb[6].mxu1 }
 0x137   :  { %v11165_v7 = vpop.f32.mrb[7].mxu1 }
 0x138   :  { %7912 = vmatmul.mubr.msk.bf16.gmra.mrb[96].mxu0 %vm10400_vm5, %v11152_v60 }
 0x139   :  { %1454 = vmatprep.mubr.bf16.mxu0 %v11154_v34 }
 0x13a   :  { %8084 = vmatmul.mubr.msk.bf16.gmra.mrb[112].mxu1 %vm10400_vm5, %v15975_v22  ;;  %v280_v22 = vrot.slane %v10918_v31, 7 }
 0x13b   :  { %2080 = vmatprep.mubr.bf16.mxu1 %v15976_v33  ;;  %v279_v33 = vrot.slane %v10819_v40, 7 }
 0x13c   :  { %v11182_v43 = vpop.f32.mrb[8].mxu1 }
 0x13d   :  { %v11184_v57 = vpop.f32.mrb[9].mxu1  ;;  %v281_v40 = vsel %vm197_vm3, %v279_v33, %v280_v22  ;;  %v282_v22 = vrot.slane %v10920_v24, 7 }
 0x13e   :  { %v11186_v30 = vpop.f32.mrb[10].mxu1 }
 0x13f   :  { %v11191_v23 = vpop.f32.mrb[11].mxu1 }
 0x140   :  { %7916 = vmatmul.mubr.msk.bf16.gmra.mrb[100].mxu0 %vm10400_vm5, %v11174_v42 }
 0x141   :  { %1462 = vmatprep.mubr.bf16.mxu0 %v11178_v63 }
 0x142   :  { %8088 = vmatmul.mubr.msk.bf16.gmra.mrb[116].mxu1 %vm10400_vm5, %v15977_v11  ;;  %v11227_v11 = vpack.c.bf16 %v281_v40, %v279_v33 }
 0x143   :  { %2088 = vmatprep.mubr.bf16.mxu1 %v15978_v50 }
 0x144   :  { %v11207_v58 = vpop.f32.mrb[12].mxu1  ;;  %15994 = vst [vmem:[#allocation96_spill] sm:$0xff] %v11227_v11 }
 0x145   :  { %v11209_v3 = vpop.f32.mrb[13].mxu1 }
 0x146   :  { %v11211_v16 = vpop.f32.mrb[14].mxu1 }
 0x147   :  { %v11216_v0 = vpop.f32.mrb[15].mxu1 }
 0x148   :  { %7920 = vmatmul.mubr.msk.bf16.gmra.mrb[104].mxu0 %vm10400_vm5, %v11199_v45 }
 0x149   :  { %1470 = vmatprep.mubr.bf16.mxu0 %v11203_v25  ;;  %v283_v25 = vrot.slane %v10922_v27, 7  ;;  %v9899_v27 = vld [vmem:[#allocation7 + $0x1f0] sm:$0xff]  }
 0x14a   :  { %8092 = vmatmul.mubr.msk.bf16.gmra.mrb[120].mxu1 %vm10400_vm5, %v15980_v21 }
 0x14b   :  { %v1256_v31 = vpop.f32.mrb[0].mxu0  ;;  %2096 = vmatprep.mubr.bf16.mxu1 %v15981_v12  ;;  %v284_v24 = vsel %vm197_vm3, %v282_v22, %v283_v25  ;;  %2841 = vmatpush1.bf16.msra.mxu1 %v9899_v27  ;;  %v11262_v25 = vpack.c.bf16 %v10955_v53, %v10924_v14  ;;  %v9900_v27 = vld [vmem:[#allocation7 + $0x1f8] sm:$0xff]  }
 0x14c   :  { %v11225_v9 = vadd.f32 %v1545_v41, %v1256_v31  ;;  %v1258_v50 = vpop.f32.mrb[1].mxu0  ;;  %2842 = vmatprep.subr.bf16.mxu1 %v15829_v51  ;;  %v285_v31 = vrot.slane %v10924_v14, 7 }
 0x14d   :  { %v1259_v8 = vpop.f32.mrb[2].mxu0  ;;  %v11235_v45 = vpop.f32.mrb[16].mxu1  ;;  %15997 = vst [vmem:[#allocation99_spill] sm:$0xff] %v11262_v25 }
 0x14e   :  { %v11237_v21 = vadd.f32 %v1548_v59, %v1259_v8  ;;  %v1261_v63 = vpop.f32.mrb[3].mxu0  ;;  %v11239_v12 = vpop.f32.mrb[17].mxu1 }
 0x14f   :  { %v11241_v41 = vpop.f32.mrb[18].mxu1  ;;  %v11257_v63 = vpack.c.bf16 %v284_v24, %v282_v22  ;;  %2843 = vmatpush1.bf16.msra.mxu1 %v9900_v27 }
 0x150   :  { %7924 = vmatmul.mubr.msk.bf16.gmra.mrb[108].mxu0 %vm10400_vm5, %v11227_v11  ;;  %v11246_v33 = vpop.f32.mrb[19].mxu1 }
 0x151   :  { %1478 = vmatprep.mubr.bf16.mxu0 %v11231_v52  ;;  %15996 = vst [vmem:[#allocation98_spill] sm:$0xff] %v11257_v63 }
 0x152   :  { %8096 = vmatmul.mubr.msk.bf16.gmra.mrb[124].mxu1 %vm10400_vm5, %v10603_v56  ;;  %v286_v56 = vrot.slane %v10955_v53, 7 }
 0x153   :  { %v1264_v59 = vpop.f32.mrb[4].mxu0  ;;  %2104 = vmatprep.mubr.bf16.mxu1 %v15829_v51 }
 0x154   :  { %v11255_v50 = vadd.f32 %v11139_v44, %v1264_v59  ;;  %v1266_v8 = vpop.f32.mrb[5].mxu0  ;;  %v287_v14 = vsel %vm197_vm3, %v285_v31, %v286_v56  ;;  %v289_v56 = vrot.slane %v10964_v6, 7 }
 0x155   :  { %v1267_v40 = vpop.f32.mrb[6].mxu0  ;;  %v11266_v52 = vpop.f32.mrb[20].mxu1  ;;  %v11287_v27 = vpack.c.bf16 %v287_v14, %v285_v31 }
 0x156   :  { %v11269_v44 = vadd.f32 %v11141_v61, %v1267_v40  ;;  %v1269_v59 = vpop.f32.mrb[7].mxu0  ;;  %v11271_v22 = vpop.f32.mrb[21].mxu1 }
 0x157   :  { %v11273_v24 = vpop.f32.mrb[22].mxu1  ;;  %15999 = vst [vmem:[#allocation101_spill] sm:$0xff] %v11287_v27 }
 0x158   :  { %15998 = vst [vmem:[#allocation100_spill] sm:$0xff] %v11269_v44  ;;  %7928 = vmatmul.mubr.msk.bf16.gmra.mrb[112].mxu0 %vm10400_vm5, %v11257_v63  ;;  %v11278_v8 = vpop.f32.mrb[23].mxu1  ;;  %v11291_v63 = vpack.c.bf16 %v10964_v6, %v10962_v54 }
 0x159   :  { %1486 = vmatprep.mubr.bf16.mxu0 %v11262_v25  ;;  %v288_v25 = vrot.slane %v10962_v54, 7 }
 0x15a   :  { %2105 = vmatmul.mubr.bf16.gmra.mrb[128].mxu1 %v15829_v51  ;;  %16000 = vst [vmem:[#allocation102_spill] sm:$0xff] %v11291_v63 }
 0x15b   :  { %v1272_v53 = vpop.f32.mrb[8].mxu0  ;;  %2112 = vmatprep.mubr.bf16.mxu1 %v15985_v37  ;;  %v290_v6 = vsel %vm197_vm3, %v288_v25, %v289_v56  ;;  %v291_v56 = vrot.slane %v11000_v47, 7 }
 0x15c   :  { %v11285_v61 = vadd.f32 %v11158_v13, %v1272_v53  ;;  %v1274_v40 = vpop.f32.mrb[9].mxu0 }
 0x15d   :  { %v1275_v59 = vpop.f32.mrb[10].mxu0  ;;  %v11295_v11 = vpop.f32.mrb[24].mxu1  ;;  %v11318_v40 = vpack.c.bf16 %v290_v6, %v288_v25 }
 0x15e   :  { %v11298_v44 = vadd.f32 %v11165_v7, %v1275_v59  ;;  %v1277_v37 = vpop.f32.mrb[11].mxu0  ;;  %v11300_v13 = vpop.f32.mrb[25].mxu1 }
 0x15f   :  { %v11302_v53 = vpop.f32.mrb[26].mxu1  ;;  %16001 = vst [vmem:[#allocation103_spill] sm:$0xff] %v11318_v40  ;;  %v11322_v37 = vpack.c.bf16 %v11002_v46, %v11000_v47 }
 0x160   :  { %7932 = vmatmul.mubr.msk.bf16.gmra.mrb[116].mxu0 %vm10400_vm5, %v11287_v27  ;;  %v11307_v31 = vpop.f32.mrb[27].mxu1 }
 0x161   :  { %1494 = vmatprep.mubr.bf16.mxu0 %v11291_v63  ;;  %16002 = vst [vmem:[#allocation104_spill] sm:$0xff] %v11322_v37  ;;  %v292_v63 = vrot.slane %v11002_v46, 7 }
 0x162   :  { %8100 = vmatmul.mubr.msk.bf16.gmra.mrb[132].mxu1 %vm10400_vm5, %v10621_v2 }
 0x163   :  { %v1280_v7 = vpop.f32.mrb[12].mxu0  ;;  %2120 = vmatprep.mubr.bf16.mxu1 %v15986_v4  ;;  %v293_v47 = vsel %vm197_vm3, %v291_v56, %v292_v63 }
 0x164   :  { %v11316_v54 = vadd.f32 %v11156_v18, %v1280_v7  ;;  %v1282_v14 = vpop.f32.mrb[13].mxu0  ;;  %v11349_v6 = vpack.c.bf16 %v293_v47, %v291_v56 }
 0x165   :  { %v1283_v59 = vpop.f32.mrb[14].mxu0  ;;  %v11326_v27 = vpop.f32.mrb[28].mxu1 }
 0x166   :  { %v11329_v2 = vadd.f32 %v11160_v38, %v1283_v59  ;;  %v1285_v4 = vpop.f32.mrb[15].mxu0  ;;  %v11331_v18 = vpop.f32.mrb[29].mxu1  ;;  %16004 = vst [vmem:[#allocation106_spill] sm:$0xff] %v11349_v6 }
 0x167   :  { %v11333_v7 = vpop.f32.mrb[30].mxu1 }
 0x168   :  { %16003 = vst [vmem:[#allocation105_spill] sm:$0xff] %v11329_v2  ;;  %7936 = vmatmul.mubr.msk.bf16.gmra.mrb[120].mxu0 %vm10400_vm5, %v11318_v40  ;;  %v11338_v25 = vpop.f32.mrb[31].mxu1 }
 0x169   :  { %1502 = vmatprep.mubr.bf16.mxu0 %v11322_v37 }
 0x16a   :  { %8104 = vmatmul.mubr.msk.bf16.gmra.mrb[136].mxu1 %vm10400_vm5, %v10627_v55 }
 0x16b   :  { %v1288_v46 = vpop.f32.mrb[16].mxu0  ;;  %2128 = vmatprep.mubr.bf16.mxu1 %v10631_v26 }
 0x16c   :  { %v11347_v4 = vadd.f32 %v11184_v57, %v1288_v46  ;;  %v1290_v38 = vpop.f32.mrb[17].mxu0 }
 0x16d   :  { %v1291_v14 = vpop.f32.mrb[18].mxu0  ;;  %v11351_v59 = vpop.f32.mrb[32].mxu1 }
 0x16e   :  { %v11354_v37 = vadd.f32 %v11191_v23, %v1291_v14  ;;  %v1293_v63 = vpop.f32.mrb[19].mxu0  ;;  %v11356_v40 = vpop.f32.mrb[33].mxu1 }
 0x16f   :  { %v11358_v2 = vpop.f32.mrb[34].mxu1 }
 0x170   :  { %7940 = vmatmul.mubr.msk.bf16.gmra.mrb[124].mxu0 %vm10400_vm5, %v11349_v6  ;;  %v11363_v57 = vpop.f32.mrb[35].mxu1  ;;  %v9890_v6 = vld [vmem:[#allocation7 + $0x208] sm:$0xff]  }
 0x171   :  { %9437 = vmatprep.mubr.bf16.mxu0 %v15829_v51 }
 0x172   :  { %8108 = vmatmul.mubr.msk.bf16.gmra.mrb[140].mxu1 %vm10400_vm5, %v10658_v20  ;;  %v16007_v20 = vld [vmem:[#allocation15_spill] sm:$0xff] }
 0x173   :  { %v1296_v56 = vpop.f32.mrb[20].mxu0  ;;  %2136 = vmatprep.mubr.bf16.mxu1 %v10683_v62 }
 0x174   :  { %v11371_v23 = vadd.f32 %v11182_v43, %v1296_v56  ;;  %v1298_v47 = vpop.f32.mrb[21].mxu0  ;;  %v16009_v43 = vld [vmem:[#allocation16_spill] sm:$0xff] }
 0x175   :  { %v1299_v46 = vpop.f32.mrb[22].mxu0  ;;  %v11373_v38 = vpop.f32.mrb[36].mxu1 }
 0x176   :  { %16005 = vst [vmem:[#allocation107_spill] sm:$0xff] %v11373_v38  ;;  %v11376_v14 = vadd.f32 %v11186_v30, %v1299_v46  ;;  %v1301_v63 = vpop.f32.mrb[23].mxu0  ;;  %v11378_v26 = vpop.f32.mrb[37].mxu1  ;;  %v9892_v30 = vld [vmem:[#allocation7 + $0x210] sm:$0xff]  }
 0x177   :  { %v11380_v55 = vpop.f32.mrb[38].mxu1 }
 0x178   :  { %16006 = vst [vmem:[#allocation108_spill] sm:$0xff] %v11380_v55  ;;  %9438 = vmatmul.mubr.msk.bf16.vlgmr.msra.gmra.mrb[128].mxu0 %vm10190_vm2, %v16007_v20  ;;  %v11385_v62 = vpop.f32.mrb[39].mxu1 }
 0x179   :  { %16008 = vst [vmem:[#allocation15_spill] sm:$0xff] %v11385_v62  ;;  %9502 = vmatpush3.bf16.msra.mxu0 %v11077_v29  ;;  %9441 = vmatprep.mubr.msk.bf16.mxu0 %vm10190_vm2, %v16009_v43  ;;  %v16012_v62 = vld [vmem:[#allocation17_spill] sm:$0xff] }
 0x17a   :  { %8112 = vmatmul.mubr.msk.bf16.gmra.mrb[144].mxu1 %vm10400_vm5, %v10712_v36  ;;  %9503 = vmatprep.subr.bf16.mxu0 %v9890_v6  ;;  %v9894_v36 = vld [vmem:[#allocation7 + $0x218] sm:$0xff]  }
 0x17b   :  { %v1304_v56 = vpop.f32.mrb[24].mxu0  ;;  %2144 = vmatprep.mubr.bf16.mxu1 %v10738_v10 }
 0x17c   :  { %v11396_v47 = vadd.f32 %v11209_v3, %v1304_v56  ;;  %v1306_v20 = vpop.f32.mrb[25].mxu0  ;;  %v16013_v56 = vld [vmem:[#allocation19_spill] sm:$0xff] }
 0x17d   :  { %v1307_v46 = vpop.f32.mrb[26].mxu0  ;;  %9504 = vmatpush3.bf16.msra.mxu0 %v9890_v6  ;;  %v11398_v29 = vpop.f32.mrb[40].mxu1 }
 0x17e   :  { %16010 = vst [vmem:[#allocation109_spill] sm:$0xff] %v11398_v29  ;;  %v11401_v63 = vadd.f32 %v11216_v0, %v1307_v46  ;;  %v1309_v43 = vpop.f32.mrb[27].mxu0  ;;  %v11403_v55 = vpop.f32.mrb[41].mxu1  ;;  %9505 = vmatprep.subr.bf16.mxu0 %v9892_v30  ;;  %v9896_v0 = vld [vmem:[#allocation7 + $0x220] sm:$0xff]   ;;  %v16016_v29 = vld [vmem:[#allocation20_spill] sm:$0xff] }
 0x17f   :  { %v11405_v38 = vpop.f32.mrb[42].mxu1 }
 0x180   :  { %16011 = vst [vmem:[#allocation110_spill] sm:$0xff] %v11405_v38  ;;  %9442 = vmatmul.mubr.msk.bf16.gmra.mrb[132].mxu0 %vm10190_vm2, %v16012_v62  ;;  %v11410_v3 = vpop.f32.mrb[43].mxu1 }
 0x181   :  { %9445 = vmatprep.mubr.msk.bf16.mxu0 %vm10190_vm2, %v16013_v56  ;;  %9506 = vmatpush3.bf16.msra.mxu0 %v9892_v30 }
 0x182   :  { %8116 = vmatmul.mubr.msk.bf16.gmra.mrb[148].mxu1 %vm10400_vm5, %v10767_v39  ;;  %9507 = vmatprep.subr.bf16.mxu0 %v9894_v36  ;;  %v9898_v39 = vld [vmem:[#allocation7 + $0x228] sm:$0xff]  }
 0x183   :  { %v1312_v6 = vpop.f32.mrb[28].mxu0  ;;  %2152 = vmatprep.mubr.bf16.mxu1 %v10793_v15 }
 0x184   :  { %v11420_v43 = vadd.f32 %v11207_v58, %v1312_v6  ;;  %v1314_v20 = vpop.f32.mrb[29].mxu0  ;;  %v16017_v6 = vld [vmem:[#allocation24_spill] sm:$0xff] }
 0x185   :  { %v1315_v46 = vpop.f32.mrb[30].mxu0  ;;  %v11422_v10 = vpop.f32.mrb[44].mxu1  ;;  %9508 = vmatpush3.bf16.msra.mxu0 %v9894_v36 }
 0x186   :  { %16014 = vst [vmem:[#allocation111_spill] sm:$0xff] %v11422_v10  ;;  %v11425_v56 = vadd.f32 %v11211_v16, %v1315_v46  ;;  %v1317_v30 = vpop.f32.mrb[31].mxu0  ;;  %v11427_v62 = vpop.f32.mrb[45].mxu1  ;;  %9509 = vmatprep.subr.bf16.mxu0 %v9896_v0  ;;  %v9901_v16 = vld [vmem:[#allocation7 + $0x230] sm:$0xff]  }
 0x187   :  { %v11429_v38 = vpop.f32.mrb[46].mxu1 }
 0x188   :  { %16015 = vst [vmem:[#allocation112_spill] sm:$0xff] %v11429_v38  ;;  %9446 = vmatmul.mubr.msk.bf16.gmra.mrb[136].mxu0 %vm10190_vm2, %v16016_v29  ;;  %v11434_v58 = vpop.f32.mrb[47].mxu1  ;;  %v16020_v29 = vld [vmem:[#allocation26_spill] sm:$0xff] }
 0x189   :  { %9449 = vmatprep.mubr.msk.bf16.mxu0 %vm10190_vm2, %v16017_v6  ;;  %9510 = vmatpush3.bf16.msra.mxu0 %v9896_v0 }
 0x18a   :  { %8120 = vmatmul.mubr.msk.bf16.gmra.mrb[152].mxu1 %vm10400_vm5, %v10821_v49  ;;  %9511 = vmatprep.subr.bf16.mxu0 %v9898_v39  ;;  %v9902_v49 = vld [vmem:[#allocation7 + $0x238] sm:$0xff]  }
 0x18b   :  { %v1320_v36 = vpop.f32.mrb[32].mxu0  ;;  %2160 = vmatprep.mubr.bf16.mxu1 %v10846_v28 }
 0x18c   :  { %v11444_v20 = vadd.f32 %v11239_v12, %v1320_v36  ;;  %v1322_v46 = vpop.f32.mrb[33].mxu0  ;;  %v16021_v36 = vld [vmem:[#allocation29_spill] sm:$0xff] }
 0x18d   :  { %v1323_v30 = vpop.f32.mrb[34].mxu0  ;;  %v11446_v15 = vpop.f32.mrb[48].mxu1  ;;  %9512 = vmatpush3.bf16.msra.mxu0 %v9898_v39 }
 0x18e   :  { %16018 = vst [vmem:[#allocation113_spill] sm:$0xff] %v11446_v15  ;;  %v11449_v38 = vadd.f32 %v11246_v33, %v1323_v30  ;;  %v1325_v0 = vpop.f32.mrb[35].mxu0  ;;  %v11451_v10 = vpop.f32.mrb[49].mxu1  ;;  %9513 = vmatprep.subr.bf16.mxu0 %v9901_v16  ;;  %v16025_v15 = vld [vmem:[#allocation31_spill] sm:$0xff] }
 0x18f   :  { %v11453_v6 = vpop.f32.mrb[50].mxu1 }
 0x190   :  { %16019 = vst [vmem:[#allocation114_spill] sm:$0xff] %v11453_v6  ;;  %9450 = vmatmul.mubr.msk.bf16.gmra.mrb[140].mxu0 %vm10190_vm2, %v16020_v29  ;;  %v11458_v12 = vpop.f32.mrb[51].mxu1 }
 0x191   :  { %9453 = vmatprep.mubr.msk.bf16.mxu0 %vm10190_vm2, %v16021_v36  ;;  %9514 = vmatpush3.bf16.msra.mxu0 %v9901_v16 }
 0x192   :  { %8124 = vmatmul.mubr.msk.bf16.gmra.mrb[156].mxu1 %vm10400_vm5, %v10872_v1  ;;  %9515 = vmatprep.subr.bf16.mxu0 %v9902_v49 }
 0x193   :  { %v1328_v39 = vpop.f32.mrb[36].mxu0  ;;  %2168 = vmatprep.mubr.bf16.mxu1 %v10896_v17 }
 0x194   :  { %v11468_v33 = vadd.f32 %v11235_v45, %v1328_v39  ;;  %v1330_v46 = vpop.f32.mrb[37].mxu0  ;;  %v16027_v39 = vld [vmem:[#allocation38_spill] sm:$0xff] }
 0x195   :  { %v1331_v30 = vpop.f32.mrb[38].mxu0  ;;  %v11470_v0 = vpop.f32.mrb[52].mxu1  ;;  %9516 = vmatpush3.bf16.msra.mxu0 %v9902_v49 }
 0x196   :  { %16022 = vst [vmem:[#allocation26_spill] sm:$0xff] %v11470_v0  ;;  %v11473_v28 = vadd.f32 %v11241_v41, %v1331_v30  ;;  %v1333_v16 = vpop.f32.mrb[39].mxu0  ;;  %v11475_v6 = vpop.f32.mrb[53].mxu1  ;;  %4676 = vmatprep.subr.bf16.mxu0 %v15829_v51 }
 0x197   :  { %16023 = vst [vmem:[#allocation29_spill] sm:$0xff] %v11475_v6  ;;  %v11478_v1 = vpop.f32.mrb[54].mxu1  ;;  %v16031_v6 = vld [vmem:[#allocation39_spill] sm:$0xff] }
 0x198   :  { %16024 = vst [vmem:[#allocation115_spill] sm:$0xff] %v11478_v1  ;;  %9454 = vmatmul.mubr.msk.bf16.gmra.mrb[144].mxu0 %vm10190_vm2, %v16025_v15  ;;  %v11483_v45 = vpop.f32.mrb[55].mxu1 }
 0x199   :  { %16026 = vst [vmem:[#allocation31_spill] sm:$0xff] %v11483_v45  ;;  %9457 = vmatprep.mubr.msk.bf16.mxu0 %vm10190_vm2, %v16027_v39 }
 0x19a   :  { %8128 = vmatmul.mubr.msk.bf16.gmra.mrb[160].mxu1 %vm10400_vm5, %v10926_v5 }
 0x19b   :  { %v1336_v49 = vpop.f32.mrb[40].mxu0  ;;  %2176 = vmatprep.mubr.bf16.mxu1 %v11137_v48 }
 0x19c   :  { %v11493_v41 = vadd.f32 %v11271_v22, %v1336_v49  ;;  %v1338_v46 = vpop.f32.mrb[41].mxu0 }
 0x19d   :  { %v1339_v30 = vpop.f32.mrb[42].mxu0  ;;  %v11495_v16 = vpop.f32.mrb[56].mxu1 }
 0x19e   :  { %16028 = vst [vmem:[#allocation38_spill] sm:$0xff] %v11495_v16  ;;  %v11498_v17 = vadd.f32 %v11278_v8, %v1339_v30  ;;  %v1341_v1 = vpop.f32.mrb[43].mxu0  ;;  %v11500_v0 = vpop.f32.mrb[57].mxu1 }
 0x19f   :  { %16029 = vst [vmem:[#allocation116_spill] sm:$0xff] %v11500_v0  ;;  %v11502_v45 = vpop.f32.mrb[58].mxu1 }
 0x1a0   :  { %16030 = vst [vmem:[#allocation117_spill] sm:$0xff] %v11502_v45  ;;  %9458 = vmatmul.mubr.msk.bf16.gmra.mrb[148].mxu0 %vm10190_vm2, %v16031_v6  ;;  %v11507_v48 = vpop.f32.mrb[59].mxu1 }
 0x1a1   :  { %16032 = vst [vmem:[#allocation39_spill] sm:$0xff] %v11507_v48  ;;  %9461 = vmatprep.mubr.msk.bf16.mxu0 %vm10190_vm2, %v10595_v32  ;;  %v16036_v48 = vld [vmem:[#allocation47_spill] sm:$0xff] }
 0x1a2   :  { %8132 = vmatmul.mubr.msk.bf16.gmra.mrb[164].mxu1 %vm10400_vm5, %v11152_v60 }
 0x1a3   :  { %v1344_v22 = vpop.f32.mrb[44].mxu0  ;;  %2184 = vmatprep.mubr.bf16.mxu1 %v11154_v34 }
 0x1a4   :  { %v11517_v1 = vadd.f32 %v11266_v52, %v1344_v22  ;;  %v1346_v8 = vpop.f32.mrb[45].mxu0  ;;  %v16038_v52 = vld [vmem:[#allocation55_spill] sm:$0xff] }
 0x1a5   :  { %v1347_v49 = vpop.f32.mrb[46].mxu0  ;;  %v11519_v46 = vpop.f32.mrb[60].mxu1 }
 0x1a6   :  { %16033 = vst [vmem:[#allocation118_spill] sm:$0xff] %v11519_v46  ;;  %v11522_v30 = vadd.f32 %v11273_v24, %v1347_v49  ;;  %v1349_v5 = vpop.f32.mrb[47].mxu0  ;;  %v11524_v45 = vpop.f32.mrb[61].mxu1 }
 0x1a7   :  { %16034 = vst [vmem:[#allocation119_spill] sm:$0xff] %v11524_v45  ;;  %v11526_v16 = vpop.f32.mrb[62].mxu1  ;;  %v16039_v5 = vld [vmem:[#allocation93_spill] sm:$0xff] }
 0x1a8   :  { %16035 = vst [vmem:[#allocation120_spill] sm:$0xff] %v11526_v16  ;;  %9462 = vmatmul.mubr.msk.bf16.gmra.mrb[152].mxu0 %vm10190_vm2, %v16036_v48  ;;  %v11531_v34 = vpop.f32.mrb[63].mxu1 }
 0x1a9   :  { %16037 = vst [vmem:[#allocation47_spill] sm:$0xff] %v11531_v34  ;;  %9465 = vmatprep.mubr.msk.bf16.mxu0 %vm10190_vm2, %v16038_v52  ;;  %v16042_v52 = vld [vmem:[#allocation56_spill] sm:$0xff] }
 0x1aa   :  { %8136 = vmatmul.mubr.msk.bf16.gmra.mrb[168].mxu1 %vm10400_vm5, %v11174_v42 }
 0x1ab   :  { %v1352_v24 = vpop.f32.mrb[48].mxu0  ;;  %2192 = vmatprep.mubr.bf16.mxu1 %v16039_v5 }
 0x1ac   :  { %v11541_v22 = vadd.f32 %v11300_v13, %v1352_v24  ;;  %v1354_v8 = vpop.f32.mrb[49].mxu0  ;;  %v16043_v24 = vld [vmem:[#allocation94_spill] sm:$0xff] }
 0x1ad   :  { %v1978_v49 = vpop.f32.mrb[64].mxu1  ;;  %v1355_v60 = vpop.f32.mrb[50].mxu0 }
 0x1ae   :  { %v11544_v16 = vadd.f32 %v1978_v49, %v11225_v9  ;;  %v11547_v46 = vadd.f32 %v11307_v31, %v1355_v60  ;;  %v1980_v34 = vpop.f32.mrb[65].mxu1  ;;  %v1357_v45 = vpop.f32.mrb[51].mxu0  ;;  %v16044_v60 = vld [vmem:[#allocation95_spill] sm:$0xff] }
 0x1af   :  { %v1981_v0 = vpop.f32.mrb[66].mxu1 }
 0x1b0   :  { %16040 = vst [vmem:[#allocation121_spill] sm:$0xff] %v11544_v16  ;;  %v11550_v42 = vadd.f32 %v1981_v0, %v11237_v21  ;;  %9466 = vmatmul.mubr.msk.bf16.gmra.mrb[156].mxu0 %vm10190_vm2, %v16042_v52  ;;  %v1983_v13 = vpop.f32.mrb[67].mxu1  ;;  %v16048_v16 = vld [vmem:[#allocation62_spill] sm:$0xff] }
 0x1b1   :  { %9469 = vmatprep.mubr.bf16.mxu0 %v15829_v51 }
 0x1b2   :  { %16041 = vst [vmem:[#allocation122_spill] sm:$0xff] %v11550_v42  ;;  %8140 = vmatmul.mubr.msk.bf16.gmra.mrb[172].mxu1 %vm10400_vm5, %v16043_v24  ;;  %v16046_v42 = vld [vmem:[#allocation100_spill] sm:$0xff] }
 0x1b3   :  { %v1360_v9 = vpop.f32.mrb[52].mxu0  ;;  %2200 = vmatprep.mubr.bf16.mxu1 %v16044_v60 }
 0x1b4   :  { %v11561_v34 = vadd.f32 %v11295_v11, %v1360_v9  ;;  %v1362_v31 = vpop.f32.mrb[53].mxu0  ;;  %v16049_v9 = vld [vmem:[#allocation67_spill] sm:$0xff] }
 0x1b5   :  { %v1986_v21 = vpop.f32.mrb[68].mxu1  ;;  %v1363_v0 = vpop.f32.mrb[54].mxu0  ;;  %v16051_v31 = vld [vmem:[#allocation97_spill] sm:$0xff] }
 0x1b6   :  { %v11564_v45 = vadd.f32 %v1986_v21, %v11255_v50  ;;  %v11567_v8 = vadd.f32 %v11302_v53, %v1363_v0  ;;  %v1988_v49 = vpop.f32.mrb[69].mxu1  ;;  %v1365_v13 = vpop.f32.mrb[55].mxu0  ;;  %v16050_v50 = vld [vmem:[#allocation96_spill] sm:$0xff] }
 0x1b7   :  { %v1989_v5 = vpop.f32.mrb[70].mxu1 }
 0x1b8   :  { %16045 = vst [vmem:[#allocation56_spill] sm:$0xff] %v11564_v45  ;;  %v11570_v24 = vadd.f32 %v1989_v5, %v16046_v42  ;;  %9470 = vmatmul.mubr.msk.bf16.gmra.mrb[160].mxu0 %vm10190_vm2, %v16048_v16  ;;  %v1991_v11 = vpop.f32.mrb[71].mxu1  ;;  %v16061_v45 = vld [vmem:[#allocation74_spill] sm:$0xff] }
 0x1b9   :  { %9473 = vmatprep.mubr.msk.bf16.mxu0 %vm10190_vm2, %v16049_v9 }
 0x1ba   :  { %16047 = vst [vmem:[#allocation100_spill] sm:$0xff] %v11570_v24  ;;  %8144 = vmatmul.mubr.msk.bf16.gmra.mrb[176].mxu1 %vm10400_vm5, %v16050_v50  ;;  %v16054_v24 = vld [vmem:[#allocation68_spill] sm:$0xff] }
 0x1bb   :  { %v1368_v53 = vpop.f32.mrb[56].mxu0  ;;  %2208 = vmatprep.mubr.bf16.mxu1 %v16051_v31 }
 0x1bc   :  { %v11583_v21 = vadd.f32 %v11331_v18, %v1368_v53  ;;  %v1370_v42 = vpop.f32.mrb[57].mxu0  ;;  %v16055_v53 = vld [vmem:[#allocation73_spill] sm:$0xff] }
 0x1bd   :  { %v1994_v5 = vpop.f32.mrb[72].mxu1  ;;  %v1371_v0 = vpop.f32.mrb[58].mxu0  ;;  %v16057_v42 = vld [vmem:[#allocation99_spill] sm:$0xff] }
 0x1be   :  { %v11586_v16 = vadd.f32 %v1994_v5, %v11285_v61  ;;  %v11589_v49 = vadd.f32 %v11338_v25, %v1371_v0  ;;  %v1996_v13 = vpop.f32.mrb[73].mxu1  ;;  %v1373_v11 = vpop.f32.mrb[59].mxu0  ;;  %v16056_v61 = vld [vmem:[#allocation98_spill] sm:$0xff] }
 0x1bf   :  { %v1997_v60 = vpop.f32.mrb[74].mxu1 }
 0x1c0   :  { %16052 = vst [vmem:[#allocation62_spill] sm:$0xff] %v11586_v16  ;;  %v11592_v50 = vadd.f32 %v1997_v60, %v11298_v44  ;;  %9474 = vmatmul.mubr.msk.bf16.gmra.mrb[164].mxu0 %vm10190_vm2, %v16054_v24  ;;  %v1999_v18 = vpop.f32.mrb[75].mxu1  ;;  %v16059_v16 = vld [vmem:[#allocation105_spill] sm:$0xff] }
 0x1c1   :  { %9477 = vmatprep.mubr.msk.bf16.mxu0 %vm10190_vm2, %v16055_v53 }
 0x1c2   :  { %16053 = vst [vmem:[#allocation67_spill] sm:$0xff] %v11592_v50  ;;  %8148 = vmatmul.mubr.msk.bf16.gmra.mrb[180].mxu1 %vm10400_vm5, %v16056_v61 }
 0x1c3   :  { %v1376_v25 = vpop.f32.mrb[60].mxu0  ;;  %2216 = vmatprep.mubr.bf16.mxu1 %v16057_v42 }
 0x1c4   :  { %v11605_v5 = vadd.f32 %v11326_v27, %v1376_v25  ;;  %v1378_v44 = vpop.f32.mrb[61].mxu0  ;;  %v16062_v25 = vld [vmem:[#allocation79_spill] sm:$0xff] }
 0x1c5   :  { %v2002_v60 = vpop.f32.mrb[76].mxu1  ;;  %v1379_v0 = vpop.f32.mrb[62].mxu0  ;;  %v16064_v44 = vld [vmem:[#allocation102_spill] sm:$0xff] }
 0x1c6   :  { %v11608_v13 = vadd.f32 %v2002_v60, %v11316_v54  ;;  %v11611_v11 = vadd.f32 %v11333_v7, %v1379_v0  ;;  %v2004_v18 = vpop.f32.mrb[77].mxu1  ;;  %v1381_v31 = vpop.f32.mrb[63].mxu0  ;;  %v16063_v54 = vld [vmem:[#allocation101_spill] sm:$0xff] }
 0x1c7   :  { %v2005_v50 = vpop.f32.mrb[78].mxu1 }
 0x1c8   :  { %16058 = vst [vmem:[#allocation68_spill] sm:$0xff] %v11608_v13  ;;  %v11614_v61 = vadd.f32 %v2005_v50, %v16059_v16  ;;  %9478 = vmatmul.mubr.msk.bf16.gmra.mrb[168].mxu0 %vm10190_vm2, %v16061_v45  ;;  %v2007_v27 = vpop.f32.mrb[79].mxu1  ;;  %v16067_v13 = vld [vmem:[#allocation80_spill] sm:$0xff] }
 0x1c9   :  { %9481 = vmatprep.mubr.msk.bf16.mxu0 %vm10190_vm2, %v16062_v25 }
 0x1ca   :  { %16060 = vst [vmem:[#allocation73_spill] sm:$0xff] %v11614_v61  ;;  %8152 = vmatmul.mubr.msk.bf16.gmra.mrb[184].mxu1 %vm10400_vm5, %v16063_v54 }
 0x1cb   :  { %v1384_v7 = vpop.f32.mrb[64].mxu0  ;;  %2224 = vmatprep.mubr.bf16.mxu1 %v16064_v44 }
 0x1cc   :  { %v11627_v31 = vadd.f32 %v11356_v40, %v1384_v7  ;;  %v1386_v50 = vpop.f32.mrb[65].mxu0  ;;  %v16068_v7 = vld [vmem:[#allocation84_spill] sm:$0xff] }
 0x1cd   :  { %v2010_v16 = vpop.f32.mrb[80].mxu1  ;;  %v1387_v60 = vpop.f32.mrb[66].mxu0  ;;  %v16070_v50 = vld [vmem:[#allocation34_spill] sm:$0xff] }
 0x1ce   :  { %v11630_v0 = vadd.f32 %v2010_v16, %v11347_v4  ;;  %v11633_v18 = vadd.f32 %v11363_v57, %v1387_v60  ;;  %v2012_v27 = vpop.f32.mrb[81].mxu1  ;;  %v1389_v42 = vpop.f32.mrb[67].mxu0  ;;  %v16069_v4 = vld [vmem:[#allocation103_spill] sm:$0xff] }
 0x1cf   :  { %v2013_v61 = vpop.f32.mrb[82].mxu1 }
 0x1d0   :  { %16065 = vst [vmem:[#allocation105_spill] sm:$0xff] %v11630_v0  ;;  %v11636_v54 = vadd.f32 %v2013_v61, %v11354_v37  ;;  %9482 = vmatmul.mubr.msk.bf16.gmra.mrb[172].mxu0 %vm10190_vm2, %v16067_v13  ;;  %v2015_v40 = vpop.f32.mrb[83].mxu1  ;;  %v16073_v0 = vld [vmem:[#allocation85_spill] sm:$0xff] }
 0x1d1   :  { %9485 = vmatprep.mubr.msk.bf16.mxu0 %vm10190_vm2, %v16068_v7 }
 0x1d2   :  { %16066 = vst [vmem:[#allocation74_spill] sm:$0xff] %v11636_v54  ;;  %8156 = vmatmul.mubr.msk.bf16.gmra.mrb[188].mxu1 %vm10400_vm5, %v16069_v4 }
 0x1d3   :  { %v1392_v57 = vpop.f32.mrb[68].mxu0  ;;  %2844 = vmatprep.mubr.bf16.mxu1 %v16070_v50  ;;  %v16074_v50 = vld [vmem:[#allocation43_spill] sm:$0xff] }
 0x1d4   :  { %v11649_v42 = vadd.f32 %v11351_v59, %v1392_v57  ;;  %v1394_v37 = vpop.f32.mrb[69].mxu0  ;;  %v9903_v57 = vld [vmem:[#allocation9 + $0x140] sm:$0xff]  }
 0x1d5   :  { %v2018_v61 = vpop.f32.mrb[84].mxu1  ;;  %v1395_v16 = vpop.f32.mrb[70].mxu0  ;;  %9581 = vmatprep.subr.bf16.mxu1 %v9903_v57 }
 0x1d6   :  { %v11652_v60 = vadd.f32 %v2018_v61, %v11371_v23  ;;  %v11655_v27 = vadd.f32 %v11358_v2, %v1395_v16  ;;  %v2020_v40 = vpop.f32.mrb[85].mxu1  ;;  %v1397_v44 = vpop.f32.mrb[71].mxu0  ;;  %v16075_v23 = vld [vmem:[#allocation42_spill] sm:$0xff] }
 0x1d7   :  { %v2021_v54 = vpop.f32.mrb[86].mxu1  ;;  %v16076_v44 = vld [vmem:[#allocation46_spill] sm:$0xff]  ;;  %v16078_v40 = vld [vmem:[#allocation15_spill] sm:$0xff] }
 0x1d8   :  { %16071 = vst [vmem:[#allocation79_spill] sm:$0xff] %v11652_v60  ;;  %v11658_v4 = vadd.f32 %v2021_v54, %v11376_v14  ;;  %9486 = vmatmul.mubr.msk.bf16.gmra.mrb[176].mxu0 %vm10190_vm2, %v16073_v0  ;;  %v2023_v59 = vpop.f32.mrb[87].mxu1 }
 0x1d9   :  { %9489 = vmatprep.mubr.msk.bf16.mxu0 %vm10190_vm2, %v16074_v50 }
 0x1da   :  { %16072 = vst [vmem:[#allocation80_spill] sm:$0xff] %v11658_v4  ;;  %8250 = vmatmul.mubr.msk.bf16.vlgmr.msra.gmra.mrb[192].mxu1 %vm10400_vm5, %v16075_v23 }
 0x1db   :  { %v1400_v2 = vpop.f32.mrb[72].mxu0  ;;  %2852 = vmatprep.mubr.bf16.mxu1 %v16076_v44  ;;  %9582 = vmatpush3.bf16.msra.mxu1 %v9903_v57  ;;  %v16080_v44 = vld [vmem:[#allocation86_spill] sm:$0xff]  ;;  %v16081_v57 = vld [vmem:[#allocation87_spill] sm:$0xff] }
 0x1dc   :  { %v11671_v14 = vadd.f32 %v11378_v26, %v1400_v2  ;;  %v1402_v54 = vpop.f32.mrb[73].mxu0 }
 0x1dd   :  { %v2026_v37 = vpop.f32.mrb[88].mxu1  ;;  %v1403_v61 = vpop.f32.mrb[74].mxu0 }
 0x1de   :  { %v11674_v16 = vadd.f32 %v2026_v37, %v11396_v47  ;;  %v11677_v59 = vadd.f32 %v16078_v40, %v1403_v61  ;;  %v2028_v4 = vpop.f32.mrb[89].mxu1  ;;  %v1405_v60 = vpop.f32.mrb[75].mxu0  ;;  %v16082_v47 = vld [vmem:[#allocation52_spill] sm:$0xff] }
 0x1df   :  { %v2029_v23 = vpop.f32.mrb[90].mxu1  ;;  %v16083_v4 = vld [vmem:[#allocation53_spill] sm:$0xff]  ;;  %v16084_v60 = vld [vmem:[#allocation107_spill] sm:$0xff] }
 0x1e0   :  { %16077 = vst [vmem:[#allocation84_spill] sm:$0xff] %v11674_v16  ;;  %v11680_v50 = vadd.f32 %v2029_v23, %v11401_v63  ;;  %9490 = vmatmul.mubr.msk.bf16.gmra.mrb[180].mxu0 %vm10190_vm2, %v16080_v44  ;;  %v2031_v26 = vpop.f32.mrb[91].mxu1  ;;  %v16086_v23 = vld [vmem:[#allocation108_spill] sm:$0xff] }
 0x1e1   :  { %9493 = vmatprep.mubr.msk.bf16.mxu0 %vm10190_vm2, %v16081_v57  ;;  %v16088_v44 = vld [vmem:[#allocation88_spill] sm:$0xff] }
 0x1e2   :  { %16079 = vst [vmem:[#allocation34_spill] sm:$0xff] %v11680_v50  ;;  %8254 = vmatmul.mubr.msk.bf16.gmra.mrb[196].mxu1 %vm10400_vm5, %v16082_v47 }
 0x1e3   :  { %v1408_v2 = vpop.f32.mrb[76].mxu0  ;;  %2860 = vmatprep.mubr.bf16.mxu1 %v16083_v4  ;;  %v16089_v4 = vld [vmem:[#allocation89_spill] sm:$0xff] }
 0x1e4   :  { %v11693_v54 = vadd.f32 %v16084_v60, %v1408_v2  ;;  %v1410_v63 = vpop.f32.mrb[77].mxu0 }
 0x1e5   :  { %v2034_v37 = vpop.f32.mrb[92].mxu1  ;;  %v1411_v61 = vpop.f32.mrb[78].mxu0 }
 0x1e6   :  { %v11696_v40 = vadd.f32 %v2034_v37, %v11420_v43  ;;  %v11699_v26 = vadd.f32 %v16086_v23, %v1411_v61  ;;  %v2036_v50 = vpop.f32.mrb[93].mxu1  ;;  %v1413_v16 = vpop.f32.mrb[79].mxu0  ;;  %v16090_v43 = vld [vmem:[#allocation58_spill] sm:$0xff] }
 0x1e7   :  { %v2037_v57 = vpop.f32.mrb[94].mxu1  ;;  %v16091_v50 = vld [vmem:[#allocation59_spill] sm:$0xff] }
 0x1e8   :  { %16085 = vst [vmem:[#allocation85_spill] sm:$0xff] %v11696_v40  ;;  %v11702_v47 = vadd.f32 %v2037_v57, %v11425_v56  ;;  %9494 = vmatmul.mubr.msk.bf16.gmra.mrb[184].mxu0 %vm10190_vm2, %v16088_v44  ;;  %v2039_v2 = vpop.f32.mrb[95].mxu1  ;;  %v16094_v40 = vld [vmem:[#allocation90_spill] sm:$0xff] }
 0x1e9   :  { %9497 = vmatprep.mubr.msk.bf16.mxu0 %vm10190_vm2, %v16089_v4 }
 0x1ea   :  { %16087 = vst [vmem:[#allocation42_spill] sm:$0xff] %v11702_v47  ;;  %8258 = vmatmul.mubr.msk.bf16.gmra.mrb[200].mxu1 %vm10400_vm5, %v16090_v43 }
 0x1eb   :  { %v1416_v60 = vpop.f32.mrb[80].mxu0  ;;  %2868 = vmatprep.mubr.bf16.mxu1 %v16091_v50  ;;  %v16097_v50 = vld [vmem:[#allocation65_spill] sm:$0xff] }
 0x1ec   :  { %v11715_v16 = vadd.f32 %v11403_v55, %v1416_v60  ;;  %v1418_v56 = vpop.f32.mrb[81].mxu0  ;;  %v16095_v60 = vld [vmem:[#allocation16_spill] sm:$0xff] }
 0x1ed   :  { %v2042_v57 = vpop.f32.mrb[96].mxu1  ;;  %v1419_v63 = vpop.f32.mrb[82].mxu0  ;;  %v16098_v56 = vld [vmem:[#allocation109_spill] sm:$0xff] }
 0x1ee   :  { %v11718_v37 = vadd.f32 %v2042_v57, %v11444_v20  ;;  %v11721_v61 = vadd.f32 %v11410_v3, %v1419_v63  ;;  %v2044_v23 = vpop.f32.mrb[97].mxu1  ;;  %v1421_v2 = vpop.f32.mrb[83].mxu0  ;;  %v16096_v20 = vld [vmem:[#allocation64_spill] sm:$0xff] }
 0x1ef   :  { %v2045_v47 = vpop.f32.mrb[98].mxu1  ;;  %v9904_v23 = vld [vmem:[#allocation9 + $0xc0] sm:$0xff]  }
 0x1f0   :  { %16092 = vst [vmem:[#allocation46_spill] sm:$0xff] %v11718_v37  ;;  %v11724_v43 = vadd.f32 %v2045_v47, %v11449_v38  ;;  %9498 = vmatmul.mubr.msk.bf16.gmra.mrb[188].mxu0 %vm10190_vm2, %v16094_v40  ;;  %v2047_v55 = vpop.f32.mrb[99].mxu1 }
 0x1f1   :  { %9517 = vmatprep.mubr.msk.bf16.mxu0 %vm10190_vm2, %v16095_v60  ;;  %v16099_v55 = vld [vmem:[#allocation110_spill] sm:$0xff] }
 0x1f2   :  { %16093 = vst [vmem:[#allocation15_spill] sm:$0xff] %v11724_v43  ;;  %8262 = vmatmul.mubr.msk.bf16.gmra.mrb[204].mxu1 %vm10400_vm5, %v16096_v20 }
 0x1f3   :  { %v1424_v3 = vpop.f32.mrb[84].mxu0  ;;  %2876 = vmatprep.mubr.bf16.mxu1 %v16097_v50  ;;  %v16100_v50 = vld [vmem:[#allocation17_spill] sm:$0xff] }
 0x1f4   :  { %v11737_v57 = vadd.f32 %v16098_v56, %v1424_v3  ;;  %v1426_v38 = vpop.f32.mrb[85].mxu0  ;;  %v9908_v56 = vld [vmem:[#allocation9 + $0x148] sm:$0xff]  }
 0x1f5   :  { %v2050_v47 = vpop.f32.mrb[100].mxu1  ;;  %v1427_v63 = vpop.f32.mrb[86].mxu0  ;;  %v16101_v38 = vld [vmem:[#allocation19_spill] sm:$0xff]  ;;  %9583 = vmatprep.subr.bf16.mxu1 %v9908_v56 }
 0x1f6   :  { %v11740_v2 = vadd.f32 %v2050_v47, %v11468_v33  ;;  %v11743_v43 = vadd.f32 %v16099_v55, %v1427_v63  ;;  %v2052_v60 = vpop.f32.mrb[101].mxu1  ;;  %v1429_v37 = vpop.f32.mrb[87].mxu0  ;;  %v9905_v33 = vld [vmem:[#allocation9 + $0xc8] sm:$0xff]   ;;  %v16102_v47 = vld [vmem:[#allocation70_spill] sm:$0xff]  ;;  %9584 = vmatpush3.bf16.msra.mxu1 %v9908_v56 }
 0x1f7   :  { %v2053_v40 = vpop.f32.mrb[102].mxu1 }
 0x1f8   :  { %v11746_v20 = vadd.f32 %v2053_v40, %v11473_v28  ;;  %9518 = vmatmul.mubr.msk.bf16.vlgmr.msra.gmra.mrb[192].mxu0 %vm10190_vm2, %v16100_v50  ;;  %v2055_v3 = vpop.f32.mrb[103].mxu1  ;;  %v16103_v40 = vld [vmem:[#allocation71_spill] sm:$0xff] }
 0x1f9   :  { %9521 = vmatprep.mubr.msk.bf16.mxu0 %vm10190_vm2, %v16101_v38  ;;  %4677 = vmatpush1.bf16.msra.mxu0 %v9904_v23  ;;  %v9906_v23 = vld [vmem:[#allocation9 + $0xd0] sm:$0xff]  }
 0x1fa   :  { %8266 = vmatmul.mubr.msk.bf16.gmra.mrb[208].mxu1 %vm10400_vm5, %v16102_v47  ;;  %4678 = vmatprep.subr.bf16.mxu0 %v15829_v51 }
 0x1fb   :  { %v1432_v28 = vpop.f32.mrb[88].mxu0  ;;  %2884 = vmatprep.mubr.bf16.mxu1 %v16103_v40 }
 0x1fc   :  { %v11760_v37 = vadd.f32 %v11427_v62, %v1432_v28  ;;  %v1434_v63 = vpop.f32.mrb[89].mxu0  ;;  %v16106_v28 = vld [vmem:[#allocation20_spill] sm:$0xff] }
 0x1fd   :  { %v2058_v55 = vpop.f32.mrb[104].mxu1  ;;  %v1435_v60 = vpop.f32.mrb[90].mxu0  ;;  %4679 = vmatpush1.bf16.msra.mxu0 %v9905_v33  ;;  %v16107_v33 = vld [vmem:[#allocation24_spill] sm:$0xff] }
 0x1fe   :  { %v11763_v50 = vadd.f32 %v2058_v55, %v11493_v41  ;;  %v11766_v3 = vadd.f32 %v11434_v58, %v1435_v60  ;;  %v2060_v38 = vpop.f32.mrb[105].mxu1  ;;  %v1437_v47 = vpop.f32.mrb[91].mxu0  ;;  %4680 = vmatprep.subr.bf16.mxu0 %v15829_v51  ;;  %v9907_v58 = vld [vmem:[#allocation9 + $0xd8] sm:$0xff]   ;;  %v16108_v41 = vld [vmem:[#allocation76_spill] sm:$0xff]  ;;  %v16110_v55 = vld [vmem:[#allocation111_spill] sm:$0xff] }
 0x1ff   :  { %v2061_v40 = vpop.f32.mrb[106].mxu1 }
 0x200   :  { %16104 = vst [vmem:[#allocation52_spill] sm:$0xff] %v11763_v50  ;;  %v11770_v62 = vadd.f32 %v2061_v40, %v11498_v17  ;;  %9522 = vmatmul.mubr.msk.bf16.gmra.mrb[196].mxu0 %vm10190_vm2, %v16106_v28  ;;  %v2063_v56 = vpop.f32.mrb[107].mxu1  ;;  %v16109_v17 = vld [vmem:[#allocation77_spill] sm:$0xff]  ;;  %v9909_v28 = vld [vmem:[#allocation9 + $0xe0] sm:$0xff]  }
 0x201   :  { %9525 = vmatprep.mubr.msk.bf16.mxu0 %vm10190_vm2, %v16107_v33  ;;  %4681 = vmatpush1.bf16.msra.mxu0 %v9906_v23  ;;  %v16111_v56 = vld [vmem:[#allocation112_spill] sm:$0xff] }
 0x202   :  { %16105 = vst [vmem:[#allocation53_spill] sm:$0xff] %v11770_v62  ;;  %8270 = vmatmul.mubr.msk.bf16.gmra.mrb[212].mxu1 %vm10400_vm5, %v16108_v41  ;;  %4682 = vmatprep.subr.bf16.mxu0 %v15829_v51 }
 0x203   :  { %v1440_v63 = vpop.f32.mrb[92].mxu0  ;;  %2892 = vmatprep.mubr.bf16.mxu1 %v16109_v17 }
 0x204   :  { %v11784_v60 = vadd.f32 %v16110_v55, %v1440_v63  ;;  %v1442_v38 = vpop.f32.mrb[93].mxu0  ;;  %v16112_v63 = vld [vmem:[#allocation82_spill] sm:$0xff] }
 0x205   :  { %v2066_v47 = vpop.f32.mrb[108].mxu1  ;;  %v1443_v40 = vpop.f32.mrb[94].mxu0  ;;  %4683 = vmatpush1.bf16.msra.mxu0 %v9907_v58 }
 0x206   :  { %v11787_v23 = vadd.f32 %v2066_v47, %v11517_v1  ;;  %v11790_v33 = vadd.f32 %v16111_v56, %v1443_v40  ;;  %v2068_v41 = vpop.f32.mrb[109].mxu1  ;;  %v1445_v62 = vpop.f32.mrb[95].mxu0  ;;  %4684 = vmatprep.subr.bf16.mxu0 %v15829_v51  ;;  %v9910_v1 = vld [vmem:[#allocation9 + $0xe8] sm:$0xff]   ;;  %v9911_v56 = vld [vmem:[#allocation9 + $0xf0] sm:$0xff]  }
 0x207   :  { %v2069_v50 = vpop.f32.mrb[110].mxu1 }
 0x208   :  { %v11794_v17 = vadd.f32 %v2069_v50, %v11522_v30  ;;  %9526 = vmatmul.mubr.msk.bf16.gmra.mrb[200].mxu0 %vm10190_vm2, %v16020_v29  ;;  %v2071_v58 = vpop.f32.mrb[111].mxu1  ;;  %v16113_v30 = vld [vmem:[#allocation18_spill] sm:$0xff] }
 0x209   :  { %9529 = vmatprep.mubr.msk.bf16.mxu0 %vm10190_vm2, %v16021_v36  ;;  %4685 = vmatpush1.bf16.msra.mxu0 %v9909_v28 }
 0x20a   :  { %8274 = vmatmul.mubr.msk.bf16.gmra.mrb[216].mxu1 %vm10400_vm5, %v16112_v63  ;;  %4686 = vmatprep.subr.bf16.mxu0 %v15829_v51 }
 0x20b   :  { %v1448_v62 = vpop.f32.mrb[96].mxu0  ;;  %2900 = vmatprep.mubr.bf16.mxu1 %v16113_v30 }
 0x20c   :  { %v11808_v50 = vadd.f32 %v11451_v10, %v1448_v62  ;;  %v1450_v29 = vpop.f32.mrb[97].mxu0 }
 0x20d   :  { %v2074_v55 = vpop.f32.mrb[112].mxu1  ;;  %v1451_v38 = vpop.f32.mrb[98].mxu0  ;;  %4687 = vmatpush1.bf16.msra.mxu0 %v9910_v1  ;;  %v16115_v1 = vld [vmem:[#allocation21_spill] sm:$0xff] }
 0x20e   :  { %v11811_v36 = vadd.f32 %v2074_v55, %v11541_v22  ;;  %v11814_v47 = vadd.f32 %v11458_v12, %v1451_v38  ;;  %v2076_v40 = vpop.f32.mrb[113].mxu1  ;;  %v1453_v28 = vpop.f32.mrb[99].mxu0  ;;  %4688 = vmatprep.subr.bf16.mxu0 %v15829_v51  ;;  %v16114_v12 = vld [vmem:[#allocation23_spill] sm:$0xff] }
 0x20f   :  { %v2077_v41 = vpop.f32.mrb[114].mxu1  ;;  %v9912_v28 = vld [vmem:[#allocation9 + $0xf8] sm:$0xff]  }
 0x210   :  { %v11818_v58 = vadd.f32 %v2077_v41, %v11547_v46  ;;  %9530 = vmatmul.mubr.msk.bf16.gmra.mrb[204].mxu0 %vm10190_vm2, %v16025_v15  ;;  %v2079_v10 = vpop.f32.mrb[115].mxu1  ;;  %v16116_v46 = vld [vmem:[#allocation113_spill] sm:$0xff] }
 0x211   :  { %9533 = vmatprep.mubr.msk.bf16.mxu0 %vm10190_vm2, %v16027_v39  ;;  %4689 = vmatpush1.bf16.msra.mxu0 %v9911_v56  ;;  %v16117_v39 = vld [vmem:[#allocation114_spill] sm:$0xff] }
 0x212   :  { %8278 = vmatmul.mubr.msk.bf16.gmra.mrb[220].mxu1 %vm10400_vm5, %v16114_v12  ;;  %4690 = vmatprep.subr.bf16.mxu0 %v15829_v51  ;;  %v9913_v12 = vld [vmem:[#allocation9 + $0x150] sm:$0xff]  }
 0x213   :  { %v1456_v22 = vpop.f32.mrb[100].mxu0  ;;  %2908 = vmatprep.mubr.bf16.mxu1 %v16115_v1  ;;  %9585 = vmatprep.subr.bf16.mxu1 %v9913_v12  ;;  %v16119_v1 = vld [vmem:[#allocation22_spill] sm:$0xff] }
 0x214   :  { %v11832_v63 = vadd.f32 %v16116_v46, %v1456_v22  ;;  %v1458_v62 = vpop.f32.mrb[101].mxu0  ;;  %9586 = vmatpush3.bf16.msra.mxu1 %v9913_v12 }
 0x215   :  { %v2082_v15 = vpop.f32.mrb[116].mxu1  ;;  %v1459_v30 = vpop.f32.mrb[102].mxu0  ;;  %4691 = vmatpush1.bf16.msra.mxu0 %v9912_v28  ;;  %v9914_v28 = vld [vmem:[#allocation9 + $0x100] sm:$0xff]  }
 0x216   :  { %v11835_v29 = vadd.f32 %v2082_v15, %v11561_v34  ;;  %v11838_v55 = vadd.f32 %v16117_v39, %v1459_v30  ;;  %v2084_v38 = vpop.f32.mrb[117].mxu1  ;;  %v1461_v40 = vpop.f32.mrb[103].mxu0  ;;  %v16118_v34 = vld [vmem:[#allocation27_spill] sm:$0xff]  ;;  %4692 = vmatprep.subr.bf16.mxu0 %v15829_v51 }
 0x217   :  { %v2085_v56 = vpop.f32.mrb[118].mxu1  ;;  %v16121_v30 = vld [vmem:[#allocation31_spill] sm:$0xff] }
 0x218   :  { %v11841_v41 = vadd.f32 %v2085_v56, %v11567_v8  ;;  %9534 = vmatmul.mubr.msk.bf16.gmra.mrb[208].mxu0 %vm10190_vm2, %v16031_v6  ;;  %v2087_v10 = vpop.f32.mrb[119].mxu1  ;;  %v16120_v8 = vld [vmem:[#allocation29_spill] sm:$0xff] }
 0x219   :  { %9537 = vmatprep.mubr.msk.bf16.mxu0 %vm10190_vm2, %v10595_v32  ;;  %4693 = vmatpush1.bf16.msra.mxu0 %v9914_v28 }
 0x21a   :  { %8282 = vmatmul.mubr.msk.bf16.gmra.mrb[224].mxu1 %vm10400_vm5, %v16118_v34  ;;  %v16122_v34 = vld [vmem:[#allocation55_spill] sm:$0xff]  ;;  %4694 = vmatprep.subr.bf16.mxu0 %v15829_v51 }
 0x21b   :  { %v1464_v22 = vpop.f32.mrb[104].mxu0  ;;  %2916 = vmatprep.mubr.bf16.mxu1 %v16119_v1  ;;  %v16124_v1 = vld [vmem:[#allocation25_spill] sm:$0xff] }
 0x21c   :  { %v11854_v46 = vadd.f32 %v16120_v8, %v1464_v22  ;;  %v1466_v6 = vpop.f32.mrb[105].mxu0 }
 0x21d   :  { %v2090_v62 = vpop.f32.mrb[120].mxu1  ;;  %v1467_v15 = vpop.f32.mrb[106].mxu0 }
 0x21e   :  { %v11858_v32 = vadd.f32 %v2090_v62, %v11583_v21  ;;  %v11861_v39 = vadd.f32 %v16121_v30, %v1467_v15  ;;  %v2092_v38 = vpop.f32.mrb[121].mxu1  ;;  %v1469_v40 = vpop.f32.mrb[107].mxu0  ;;  %v16123_v21 = vld [vmem:[#allocation28_spill] sm:$0xff]  ;;  %v16126_v30 = vld [vmem:[#allocation115_spill] sm:$0xff] }
 0x21f   :  { %v2093_v56 = vpop.f32.mrb[122].mxu1 }
 0x220   :  { %v11864_v10 = vadd.f32 %v2093_v56, %v11589_v49  ;;  %v2095_v12 = vpop.f32.mrb[123].mxu1  ;;  %9538 = vmatmul.mubr.msk.bf16.gmra.mrb[212].mxu0 %vm10190_vm2, %v16036_v48  ;;  %v16125_v49 = vld [vmem:[#allocation26_spill] sm:$0xff]  ;;  %v9915_v56 = vld [vmem:[#allocation9 + $0x108] sm:$0xff]  }
 0x221   :  { %9541 = vmatprep.mubr.msk.bf16.mxu0 %vm10190_vm2, %v16122_v34  ;;  %4695 = vmatpush1.bf16.msra.mxu0 %v9915_v56 }
 0x222   :  { %8286 = vmatmul.mubr.msk.bf16.gmra.mrb[228].mxu1 %vm10400_vm5, %v16123_v21  ;;  %4696 = vmatprep.subr.bf16.mxu0 %v15829_v51 }
 0x223   :  { %v1472_v22 = vpop.f32.mrb[108].mxu0  ;;  %2924 = vmatprep.mubr.bf16.mxu1 %v16124_v1 }
 0x224   :  { %v11878_v8 = vadd.f32 %v16125_v49, %v1472_v22  ;;  %v1474_v6 = vpop.f32.mrb[109].mxu0  ;;  %v16127_v22 = vld [vmem:[#allocation61_spill] sm:$0xff]  ;;  %v16129_v49 = vld [vmem:[#allocation30_spill] sm:$0xff] }
 0x225   :  { %v2098_v62 = vpop.f32.mrb[124].mxu1  ;;  %v1475_v48 = vpop.f32.mrb[110].mxu0 }
 0x226   :  { %v11881_v15 = vadd.f32 %v2098_v62, %v11605_v5  ;;  %v11884_v38 = vadd.f32 %v16126_v30, %v1475_v48  ;;  %v2100_v40 = vpop.f32.mrb[125].mxu1  ;;  %v1477_v28 = vpop.f32.mrb[111].mxu0  ;;  %v16128_v5 = vld [vmem:[#allocation35_spill] sm:$0xff] }
 0x227   :  { %v2101_v12 = vpop.f32.mrb[126].mxu1  ;;  %v16131_v40 = vld [vmem:[#allocation39_spill] sm:$0xff] }
 0x228   :  { %v11887_v34 = vadd.f32 %v2101_v12, %v11611_v11  ;;  %v2103_v21 = vpop.f32.mrb[127].mxu1  ;;  %9542 = vmatmul.mubr.msk.bf16.gmra.mrb[216].mxu0 %vm10190_vm2, %v16042_v52  ;;  %v16130_v11 = vld [vmem:[#allocation116_spill] sm:$0xff] }
 0x229   :  { %9545 = vmatprep.mubr.msk.bf16.mxu0 %vm10190_vm2, %v16127_v22  ;;  %v9916_v21 = vld [vmem:[#allocation9 + $0x110] sm:$0xff]  }
 0x22a   :  { %8290 = vmatmul.mubr.msk.bf16.gmra.mrb[232].mxu1 %vm10400_vm5, %v16128_v5  ;;  %4697 = vmatpush1.bf16.msra.mxu0 %v9916_v21 }
 0x22b   :  { %v1480_v1 = vpop.f32.mrb[112].mxu0  ;;  %2932 = vmatprep.mubr.bf16.mxu1 %v16129_v49  ;;  %4698 = vmatprep.subr.bf16.mxu0 %v15829_v51 }
 0x22c   :  { %v11901_v6 = vadd.f32 %v16130_v11, %v1480_v1  ;;  %v1482_v62 = vpop.f32.mrb[113].mxu0  ;;  %v16135_v11 = vld [vmem:[#allocation32_spill] sm:$0xff] }
 0x22d   :  { %v2106_v48 = vpop.f32.mrb[128].mxu1  ;;  %v1483_v52 = vpop.f32.mrb[114].mxu0  ;;  %v16136_v62 = vld [vmem:[#allocation38_spill] sm:$0xff] }
 0x22e   :  { %v11904_v30 = vadd.f32 %v2106_v48, %v11627_v31  ;;  %v11907_v28 = vadd.f32 %v16131_v40, %v1483_v52  ;;  %v2108_v56 = vpop.f32.mrb[129].mxu1  ;;  %v1485_v12 = vpop.f32.mrb[115].mxu0  ;;  %v16134_v31 = vld [vmem:[#allocation37_spill] sm:$0xff] }
 0x22f   :  { %v2109_v22 = vpop.f32.mrb[130].mxu1 }
 0x230   :  { %16132 = vst [vmem:[#allocation107_spill] sm:$0xff] %v11907_v28  ;;  %v11910_v5 = vadd.f32 %v2109_v22, %v11633_v18  ;;  %v2111_v49 = vpop.f32.mrb[131].mxu1  ;;  %9546 = vmatmul.mubr.bf16.gmra.mrb[220].mxu0 %v15829_v51  ;;  %v9918_v28 = vld [vmem:[#allocation9 + $0x158] sm:$0xff]  }
 0x231   :  { %9549 = vmatprep.mubr.msk.bf16.mxu0 %vm10190_vm2, %v16049_v9  ;;  %v16137_v9 = vld [vmem:[#allocation117_spill] sm:$0xff]  ;;  %9587 = vmatprep.subr.bf16.mxu1 %v9918_v28 }
 0x232   :  { %16133 = vst [vmem:[#allocation108_spill] sm:$0xff] %v11910_v5  ;;  %8294 = vmatmul.mubr.msk.bf16.gmra.mrb[236].mxu1 %vm10400_vm5, %v16134_v31  ;;  %v9917_v49 = vld [vmem:[#allocation9 + $0x118] sm:$0xff]  }
 0x233   :  { %v1488_v1 = vpop.f32.mrb[116].mxu0  ;;  %2940 = vmatprep.mubr.bf16.mxu1 %v16135_v11  ;;  %4699 = vmatpush1.bf16.msra.mxu0 %v9917_v49 }
 0x234   :  { %v11922_v18 = vadd.f32 %v16136_v62, %v1488_v1  ;;  %v1490_v48 = vpop.f32.mrb[117].mxu0  ;;  %v16139_v62 = vld [vmem:[#allocation36_spill] sm:$0xff]  ;;  %9588 = vmatpush3.bf16.msra.mxu1 %v9918_v28  ;;  %4700 = vmatprep.subr.bf16.mxu0 %v15829_v51 }
 0x235   :  { %v2114_v52 = vpop.f32.mrb[132].mxu1  ;;  %v1491_v40 = vpop.f32.mrb[118].mxu0 }
 0x236   :  { %v11925_v56 = vadd.f32 %v2114_v52, %v11649_v42  ;;  %v11928_v12 = vadd.f32 %v16137_v9, %v1491_v40  ;;  %v2116_v21 = vpop.f32.mrb[133].mxu1  ;;  %v1493_v22 = vpop.f32.mrb[119].mxu0  ;;  %v16138_v42 = vld [vmem:[#allocation45_spill] sm:$0xff]  ;;  %v16141_v9 = vld [vmem:[#allocation47_spill] sm:$0xff] }
 0x237   :  { %v2117_v31 = vpop.f32.mrb[134].mxu1 }
 0x238   :  { %v11931_v5 = vadd.f32 %v2117_v31, %v11655_v27  ;;  %v2119_v11 = vpop.f32.mrb[135].mxu1  ;;  %9550 = vmatmul.mubr.msk.bf16.gmra.mrb[224].mxu0 %vm10190_vm2, %v16054_v24  ;;  %v16140_v27 = vld [vmem:[#allocation119_spill] sm:$0xff]  ;;  %v9919_v31 = vld [vmem:[#allocation9 + $0x120] sm:$0xff]  }
 0x239   :  { %9553 = vmatprep.mubr.msk.bf16.mxu0 %vm10190_vm2, %v16055_v53  ;;  %4701 = vmatpush1.bf16.msra.mxu0 %v9919_v31  ;;  %v9920_v31 = vld [vmem:[#allocation9 + $0x128] sm:$0xff]  }
 0x23a   :  { %8298 = vmatmul.mubr.msk.bf16.gmra.mrb[240].mxu1 %vm10400_vm5, %v16138_v42  ;;  %4702 = vmatprep.subr.bf16.mxu0 %v15829_v51 }
 0x23b   :  { %v1496_v1 = vpop.f32.mrb[120].mxu0  ;;  %2948 = vmatprep.mubr.bf16.mxu1 %v16139_v62  ;;  %v16143_v62 = vld [vmem:[#allocation40_spill] sm:$0xff] }
 0x23c   :  { %v11944_v48 = vadd.f32 %v16140_v27, %v1496_v1  ;;  %v1498_v52 = vpop.f32.mrb[121].mxu0 }
 0x23d   :  { %v2122_v24 = vpop.f32.mrb[136].mxu1  ;;  %v1499_v40 = vpop.f32.mrb[122].mxu0  ;;  %4703 = vmatpush1.bf16.msra.mxu0 %v9920_v31 }
 0x23e   :  { %v11948_v53 = vadd.f32 %v2122_v24, %v11671_v14  ;;  %v11951_v21 = vadd.f32 %v16141_v9, %v1499_v40  ;;  %v2124_v22 = vpop.f32.mrb[137].mxu1  ;;  %v1501_v49 = vpop.f32.mrb[123].mxu0  ;;  %v16142_v14 = vld [vmem:[#allocation48_spill] sm:$0xff]  ;;  %4704 = vmatprep.subr.bf16.mxu0 %v15829_v51 }
 0x23f   :  { %v2125_v11 = vpop.f32.mrb[138].mxu1 }
 0x240   :  { %v11954_v28 = vadd.f32 %v2125_v11, %v11677_v59  ;;  %v2127_v42 = vpop.f32.mrb[139].mxu1  ;;  %9554 = vmatmul.mubr.msk.bf16.gmra.mrb[228].mxu0 %vm10190_vm2, %v16061_v45  ;;  %v16144_v59 = vld [vmem:[#allocation118_spill] sm:$0xff] }
 0x241   :  { %9557 = vmatprep.mubr.msk.bf16.mxu0 %vm10190_vm2, %v16062_v25  ;;  %v16145_v25 = vld [vmem:[#allocation120_spill] sm:$0xff] }
 0x242   :  { %8302 = vmatmul.mubr.msk.bf16.gmra.mrb[244].mxu1 %vm10400_vm5, %v16142_v14 }
 0x243   :  { %v1504_v1 = vpop.f32.mrb[124].mxu0  ;;  %2956 = vmatprep.mubr.bf16.mxu1 %v16143_v62 }
 0x244   :  { %v11968_v27 = vadd.f32 %v16144_v59, %v1504_v1  ;;  %v1506_v52 = vpop.f32.mrb[125].mxu0 }
 0x245   :  { %v2130_v24 = vpop.f32.mrb[140].mxu1  ;;  %v1507_v45 = vpop.f32.mrb[126].mxu0  ;;  %v9922_v52 = vld [vmem:[#allocation9 + $0x160] sm:$0xff]  }
 0x246   :  { %v11971_v40 = vadd.f32 %v2130_v24, %v11693_v54  ;;  %v11974_v9 = vadd.f32 %v16145_v25, %v1507_v45  ;;  %v2132_v22 = vpop.f32.mrb[141].mxu1  ;;  %v1509_v49 = vpop.f32.mrb[127].mxu0  ;;  %v16146_v54 = vld [vmem:[#allocation49_spill] sm:$0xff]  ;;  %9589 = vmatprep.subr.bf16.mxu1 %v9922_v52 }
 0x247   :  { %v2133_v11 = vpop.f32.mrb[142].mxu1  ;;  %v16148_v24 = vld [vmem:[#allocation121_spill] sm:$0xff]  ;;  %v16150_v49 = vld [vmem:[#allocation100_spill] sm:$0xff]  ;;  %9590 = vmatpush3.bf16.msra.mxu1 %v9922_v52 }
 0x248   :  { %v11977_v42 = vadd.f32 %v2133_v11, %v11699_v26  ;;  %v2135_v14 = vpop.f32.mrb[143].mxu1  ;;  %9558 = vmatmul.mubr.msk.bf16.gmra.mrb[232].mxu0 %vm10190_vm2, %v16067_v13  ;;  %v16147_v26 = vld [vmem:[#allocation56_spill] sm:$0xff] }
 0x249   :  { %9561 = vmatprep.mubr.msk.bf16.mxu0 %vm10190_vm2, %v16068_v7  ;;  %v16156_v52 = vld [vmem:[#allocation68_spill] sm:$0xff] }
 0x24a   :  { %8306 = vmatmul.mubr.msk.bf16.gmra.mrb[248].mxu1 %vm10400_vm5, %v16146_v54  ;;  %v16152_v54 = vld [vmem:[#allocation122_spill] sm:$0xff] }
 0x24b   :  { %v9439_v1 = vpop.f32.mrb[128].mxu0  ;;  %2964 = vmatprep.mubr.bf16.mxu1 %v15829_v51 }
 0x24c   :  { %v11991_v62 = vadd.f32 %v9439_v1, %v16147_v26  ;;  %v2267_v59 = vpop.f32.mrb[129].mxu0 }
 0x24d   :  { %v2138_v13 = vpop.f32.mrb[144].mxu1  ;;  %v11994_v45 = vadd.f32 %v2267_v59, %v16148_v24  ;;  %v9440_v7 = vpop.f32.mrb[130].mxu0 }
 0x24e   :  { %v11997_v25 = vadd.f32 %v2138_v13, %v11715_v16  ;;  %v2140_v22 = vpop.f32.mrb[145].mxu1  ;;  %v12000_v31 = vadd.f32 %v9440_v7, %v16150_v49  ;;  %v2270_v11 = vpop.f32.mrb[131].mxu0  ;;  %v9923_v16 = vld [vmem:[#allocation9 + $0x168] sm:$0xff]   ;;  %v16155_v7 = vld [vmem:[#allocation44_spill] sm:$0xff] }
 0x24f   :  { %16149 = vst [vmem:[#allocation88_spill] sm:$0xff] %v11994_v45  ;;  %v2141_v14 = vpop.f32.mrb[146].mxu1  ;;  %v12003_v1 = vadd.f32 %v2270_v11, %v16152_v54  ;;  %v16154_v13 = vld [vmem:[#allocation43_spill] sm:$0xff]  ;;  %9591 = vmatprep.subr.bf16.mxu1 %v9923_v16  ;;  %v9921_v49 = vld [vmem:[#allocation9 + $0x130] sm:$0xff]  }
 0x250   :  { %16151 = vst [vmem:[#allocation89_spill] sm:$0xff] %v12000_v31  ;;  %v12006_v26 = vadd.f32 %v2141_v14, %v11721_v61  ;;  %v2143_v59 = vpop.f32.mrb[147].mxu1  ;;  %9562 = vmatmul.mubr.msk.bf16.gmra.mrb[236].mxu0 %vm10190_vm2, %v16073_v0  ;;  %9592 = vmatpush3.bf16.msra.mxu1 %v9923_v16  ;;  %v9925_v11 = vld [vmem:[#allocation9 + $0x170] sm:$0xff]   ;;  %v16157_v0 = vld [vmem:[#allocation62_spill] sm:$0xff]  ;;  %v16159_v31 = vld [vmem:[#allocation73_spill] sm:$0xff] }
 0x251   :  { %16153 = vst [vmem:[#allocation58_spill] sm:$0xff] %v12003_v1  ;;  %9565 = vmatprep.mubr.msk.bf16.mxu0 %vm10190_vm2, %v16154_v13  ;;  %4705 = vmatpush1.bf16.msra.mxu0 %v9921_v49  ;;  %v16165_v49 = vld [vmem:[#allocation50_spill] sm:$0xff] }
 0x252   :  { %2965 = vmatmul.mubr.bf16.gmra.mrb[252].mxu1 %v15829_v51  ;;  %9593 = vmatprep.subr.bf16.mxu1 %v9925_v11 }
 0x253   :  { %v9443_v24 = vpop.f32.mrb[132].mxu0  ;;  %2972 = vmatprep.mubr.bf16.mxu1 %v16155_v7  ;;  %4706 = vmatprep.subr.bf16.mxu0 %v15829_v51 }
 0x254   :  { %v12017_v61 = vadd.f32 %v9443_v24, %v16156_v52  ;;  %v2283_v22 = vpop.f32.mrb[133].mxu0  ;;  %v16161_v24 = vld [vmem:[#allocation67_spill] sm:$0xff]  ;;  %9594 = vmatpush3.bf16.msra.mxu1 %v9925_v11 }
 0x255   :  { %v2146_v14 = vpop.f32.mrb[148].mxu1  ;;  %v12020_v54 = vadd.f32 %v2283_v22, %v16157_v0  ;;  %v9444_v59 = vpop.f32.mrb[134].mxu0 }
 0x256   :  { %v12023_v13 = vadd.f32 %v2146_v14, %v11737_v57  ;;  %v2148_v1 = vpop.f32.mrb[149].mxu1  ;;  %v12026_v45 = vadd.f32 %v9444_v59, %v16159_v31  ;;  %v2286_v7 = vpop.f32.mrb[135].mxu0  ;;  %v16163_v57 = vld [vmem:[#allocation86_spill] sm:$0xff]  ;;  %v9924_v31 = vld [vmem:[#allocation9 + $0x138] sm:$0xff]   ;;  %v16164_v14 = vld [vmem:[#allocation87_spill] sm:$0xff] }
 0x257   :  { %16158 = vst [vmem:[#allocation59_spill] sm:$0xff] %v12020_v54  ;;  %v2149_v16 = vpop.f32.mrb[150].mxu1  ;;  %v12029_v52 = vadd.f32 %v2286_v7, %v16161_v24  ;;  %v9926_v1 = vld [vmem:[#allocation9 + $0x178] sm:$0xff]   ;;  %4707 = vmatpush1.bf16.msra.mxu0 %v9924_v31  ;;  %v16166_v59 = vld [vmem:[#allocation51_spill] sm:$0xff] }
 0x258   :  { %16160 = vst [vmem:[#allocation16_spill] sm:$0xff] %v12026_v45  ;;  %v12033_v22 = vadd.f32 %v2149_v16, %v11743_v43  ;;  %v2151_v0 = vpop.f32.mrb[151].mxu1  ;;  %9566 = vmatmul.mubr.msk.bf16.gmra.mrb[240].mxu0 %vm10190_vm2, %v16163_v57  ;;  %9595 = vmatprep.subr.bf16.mxu1 %v9926_v1  ;;  %v16167_v43 = vld [vmem:[#allocation79_spill] sm:$0xff] }
 0x259   :  { %16162 = vst [vmem:[#allocation64_spill] sm:$0xff] %v12029_v52  ;;  %9569 = vmatprep.mubr.msk.bf16.mxu0 %vm10190_vm2, %v16164_v14  ;;  %9596 = vmatpush3.bf16.msra.mxu1 %v9926_v1  ;;  %v16168_v0 = vld [vmem:[#allocation105_spill] sm:$0xff] }
 0x25a   :  { %8310 = vmatmul.mubr.msk.bf16.gmra.mrb[0].mxu1 %vm10400_vm5, %v16165_v49  ;;  %5398 = vmatprep.subr.bf16.mxu1 %v15829_v51  ;;  %v16170_v49 = vld [vmem:[#allocation80_spill] sm:$0xff] }
 0x25b   :  { %v9447_v11 = vpop.f32.mrb[136].mxu0  ;;  %2980 = vmatprep.mubr.bf16.mxu1 %v16166_v59 }
 0x25c   :  { %v12046_v7 = vadd.f32 %v9447_v11, %v16167_v43  ;;  %v2299_v16 = vpop.f32.mrb[137].mxu0  ;;  %v16172_v11 = vld [vmem:[#allocation74_spill] sm:$0xff] }
 0x25d   :  { %v2154_v24 = vpop.f32.mrb[152].mxu1  ;;  %v12049_v57 = vadd.f32 %v2299_v16, %v16168_v0  ;;  %v9448_v52 = vpop.f32.mrb[138].mxu0  ;;  %v16176_v0 = vld [vmem:[#allocation85_spill] sm:$0xff] }
 0x25e   :  { %v12053_v14 = vadd.f32 %v2154_v24, %v11760_v37  ;;  %v2156_v31 = vpop.f32.mrb[153].mxu1  ;;  %v12056_v45 = vadd.f32 %v9448_v52, %v16170_v49  ;;  %v2302_v59 = vpop.f32.mrb[139].mxu0  ;;  %v16174_v37 = vld [vmem:[#allocation54_spill] sm:$0xff]  ;;  %v16175_v24 = vld [vmem:[#allocation57_spill] sm:$0xff]  ;;  %v16177_v49 = vld [vmem:[#allocation84_spill] sm:$0xff] }
 0x25f   :  { %16169 = vst [vmem:[#allocation65_spill] sm:$0xff] %v12049_v57  ;;  %v2157_v54 = vpop.f32.mrb[154].mxu1  ;;  %v12059_v43 = vadd.f32 %v2302_v59, %v16172_v11  ;;  %v12080_v11 = vld [vmem:[#allocation9 + $0x80] sm:$0xff]  }
 0x260   :  { %16171 = vst [vmem:[#allocation109_spill] sm:$0xff] %v12056_v45  ;;  %v12062_v1 = vadd.f32 %v2157_v54, %v11766_v3  ;;  %v2159_v16 = vpop.f32.mrb[155].mxu1  ;;  %9570 = vmatmul.mubr.msk.bf16.gmra.mrb[244].mxu0 %vm10190_vm2, %v16088_v44  ;;  %v16181_v57 = vld [vmem:[#allocation34_spill] sm:$0xff]  ;;  %9661 = vmatprep.subr.bf16.mxu0 %v12080_v11 }
 0x261   :  { %16173 = vst [vmem:[#allocation110_spill] sm:$0xff] %v12059_v43  ;;  %9573 = vmatprep.mubr.msk.bf16.mxu0 %vm10190_vm2, %v16089_v4  ;;  %v16179_v43 = vld [vmem:[#allocation42_spill] sm:$0xff] }
 0x262   :  { %8314 = vmatmul.mubr.msk.bf16.gmra.mrb[4].mxu1 %vm10400_vm5, %v16174_v37 }
 0x263   :  { %v9451_v52 = vpop.f32.mrb[140].mxu0  ;;  %2988 = vmatprep.mubr.bf16.mxu1 %v16175_v24 }
 0x264   :  { %v12075_v31 = vadd.f32 %v9451_v52, %v16176_v0  ;;  %v2315_v3 = vpop.f32.mrb[141].mxu0 }
 0x265   :  { %v2162_v54 = vpop.f32.mrb[156].mxu1  ;;  %v12078_v59 = vadd.f32 %v2315_v3, %v16177_v49  ;;  %v9452_v44 = vpop.f32.mrb[142].mxu0  ;;  %v16183_v49 = vld [vmem:[#allocation90_spill] sm:$0xff] }
 0x266   :  { %v12083_v4 = vadd.f32 %v2162_v54, %v11784_v60  ;;  %v2164_v16 = vpop.f32.mrb[157].mxu1  ;;  %v12086_v37 = vadd.f32 %v9452_v44, %v16179_v43  ;;  %v2318_v45 = vpop.f32.mrb[143].mxu0  ;;  %v16184_v60 = vld [vmem:[#allocation91_spill] sm:$0xff]  ;;  %v16185_v43 = vld [vmem:[#allocation60_spill] sm:$0xff] }
 0x267   :  { %16178 = vst [vmem:[#allocation17_spill] sm:$0xff] %v12078_v59  ;;  %v2165_v24 = vpop.f32.mrb[158].mxu1  ;;  %v12089_v52 = vadd.f32 %v2318_v45, %v16181_v57  ;;  %v16186_v57 = vld [vmem:[#allocation63_spill] sm:$0xff]  ;;  %v16188_v16 = vld [vmem:[#allocation46_spill] sm:$0xff] }
 0x268   :  { %16180 = vst [vmem:[#allocation19_spill] sm:$0xff] %v12086_v37  ;;  %v12093_v0 = vadd.f32 %v2165_v24, %v11790_v33  ;;  %v2167_v3 = vpop.f32.mrb[159].mxu1  ;;  %9574 = vmatmul.mubr.msk.bf16.gmra.mrb[248].mxu0 %vm10190_vm2, %v16183_v49  ;;  %v16190_v59 = vld [vmem:[#allocation15_spill] sm:$0xff] }
 0x269   :  { %16182 = vst [vmem:[#allocation70_spill] sm:$0xff] %v12089_v52  ;;  %9577 = vmatprep.mubr.msk.bf16.mxu0 %vm10190_vm2, %v16184_v60 }
 0x26a   :  { %8318 = vmatmul.mubr.msk.bf16.gmra.mrb[8].mxu1 %vm10400_vm5, %v16185_v43 }
 0x26b   :  { %v9455_v45 = vpop.f32.mrb[144].mxu0  ;;  %2996 = vmatprep.mubr.bf16.mxu1 %v16186_v57 }
 0x26c   :  { %v12106_v54 = vadd.f32 %v9455_v45, %v11740_v2  ;;  %v2331_v33 = vpop.f32.mrb[145].mxu0 }
 0x26d   :  { %v2170_v44 = vpop.f32.mrb[160].mxu1  ;;  %v12109_v24 = vadd.f32 %v2331_v33, %v16188_v16  ;;  %v9456_v3 = vpop.f32.mrb[146].mxu0  ;;  %v16191_v33 = vld [vmem:[#allocation66_spill] sm:$0xff] }
 0x26e   :  { %16187 = vst [vmem:[#allocation71_spill] sm:$0xff] %v12106_v54  ;;  %v12112_v49 = vadd.f32 %v2170_v44, %v11808_v50  ;;  %v2172_v60 = vpop.f32.mrb[161].mxu1  ;;  %v12115_v37 = vadd.f32 %v9456_v3, %v11746_v20  ;;  %v2334_v43 = vpop.f32.mrb[147].mxu0  ;;  %v16192_v44 = vld [vmem:[#allocation69_spill] sm:$0xff] }
 0x26f   :  { %v2173_v52 = vpop.f32.mrb[162].mxu1  ;;  %v12118_v57 = vadd.f32 %v2334_v43, %v16190_v59  ;;  %v16194_v59 = vld [vmem:[#allocation52_spill] sm:$0xff]  ;;  %v16195_v54 = vld [vmem:[#allocation53_spill] sm:$0xff] }
 0x270   :  { %16189 = vst [vmem:[#allocation20_spill] sm:$0xff] %v12115_v37  ;;  %v12121_v2 = vadd.f32 %v2173_v52, %v11814_v47  ;;  %v2175_v45 = vpop.f32.mrb[163].mxu1  ;;  %9578 = vmatmul.mubr.bf16.gmra.mrb[252].mxu0 %v15829_v51 }
 0x272   :  { %8322 = vmatmul.mubr.msk.bf16.gmra.mrb[12].mxu1 %vm10400_vm5, %v16191_v33 }
 0x273   :  { %v9459_v50 = vpop.f32.mrb[148].mxu0  ;;  %3004 = vmatprep.mubr.bf16.mxu1 %v16192_v44 }
 0x274   :  { %v12129_v20 = vadd.f32 %v9459_v50, %v11787_v23  ;;  %v2347_v16 = vpop.f32.mrb[149].mxu0 }
 0x275   :  { %v2178_v3 = vpop.f32.mrb[164].mxu1  ;;  %v12132_v60 = vadd.f32 %v2347_v16, %v16194_v59  ;;  %v9460_v47 = vpop.f32.mrb[150].mxu0 }
 0x276   :  { %16193 = vst [vmem:[#allocation24_spill] sm:$0xff] %v12129_v20  ;;  %v12135_v52 = vadd.f32 %v2178_v3, %v11832_v63  ;;  %v2180_v43 = vpop.f32.mrb[165].mxu1  ;;  %v12138_v45 = vadd.f32 %v9460_v47, %v11794_v17  ;;  %v2350_v33 = vpop.f32.mrb[151].mxu0  ;;  %v16196_v20 = vld [vmem:[#allocation72_spill] sm:$0xff]  ;;  %v16197_v63 = vld [vmem:[#allocation75_spill] sm:$0xff] }
 0x277   :  { %v2181_v37 = vpop.f32.mrb[166].mxu1  ;;  %v12141_v44 = vadd.f32 %v2350_v33, %v16195_v54 }
 0x278   :  { %v12144_v23 = vadd.f32 %v2181_v37, %v11838_v55  ;;  %v2183_v50 = vpop.f32.mrb[167].mxu1 }
 0x27a   :  { %8326 = vmatmul.mubr.msk.bf16.gmra.mrb[16].mxu1 %vm10400_vm5, %v16196_v20 }
 0x27b   :  { %v9463_v16 = vpop.f32.mrb[152].mxu0  ;;  %3012 = vmatprep.mubr.bf16.mxu1 %v16197_v63  ;;  %v16198_v63 = vld [vmem:[#allocation78_spill] sm:$0xff] }
 0x27c   :  { %v12151_v3 = vadd.f32 %v9463_v16, %v11835_v29  ;;  %v2363_v17 = vpop.f32.mrb[153].mxu0 }
 0x27d   :  { %v2186_v59 = vpop.f32.mrb[168].mxu1  ;;  %v12154_v47 = vadd.f32 %v2363_v17, %v11811_v36  ;;  %v9464_v54 = vpop.f32.mrb[154].mxu0 }
 0x27e   :  { %v12157_v55 = vadd.f32 %v2186_v59, %v11854_v46  ;;  %v2188_v37 = vpop.f32.mrb[169].mxu1  ;;  %v12160_v43 = vadd.f32 %v9464_v54, %v11841_v41  ;;  %v2366_v20 = vpop.f32.mrb[155].mxu0  ;;  %v16199_v46 = vld [vmem:[#allocation81_spill] sm:$0xff] }
 0x27f   :  { %v2189_v33 = vpop.f32.mrb[170].mxu1  ;;  %v12163_v50 = vadd.f32 %v2366_v20, %v11818_v58 }
 0x280   :  { %v12166_v29 = vadd.f32 %v2189_v33, %v11861_v39  ;;  %v2191_v16 = vpop.f32.mrb[171].mxu1 }
 0x282   :  { %8330 = vmatmul.mubr.msk.bf16.gmra.mrb[20].mxu1 %vm10400_vm5, %v16198_v63 }
 0x283   :  { %v9467_v36 = vpop.f32.mrb[156].mxu0  ;;  %3020 = vmatprep.mubr.bf16.mxu1 %v16199_v46  ;;  %v16201_v46 = vld [vmem:[#allocation83_spill] sm:$0xff] }
 0x284   :  { %v12173_v17 = vadd.f32 %v9467_v36, %v11881_v15  ;;  %v2379_v41 = vpop.f32.mrb[157].mxu0 }
 0x285   :  { %v2194_v59 = vpop.f32.mrb[172].mxu1  ;;  %v12176_v54 = vadd.f32 %v2379_v41, %v11858_v32  ;;  %v9468_v58 = vpop.f32.mrb[158].mxu0 }
 0x286   :  { %v12179_v39 = vadd.f32 %v2194_v59, %v11878_v8  ;;  %v2196_v37 = vpop.f32.mrb[173].mxu1  ;;  %v12182_v20 = vadd.f32 %v9468_v58, %v11887_v34  ;;  %v2382_v33 = vpop.f32.mrb[159].mxu0  ;;  %v16202_v8 = vld [vmem:[#allocation14_spill] sm:$0xff] }
 0x287   :  { %v2197_v16 = vpop.f32.mrb[174].mxu1  ;;  %v12185_v63 = vadd.f32 %v2382_v33, %v11864_v10 }
 0x288   :  { %16200 = vst [vmem:[#allocation76_spill] sm:$0xff] %v12182_v20  ;;  %v12188_v15 = vadd.f32 %v2197_v16, %v11884_v38  ;;  %v2199_v36 = vpop.f32.mrb[175].mxu1  ;;  %v16206_v20 = vld [vmem:[#allocation33_spill] sm:$0xff] }
 0x28a   :  { %8334 = vmatmul.mubr.msk.bf16.gmra.mrb[24].mxu1 %vm10400_vm5, %v16201_v46  ;;  %v16204_v46 = vld [vmem:[#allocation108_spill] sm:$0xff] }
 0x28b   :  { %v9471_v32 = vpop.f32.mrb[160].mxu0  ;;  %3028 = vmatprep.mubr.bf16.mxu1 %v16202_v8 }
 0x28c   :  { %v12195_v41 = vadd.f32 %v9471_v32, %v11925_v56  ;;  %v2395_v34 = vpop.f32.mrb[161].mxu0  ;;  %v16205_v56 = vld [vmem:[#allocation107_spill] sm:$0xff] }
 0x28d   :  { %v2202_v59 = vpop.f32.mrb[176].mxu1  ;;  %v12198_v58 = vadd.f32 %v2395_v34, %v11904_v30  ;;  %v9472_v10 = vpop.f32.mrb[162].mxu0 }
 0x28e   :  { %16203 = vst [vmem:[#allocation77_spill] sm:$0xff] %v12195_v41  ;;  %v12201_v38 = vadd.f32 %v2202_v59, %v11901_v6  ;;  %v2204_v37 = vpop.f32.mrb[177].mxu1  ;;  %v12204_v33 = vadd.f32 %v9472_v10, %v11931_v5  ;;  %v2398_v16 = vpop.f32.mrb[163].mxu0  ;;  %v16207_v6 = vld [vmem:[#allocation41_spill] sm:$0xff] }
 0x28f   :  { %v2205_v36 = vpop.f32.mrb[178].mxu1  ;;  %v12207_v8 = vadd.f32 %v2398_v16, %v16204_v46 }
 0x290   :  { %v12210_v32 = vadd.f32 %v2205_v36, %v16205_v56  ;;  %v2207_v41 = vpop.f32.mrb[179].mxu1 }
 0x292   :  { %8338 = vmatmul.mubr.msk.bf16.gmra.mrb[28].mxu1 %vm10400_vm5, %v16206_v20 }
 0x293   :  { %v9475_v30 = vpop.f32.mrb[164].mxu0  ;;  %3036 = vmatprep.mubr.bf16.mxu1 %v16207_v6  ;;  %v16208_v6 = vld [vmem:[#allocation92_spill] sm:$0xff] }
 0x294   :  { %v12217_v34 = vadd.f32 %v9475_v30, %v11971_v40  ;;  %v2411_v5 = vpop.f32.mrb[165].mxu0 }
 0x295   :  { %v2210_v59 = vpop.f32.mrb[180].mxu1  ;;  %v12220_v10 = vadd.f32 %v2411_v5, %v11948_v53  ;;  %v9476_v37 = vpop.f32.mrb[166].mxu0 }
 0x296   :  { %v12223_v16 = vadd.f32 %v2210_v59, %v11922_v18  ;;  %v2212_v41 = vpop.f32.mrb[181].mxu1  ;;  %v12226_v36 = vadd.f32 %v9476_v37, %v11977_v42  ;;  %v2414_v20 = vpop.f32.mrb[167].mxu0  ;;  %v16209_v18 = vld [vmem:[#allocation93_spill] sm:$0xff] }
 0x297   :  { %v2213_v46 = vpop.f32.mrb[182].mxu1  ;;  %v12229_v56 = vadd.f32 %v2414_v20, %v11954_v28 }
 0x298   :  { %v12232_v40 = vadd.f32 %v2213_v46, %v11928_v12  ;;  %v2215_v30 = vpop.f32.mrb[183].mxu1 }
 0x29a   :  { %8342 = vmatmul.mubr.msk.bf16.gmra.mrb[32].mxu1 %vm10400_vm5, %v16208_v6 }
 0x29b   :  { %v9479_v53 = vpop.f32.mrb[168].mxu0  ;;  %3044 = vmatprep.mubr.bf16.mxu1 %v16209_v18  ;;  %v16211_v18 = vld [vmem:[#allocation94_spill] sm:$0xff] }
 0x29c   :  { %v12239_v5 = vadd.f32 %v9479_v53, %v12023_v13  ;;  %v2427_v42 = vpop.f32.mrb[169].mxu0 }
 0x29d   :  { %v2218_v59 = vpop.f32.mrb[184].mxu1  ;;  %v12242_v37 = vadd.f32 %v2427_v42, %v11997_v25  ;;  %v9480_v28 = vpop.f32.mrb[170].mxu0 }
 0x29e   :  { %v12245_v12 = vadd.f32 %v2218_v59, %v11944_v48  ;;  %v2220_v41 = vpop.f32.mrb[185].mxu1  ;;  %v12248_v20 = vadd.f32 %v9480_v28, %v12033_v22  ;;  %v2430_v46 = vpop.f32.mrb[171].mxu0  ;;  %v16212_v48 = vld [vmem:[#allocation95_spill] sm:$0xff] }
 0x29f   :  { %v2221_v30 = vpop.f32.mrb[186].mxu1  ;;  %v12251_v6 = vadd.f32 %v2430_v46, %v12006_v26 }
 0x2a0   :  { %16210 = vst [vmem:[#allocation111_spill] sm:$0xff] %v12248_v20  ;;  %v12254_v13 = vadd.f32 %v2221_v30, %v11951_v21  ;;  %v2223_v53 = vpop.f32.mrb[187].mxu1 }
 0x2a2   :  { %8346 = vmatmul.mubr.msk.bf16.gmra.mrb[36].mxu1 %vm10400_vm5, %v16211_v18 }
 0x2a3   :  { %v9483_v25 = vpop.f32.mrb[172].mxu0  ;;  %3052 = vmatprep.mubr.bf16.mxu1 %v16212_v48  ;;  %v16217_v48 = vld [vmem:[#allocation96_spill] sm:$0xff] }
 0x2a4   :  { %v12261_v42 = vadd.f32 %v9483_v25, %v12083_v4  ;;  %v2443_v22 = vpop.f32.mrb[173].mxu0 }
 0x2a5   :  { %v2226_v59 = vpop.f32.mrb[188].mxu1  ;;  %v12264_v28 = vadd.f32 %v2443_v22, %v12053_v14  ;;  %v9484_v26 = vpop.f32.mrb[174].mxu0  ;;  %v16218_v22 = vld [vmem:[#allocation97_spill] sm:$0xff] }
 0x2a6   :  { %16213 = vst [vmem:[#allocation112_spill] sm:$0xff] %v12261_v42  ;;  %v2227_v21 = vadd.f32 %v2226_v59, %v11968_v27  ;;  %v2228_v41 = vpop.f32.mrb[189].mxu1  ;;  %v12268_v46 = vadd.f32 %v9484_v26, %v12093_v0  ;;  %v2446_v30 = vpop.f32.mrb[175].mxu0  ;;  %v16247_v42 = vld [vmem:[#allocation16_spill] sm:$0xff] }
 0x2a7   :  { %16214 = vst [vmem:[#allocation82_spill] sm:$0xff] %v12264_v28  ;;  %v2229_v53 = vpop.f32.mrb[190].mxu1  ;;  %v12271_v18 = vadd.f32 %v2446_v30, %v12062_v1 }
 0x2a8   :  { %16215 = vst [vmem:[#allocation18_spill] sm:$0xff] %v12268_v46  ;;  %v2230_v4 = vadd.f32 %v2229_v53, %v11974_v9  ;;  %v2231_v25 = vpop.f32.mrb[191].mxu1 }
 0x2a9   :  { %16216 = vst [vmem:[#allocation23_spill] sm:$0xff] %v12271_v18 }
 0x2aa   :  { %8350 = vmatmul.mubr.msk.bf16.gmra.mrb[40].mxu1 %vm10400_vm5, %v16217_v48 }
 0x2ab   :  { %v9487_v14 = vpop.f32.mrb[176].mxu0  ;;  %3060 = vmatprep.mubr.bf16.mxu1 %v16218_v22  ;;  %v16223_v22 = vld [vmem:[#allocation98_spill] sm:$0xff] }
 0x2ac   :  { %v12279_v27 = vadd.f32 %v9487_v14, %v12135_v52  ;;  %v2459_v0 = vpop.f32.mrb[177].mxu0  ;;  %v16224_v14 = vld [vmem:[#allocation99_spill] sm:$0xff] }
 0x2ad   :  { %v12282_v59 = vadd.f32 %v2459_v0, %v12112_v49  ;;  %v9488_v26 = vpop.f32.mrb[178].mxu0  ;;  %v2846_v1 = vpop.f32.mrb[192].mxu1 }
 0x2ae   :  { %16219 = vst [vmem:[#allocation21_spill] sm:$0xff] %v12279_v27  ;;  %v12285_v41 = vadd.f32 %v9488_v26, %v12144_v23  ;;  %v2462_v9 = vpop.f32.mrb[179].mxu0  ;;  %v2848_v30 = vpop.f32.mrb[193].mxu1 }
 0x2af   :  { %16220 = vst [vmem:[#allocation113_spill] sm:$0xff] %v12282_v59  ;;  %v12288_v53 = vadd.f32 %v2462_v9, %v12121_v2  ;;  %v2849_v25 = vpop.f32.mrb[194].mxu1  ;;  %v16245_v59 = vld [vmem:[#allocation59_spill] sm:$0xff] }
 0x2b0   :  { %16221 = vst [vmem:[#allocation114_spill] sm:$0xff] %v12285_v41  ;;  %v2851_v48 = vpop.f32.mrb[195].mxu1 }
 0x2b1   :  { %16222 = vst [vmem:[#allocation27_spill] sm:$0xff] %v12288_v53 }
 0x2b2   :  { %8354 = vmatmul.mubr.msk.bf16.gmra.mrb[44].mxu1 %vm10400_vm5, %v16223_v22 }
 0x2b3   :  { %v9491_v52 = vpop.f32.mrb[180].mxu0  ;;  %3068 = vmatprep.mubr.bf16.mxu1 %v16224_v14  ;;  %v16229_v14 = vld [vmem:[#allocation101_spill] sm:$0xff] }
 0x2b4   :  { %v12295_v49 = vadd.f32 %v9491_v52, %v12179_v39  ;;  %v2475_v0 = vpop.f32.mrb[181].mxu0  ;;  %v16230_v52 = vld [vmem:[#allocation102_spill] sm:$0xff] }
 0x2b5   :  { %v12298_v23 = vadd.f32 %v2475_v0, %v12157_v55  ;;  %v9492_v26 = vpop.f32.mrb[182].mxu0  ;;  %v2854_v30 = vpop.f32.mrb[196].mxu1 }
 0x2b6   :  { %16225 = vst [vmem:[#allocation22_spill] sm:$0xff] %v12295_v49  ;;  %v12301_v2 = vadd.f32 %v9492_v26, %v12188_v15  ;;  %v2478_v9 = vpop.f32.mrb[183].mxu0  ;;  %v2856_v48 = vpop.f32.mrb[197].mxu1 }
 0x2b7   :  { %16226 = vst [vmem:[#allocation29_spill] sm:$0xff] %v12298_v23  ;;  %v12304_v41 = vadd.f32 %v2478_v9, %v12166_v29  ;;  %v2857_v22 = vpop.f32.mrb[198].mxu1 }
 0x2b8   :  { %16227 = vst [vmem:[#allocation31_spill] sm:$0xff] %v12301_v2  ;;  %v2859_v27 = vpop.f32.mrb[199].mxu1 }
 0x2b9   :  { %16228 = vst [vmem:[#allocation55_spill] sm:$0xff] %v12304_v41 }
 0x2ba   :  { %8358 = vmatmul.mubr.msk.bf16.gmra.mrb[48].mxu1 %vm10400_vm5, %v16229_v14 }
 0x2bb   :  { %v9495_v39 = vpop.f32.mrb[184].mxu0  ;;  %3076 = vmatprep.mubr.bf16.mxu1 %v16230_v52  ;;  %v16235_v52 = vld [vmem:[#allocation103_spill] sm:$0xff] }
 0x2bc   :  { %v12311_v55 = vadd.f32 %v9495_v39, %v12223_v16  ;;  %v2491_v0 = vpop.f32.mrb[185].mxu0  ;;  %v16236_v39 = vld [vmem:[#allocation104_spill] sm:$0xff] }
 0x2bd   :  { %v12314_v15 = vadd.f32 %v2491_v0, %v12201_v38  ;;  %v9496_v26 = vpop.f32.mrb[186].mxu0  ;;  %v2862_v48 = vpop.f32.mrb[200].mxu1 }
 0x2be   :  { %16231 = vst [vmem:[#allocation28_spill] sm:$0xff] %v12311_v55  ;;  %v12317_v29 = vadd.f32 %v9496_v26, %v12232_v40  ;;  %v2494_v27 = vpop.f32.mrb[187].mxu0  ;;  %v2864_v9 = vpop.f32.mrb[201].mxu1 }
 0x2bf   :  { %16232 = vst [vmem:[#allocation25_spill] sm:$0xff] %v12314_v15  ;;  %v12320_v2 = vadd.f32 %v2494_v27, %v12210_v32  ;;  %v2865_v14 = vpop.f32.mrb[202].mxu1 }
 0x2c0   :  { %16233 = vst [vmem:[#allocation26_spill] sm:$0xff] %v12317_v29  ;;  %v2867_v49 = vpop.f32.mrb[203].mxu1 }
 0x2c1   :  { %16234 = vst [vmem:[#allocation115_spill] sm:$0xff] %v12320_v2  ;;  %v16241_v2 = vld [vmem:[#allocation106_spill] sm:$0xff] }
 0x2c2   :  { %8362 = vmatmul.mubr.msk.bf16.gmra.mrb[52].mxu1 %vm10400_vm5, %v16235_v52 }
 0x2c3   :  { %v9499_v16 = vpop.f32.mrb[188].mxu0  ;;  %3084 = vmatprep.mubr.bf16.mxu1 %v16236_v39 }
 0x2c4   :  { %v12326_v38 = vadd.f32 %v9499_v16, %v2227_v21  ;;  %v2507_v0 = vpop.f32.mrb[189].mxu0 }
 0x2c5   :  { %v12329_v40 = vadd.f32 %v2507_v0, %v12245_v12  ;;  %v9500_v26 = vpop.f32.mrb[190].mxu0  ;;  %v2870_v9 = vpop.f32.mrb[204].mxu1 }
 0x2c6   :  { %16237 = vst [vmem:[#allocation61_spill] sm:$0xff] %v12326_v38  ;;  %v12331_v29 = vadd.f32 %v9500_v26, %v2230_v4  ;;  %v2510_v32 = vpop.f32.mrb[191].mxu0  ;;  %v2872_v27 = vpop.f32.mrb[205].mxu1  ;;  %v12343_v4 = vld [vmem:[%s15415_s2] ss:$0 sm:$0xff] }
 0x2c7   :  { %16238 = vst [vmem:[#allocation35_spill] sm:$0xff] %v12329_v40  ;;  %v12334_v49 = vadd.f32 %v2510_v32, %v12254_v13  ;;  %v2873_v55 = vpop.f32.mrb[206].mxu1 }
 0x2c8   :  { %16239 = vst [vmem:[#allocation30_spill] sm:$0xff] %v12331_v29  ;;  %v2875_v52 = vpop.f32.mrb[207].mxu1 }
 0x2c9   :  { %16240 = vst [vmem:[#allocation116_spill] sm:$0xff] %v12334_v49 }
 0x2ca   :  { %8366 = vmatmul.mubr.msk.bf16.gmra.mrb[56].mxu1 %vm10400_vm5, %v16241_v2  ;;  %v16242_v2 = vld [vmem:[#allocation88_spill] sm:$0xff] }
 0x2cb   :  { %v9519_v21 = vpop.f32.mrb[192].mxu0  ;;  %3092 = vmatprep.mubr.bf16.mxu1 %v15829_v51 }
 0x2cc   :  { %v3144_v12 = vadd.f32 %v9519_v21, %v2854_v30  ;;  %v3135_v16 = vpop.f32.mrb[193].mxu0  ;;  %v16243_v21 = vld [vmem:[#allocation89_spill] sm:$0xff] }
 0x2cd   :  { %v3136_v39 = vadd.f32 %v3135_v16, %v2846_v1  ;;  %v9520_v0 = vpop.f32.mrb[194].mxu0  ;;  %v12345_v13 = vpop.f32.mrb[208].mxu1  ;;  %v16244_v16 = vld [vmem:[#allocation58_spill] sm:$0xff] }
 0x2ce   :  { %v3392_v26 = vadd.f32 %v3144_v12, %v11991_v62  ;;  %v3147_v32 = vadd.f32 %v9520_v0, %v2857_v22  ;;  %v3138_v27 = vpop.f32.mrb[195].mxu0  ;;  %v2880_v52 = vpop.f32.mrb[209].mxu1 }
 0x2cf   :  { %v3390_v29 = vadd.f32 %v3136_v39, %v16242_v2  ;;  %v3139_v38 = vadd.f32 %v3138_v27, %v2849_v25  ;;  %v12349_v49 = vpop.f32.mrb[210].mxu1 }
 0x2d0   :  { %v3463_v30 = vadd.f32 %v12343_v4, %v3392_v26  ;;  %v3393_v40 = vadd.f32 %v3147_v32, %v16243_v21  ;;  %v2883_v15 = vpop.f32.mrb[211].mxu1 }
 0x2d1   :  { %v3461_v1 = vadd.f32 %v12343_v4, %v3390_v29  ;;  %v3391_v41 = vadd.f32 %v3139_v38, %v16244_v16 }
 0x2d2   :  { %v3527_v23 = vmax.f32 %v3463_v30, 0.0  ;;  %v3464_v62 = vadd.f32 %v12343_v4, %v3393_v40  ;;  %3093 = vmatmul.mubr.bf16.gmra.mrb[60].mxu1 %v15829_v51 }
 0x2d3   :  { %v12357_v22 = vmax.f32 %v3461_v1, 0.0  ;;  %v3462_v25 = vadd.f32 %v12343_v4, %v3391_v41  ;;  %v9523_v12 = vpop.f32.mrb[196].mxu0 }
 0x2d4   :  { %v3656_v39 = vrot.slane %v3527_v23, 7  ;;  %v3528_v0 = vmax.f32 %v3464_v62, 0.0  ;;  %v3160_v26 = vadd.f32 %v9523_v12, %v2870_v9  ;;  %v3151_v27 = vpop.f32.mrb[197].mxu0  ;;  %v3848_v32 = vrot.slane %v3527_v23, 1 }
 0x2d5   :  { %v3653_v15 = vrot.slane %v12357_v22, 7  ;;  %v3526_v29 = vmax.f32 %v3462_v25, 0.0  ;;  %v3152_v52 = vadd.f32 %v3151_v27, %v2862_v48  ;;  %v9524_v38 = vpop.f32.mrb[198].mxu0  ;;  %v2886_v2 = vpop.f32.mrb[212].mxu1 }
 0x2d6   :  { %v3657_v30 = vrot.slane %v3528_v0, 7  ;;  %v3849_v40 = vrot.slane %v3528_v0, 1  ;;  %v3396_v21 = vadd.f32 %v3160_v26, %v12017_v61  ;;  %v3163_v1 = vadd.f32 %v9524_v38, %v2873_v55  ;;  %v3154_v16 = vpop.f32.mrb[199].mxu0  ;;  %v2888_v53 = vpop.f32.mrb[213].mxu1  ;;  %v16250_v38 = vld [vmem:[#allocation64_spill] sm:$0xff] }
 0x2d7   :  { %v3654_v41 = vrot.slane %v3526_v29, 7  ;;  %v3394_v46 = vadd.f32 %v3152_v52, %v16245_v59  ;;  %v3155_v62 = vadd.f32 %v3154_v16, %v2865_v14  ;;  %v12364_v9 = vpack.c.bf16 %v3526_v29, %v12357_v22  ;;  %v2889_v12 = vpop.f32.mrb[214].mxu1 }
 0x2d8   :  { %v3658_v25 = vsel %vm197_vm3, %v3656_v39, %v3657_v30  ;;  %v3850_v48 = vsel %vm390_vm0, %v3848_v32, %v3849_v40  ;;  %v3467_v27 = vadd.f32 %v12343_v4, %v3396_v21  ;;  %v3397_v18 = vadd.f32 %v3163_v1, %v16247_v42  ;;  %v2891_v61 = vpop.f32.mrb[215].mxu1  ;;  %v9928_v42 = vld [vmem:[#allocation9 + $0x88] sm:$0xff]  }
 0x2d9   :  { %16246 = vst [vmem:[#allocation39_spill] sm:$0xff] %v12364_v9  ;;  %v12370_v55 = vpack.c.bf16 %v3658_v25, %v3656_v39  ;;  %v12372_v53 = vpack.c.bf16 %v3849_v40, %v3850_v48  ;;  %v3655_v59 = vsel %vm197_vm3, %v3653_v15, %v3654_v41  ;;  %v3465_v14 = vadd.f32 %v12343_v4, %v3394_v46 }
 0x2da   :  { %4708 = vmatprep.mubr.bf16.mxu0 %v12364_v9  ;;  %v12377_v26 = vpack.c.bf16 %v3655_v59, %v3653_v15  ;;  %v12379_v52 = vmax.f32 %v3467_v27, 0.0  ;;  %v3468_v32 = vadd.f32 %v12343_v4, %v3397_v18  ;;  %v3395_v30 = vadd.f32 %v3155_v62, %v16250_v38 }
 0x2db   :  { %16248 = vst [vmem:[#allocation37_spill] sm:$0xff] %v12372_v53  ;;  %v3845_v39 = vrot.slane %v12357_v22, 1  ;;  %v3529_v21 = vmax.f32 %v3465_v14, 0.0  ;;  %v9527_v40 = vpop.f32.mrb[200].mxu0  ;;  %v3846_v1 = vrot.slane %v3526_v29, 1  ;;  %v12384_v16 = vpack.c.bf16 %v3528_v0, %v3527_v23 }
 0x2dc   :  { %16249 = vst [vmem:[#allocation32_spill] sm:$0xff] %v12377_v26  ;;  %v3662_v46 = vrot.slane %v12379_v52, 7  ;;  %v3854_v41 = vrot.slane %v12379_v52, 1  ;;  %v3532_v15 = vmax.f32 %v3468_v32, 0.0  ;;  %v3466_v25 = vadd.f32 %v12343_v4, %v3395_v30  ;;  %v3167_v48 = vpop.f32.mrb[201].mxu0  ;;  %8460 = vmatmul.mubr.msk.bf16.vlgmr.msra.gmra.mrb[0].mxu0 %vm10400_vm5, %v12377_v26  ;;  %v16252_v26 = vld [vmem:[#allocation65_spill] sm:$0xff] }
 0x2dd   :  { %16251 = vst [vmem:[#allocation38_spill] sm:$0xff] %v12384_v16  ;;  %v3659_v18 = vrot.slane %v3529_v21, 7  ;;  %v3851_v62 = vrot.slane %v3529_v21, 1  ;;  %v3176_v22 = vadd.f32 %v9527_v40, %v2886_v2  ;;  %v3168_v27 = vadd.f32 %v3167_v48, %v12345_v13  ;;  %v9528_v29 = vpop.f32.mrb[202].mxu0  ;;  %4716 = vmatprep.mubr.bf16.mxu0 %v12384_v16  ;;  %9662 = vmatpush3.bf16.msra.mxu0 %v12080_v11  ;;  %v2894_v23 = vpop.f32.mrb[216].mxu1  ;;  %v9929_v16 = vld [vmem:[#allocation9 + $0x90] sm:$0xff]  }
 0x2de   :  { %v3663_v0 = vrot.slane %v3532_v15, 7  ;;  %v3855_v61 = vrot.slane %v3532_v15, 1  ;;  %v3530_v59 = vmax.f32 %v3466_v25, 0.0  ;;  %v3847_v14 = vsel %vm390_vm0, %v3845_v39, %v3846_v1  ;;  %v3170_v32 = vpop.f32.mrb[203].mxu0  ;;  %v2896_v38 = vpop.f32.mrb[217].mxu1  ;;  %9663 = vmatprep.subr.bf16.mxu0 %v9928_v42 }
 0x2df   :  { %v3400_v30 = vadd.f32 %v3176_v22, %v12046_v7  ;;  %v3398_v2 = vadd.f32 %v3168_v27, %v16252_v26  ;;  %v12398_v40 = vpack.c.bf16 %v3846_v1, %v3847_v14  ;;  %v3179_v13 = vadd.f32 %v9528_v29, %v2889_v12  ;;  %v2897_v48 = vpop.f32.mrb[218].mxu1  ;;  %v16256_v1 = vld [vmem:[#allocation109_spill] sm:$0xff]  ;;  %v9931_v14 = vld [vmem:[#allocation9] sm:$0xff]  }
 0x2e0   :  { %v3664_v11 = vsel %vm197_vm3, %v3662_v46, %v3663_v0  ;;  %v3856_v9 = vsel %vm390_vm0, %v3854_v41, %v3855_v61  ;;  %v3660_v28 = vrot.slane %v3530_v59, 7  ;;  %v3171_v25 = vadd.f32 %v3170_v32, %v12349_v49  ;;  %v2899_v39 = vpop.f32.mrb[219].mxu1  ;;  %v16257_v49 = vld [vmem:[#allocation110_spill] sm:$0xff] }
 0x2e1   :  { %16253 = vst [vmem:[#allocation117_spill] sm:$0xff] %v12398_v40  ;;  %v12403_v20 = vpack.c.bf16 %v3664_v11, %v3662_v46  ;;  %v12405_v38 = vpack.c.bf16 %v3855_v61, %v3856_v9  ;;  %v3471_v7 = vadd.f32 %v12343_v4, %v3400_v30  ;;  %v3469_v26 = vadd.f32 %v12343_v4, %v3398_v2 }
 0x2e2   :  { %9597 = vmatprep.mubr.msk.bf16.mxu1 %vm10190_vm2, %v12398_v40  ;;  %v3661_v12 = vsel %vm197_vm3, %v3659_v18, %v3660_v28  ;;  %v3401_v41 = vadd.f32 %v3179_v13, %v16256_v1  ;;  %v3399_v46 = vadd.f32 %v3171_v25, %v16257_v49  ;;  %v3852_v9 = vrot.slane %v3530_v59, 1  ;;  %9664 = vmatpush3.bf16.msra.mxu0 %v9928_v42  ;;  %v9930_v28 = vld [vmem:[#allocation9 + $0x98] sm:$0xff]  }
 0x2e3   :  { %16254 = vst [vmem:[#allocation45_spill] sm:$0xff] %v12403_v20  ;;  %16255 = vst [vmem:[#allocation36_spill] sm:$0xff] %v12405_v38  ;;  %9598 = vmatmul.mubr.msk.bf16.vlgmr.msra.gmra.mrb[64].mxu1 %vm10190_vm2, %v12372_v53  ;;  %v12418_v22 = vpack.c.bf16 %v3661_v12, %v3659_v18  ;;  %v12420_v27 = vmax.f32 %v3471_v7, 0.0  ;;  %v12422_v29 = vmax.f32 %v3469_v26, 0.0  ;;  %v9531_v0 = vpop.f32.mrb[204].mxu0  ;;  %v12424_v61 = vpack.c.bf16 %v3530_v59, %v3529_v21 }
 0x2e4   :  { %9665 = vmatprep.subr.bf16.mxu0 %v9929_v16  ;;  %v3472_v32 = vadd.f32 %v12343_v4, %v3401_v41  ;;  %v3470_v30 = vadd.f32 %v12343_v4, %v3399_v46  ;;  %v3183_v2 = vpop.f32.mrb[205].mxu0  ;;  %8464 = vmatmul.mubr.msk.bf16.gmra.mrb[4].mxu0 %vm10400_vm5, %v12370_v55  ;;  %v3853_v42 = vsel %vm390_vm0, %v3851_v62, %v3852_v9 }
 0x2e5   :  { %v12433_v18 = vpack.c.bf16 %v3532_v15, %v12379_v52  ;;  %v3668_v21 = vrot.slane %v12420_v27, 7  ;;  %v3860_v59 = vrot.slane %v12420_v27, 1  ;;  %v2902_v13 = vpop.f32.mrb[220].mxu1  ;;  %v9532_v11 = vpop.f32.mrb[206].mxu0  ;;  %4724 = vmatprep.mubr.bf16.mxu0 %v12424_v61  ;;  %5399 = vmatpush1.bf16.msra.mxu1 %v9931_v14  ;;  %v3184_v26 = vadd.f32 %v3183_v2, %v2894_v23  ;;  %v16260_v2 = vld [vmem:[#allocation17_spill] sm:$0xff] }
 0x2e6   :  { %v3536_v25 = vmax.f32 %v3472_v32, 0.0  ;;  %v3534_v39 = vmax.f32 %v3470_v30, 0.0  ;;  %v3192_v7 = vadd.f32 %v9531_v0, %v2902_v13  ;;  %v2904_v12 = vpop.f32.mrb[221].mxu1  ;;  %v3186_v1 = vpop.f32.mrb[207].mxu0  ;;  %9666 = vmatpush3.bf16.msra.mxu0 %v9929_v16  ;;  %5400 = vmatprep.subr.bf16.mxu1 %v15829_v51  ;;  %v3665_v52 = vrot.slane %v12422_v29, 7  ;;  %v9932_v30 = vld [vmem:[#allocation9 + $0xa0] sm:$0xff]  }
 0x2e7   :  { %16258 = vst [vmem:[#allocation119_spill] sm:$0xff] %v12433_v18  ;;  %v3857_v15 = vrot.slane %v12422_v29, 1  ;;  %v12441_v62 = vpack.c.bf16 %v3852_v9, %v3853_v42  ;;  %v2905_v41 = vpop.f32.mrb[222].mxu1  ;;  %v3187_v49 = vadd.f32 %v3186_v1, %v2897_v48  ;;  %9667 = vmatprep.subr.bf16.mxu0 %v9930_v28  ;;  %v3402_v16 = vadd.f32 %v3184_v26, %v16260_v2  ;;  %v16261_v12 = vld [vmem:[#allocation70_spill] sm:$0xff] }
 0x2e8   :  { %v3669_v46 = vrot.slane %v3536_v25, 7  ;;  %v3861_v14 = vrot.slane %v3536_v25, 1  ;;  %v3666_v32 = vrot.slane %v3534_v39, 7  ;;  %v3404_v0 = vadd.f32 %v3192_v7, %v12075_v31  ;;  %v2907_v23 = vpop.f32.mrb[223].mxu1 }
 0x2e9   :  { %16259 = vst [vmem:[#allocation47_spill] sm:$0xff] %v12441_v62  ;;  %9601 = vmatprep.mubr.msk.bf16.mxu1 %vm10190_vm2, %v12441_v62  ;;  %v3195_v13 = vadd.f32 %v9532_v11, %v2905_v41  ;;  %v3403_v9 = vadd.f32 %v3187_v49, %v16261_v12  ;;  %v3858_v42 = vrot.slane %v3534_v39, 1  ;;  %v3473_v41 = vadd.f32 %v12343_v4, %v3402_v16 }
 0x2ea   :  { %v3670_v48 = vsel %vm197_vm3, %v3668_v21, %v3669_v46  ;;  %v3862_v1 = vsel %vm390_vm0, %v3860_v59, %v3861_v14  ;;  %v3667_v53 = vsel %vm197_vm3, %v3665_v52, %v3666_v32  ;;  %v3475_v31 = vadd.f32 %v12343_v4, %v3404_v0  ;;  %9668 = vmatpush3.bf16.msra.mxu0 %v9930_v28  ;;  %v9933_v59 = vld [vmem:[#allocation9 + $0x8] sm:$0xff]  }
 0x2eb   :  { %9602 = vmatmul.mubr.msk.bf16.gmra.mrb[68].mxu1 %vm10190_vm2, %v12405_v38  ;;  %v12456_v7 = vpack.c.bf16 %v3670_v48, %v3668_v21  ;;  %v12458_v26 = vpack.c.bf16 %v3861_v14, %v3862_v1  ;;  %v12460_v11 = vpack.c.bf16 %v3667_v53, %v3665_v52  ;;  %v12463_v49 = vpop.f32.mrb[208].mxu0  ;;  %v16265_v32 = vld [vmem:[#allocation19_spill] sm:$0xff]  ;;  %v3474_v0 = vadd.f32 %v12343_v4, %v3403_v9 }
 0x2ec   :  { %v3539_v46 = vmax.f32 %v3475_v31, 0.0  ;;  %v3405_v23 = vadd.f32 %v3195_v13, %v16265_v32  ;;  %v3199_v2 = vpop.f32.mrb[209].mxu0  ;;  %8468 = vmatmul.mubr.msk.bf16.gmra.mrb[8].mxu0 %vm10400_vm5, %v12418_v22  ;;  %v3859_v21 = vsel %vm390_vm0, %v3857_v15, %v3858_v42  ;;  %9669 = vmatprep.subr.bf16.mxu0 %v9932_v30  ;;  %v3537_v53 = vmax.f32 %v3473_v41, 0.0 }
 0x2ed   :  { %16262 = vst [vmem:[#allocation48_spill] sm:$0xff] %v12456_v7  ;;  %16263 = vst [vmem:[#allocation40_spill] sm:$0xff] %v12458_v26  ;;  %v2910_v52 = vpop.f32.mrb[224].mxu1  ;;  %v12471_v14 = vpack.c.bf16 %v3858_v42, %v3859_v21  ;;  %v9536_v16 = vpop.f32.mrb[210].mxu0  ;;  %4732 = vmatprep.mubr.bf16.mxu0 %v12433_v18  ;;  %v12475_v28 = vpack.c.bf16 %v3534_v39, %v12422_v29  ;;  %v12478_v13 = vpack.c.bf16 %v3536_v25, %v12420_v27 }
 0x2ee   :  { %16264 = vst [vmem:[#allocation118_spill] sm:$0xff] %v12460_v11  ;;  %5401 = vmatpush1.bf16.msra.mxu1 %v9933_v59  ;;  %v3476_v12 = vadd.f32 %v12343_v4, %v3405_v23  ;;  %v3538_v9 = vmax.f32 %v3474_v0, 0.0  ;;  %v2912_v48 = vpop.f32.mrb[225].mxu1  ;;  %v3202_v15 = vpop.f32.mrb[211].mxu0  ;;  %v3674_v1 = vrot.slane %v3539_v46, 7  ;;  %v3671_v42 = vrot.slane %v3537_v53, 7  ;;  %9670 = vmatpush3.bf16.msra.mxu0 %v9932_v30 }
 0x2ef   :  { %16266 = vst [vmem:[#allocation120_spill] sm:$0xff] %v12471_v14  ;;  %16267 = vst [vmem:[#allocation49_spill] sm:$0xff] %v12475_v28  ;;  %5402 = vmatprep.subr.bf16.mxu1 %v15829_v51  ;;  %v3200_v31 = vadd.f32 %v3199_v2, %v2910_v52  ;;  %9605 = vmatprep.mubr.msk.bf16.mxu1 %vm10190_vm2, %v12471_v14  ;;  %v2913_v29 = vpop.f32.mrb[226].mxu1  ;;  %v3866_v32 = vrot.slane %v3539_v46, 1  ;;  %v3863_v23 = vrot.slane %v3537_v53, 1 }
 0x2f0   :  { %16268 = vst [vmem:[#allocation56_spill] sm:$0xff] %v12478_v13  ;;  %v3540_v39 = vmax.f32 %v3476_v12, 0.0  ;;  %v3672_v27 = vrot.slane %v3538_v9, 7  ;;  %v3203_v25 = vadd.f32 %v3202_v15, %v2913_v29  ;;  %v2915_v41 = vpop.f32.mrb[227].mxu1  ;;  %v3864_v59 = vrot.slane %v3538_v9, 1 }
 0x2f1   :  { %v3406_v0 = vadd.f32 %v3200_v31, %v12109_v24  ;;  %v12486_v21 = vpack.c.bf16 %v3538_v9, %v3537_v53  ;;  %v9934_v53 = vld [vmem:[#allocation9 + $0x10] sm:$0xff]  }
 0x2f2   :  { %v3675_v48 = vrot.slane %v3540_v39, 7  ;;  %v3867_v38 = vrot.slane %v3540_v39, 1  ;;  %v3673_v2 = vsel %vm197_vm3, %v3671_v42, %v3672_v27  ;;  %v3407_v30 = vadd.f32 %v3203_v25, %v12118_v57  ;;  %5403 = vmatpush1.bf16.msra.mxu1 %v9934_v53 }
 0x2f3   :  { %16269 = vst [vmem:[#allocation121_spill] sm:$0xff] %v12486_v21  ;;  %9606 = vmatmul.mubr.msk.bf16.gmra.mrb[72].mxu1 %vm10190_vm2, %v12458_v26  ;;  %v12493_v52 = vpack.c.bf16 %v3673_v2, %v3671_v42  ;;  %v3477_v12 = vadd.f32 %v12343_v4, %v3406_v0  ;;  %v3865_v15 = vsel %vm390_vm0, %v3863_v23, %v3864_v59  ;;  %v12497_v29 = vpop.f32.mrb[212].mxu0 }
 0x2f4   :  { %v12499_v24 = vpack.c.bf16 %v3540_v39, %v3539_v46  ;;  %v3676_v9 = vsel %vm197_vm3, %v3674_v1, %v3675_v48  ;;  %v3868_v31 = vsel %vm390_vm0, %v3866_v32, %v3867_v38  ;;  %v3478_v27 = vadd.f32 %v12343_v4, %v3407_v30  ;;  %8472 = vmatmul.mubr.msk.bf16.gmra.mrb[12].mxu0 %vm10400_vm5, %v12403_v20  ;;  %v3215_v42 = vpop.f32.mrb[213].mxu0 }
 0x2f5   :  { %16270 = vst [vmem:[#allocation100_spill] sm:$0xff] %v12493_v52  ;;  %v12507_v57 = vpack.c.bf16 %v3864_v59, %v3865_v15  ;;  %v12509_v25 = vpack.c.bf16 %v3676_v9, %v3674_v1  ;;  %v12511_v41 = vpack.c.bf16 %v3867_v38, %v3868_v31  ;;  %v3541_v46 = vmax.f32 %v3477_v12, 0.0  ;;  %v2918_v39 = vpop.f32.mrb[228].mxu1  ;;  %4740 = vmatprep.mubr.bf16.mxu0 %v12475_v28  ;;  %v12514_v23 = vpop.f32.mrb[214].mxu0  ;;  %v16275_v12 = vld [vmem:[#allocation71_spill] sm:$0xff]  ;;  %v9936_v28 = vld [vmem:[#allocation9 + $0x20] sm:$0xff]  }
 0x2f6   :  { %16271 = vst [vmem:[#allocation122_spill] sm:$0xff] %v12499_v24  ;;  %v3542_v32 = vmax.f32 %v3478_v27, 0.0  ;;  %v3208_v0 = vadd.f32 %v12463_v49, %v2918_v39  ;;  %v2920_v59 = vpop.f32.mrb[229].mxu1  ;;  %v3218_v48 = vpop.f32.mrb[215].mxu0  ;;  %5404 = vmatprep.subr.bf16.mxu1 %v15829_v51 }
 0x2f7   :  { %16272 = vst [vmem:[#allocation43_spill] sm:$0xff] %v12507_v57  ;;  %16273 = vst [vmem:[#allocation44_spill] sm:$0xff] %v12509_v25  ;;  %9609 = vmatprep.mubr.msk.bf16.mxu1 %vm10190_vm2, %v12507_v57  ;;  %v3677_v38 = vrot.slane %v3541_v46, 7  ;;  %v3869_v1 = vrot.slane %v3541_v46, 1  ;;  %v2921_v2 = vpop.f32.mrb[230].mxu1  ;;  %v16277_v59 = vld [vmem:[#allocation20_spill] sm:$0xff] }
 0x2f8   :  { %16274 = vst [vmem:[#allocation68_spill] sm:$0xff] %v12511_v41  ;;  %v3678_v30 = vrot.slane %v3542_v32, 7  ;;  %v3408_v15 = vadd.f32 %v3208_v0, %v16275_v12  ;;  %v3211_v9 = vadd.f32 %v9536_v16, %v2921_v2  ;;  %v2923_v31 = vpop.f32.mrb[231].mxu1  ;;  %v3870_v53 = vrot.slane %v3542_v32, 1 }
 0x2f9   :  { %v12522_v27 = vpack.c.bf16 %v3542_v32, %v3541_v46  ;;  %v9935_v46 = vld [vmem:[#allocation9 + $0x18] sm:$0xff]  }
 0x2fa   :  { %v3679_v49 = vsel %vm197_vm3, %v3677_v38, %v3678_v30  ;;  %v3479_v39 = vadd.f32 %v12343_v4, %v3408_v15  ;;  %v3409_v57 = vadd.f32 %v3211_v9, %v16277_v59  ;;  %v3871_v26 = vsel %vm390_vm0, %v3869_v1, %v3870_v53  ;;  %5405 = vmatpush1.bf16.msra.mxu1 %v9935_v46 }
 0x2fb   :  { %16276 = vst [vmem:[#allocation62_spill] sm:$0xff] %v12522_v27  ;;  %9610 = vmatmul.mubr.msk.bf16.gmra.mrb[76].mxu1 %vm10190_vm2, %v12511_v41  ;;  %v12531_v14 = vpack.c.bf16 %v3679_v49, %v3677_v38  ;;  %v12533_v0 = vpack.c.bf16 %v3870_v53, %v3871_v26  ;;  %v12535_v16 = vpop.f32.mrb[216].mxu0  ;;  %5406 = vmatprep.subr.bf16.mxu1 %v15829_v51 }
 0x2fc   :  { %v3543_v32 = vmax.f32 %v3479_v39, 0.0  ;;  %v3480_v2 = vadd.f32 %v12343_v4, %v3409_v57  ;;  %8476 = vmatmul.mubr.msk.bf16.gmra.mrb[16].mxu0 %vm10400_vm5, %v12460_v11  ;;  %v12541_v30 = vpop.f32.mrb[217].mxu0 }
 0x2fd   :  { %16278 = vst [vmem:[#allocation73_spill] sm:$0xff] %v12531_v14  ;;  %16279 = vst [vmem:[#allocation67_spill] sm:$0xff] %v12533_v0  ;;  %v2926_v12 = vpop.f32.mrb[232].mxu1  ;;  %9613 = vmatprep.mubr.msk.bf16.mxu1 %vm10190_vm2, %v12533_v0  ;;  %4748 = vmatprep.mubr.bf16.mxu0 %v12478_v13  ;;  %v12547_v26 = vpop.f32.mrb[218].mxu0 }
 0x2fe   :  { %v3544_v38 = vmax.f32 %v3480_v2, 0.0  ;;  %v3216_v1 = vadd.f32 %v3215_v42, %v2926_v12  ;;  %v2928_v15 = vpop.f32.mrb[233].mxu1  ;;  %v12549_v9 = vpop.f32.mrb[219].mxu0  ;;  %v3680_v57 = vrot.slane %v3543_v32, 7  ;;  %v3872_v31 = vrot.slane %v3543_v32, 1  ;;  %5407 = vmatpush1.bf16.msra.mxu1 %v9936_v28 }
 0x2ff   :  { %v2929_v53 = vpop.f32.mrb[234].mxu1  ;;  %5408 = vmatprep.subr.bf16.mxu1 %v15829_v51 }
 0x300   :  { %v3681_v49 = vrot.slane %v3544_v38, 7  ;;  %v3873_v39 = vrot.slane %v3544_v38, 1  ;;  %v3410_v59 = vadd.f32 %v3216_v1, %v12132_v60  ;;  %v3219_v0 = vadd.f32 %v3218_v48, %v2929_v53  ;;  %v2931_v41 = vpop.f32.mrb[235].mxu1 }
 0x301   :  { %v12553_v13 = vpack.c.bf16 %v3544_v38, %v3543_v32 }
 0x302   :  { %v3682_v2 = vsel %vm197_vm3, %v3680_v57, %v3681_v49  ;;  %v3874_v42 = vsel %vm390_vm0, %v3872_v31, %v3873_v39  ;;  %v3481_v12 = vadd.f32 %v12343_v4, %v3410_v59  ;;  %v3411_v46 = vadd.f32 %v3219_v0, %v12141_v44  ;;  %v9937_v31 = vld [vmem:[#allocation9 + $0xa8] sm:$0xff]  }
 0x303   :  { %16280 = vst [vmem:[#allocation86_spill] sm:$0xff] %v12553_v13  ;;  %v12559_v15 = vpack.c.bf16 %v3682_v2, %v3680_v57  ;;  %v12561_v11 = vpack.c.bf16 %v3873_v39, %v3874_v42  ;;  %v12563_v62 = vpop.f32.mrb[220].mxu0  ;;  %v16283_v2 = vld [vmem:[#allocation24_spill] sm:$0xff]  ;;  %9671 = vmatprep.subr.bf16.mxu0 %v9937_v31 }
 0x304   :  { %v3545_v60 = vmax.f32 %v3481_v12, 0.0  ;;  %v3482_v41 = vadd.f32 %v12343_v4, %v3411_v46  ;;  %8480 = vmatmul.mubr.msk.bf16.gmra.mrb[20].mxu0 %vm10400_vm5, %v12456_v7  ;;  %v12569_v48 = vpop.f32.mrb[221].mxu0 }
 0x305   :  { %16281 = vst [vmem:[#allocation87_spill] sm:$0xff] %v12559_v15  ;;  %16282 = vst [vmem:[#allocation50_spill] sm:$0xff] %v12561_v11  ;;  %v2934_v32 = vpop.f32.mrb[236].mxu1  ;;  %9614 = vmatmul.mubr.msk.bf16.gmra.mrb[80].mxu1 %vm10190_vm2, %v12561_v11  ;;  %4756 = vmatprep.mubr.bf16.mxu0 %v12486_v21  ;;  %v12575_v44 = vpop.f32.mrb[222].mxu0 }
 0x306   :  { %v3546_v0 = vmax.f32 %v3482_v41, 0.0  ;;  %v3224_v38 = vadd.f32 %v12497_v29, %v2934_v32  ;;  %v2936_v1 = vpop.f32.mrb[237].mxu1  ;;  %v12578_v57 = vpop.f32.mrb[223].mxu0  ;;  %v3683_v53 = vrot.slane %v3545_v60, 7  ;;  %v3875_v49 = vrot.slane %v3545_v60, 1  ;;  %9672 = vmatpush3.bf16.msra.mxu0 %v9937_v31 }
 0x307   :  { %v2937_v39 = vpop.f32.mrb[238].mxu1 }
 0x308   :  { %v3684_v59 = vrot.slane %v3546_v0, 7  ;;  %v3412_v42 = vadd.f32 %v3224_v38, %v16283_v2  ;;  %v3227_v12 = vadd.f32 %v12514_v23, %v2937_v39  ;;  %v2939_v46 = vpop.f32.mrb[239].mxu1  ;;  %v3876_v11 = vrot.slane %v3546_v0, 1  ;;  %v9938_v23 = vld [vmem:[#allocation9 + $0x28] sm:$0xff]  }
 0x309   :  { %v12583_v41 = vpack.c.bf16 %v3546_v0, %v3545_v60  ;;  %5409 = vmatpush1.bf16.msra.mxu1 %v9938_v23 }
 0x30a   :  { %v3685_v29 = vsel %vm197_vm3, %v3683_v53, %v3684_v59  ;;  %v3483_v28 = vadd.f32 %v12343_v4, %v3412_v42  ;;  %v3413_v32 = vadd.f32 %v3227_v12, %v12138_v45  ;;  %v3877_v1 = vsel %vm390_vm0, %v3875_v49, %v3876_v11  ;;  %5410 = vmatprep.subr.bf16.mxu1 %v15829_v51 }
 0x30b   :  { %16284 = vst [vmem:[#allocation51_spill] sm:$0xff] %v12583_v41  ;;  %v12589_v21 = vpack.c.bf16 %v3685_v29, %v3683_v53  ;;  %v12591_v7 = vpack.c.bf16 %v3876_v11, %v3877_v1  ;;  %v12593_v38 = vpop.f32.mrb[224].mxu0 }
 0x30c   :  { %v3547_v39 = vmax.f32 %v3483_v28, 0.0  ;;  %v3484_v60 = vadd.f32 %v12343_v4, %v3413_v32  ;;  %8484 = vmatmul.mubr.msk.bf16.gmra.mrb[24].mxu0 %vm10400_vm5, %v12493_v52  ;;  %v12599_v0 = vpop.f32.mrb[225].mxu0 }
 0x30d   :  { %16285 = vst [vmem:[#allocation79_spill] sm:$0xff] %v12589_v21  ;;  %16286 = vst [vmem:[#allocation105_spill] sm:$0xff] %v12591_v7  ;;  %v2942_v31 = vpop.f32.mrb[240].mxu1  ;;  %9617 = vmatprep.mubr.msk.bf16.mxu1 %vm10190_vm2, %v12591_v7  ;;  %4764 = vmatprep.mubr.bf16.mxu0 %v12499_v24  ;;  %v12605_v45 = vpop.f32.mrb[226].mxu0 }
 0x30e   :  { %v3548_v11 = vmax.f32 %v3484_v60, 0.0  ;;  %v3232_v53 = vadd.f32 %v12541_v30, %v2942_v31  ;;  %v2944_v49 = vpop.f32.mrb[241].mxu1  ;;  %v12608_v59 = vpop.f32.mrb[227].mxu0  ;;  %v3686_v2 = vrot.slane %v3547_v39, 7  ;;  %v3878_v42 = vrot.slane %v3547_v39, 1 }
 0x30f   :  { %v2945_v12 = vpop.f32.mrb[242].mxu1 }
 0x310   :  { %v3687_v46 = vrot.slane %v3548_v11, 7  ;;  %v3879_v29 = vrot.slane %v3548_v11, 1  ;;  %v3414_v28 = vadd.f32 %v3232_v53, %v12154_v47  ;;  %v3235_v32 = vadd.f32 %v12549_v9, %v2945_v12  ;;  %v2947_v1 = vpop.f32.mrb[243].mxu1  ;;  %v9939_v47 = vld [vmem:[#allocation9 + $0x30] sm:$0xff]  }
 0x311   :  { %v12613_v7 = vpack.c.bf16 %v3548_v11, %v3547_v39  ;;  %5411 = vmatpush1.bf16.msra.mxu1 %v9939_v47 }
 0x312   :  { %v3688_v30 = vsel %vm197_vm3, %v3686_v2, %v3687_v46  ;;  %v3880_v60 = vsel %vm390_vm0, %v3878_v42, %v3879_v29  ;;  %v3485_v23 = vadd.f32 %v12343_v4, %v3414_v28  ;;  %v3415_v31 = vadd.f32 %v3235_v32, %v12163_v50  ;;  %5412 = vmatprep.subr.bf16.mxu1 %v15829_v51 }
 0x313   :  { %16287 = vst [vmem:[#allocation80_spill] sm:$0xff] %v12613_v7  ;;  %v12619_v49 = vpack.c.bf16 %v3688_v30, %v3686_v2  ;;  %v12621_v24 = vpack.c.bf16 %v3879_v29, %v3880_v60  ;;  %v12623_v52 = vpop.f32.mrb[228].mxu0 }
 0x314   :  { %v3549_v53 = vmax.f32 %v3485_v23, 0.0  ;;  %v3486_v9 = vadd.f32 %v12343_v4, %v3415_v31  ;;  %8488 = vmatmul.mubr.msk.bf16.gmra.mrb[28].mxu0 %vm10400_vm5, %v12509_v25  ;;  %v12629_v39 = vpop.f32.mrb[229].mxu0 }
 0x315   :  { %16288 = vst [vmem:[#allocation74_spill] sm:$0xff] %v12619_v49  ;;  %16289 = vst [vmem:[#allocation54_spill] sm:$0xff] %v12621_v24  ;;  %v2950_v11 = vpop.f32.mrb[244].mxu1  ;;  %9618 = vmatmul.mubr.msk.bf16.gmra.mrb[84].mxu1 %vm10190_vm2, %v12621_v24  ;;  %4772 = vmatprep.mubr.bf16.mxu0 %v12522_v27  ;;  %v12635_v50 = vpop.f32.mrb[230].mxu0 }
 0x316   :  { %v3550_v2 = vmax.f32 %v3486_v9, 0.0  ;;  %v3240_v42 = vadd.f32 %v12535_v16, %v2950_v11  ;;  %v2952_v12 = vpop.f32.mrb[245].mxu1  ;;  %v12638_v46 = vpop.f32.mrb[231].mxu0  ;;  %v3689_v29 = vrot.slane %v3549_v53, 7  ;;  %v3881_v28 = vrot.slane %v3549_v53, 1 }
 0x317   :  { %v2953_v32 = vpop.f32.mrb[246].mxu1 }
 0x318   :  { %v3690_v1 = vrot.slane %v3550_v2, 7  ;;  %v3416_v30 = vadd.f32 %v3240_v42, %v12151_v3  ;;  %v3243_v60 = vadd.f32 %v12547_v26, %v2953_v32  ;;  %v2955_v23 = vpop.f32.mrb[247].mxu1  ;;  %v3882_v31 = vrot.slane %v3550_v2, 1  ;;  %v9940_v3 = vld [vmem:[#allocation9 + $0x38] sm:$0xff]  }
 0x319   :  { %v12643_v24 = vpack.c.bf16 %v3550_v2, %v3549_v53  ;;  %5413 = vmatpush1.bf16.msra.mxu1 %v9940_v3 }
 0x31a   :  { %v3691_v16 = vsel %vm197_vm3, %v3689_v29, %v3690_v1  ;;  %v3487_v9 = vadd.f32 %v12343_v4, %v3416_v30  ;;  %v3417_v47 = vadd.f32 %v3243_v60, %v12160_v43  ;;  %v3883_v11 = vsel %vm390_vm0, %v3881_v28, %v3882_v31  ;;  %5414 = vmatprep.subr.bf16.mxu1 %v15829_v51 }
 0x31b   :  { %16290 = vst [vmem:[#allocation57_spill] sm:$0xff] %v12643_v24  ;;  %v12649_v12 = vpack.c.bf16 %v3691_v16, %v3689_v29  ;;  %v12651_v27 = vpack.c.bf16 %v3882_v31, %v3883_v11  ;;  %v12653_v25 = vpop.f32.mrb[232].mxu0 }
 0x31c   :  { %v3551_v26 = vmax.f32 %v3487_v9, 0.0  ;;  %v3488_v42 = vadd.f32 %v12343_v4, %v3417_v47  ;;  %8492 = vmatmul.mubr.msk.bf16.gmra.mrb[32].mxu0 %vm10400_vm5, %v12531_v14  ;;  %v12659_v53 = vpop.f32.mrb[233].mxu0 }
 0x31d   :  { %16291 = vst [vmem:[#allocation85_spill] sm:$0xff] %v12649_v12  ;;  %16292 = vst [vmem:[#allocation84_spill] sm:$0xff] %v12651_v27  ;;  %v2958_v2 = vpop.f32.mrb[248].mxu1  ;;  %9621 = vmatprep.mubr.msk.bf16.mxu1 %vm10190_vm2, %v12651_v27  ;;  %4780 = vmatprep.mubr.bf16.mxu0 %v12553_v13  ;;  %v12665_v43 = vpop.f32.mrb[234].mxu0 }
 0x31e   :  { %v3552_v29 = vmax.f32 %v3488_v42, 0.0  ;;  %v3248_v28 = vadd.f32 %v12569_v48, %v2958_v2  ;;  %v2960_v32 = vpop.f32.mrb[249].mxu1  ;;  %v12668_v1 = vpop.f32.mrb[235].mxu0  ;;  %v3692_v30 = vrot.slane %v3551_v26, 7  ;;  %v3884_v60 = vrot.slane %v3551_v26, 1 }
 0x31f   :  { %v2961_v23 = vpop.f32.mrb[250].mxu1  ;;  %v9941_v32 = vld [vmem:[#allocation9 + $0x40] sm:$0xff]  }
 0x320   :  { %v3693_v31 = vrot.slane %v3552_v29, 7  ;;  %v3885_v16 = vrot.slane %v3552_v29, 1  ;;  %v3418_v9 = vadd.f32 %v3248_v28, %v12176_v54  ;;  %v3251_v47 = vadd.f32 %v12578_v57, %v2961_v23  ;;  %v2963_v11 = vpop.f32.mrb[251].mxu1  ;;  %5415 = vmatpush1.bf16.msra.mxu1 %v9941_v32 }
 0x321   :  { %v12673_v27 = vpack.c.bf16 %v3552_v29, %v3551_v26  ;;  %5416 = vmatprep.subr.bf16.mxu1 %v15829_v51  ;;  %v9943_v11 = vld [vmem:[#allocation9 + $0x48] sm:$0xff]  }
 0x322   :  { %v3694_v48 = vsel %vm197_vm3, %v3692_v30, %v3693_v31  ;;  %v3886_v42 = vsel %vm390_vm0, %v3884_v60, %v3885_v16  ;;  %v3489_v3 = vadd.f32 %v12343_v4, %v3418_v9  ;;  %v3419_v2 = vadd.f32 %v3251_v47, %v12185_v63  ;;  %v9942_v31 = vld [vmem:[#allocation9 + $0xb0] sm:$0xff]  }
 0x323   :  { %16293 = vst [vmem:[#allocation42_spill] sm:$0xff] %v12673_v27  ;;  %v12679_v13 = vpack.c.bf16 %v3694_v48, %v3692_v30  ;;  %v12681_v14 = vpack.c.bf16 %v3885_v16, %v3886_v42  ;;  %v12683_v20 = vpop.f32.mrb[236].mxu0  ;;  %9673 = vmatprep.subr.bf16.mxu0 %v9942_v31 }
 0x324   :  { %v3553_v54 = vmax.f32 %v3489_v3, 0.0  ;;  %v3490_v57 = vadd.f32 %v12343_v4, %v3419_v2  ;;  %8496 = vmatmul.mubr.msk.bf16.gmra.mrb[36].mxu0 %vm10400_vm5, %v12559_v15  ;;  %v12689_v26 = vpop.f32.mrb[237].mxu0  ;;  %5417 = vmatpush1.bf16.msra.mxu1 %v9943_v11 }
 0x325   :  { %16294 = vst [vmem:[#allocation34_spill] sm:$0xff] %v12679_v13  ;;  %16295 = vst [vmem:[#allocation90_spill] sm:$0xff] %v12681_v14  ;;  %v2966_v29 = vpop.f32.mrb[252].mxu1  ;;  %9622 = vmatmul.mubr.msk.bf16.gmra.mrb[88].mxu1 %vm10190_vm2, %v12681_v14  ;;  %4788 = vmatprep.mubr.bf16.mxu0 %v12583_v41  ;;  %v12695_v63 = vpop.f32.mrb[238].mxu0 }
 0x326   :  { %v3554_v28 = vmax.f32 %v3490_v57, 0.0  ;;  %v3256_v30 = vadd.f32 %v12563_v62, %v2966_v29  ;;  %v2968_v60 = vpop.f32.mrb[253].mxu1  ;;  %v12698_v23 = vpop.f32.mrb[239].mxu0  ;;  %v3695_v16 = vrot.slane %v3553_v54, 7  ;;  %v3887_v9 = vrot.slane %v3553_v54, 1  ;;  %9674 = vmatpush3.bf16.msra.mxu0 %v9942_v31  ;;  %5418 = vmatprep.subr.bf16.mxu1 %v15829_v51 }
 0x327   :  { %v2969_v47 = vpop.f32.mrb[254].mxu1  ;;  %v16297_v60 = vld [vmem:[#allocation76_spill] sm:$0xff] }
 0x328   :  { %v3696_v48 = vrot.slane %v3554_v28, 7  ;;  %v3420_v42 = vadd.f32 %v3256_v30, %v12173_v17  ;;  %v3259_v3 = vadd.f32 %v12575_v44, %v2969_v47  ;;  %v2971_v2 = vpop.f32.mrb[255].mxu1  ;;  %v3888_v32 = vrot.slane %v3554_v28, 1  ;;  %v9944_v17 = vld [vmem:[#allocation9 + $0x50] sm:$0xff]  }
 0x329   :  { %v12703_v57 = vpack.c.bf16 %v3554_v28, %v3553_v54  ;;  %5419 = vmatpush1.bf16.msra.mxu1 %v9944_v17 }
 0x32a   :  { %v3697_v62 = vsel %vm197_vm3, %v3695_v16, %v3696_v48  ;;  %v3491_v29 = vadd.f32 %v12343_v4, %v3420_v42  ;;  %v3421_v41 = vadd.f32 %v3259_v3, %v16297_v60  ;;  %v3889_v14 = vsel %vm390_vm0, %v3887_v9, %v3888_v32  ;;  %v9945_v42 = vld [vmem:[#allocation9 + $0x58] sm:$0xff]   ;;  %5420 = vmatprep.subr.bf16.mxu1 %v15829_v51 }
 0x32b   :  { %16296 = vst [vmem:[#allocation91_spill] sm:$0xff] %v12703_v57  ;;  %v12710_v30 = vpack.c.bf16 %v3697_v62, %v3695_v16  ;;  %v12712_v44 = vpack.c.bf16 %v3888_v32, %v3889_v14  ;;  %v12714_v47 = vpop.f32.mrb[240].mxu0 }
 0x32c   :  { %v3555_v54 = vmax.f32 %v3491_v29, 0.0  ;;  %v3492_v28 = vadd.f32 %v12343_v4, %v3421_v41  ;;  %8500 = vmatmul.mubr.msk.bf16.gmra.mrb[40].mxu0 %vm10400_vm5, %v12589_v21  ;;  %v12720_v31 = vpop.f32.mrb[241].mxu0 }
 0x32d   :  { %16298 = vst [vmem:[#allocation60_spill] sm:$0xff] %v12712_v44  ;;  %v2974_v11 = vpop.f32.mrb[0].mxu1  ;;  %9625 = vmatprep.mubr.msk.bf16.mxu1 %vm10190_vm2, %v12712_v44  ;;  %4796 = vmatprep.mubr.bf16.mxu0 %v12613_v7  ;;  %v12726_v14 = vpop.f32.mrb[242].mxu0  ;;  %v9946_v44 = vld [vmem:[#allocation9 + $0x60] sm:$0xff]  }
 0x32e   :  { %v3556_v16 = vmax.f32 %v3492_v28, 0.0  ;;  %v3264_v9 = vadd.f32 %v12599_v0, %v2974_v11  ;;  %v2976_v48 = vpop.f32.mrb[1].mxu1  ;;  %v12729_v41 = vpop.f32.mrb[243].mxu0  ;;  %v3698_v3 = vrot.slane %v3555_v54, 7  ;;  %v3890_v2 = vrot.slane %v3555_v54, 1  ;;  %5421 = vmatpush1.bf16.msra.mxu1 %v9945_v42 }
 0x32f   :  { %v2977_v32 = vpop.f32.mrb[2].mxu1  ;;  %5422 = vmatprep.subr.bf16.mxu1 %v15829_v51 }
 0x330   :  { %v3699_v62 = vrot.slane %v3556_v16, 7  ;;  %v3891_v29 = vrot.slane %v3556_v16, 1  ;;  %v3422_v60 = vadd.f32 %v3264_v9, %v12198_v58  ;;  %v3267_v7 = vadd.f32 %v12608_v59, %v2977_v32  ;;  %v2979_v21 = vpop.f32.mrb[3].mxu1 }
 0x331   :  { %v12734_v28 = vpack.c.bf16 %v3556_v16, %v3555_v54 }
 0x332   :  { %v3700_v0 = vsel %vm197_vm3, %v3698_v3, %v3699_v62  ;;  %v3892_v11 = vsel %vm390_vm0, %v3890_v2, %v3891_v29  ;;  %v3493_v17 = vadd.f32 %v12343_v4, %v3422_v60  ;;  %v3423_v48 = vadd.f32 %v3267_v7, %v12207_v8  ;;  %5423 = vmatpush1.bf16.msra.mxu1 %v9946_v44  ;;  %v9947_v2 = vld [vmem:[#allocation9 + $0x68] sm:$0xff]  }
 0x333   :  { %16299 = vst [vmem:[#allocation63_spill] sm:$0xff] %v12734_v28  ;;  %v12740_v15 = vpack.c.bf16 %v3700_v0, %v3698_v3  ;;  %v12742_v40 = vpack.c.bf16 %v3891_v29, %v3892_v11  ;;  %v12744_v58 = vpop.f32.mrb[244].mxu0  ;;  %5424 = vmatprep.subr.bf16.mxu1 %v15829_v51  ;;  %v16302_v0 = vld [vmem:[#allocation77_spill] sm:$0xff] }
 0x334   :  { %v3557_v21 = vmax.f32 %v3493_v17, 0.0  ;;  %v3494_v59 = vadd.f32 %v12343_v4, %v3423_v48  ;;  %8504 = vmatmul.mubr.msk.bf16.gmra.mrb[44].mxu0 %vm10400_vm5, %v12619_v49  ;;  %v12751_v54 = vpop.f32.mrb[245].mxu0 }
 0x335   :  { %16300 = vst [vmem:[#allocation46_spill] sm:$0xff] %v12740_v15  ;;  %16301 = vst [vmem:[#allocation15_spill] sm:$0xff] %v12742_v40  ;;  %v2982_v8 = vpop.f32.mrb[4].mxu1  ;;  %9626 = vmatmul.mubr.msk.bf16.gmra.mrb[92].mxu1 %vm10190_vm2, %v12742_v40  ;;  %4804 = vmatprep.mubr.bf16.mxu0 %v12643_v24  ;;  %v12757_v7 = vpop.f32.mrb[246].mxu0  ;;  %v9948_v24 = vld [vmem:[#allocation9 + $0x70] sm:$0xff]  }
 0x336   :  { %v3558_v16 = vmax.f32 %v3494_v59, 0.0  ;;  %v3272_v9 = vadd.f32 %v12593_v38, %v2982_v8  ;;  %v2984_v42 = vpop.f32.mrb[5].mxu1  ;;  %v12760_v3 = vpop.f32.mrb[247].mxu0  ;;  %v3701_v32 = vrot.slane %v3557_v21, 7  ;;  %v3893_v62 = vrot.slane %v3557_v21, 1  ;;  %5425 = vmatpush1.bf16.msra.mxu1 %v9947_v2 }
 0x337   :  { %v2985_v29 = vpop.f32.mrb[6].mxu1  ;;  %5426 = vmatprep.subr.bf16.mxu1 %v15829_v51 }
 0x338   :  { %v3702_v60 = vrot.slane %v3558_v16, 7  ;;  %v3424_v11 = vadd.f32 %v3272_v9, %v16302_v0  ;;  %v3275_v17 = vadd.f32 %v12605_v45, %v2985_v29  ;;  %v2987_v48 = vpop.f32.mrb[7].mxu1  ;;  %v3894_v40 = vrot.slane %v3558_v16, 1  ;;  %v9949_v29 = vld [vmem:[#allocation9 + $0x78] sm:$0xff]  }
 0x339   :  { %v12765_v59 = vpack.c.bf16 %v3558_v16, %v3557_v21 }
 0x33a   :  { %v3703_v38 = vsel %vm197_vm3, %v3701_v32, %v3702_v60  ;;  %v3495_v8 = vadd.f32 %v12343_v4, %v3424_v11  ;;  %v3425_v44 = vadd.f32 %v3275_v17, %v12204_v33  ;;  %v3895_v42 = vsel %vm390_vm0, %v3893_v62, %v3894_v40  ;;  %5427 = vmatpush1.bf16.msra.mxu1 %v9948_v24 }
 0x33b   :  { %v12771_v49 = vpack.c.bf16 %v3703_v38, %v3701_v32  ;;  %v12773_v18 = vpack.c.bf16 %v3894_v40, %v3895_v42  ;;  %v12775_v9 = vpop.f32.mrb[248].mxu0  ;;  %5428 = vmatprep.subr.bf16.mxu1 %v15829_v51  ;;  %v9950_v42 = vld [vmem:[#allocation9 + $0xb8] sm:$0xff]  }
 0x33c   :  { %v3559_v45 = vmax.f32 %v3495_v8, 0.0  ;;  %v3496_v21 = vadd.f32 %v12343_v4, %v3425_v44  ;;  %8508 = vmatmul.mubr.msk.bf16.gmra.mrb[48].mxu0 %vm10400_vm5, %v12649_v12  ;;  %v12782_v33 = vpop.f32.mrb[249].mxu0  ;;  %9675 = vmatprep.subr.bf16.mxu0 %v9950_v42 }
 0x33d   :  { %v2990_v16 = vpop.f32.mrb[8].mxu1  ;;  %9629 = vmatprep.mubr.msk.bf16.mxu1 %vm10190_vm2, %v12773_v18  ;;  %4812 = vmatprep.mubr.bf16.mxu0 %v12673_v27  ;;  %v12788_v40 = vpop.f32.mrb[250].mxu0 }
 0x33e   :  { %v3560_v2 = vmax.f32 %v3496_v21, 0.0  ;;  %v3280_v32 = vadd.f32 %v12629_v39, %v2990_v16  ;;  %v2992_v62 = vpop.f32.mrb[9].mxu1  ;;  %v12791_v4 = vpop.f32.mrb[251].mxu0  ;;  %v3704_v60 = vrot.slane %v3559_v45, 7  ;;  %v3896_v0 = vrot.slane %v3559_v45, 1  ;;  %5429 = vmatpush1.bf16.msra.mxu1 %v9949_v29  ;;  %9676 = vmatpush3.bf16.msra.mxu0 %v9950_v42 }
 0x33f   :  { %v2993_v11 = vpop.f32.mrb[10].mxu1  ;;  %v12803_v16 = vld [vmem:[%s15415_s2] ss:$0 sm:$0xff]  ;;  %6266 = vmatprep.subr.bf16.mxu0 %v15829_v51 }
 0x340   :  { %v3705_v17 = vrot.slane %v3560_v2, 7  ;;  %v3897_v48 = vrot.slane %v3560_v2, 1  ;;  %v3426_v38 = vadd.f32 %v3280_v32, %v12220_v10  ;;  %v3283_v8 = vadd.f32 %v12638_v46, %v2993_v11  ;;  %v2995_v44 = vpop.f32.mrb[11].mxu1 }
 0x341   :  { %v12796_v21 = vpack.c.bf16 %v3560_v2, %v3559_v45 }
 0x342   :  { %v3706_v39 = vsel %vm197_vm3, %v3704_v60, %v3705_v17  ;;  %v3898_v24 = vsel %vm390_vm0, %v3896_v0, %v3897_v48  ;;  %v3497_v62 = vadd.f32 %v12803_v16, %v3426_v38  ;;  %v3427_v27 = vadd.f32 %v3283_v8, %v12229_v56 }
 0x343   :  { %v12807_v10 = vpack.c.bf16 %v3706_v39, %v3704_v60  ;;  %v12809_v46 = vpack.c.bf16 %v3897_v48, %v3898_v24  ;;  %v12811_v45 = vpop.f32.mrb[252].mxu0 }
 0x344   :  { %v3561_v2 = vmax.f32 %v3497_v62, 0.0  ;;  %v3498_v32 = vadd.f32 %v12803_v16, %v3427_v27  ;;  %8512 = vmatmul.mubr.msk.bf16.gmra.mrb[52].mxu0 %vm10400_vm5, %v12679_v13  ;;  %v12817_v0 = vpop.f32.mrb[253].mxu0 }
 0x345   :  { %16303 = vst [vmem:[#allocation66_spill] sm:$0xff] %v12809_v46  ;;  %v2998_v11 = vpop.f32.mrb[12].mxu1  ;;  %9630 = vmatmul.mubr.msk.bf16.gmra.mrb[96].mxu1 %vm10190_vm2, %v12809_v46  ;;  %4820 = vmatprep.mubr.bf16.mxu0 %v12703_v57  ;;  %v12823_v56 = vpop.f32.mrb[254].mxu0 }
 0x346   :  { %v3562_v29 = vmax.f32 %v3498_v32, 0.0  ;;  %v3288_v60 = vadd.f32 %v12623_v52, %v2998_v11  ;;  %v3000_v17 = vpop.f32.mrb[13].mxu1  ;;  %v12826_v27 = vpop.f32.mrb[255].mxu0  ;;  %v3707_v48 = vrot.slane %v3561_v2, 7  ;;  %v3899_v38 = vrot.slane %v3561_v2, 1 }
 0x347   :  { %v3001_v8 = vpop.f32.mrb[14].mxu1 }
 0x348   :  { %v3708_v44 = vrot.slane %v3562_v29, 7  ;;  %v3428_v39 = vadd.f32 %v3288_v60, %v12217_v34  ;;  %v3291_v24 = vadd.f32 %v12635_v50, %v3001_v8  ;;  %v3003_v62 = vpop.f32.mrb[15].mxu1  ;;  %v3900_v57 = vrot.slane %v3562_v29, 1 }
 0x349   :  { %v12831_v13 = vpack.c.bf16 %v3562_v29, %v3561_v2 }
 0x34a   :  { %v3709_v52 = vsel %vm197_vm3, %v3707_v48, %v3708_v44  ;;  %v3499_v32 = vadd.f32 %v12803_v16, %v3428_v39  ;;  %v3429_v42 = vadd.f32 %v3291_v24, %v12226_v36  ;;  %v3901_v11 = vsel %vm390_vm0, %v3899_v38, %v3900_v57 }
 0x34b   :  { %v12837_v17 = vpack.c.bf16 %v3709_v52, %v3707_v48  ;;  %v12839_v12 = vpack.c.bf16 %v3900_v57, %v3901_v11 }
 0x34c   :  { %v3563_v46 = vmax.f32 %v3499_v32, 0.0  ;;  %v3500_v34 = vadd.f32 %v12803_v16, %v3429_v42  ;;  %8516 = vmatmul.mubr.msk.bf16.gmra.mrb[56].mxu0 %vm10400_vm5, %v12710_v30 }
 0x34d   :  { %16304 = vst [vmem:[#allocation69_spill] sm:$0xff] %v12839_v12  ;;  %v3006_v50 = vpop.f32.mrb[16].mxu1  ;;  %9633 = vmatprep.mubr.msk.bf16.mxu1 %vm10190_vm2, %v12839_v12  ;;  %4828 = vmatprep.mubr.bf16.mxu0 %v12734_v28 }
 0x34e   :  { %v3564_v36 = vmax.f32 %v3500_v34, 0.0  ;;  %v3296_v2 = vadd.f32 %v12659_v53, %v3006_v50  ;;  %v3008_v29 = vpop.f32.mrb[17].mxu1  ;;  %v3710_v57 = vrot.slane %v3563_v46, 7  ;;  %v3902_v60 = vrot.slane %v3563_v46, 1 }
 0x34f   :  { %v3009_v48 = vpop.f32.mrb[18].mxu1 }
 0x350   :  { %v3711_v38 = vrot.slane %v3564_v36, 7  ;;  %v3903_v8 = vrot.slane %v3564_v36, 1  ;;  %v3430_v44 = vadd.f32 %v3296_v2, %v12242_v37  ;;  %v3299_v39 = vadd.f32 %v12668_v1, %v3009_v48  ;;  %v3011_v24 = vpop.f32.mrb[19].mxu1 }
 0x351   :  { %v12852_v62 = vpack.c.bf16 %v3564_v36, %v3563_v46 }
 0x352   :  { %v3712_v52 = vsel %vm197_vm3, %v3710_v57, %v3711_v38  ;;  %v3904_v32 = vsel %vm390_vm0, %v3902_v60, %v3903_v8  ;;  %v3501_v42 = vadd.f32 %v12803_v16, %v3430_v44  ;;  %v3431_v53 = vadd.f32 %v3299_v39, %v12251_v6  ;;  %v12873_v39 = vld [vmem:[#allocation9 + $0x200] sm:$0xff]  }
 0x353   :  { %16305 = vst [vmem:[#allocation52_spill] sm:$0xff] %v12852_v62  ;;  %v12858_v11 = vpack.c.bf16 %v3712_v52, %v3710_v57  ;;  %v12860_v34 = vpack.c.bf16 %v3903_v8, %v3904_v32  ;;  %9741 = vmatprep.subr.bf16.mxu1 %v12873_v39 }
 0x354   :  { %v3565_v50 = vmax.f32 %v3501_v42, 0.0  ;;  %v3502_v37 = vadd.f32 %v12803_v16, %v3431_v53  ;;  %8520 = vmatmul.mubr.msk.bf16.gmra.mrb[60].mxu0 %vm10400_vm5, %v12740_v15 }
 0x355   :  { %16306 = vst [vmem:[#allocation53_spill] sm:$0xff] %v12860_v34  ;;  %v3014_v1 = vpop.f32.mrb[20].mxu1  ;;  %9634 = vmatmul.mubr.msk.bf16.gmra.mrb[100].mxu1 %vm10190_vm2, %v12860_v34  ;;  %4836 = vmatprep.mubr.bf16.mxu0 %v12765_v59 }
 0x356   :  { %v3566_v46 = vmax.f32 %v3502_v37, 0.0  ;;  %v3304_v6 = vadd.f32 %v12653_v25, %v3014_v1  ;;  %v3016_v36 = vpop.f32.mrb[21].mxu1  ;;  %v3713_v2 = vrot.slane %v3565_v50, 7  ;;  %v3905_v29 = vrot.slane %v3565_v50, 1  ;;  %v16308_v25 = vld [vmem:[#allocation111_spill] sm:$0xff] }
 0x357   :  { %v3017_v57 = vpop.f32.mrb[22].mxu1 }
 0x358   :  { %v3714_v60 = vrot.slane %v3566_v46, 7  ;;  %v3432_v48 = vadd.f32 %v3304_v6, %v12239_v5  ;;  %v3307_v38 = vadd.f32 %v12665_v43, %v3017_v57  ;;  %v3019_v8 = vpop.f32.mrb[23].mxu1  ;;  %v3906_v44 = vrot.slane %v3566_v46, 1 }
 0x359   :  { %v12875_v24 = vpack.c.bf16 %v3566_v46, %v3565_v50 }
 0x35a   :  { %v3715_v52 = vsel %vm197_vm3, %v3713_v2, %v3714_v60  ;;  %v3503_v32 = vadd.f32 %v12803_v16, %v3432_v48  ;;  %v3433_v42 = vadd.f32 %v3307_v38, %v16308_v25  ;;  %v3907_v53 = vsel %vm390_vm0, %v3905_v29, %v3906_v44  ;;  %v16309_v38 = vld [vmem:[#allocation82_spill] sm:$0xff] }
 0x35b   :  { %16307 = vst [vmem:[#allocation72_spill] sm:$0xff] %v12875_v24  ;;  %v12882_v37 = vpack.c.bf16 %v3715_v52, %v3713_v2  ;;  %v12884_v5 = vpack.c.bf16 %v3906_v44, %v3907_v53 }
 0x35c   :  { %v3567_v43 = vmax.f32 %v3503_v32, 0.0  ;;  %v3504_v1 = vadd.f32 %v12803_v16, %v3433_v42  ;;  %8524 = vmatmul.mubr.msk.bf16.gmra.mrb[64].mxu0 %vm10400_vm5, %v12771_v49 }
 0x35d   :  { %v3022_v50 = vpop.f32.mrb[24].mxu1  ;;  %9637 = vmatprep.mubr.msk.bf16.mxu1 %vm10190_vm2, %v12884_v5  ;;  %4844 = vmatprep.mubr.bf16.mxu0 %v12796_v21 }
 0x35e   :  { %v3568_v46 = vmax.f32 %v3504_v1, 0.0  ;;  %v3312_v6 = vadd.f32 %v12689_v26, %v3022_v50  ;;  %v3024_v36 = vpop.f32.mrb[25].mxu1  ;;  %v3716_v2 = vrot.slane %v3567_v43, 7  ;;  %v3908_v29 = vrot.slane %v3567_v43, 1  ;;  %v16311_v26 = vld [vmem:[#allocation23_spill] sm:$0xff] }
 0x35f   :  { %v3025_v57 = vpop.f32.mrb[26].mxu1 }
 0x360   :  { %v3717_v60 = vrot.slane %v3568_v46, 7  ;;  %v3909_v48 = vrot.slane %v3568_v46, 1  ;;  %v3434_v8 = vadd.f32 %v3312_v6, %v16309_v38  ;;  %v3315_v44 = vadd.f32 %v12698_v23, %v3025_v57  ;;  %v3027_v52 = vpop.f32.mrb[27].mxu1  ;;  %v16313_v38 = vld [vmem:[#allocation112_spill] sm:$0xff] }
 0x361   :  { %v12897_v32 = vpack.c.bf16 %v3568_v46, %v3567_v43 }
 0x362   :  { %v3718_v25 = vsel %vm197_vm3, %v3716_v2, %v3717_v60  ;;  %v3910_v42 = vsel %vm390_vm0, %v3908_v29, %v3909_v48  ;;  %v3505_v53 = vadd.f32 %v12803_v16, %v3434_v8  ;;  %v3435_v1 = vadd.f32 %v3315_v44, %v16311_v26 }
 0x363   :  { %16310 = vst [vmem:[#allocation75_spill] sm:$0xff] %v12897_v32  ;;  %v12903_v50 = vpack.c.bf16 %v3718_v25, %v3716_v2  ;;  %v12905_v36 = vpack.c.bf16 %v3909_v48, %v3910_v42 }
 0x364   :  { %v3569_v15 = vmax.f32 %v3505_v53, 0.0  ;;  %v3506_v6 = vadd.f32 %v12803_v16, %v3435_v1  ;;  %8528 = vmatmul.mubr.msk.bf16.gmra.mrb[68].mxu0 %vm10400_vm5, %v12807_v10  ;;  %v16315_v1 = vld [vmem:[#allocation18_spill] sm:$0xff] }
 0x365   :  { %16312 = vst [vmem:[#allocation78_spill] sm:$0xff] %v12905_v36  ;;  %v3030_v23 = vpop.f32.mrb[28].mxu1  ;;  %9638 = vmatmul.mubr.msk.bf16.gmra.mrb[104].mxu1 %vm10190_vm2, %v12905_v36  ;;  %4852 = vmatprep.mubr.bf16.mxu0 %v12831_v13 }
 0x366   :  { %v3570_v43 = vmax.f32 %v3506_v6, 0.0  ;;  %v3320_v46 = vadd.f32 %v12683_v20, %v3030_v23  ;;  %v3032_v2 = vpop.f32.mrb[29].mxu1  ;;  %v3719_v29 = vrot.slane %v3569_v15, 7  ;;  %v3911_v57 = vrot.slane %v3569_v15, 1 }
 0x367   :  { %v3033_v60 = vpop.f32.mrb[30].mxu1 }
 0x368   :  { %v3720_v48 = vrot.slane %v3570_v43, 7  ;;  %v3436_v8 = vadd.f32 %v3320_v46, %v16313_v38  ;;  %v3323_v44 = vadd.f32 %v12695_v63, %v3033_v60  ;;  %v3035_v52 = vpop.f32.mrb[31].mxu1  ;;  %v3912_v25 = vrot.slane %v3570_v43, 1 }
 0x369   :  { %v12918_v42 = vpack.c.bf16 %v3570_v43, %v3569_v15 }
 0x36a   :  { %v3721_v53 = vsel %vm197_vm3, %v3719_v29, %v3720_v48  ;;  %v3507_v26 = vadd.f32 %v12803_v16, %v3436_v8  ;;  %v3437_v6 = vadd.f32 %v3323_v44, %v16315_v1  ;;  %v3913_v20 = vsel %vm390_vm0, %v3911_v57, %v3912_v25  ;;  %v16317_v44 = vld [vmem:[#allocation113_spill] sm:$0xff] }
 0x36b   :  { %16314 = vst [vmem:[#allocation81_spill] sm:$0xff] %v12918_v42  ;;  %v12924_v23 = vpack.c.bf16 %v3721_v53, %v3719_v29  ;;  %v12926_v2 = vpack.c.bf16 %v3912_v25, %v3913_v20 }
 0x36c   :  { %v3571_v28 = vmax.f32 %v3507_v26, 0.0  ;;  %v3508_v46 = vadd.f32 %v12803_v16, %v3437_v6  ;;  %8532 = vmatmul.mubr.msk.bf16.gmra.mrb[72].mxu0 %vm10400_vm5, %v12837_v17 }
 0x36d   :  { %16316 = vst [vmem:[#allocation83_spill] sm:$0xff] %v12926_v2  ;;  %v3038_v15 = vpop.f32.mrb[32].mxu1  ;;  %9641 = vmatprep.mubr.msk.bf16.mxu1 %vm10190_vm2, %v12926_v2  ;;  %4860 = vmatprep.mubr.bf16.mxu0 %v12852_v62 }
 0x36e   :  { %v3572_v63 = vmax.f32 %v3508_v46, 0.0  ;;  %v3328_v43 = vadd.f32 %v12720_v31, %v3038_v15  ;;  %v3040_v29 = vpop.f32.mrb[33].mxu1  ;;  %v3722_v57 = vrot.slane %v3571_v28, 7  ;;  %v3914_v60 = vrot.slane %v3571_v28, 1  ;;  %v16319_v31 = vld [vmem:[#allocation27_spill] sm:$0xff] }
 0x36f   :  { %v3041_v48 = vpop.f32.mrb[34].mxu1 }
 0x370   :  { %v3723_v38 = vrot.slane %v3572_v63, 7  ;;  %v3915_v8 = vrot.slane %v3572_v63, 1  ;;  %v3438_v52 = vadd.f32 %v3328_v43, %v16317_v44  ;;  %v3331_v25 = vadd.f32 %v12729_v41, %v3041_v48  ;;  %v3043_v53 = vpop.f32.mrb[35].mxu1  ;;  %v16320_v44 = vld [vmem:[#allocation21_spill] sm:$0xff] }
 0x371   :  { %v12939_v26 = vpack.c.bf16 %v3572_v63, %v3571_v28 }
 0x372   :  { %v3724_v1 = vsel %vm197_vm3, %v3722_v57, %v3723_v38  ;;  %v3916_v6 = vsel %vm390_vm0, %v3914_v60, %v3915_v8  ;;  %v3509_v20 = vadd.f32 %v12803_v16, %v3438_v52  ;;  %v3439_v46 = vadd.f32 %v3331_v25, %v16319_v31 }
 0x373   :  { %16318 = vst [vmem:[#allocation14_spill] sm:$0xff] %v12939_v26  ;;  %v12945_v15 = vpack.c.bf16 %v3724_v1, %v3722_v57  ;;  %v12947_v29 = vpack.c.bf16 %v3915_v8, %v3916_v6 }
 0x374   :  { %v3573_v62 = vmax.f32 %v3509_v20, 0.0  ;;  %v3510_v43 = vadd.f32 %v12803_v16, %v3439_v46  ;;  %8536 = vmatmul.mubr.msk.bf16.gmra.mrb[76].mxu0 %vm10400_vm5, %v12858_v11  ;;  %v16322_v46 = vld [vmem:[#allocation114_spill] sm:$0xff] }
 0x375   :  { %v3046_v41 = vpop.f32.mrb[36].mxu1  ;;  %9642 = vmatmul.mubr.msk.bf16.gmra.mrb[108].mxu1 %vm10190_vm2, %v12947_v29  ;;  %4868 = vmatprep.mubr.bf16.mxu0 %v12875_v24 }
 0x376   :  { %v3574_v28 = vmax.f32 %v3510_v43, 0.0  ;;  %v3336_v63 = vadd.f32 %v12714_v47, %v3046_v41  ;;  %v3048_v57 = vpop.f32.mrb[37].mxu1  ;;  %v3725_v60 = vrot.slane %v3573_v62, 7  ;;  %v3917_v48 = vrot.slane %v3573_v62, 1 }
 0x377   :  { %v3049_v38 = vpop.f32.mrb[38].mxu1 }
 0x378   :  { %v3726_v8 = vrot.slane %v3574_v28, 7  ;;  %v3440_v52 = vadd.f32 %v3336_v63, %v16320_v44  ;;  %v3339_v25 = vadd.f32 %v12726_v14, %v3049_v38  ;;  %v3051_v53 = vpop.f32.mrb[39].mxu1  ;;  %v3918_v1 = vrot.slane %v3574_v28, 1 }
 0x379   :  { %v12960_v6 = vpack.c.bf16 %v3574_v28, %v3573_v62 }
 0x37a   :  { %v3727_v20 = vsel %vm197_vm3, %v3725_v60, %v3726_v8  ;;  %v3511_v31 = vadd.f32 %v12803_v16, %v3440_v52  ;;  %v3441_v43 = vadd.f32 %v3339_v25, %v16322_v46  ;;  %v3919_v47 = vsel %vm390_vm0, %v3917_v48, %v3918_v1  ;;  %v16323_v25 = vld [vmem:[#allocation29_spill] sm:$0xff] }
 0x37b   :  { %16321 = vst [vmem:[#allocation108_spill] sm:$0xff] %v12960_v6  ;;  %v12966_v41 = vpack.c.bf16 %v3727_v20, %v3725_v60  ;;  %v12968_v57 = vpack.c.bf16 %v3918_v1, %v3919_v47 }
 0x37c   :  { %v3575_v24 = vmax.f32 %v3511_v31, 0.0  ;;  %v3512_v63 = vadd.f32 %v12803_v16, %v3441_v43  ;;  %8540 = vmatmul.mubr.msk.bf16.gmra.mrb[80].mxu0 %vm10400_vm5, %v12882_v37 }
 0x37d   :  { %v3054_v14 = vpop.f32.mrb[40].mxu1  ;;  %9645 = vmatprep.mubr.msk.bf16.mxu1 %vm10190_vm2, %v12968_v57  ;;  %4876 = vmatprep.mubr.bf16.mxu0 %v12897_v32 }
 0x37e   :  { %v3576_v62 = vmax.f32 %v3512_v63, 0.0  ;;  %v3344_v28 = vadd.f32 %v12751_v54, %v3054_v14  ;;  %v3056_v60 = vpop.f32.mrb[41].mxu1  ;;  %v3728_v48 = vrot.slane %v3575_v24, 7  ;;  %v3920_v38 = vrot.slane %v3575_v24, 1  ;;  %v16325_v54 = vld [vmem:[#allocation55_spill] sm:$0xff] }
 0x37f   :  { %v3057_v8 = vpop.f32.mrb[42].mxu1 }
 0x380   :  { %v3729_v44 = vrot.slane %v3576_v62, 7  ;;  %v3921_v52 = vrot.slane %v3576_v62, 1  ;;  %v3442_v53 = vadd.f32 %v3344_v28, %v16323_v25  ;;  %v3347_v1 = vadd.f32 %v12760_v3, %v3057_v8  ;;  %v3059_v20 = vpop.f32.mrb[43].mxu1  ;;  %v16327_v25 = vld [vmem:[#allocation22_spill] sm:$0xff] }
 0x381   :  { %v12981_v31 = vpack.c.bf16 %v3576_v62, %v3575_v24 }
 0x382   :  { %v3730_v46 = vsel %vm197_vm3, %v3728_v48, %v3729_v44  ;;  %v3922_v43 = vsel %vm390_vm0, %v3920_v38, %v3921_v52  ;;  %v3513_v47 = vadd.f32 %v12803_v16, %v3442_v53  ;;  %v3443_v63 = vadd.f32 %v3347_v1, %v16325_v54 }
 0x383   :  { %16324 = vst [vmem:[#allocation107_spill] sm:$0xff] %v12981_v31  ;;  %v12987_v14 = vpack.c.bf16 %v3730_v46, %v3728_v48  ;;  %v12989_v60 = vpack.c.bf16 %v3921_v52, %v3922_v43 }
 0x384   :  { %v3577_v32 = vmax.f32 %v3513_v47, 0.0  ;;  %v3514_v28 = vadd.f32 %v12803_v16, %v3443_v63  ;;  %8544 = vmatmul.mubr.msk.bf16.gmra.mrb[84].mxu0 %vm10400_vm5, %v12903_v50  ;;  %v16329_v63 = vld [vmem:[#allocation31_spill] sm:$0xff] }
 0x385   :  { %16326 = vst [vmem:[#allocation33_spill] sm:$0xff] %v12987_v14  ;;  %v3062_v3 = vpop.f32.mrb[44].mxu1  ;;  %9646 = vmatmul.mubr.msk.bf16.gmra.mrb[112].mxu1 %vm10190_vm2, %v12989_v60  ;;  %4884 = vmatprep.mubr.bf16.mxu0 %v12918_v42 }
 0x386   :  { %v3578_v24 = vmax.f32 %v3514_v28, 0.0  ;;  %v3352_v62 = vadd.f32 %v12744_v58, %v3062_v3  ;;  %v3064_v48 = vpop.f32.mrb[45].mxu1  ;;  %v3731_v38 = vrot.slane %v3577_v32, 7  ;;  %v3923_v8 = vrot.slane %v3577_v32, 1 }
 0x387   :  { %v3065_v44 = vpop.f32.mrb[46].mxu1 }
 0x388   :  { %v3732_v52 = vrot.slane %v3578_v24, 7  ;;  %v3444_v53 = vadd.f32 %v3352_v62, %v16327_v25  ;;  %v3355_v1 = vadd.f32 %v12757_v7, %v3065_v44  ;;  %v3067_v20 = vpop.f32.mrb[47].mxu1  ;;  %v3924_v46 = vrot.slane %v3578_v24, 1 }
 0x389   :  { %v13002_v43 = vpack.c.bf16 %v3578_v24, %v3577_v32 }
 0x38a   :  { %v3733_v47 = vsel %vm197_vm3, %v3731_v38, %v3732_v52  ;;  %v3515_v54 = vadd.f32 %v12803_v16, %v3444_v53  ;;  %v3445_v28 = vadd.f32 %v3355_v1, %v16329_v63  ;;  %v3925_v58 = vsel %vm390_vm0, %v3923_v8, %v3924_v46  ;;  %v16331_v1 = vld [vmem:[#allocation25_spill] sm:$0xff] }
 0x38b   :  { %16328 = vst [vmem:[#allocation41_spill] sm:$0xff] %v13002_v43  ;;  %v13008_v3 = vpack.c.bf16 %v3733_v47, %v3731_v38  ;;  %v13010_v48 = vpack.c.bf16 %v3924_v46, %v3925_v58 }
 0x38c   :  { %v3579_v42 = vmax.f32 %v3515_v54, 0.0  ;;  %v3516_v62 = vadd.f32 %v12803_v16, %v3445_v28  ;;  %8548 = vmatmul.mubr.msk.bf16.gmra.mrb[88].mxu0 %vm10400_vm5, %v12924_v23 }
 0x38d   :  { %16330 = vst [vmem:[#allocation92_spill] sm:$0xff] %v13008_v3  ;;  %v3070_v7 = vpop.f32.mrb[48].mxu1  ;;  %9649 = vmatprep.mubr.msk.bf16.mxu1 %vm10190_vm2, %v13010_v48  ;;  %4892 = vmatprep.mubr.bf16.mxu0 %v12939_v26 }
 0x38e   :  { %v3580_v32 = vmax.f32 %v3516_v62, 0.0  ;;  %v3360_v24 = vadd.f32 %v12782_v33, %v3070_v7  ;;  %v3072_v38 = vpop.f32.mrb[49].mxu1  ;;  %v3734_v8 = vrot.slane %v3579_v42, 7  ;;  %v3926_v44 = vrot.slane %v3579_v42, 1  ;;  %v16333_v33 = vld [vmem:[#allocation115_spill] sm:$0xff] }
 0x38f   :  { %v3073_v52 = vpop.f32.mrb[50].mxu1 }
 0x390   :  { %v3735_v25 = vrot.slane %v3580_v32, 7  ;;  %v3927_v53 = vrot.slane %v3580_v32, 1  ;;  %v3446_v20 = vadd.f32 %v3360_v24, %v16331_v1  ;;  %v3363_v46 = vadd.f32 %v12791_v4, %v3073_v52  ;;  %v3075_v47 = vpop.f32.mrb[51].mxu1  ;;  %v16335_v1 = vld [vmem:[#allocation28_spill] sm:$0xff] }
 0x391   :  { %v13023_v54 = vpack.c.bf16 %v3580_v32, %v3579_v42 }
 0x392   :  { %v3736_v63 = vsel %vm197_vm3, %v3734_v8, %v3735_v25  ;;  %v3928_v28 = vsel %vm390_vm0, %v3926_v44, %v3927_v53  ;;  %v3517_v58 = vadd.f32 %v12803_v16, %v3446_v20  ;;  %v3447_v62 = vadd.f32 %v3363_v46, %v16333_v33 }
 0x393   :  { %16332 = vst [vmem:[#allocation93_spill] sm:$0xff] %v13023_v54  ;;  %v13029_v7 = vpack.c.bf16 %v3736_v63, %v3734_v8  ;;  %v13031_v38 = vpack.c.bf16 %v3927_v53, %v3928_v28 }
 0x394   :  { %v3581_v26 = vmax.f32 %v3517_v58, 0.0  ;;  %v3518_v24 = vadd.f32 %v12803_v16, %v3447_v62  ;;  %8552 = vmatmul.mubr.msk.bf16.gmra.mrb[92].mxu0 %vm10400_vm5, %v12945_v15  ;;  %v16337_v62 = vld [vmem:[#allocation26_spill] sm:$0xff] }
 0x395   :  { %16334 = vst [vmem:[#allocation94_spill] sm:$0xff] %v13029_v7  ;;  %v3078_v4 = vpop.f32.mrb[52].mxu1  ;;  %9650 = vmatmul.mubr.msk.bf16.gmra.mrb[116].mxu1 %vm10190_vm2, %v13031_v38  ;;  %4900 = vmatprep.mubr.bf16.mxu0 %v12960_v6 }
 0x396   :  { %v3582_v42 = vmax.f32 %v3518_v24, 0.0  ;;  %v3368_v32 = vadd.f32 %v12775_v9, %v3078_v4  ;;  %v3080_v8 = vpop.f32.mrb[53].mxu1  ;;  %v3737_v44 = vrot.slane %v3581_v26, 7  ;;  %v3929_v52 = vrot.slane %v3581_v26, 1 }
 0x397   :  { %v3081_v25 = vpop.f32.mrb[54].mxu1 }
 0x398   :  { %v3738_v53 = vrot.slane %v3582_v42, 7  ;;  %v3448_v20 = vadd.f32 %v3368_v32, %v16335_v1  ;;  %v3371_v46 = vadd.f32 %v12788_v40, %v3081_v25  ;;  %v3083_v47 = vpop.f32.mrb[55].mxu1  ;;  %v3930_v63 = vrot.slane %v3582_v42, 1 }
 0x399   :  { %v13044_v28 = vpack.c.bf16 %v3582_v42, %v3581_v26 }
 0x39a   :  { %v3739_v58 = vsel %vm197_vm3, %v3737_v44, %v3738_v53  ;;  %v3519_v33 = vadd.f32 %v12803_v16, %v3448_v20  ;;  %v3449_v24 = vadd.f32 %v3371_v46, %v16337_v62  ;;  %v3931_v9 = vsel %vm390_vm0, %v3929_v52, %v3930_v63  ;;  %v16340_v46 = vld [vmem:[#allocation35_spill] sm:$0xff] }
 0x39b   :  { %16336 = vst [vmem:[#allocation95_spill] sm:$0xff] %v13044_v28  ;;  %v13050_v4 = vpack.c.bf16 %v3739_v58, %v3737_v44  ;;  %v13052_v8 = vpack.c.bf16 %v3930_v63, %v3931_v9 }
 0x39c   :  { %v3583_v6 = vmax.f32 %v3519_v33, 0.0  ;;  %v3520_v32 = vadd.f32 %v12803_v16, %v3449_v24  ;;  %8556 = vmatmul.mubr.msk.bf16.gmra.mrb[96].mxu0 %vm10400_vm5, %v12966_v41 }
 0x39d   :  { %16338 = vst [vmem:[#allocation96_spill] sm:$0xff] %v13050_v4  ;;  %16339 = vst [vmem:[#allocation97_spill] sm:$0xff] %v13052_v8  ;;  %v3086_v40 = vpop.f32.mrb[56].mxu1  ;;  %9653 = vmatprep.mubr.msk.bf16.mxu1 %vm10190_vm2, %v13052_v8  ;;  %4908 = vmatprep.mubr.bf16.mxu0 %v12981_v31 }
 0x39e   :  { %v3584_v26 = vmax.f32 %v3520_v32, 0.0  ;;  %v3376_v42 = vadd.f32 %v12817_v0, %v3086_v40  ;;  %v3088_v44 = vpop.f32.mrb[57].mxu1  ;;  %v3740_v52 = vrot.slane %v3583_v6, 7  ;;  %v3932_v25 = vrot.slane %v3583_v6, 1  ;;  %v16342_v0 = vld [vmem:[#allocation116_spill] sm:$0xff] }
 0x39f   :  { %v3089_v53 = vpop.f32.mrb[58].mxu1 }
 0x3a0   :  { %v3741_v1 = vrot.slane %v3584_v26, 7  ;;  %v3933_v20 = vrot.slane %v3584_v26, 1  ;;  %v3450_v47 = vadd.f32 %v3376_v42, %v16340_v46  ;;  %v3379_v63 = vadd.f32 %v12826_v27, %v3089_v53  ;;  %v3091_v58 = vpop.f32.mrb[59].mxu1  ;;  %v16345_v46 = vld [vmem:[#allocation61_spill] sm:$0xff] }
 0x3a1   :  { %v13065_v33 = vpack.c.bf16 %v3584_v26, %v3583_v6 }
 0x3a2   :  { %v3742_v62 = vsel %vm197_vm3, %v3740_v52, %v3741_v1  ;;  %v3934_v24 = vsel %vm390_vm0, %v3932_v25, %v3933_v20  ;;  %v3521_v9 = vadd.f32 %v12803_v16, %v3450_v47  ;;  %v3451_v32 = vadd.f32 %v3379_v63, %v16342_v0 }
 0x3a3   :  { %16341 = vst [vmem:[#allocation98_spill] sm:$0xff] %v13065_v33  ;;  %v13071_v40 = vpack.c.bf16 %v3742_v62, %v3740_v52  ;;  %v13073_v44 = vpack.c.bf16 %v3933_v20, %v3934_v24 }
 0x3a4   :  { %v3585_v31 = vmax.f32 %v3521_v9, 0.0  ;;  %v3522_v42 = vadd.f32 %v12803_v16, %v3451_v32  ;;  %8560 = vmatmul.mubr.msk.bf16.gmra.mrb[100].mxu0 %vm10400_vm5, %v12987_v14  ;;  %v16347_v32 = vld [vmem:[#allocation30_spill] sm:$0xff]  ;;  %v16399_v14 = vld [vmem:[#allocation105_spill] sm:$0xff] }
 0x3a5   :  { %16343 = vst [vmem:[#allocation99_spill] sm:$0xff] %v13071_v40  ;;  %16344 = vst [vmem:[#allocation101_spill] sm:$0xff] %v13073_v44  ;;  %v3094_v27 = vpop.f32.mrb[60].mxu1  ;;  %9654 = vmatmul.mubr.msk.bf16.gmra.mrb[120].mxu1 %vm10190_vm2, %v13073_v44  ;;  %4916 = vmatprep.mubr.bf16.mxu0 %v13002_v43 }
 0x3a6   :  { %v3586_v6 = vmax.f32 %v3522_v42, 0.0  ;;  %v3384_v26 = vadd.f32 %v12811_v45, %v3094_v27  ;;  %v3096_v52 = vpop.f32.mrb[61].mxu1  ;;  %v3743_v25 = vrot.slane %v3585_v31, 7  ;;  %v3935_v53 = vrot.slane %v3585_v31, 1 }
 0x3a7   :  { %v3097_v1 = vpop.f32.mrb[62].mxu1 }
 0x3a8   :  { %v3744_v20 = vrot.slane %v3586_v6, 7  ;;  %v3452_v47 = vadd.f32 %v3384_v26, %v16345_v46  ;;  %v3387_v63 = vadd.f32 %v12823_v56, %v3097_v1  ;;  %v3936_v58 = vrot.slane %v3586_v6, 1  ;;  %v3099_v62 = vpop.f32.mrb[63].mxu1 }
 0x3a9   :  { %v13086_v24 = vpack.c.bf16 %v3586_v6, %v3585_v31 }
 0x3aa   :  { %v3745_v9 = vsel %vm197_vm3, %v3743_v25, %v3744_v20  ;;  %v3523_v0 = vadd.f32 %v12803_v16, %v3452_v47  ;;  %v3453_v42 = vadd.f32 %v3387_v63, %v16347_v32  ;;  %v3937_v45 = vsel %vm390_vm0, %v3935_v53, %v3936_v58 }
 0x3ab   :  { %16346 = vst [vmem:[#allocation102_spill] sm:$0xff] %v13086_v24  ;;  %v13092_v27 = vpack.c.bf16 %v3745_v9, %v3743_v25  ;;  %v13094_v52 = vpack.c.bf16 %v3936_v58, %v3937_v45 }
 0x3ac   :  { %v3587_v43 = vmax.f32 %v3523_v0, 0.0  ;;  %v3524_v26 = vadd.f32 %v12803_v16, %v3453_v42  ;;  %8564 = vmatmul.mubr.msk.bf16.gmra.mrb[104].mxu0 %vm10400_vm5, %v13008_v3 }
 0x3ad   :  { %16348 = vst [vmem:[#allocation103_spill] sm:$0xff] %v13092_v27  ;;  %16349 = vst [vmem:[#allocation104_spill] sm:$0xff] %v13094_v52  ;;  %9657 = vmatprep.mubr.msk.bf16.mxu1 %vm10190_vm2, %v13094_v52  ;;  %4924 = vmatprep.mubr.bf16.mxu0 %v13023_v54  ;;  %v16387_v54 = vld [vmem:[#allocation43_spill] sm:$0xff] }
 0x3ae   :  { %v3588_v56 = vmax.f32 %v3524_v26, 0.0  ;;  %v3746_v31 = vrot.slane %v3587_v43, 7  ;;  %v3938_v25 = vrot.slane %v3587_v43, 1 }
 0x3af   :  { %v4710_v6 = vpop.f32.mrb[0].mxu0 }
 0x3b0   :  { %v3747_v53 = vrot.slane %v3588_v56, 7  ;;  %v3939_v1 = vrot.slane %v3588_v56, 1  ;;  %v4712_v20 = vpop.f32.mrb[1].mxu0  ;;  %v13104_v46 = vpack.c.bf16 %v3588_v56, %v3587_v43 }
 0x3b1   :  { %v4713_v16 = vpop.f32.mrb[2].mxu0 }
 0x3b2   :  { %16350 = vst [vmem:[#allocation106_spill] sm:$0xff] %v13104_v46  ;;  %v3748_v47 = vsel %vm197_vm3, %v3746_v31, %v3747_v53  ;;  %v3940_v63 = vsel %vm390_vm0, %v3938_v25, %v3939_v1  ;;  %v4715_v58 = vpop.f32.mrb[3].mxu0 }
 0x3b3   :  { %v13108_v62 = vpack.c.bf16 %v3748_v47, %v3746_v31  ;;  %v13110_v9 = vpack.c.bf16 %v3939_v1, %v3940_v63  ;;  %v9956_v47 = vld [vmem:[#allocation9 + $0x208] sm:$0xff]  }
 0x3b4   :  { %8568 = vmatmul.mubr.msk.bf16.gmra.mrb[108].mxu0 %vm10400_vm5, %v13029_v7  ;;  %v16357_v58 = vld [vmem:[#allocation39_spill] sm:$0xff]  ;;  %v9957_v7 = vld [vmem:[#allocation9 + $0x1a0] sm:$0xff]  }
 0x3b5   :  { %16351 = vst [vmem:[#allocation88_spill] sm:$0xff] %v13108_v62  ;;  %16352 = vst [vmem:[#allocation89_spill] sm:$0xff] %v13110_v9  ;;  %9658 = vmatmul.mubr.msk.bf16.gmra.mrb[124].mxu1 %vm10190_vm2, %v13110_v9  ;;  %4932 = vmatprep.mubr.bf16.mxu0 %v13044_v28  ;;  %v9966_v9 = vld [vmem:[#allocation9 + $0x218] sm:$0xff]   ;;  %v16375_v28 = vld [vmem:[#allocation47_spill] sm:$0xff] }
 0x3b6   :  { %v9599_v0 = vpop.f32.mrb[64].mxu1  ;;  %5430 = vmatprep.mubr.bf16.mxu1 %v15829_v51 }
 0x3b7   :  { %v4999_v43 = vpop.f32.mrb[65].mxu1  ;;  %v4718_v45 = vpop.f32.mrb[4].mxu0 }
 0x3b8   :  { %v13120_v32 = vadd.f32 %v4999_v43, %v4710_v6  ;;  %v9600_v42 = vpop.f32.mrb[66].mxu1  ;;  %v4720_v56 = vpop.f32.mrb[5].mxu0  ;;  %v13122_v31 = vadd.f32 %v9599_v0, %v4718_v45  ;;  %v9961_v43 = vld [vmem:[#allocation9 + $0x210] sm:$0xff]  }
 0x3b9   :  { %v5002_v26 = vpop.f32.mrb[67].mxu1  ;;  %v4721_v53 = vpop.f32.mrb[6].mxu0 }
 0x3ba   :  { %16353 = vst [vmem:[#allocation58_spill] sm:$0xff] %v13120_v32  ;;  %16354 = vst [vmem:[#allocation59_spill] sm:$0xff] %v13122_v31  ;;  %v13124_v25 = vadd.f32 %v5002_v26, %v4713_v16  ;;  %v4723_v1 = vpop.f32.mrb[7].mxu0  ;;  %v13126_v20 = vadd.f32 %v9600_v42, %v4721_v53  ;;  %v16382_v31 = vld [vmem:[#allocation48_spill] sm:$0xff] }
 0x3bc   :  { %16355 = vst [vmem:[#allocation16_spill] sm:$0xff] %v13124_v25  ;;  %16356 = vst [vmem:[#allocation64_spill] sm:$0xff] %v13126_v20  ;;  %8572 = vmatmul.mubr.msk.bf16.gmra.mrb[112].mxu0 %vm10400_vm5, %v13050_v4 }
 0x3bd   :  { %5431 = vmatmul.mubr.bf16.vlgmr.msra.gmra.mrb[128].mxu1 %v15829_v51  ;;  %4940 = vmatprep.mubr.bf16.mxu0 %v13065_v33 }
 0x3be   :  { %v9603_v63 = vpop.f32.mrb[68].mxu1  ;;  %5438 = vmatprep.mubr.bf16.mxu1 %v16357_v58  ;;  %9742 = vmatpush3.bf16.msra.mxu1 %v12873_v39  ;;  %v16360_v58 = vld [vmem:[#allocation32_spill] sm:$0xff] }
 0x3bf   :  { %v5015_v6 = vpop.f32.mrb[69].mxu1  ;;  %v4726_v0 = vpop.f32.mrb[8].mxu0  ;;  %9743 = vmatprep.subr.bf16.mxu1 %v9956_v47 }
 0x3c0   :  { %v9604_v16 = vpop.f32.mrb[70].mxu1  ;;  %v4728_v45 = vpop.f32.mrb[9].mxu0  ;;  %v13135_v26 = vadd.f32 %v5015_v6, %v4726_v0  ;;  %v16361_v0 = vld [vmem:[#allocation38_spill] sm:$0xff] }
 0x3c1   :  { %v5018_v42 = vpop.f32.mrb[71].mxu1  ;;  %v4729_v56 = vpop.f32.mrb[10].mxu0 }
 0x3c2   :  { %16358 = vst [vmem:[#allocation65_spill] sm:$0xff] %v13135_v26  ;;  %v4731_v53 = vpop.f32.mrb[11].mxu0  ;;  %9744 = vmatpush3.bf16.msra.mxu1 %v9956_v47  ;;  %v13137_v1 = vadd.f32 %v5018_v42, %v4729_v56  ;;  %v16370_v26 = vld [vmem:[#allocation45_spill] sm:$0xff] }
 0x3c3   :  { %9745 = vmatprep.subr.bf16.mxu1 %v9961_v43 }
 0x3c4   :  { %16359 = vst [vmem:[#allocation109_spill] sm:$0xff] %v13137_v1  ;;  %8576 = vmatmul.mubr.msk.bf16.gmra.mrb[116].mxu0 %vm10400_vm5, %v13071_v40  ;;  %v16369_v1 = vld [vmem:[#allocation117_spill] sm:$0xff] }
 0x3c5   :  { %8684 = vmatmul.mubr.msk.bf16.gmra.mrb[132].mxu1 %vm10400_vm5, %v16360_v58  ;;  %4948 = vmatprep.mubr.bf16.mxu0 %v13086_v24 }
 0x3c6   :  { %v9607_v39 = vpop.f32.mrb[72].mxu1  ;;  %5446 = vmatprep.mubr.bf16.mxu1 %v16361_v0  ;;  %9746 = vmatpush3.bf16.msra.mxu1 %v9961_v43 }
 0x3c7   :  { %v5031_v6 = vpop.f32.mrb[73].mxu1  ;;  %v4734_v42 = vpop.f32.mrb[12].mxu0  ;;  %9747 = vmatprep.subr.bf16.mxu1 %v9966_v9 }
 0x3c8   :  { %v9608_v47 = vpop.f32.mrb[74].mxu1  ;;  %v4736_v56 = vpop.f32.mrb[13].mxu0  ;;  %v13147_v53 = vadd.f32 %v9603_v63, %v4734_v42 }
 0x3c9   :  { %v5034_v45 = vpop.f32.mrb[75].mxu1  ;;  %v4737_v33 = vpop.f32.mrb[14].mxu0 }
 0x3ca   :  { %16362 = vst [vmem:[#allocation110_spill] sm:$0xff] %v13147_v53  ;;  %v4739_v40 = vpop.f32.mrb[15].mxu0  ;;  %9748 = vmatpush3.bf16.msra.mxu1 %v9966_v9  ;;  %v13149_v4 = vadd.f32 %v9604_v16, %v4737_v33 }
 0x3cc   :  { %16363 = vst [vmem:[#allocation17_spill] sm:$0xff] %v13149_v4  ;;  %8580 = vmatmul.mubr.msk.bf16.gmra.mrb[120].mxu0 %vm10400_vm5, %v13092_v27 }
 0x3cd   :  { %8688 = vmatmul.mubr.msk.bf16.gmra.mrb[136].mxu1 %vm10400_vm5, %v12370_v55  ;;  %4956 = vmatprep.mubr.bf16.mxu0 %v13104_v46  ;;  %v16366_v46 = vld [vmem:[#allocation119_spill] sm:$0xff] }
 0x3ce   :  { %v9611_v58 = vpop.f32.mrb[76].mxu1  ;;  %5454 = vmatprep.mubr.bf16.mxu1 %v12424_v61 }
 0x3cf   :  { %v5047_v43 = vpop.f32.mrb[77].mxu1  ;;  %v4742_v42 = vpop.f32.mrb[16].mxu0 }
 0x3d0   :  { %v9612_v63 = vpop.f32.mrb[78].mxu1  ;;  %v4744_v9 = vpop.f32.mrb[17].mxu0  ;;  %v13159_v33 = vadd.f32 %v5031_v6, %v4742_v42  ;;  %v9971_v42 = vld [vmem:[#allocation9 + $0x220] sm:$0xff]  }
 0x3d1   :  { %v5050_v40 = vpop.f32.mrb[79].mxu1  ;;  %v4745_v16 = vpop.f32.mrb[18].mxu0  ;;  %9749 = vmatprep.subr.bf16.mxu1 %v9971_v42 }
 0x3d2   :  { %16364 = vst [vmem:[#allocation70_spill] sm:$0xff] %v13159_v33  ;;  %v4747_v56 = vpop.f32.mrb[19].mxu0  ;;  %v13161_v24 = vadd.f32 %v5034_v45, %v4745_v16  ;;  %v9952_v33 = vld [vmem:[#allocation9 + $0x180] sm:$0xff]   ;;  %9750 = vmatpush3.bf16.msra.mxu1 %v9971_v42 }
 0x3d4   :  { %16365 = vst [vmem:[#allocation19_spill] sm:$0xff] %v13161_v24  ;;  %8584 = vmatmul.mubr.msk.bf16.gmra.mrb[124].mxu0 %vm10400_vm5, %v13108_v62 }
 0x3d5   :  { %8692 = vmatmul.mubr.msk.bf16.gmra.mrb[140].mxu1 %vm10400_vm5, %v12418_v22  ;;  %9677 = vmatprep.mubr.bf16.mxu0 %v15829_v51 }
 0x3d6   :  { %5462 = vmatprep.mubr.bf16.mxu1 %v16366_v46 }
 0x3d7   :  { %v4750_v27 = vpop.f32.mrb[20].mxu0 }
 0x3d8   :  { %v13171_v9 = vpop.f32.mrb[80].mxu1  ;;  %v4752_v6 = vpop.f32.mrb[21].mxu0  ;;  %v13173_v56 = vadd.f32 %v9607_v39, %v4750_v27  ;;  %v16371_v27 = vld [vmem:[#allocation37_spill] sm:$0xff] }
 0x3d9   :  { %v5063_v45 = vpop.f32.mrb[81].mxu1  ;;  %v4753_v16 = vpop.f32.mrb[22].mxu0  ;;  %v16372_v39 = vld [vmem:[#allocation49_spill] sm:$0xff] }
 0x3da   :  { %16367 = vst [vmem:[#allocation71_spill] sm:$0xff] %v13173_v56  ;;  %v13175_v24 = vpop.f32.mrb[82].mxu1  ;;  %v4755_v62 = vpop.f32.mrb[23].mxu0  ;;  %v13177_v4 = vadd.f32 %v9608_v47, %v4753_v16 }
 0x3db   :  { %v5066_v53 = vpop.f32.mrb[83].mxu1  ;;  %v9953_v62 = vld [vmem:[#allocation9 + $0x188] sm:$0xff]  }
 0x3dc   :  { %16368 = vst [vmem:[#allocation20_spill] sm:$0xff] %v13177_v4  ;;  %9678 = vmatmul.mubr.msk.bf16.vlgmr.msra.gmra.mrb[128].mxu0 %vm10190_vm2, %v16369_v1  ;;  %v9954_v4 = vld [vmem:[#allocation9 + $0x190] sm:$0xff]  }
 0x3dd   :  { %8696 = vmatmul.mubr.msk.bf16.gmra.mrb[144].mxu1 %vm10400_vm5, %v16370_v26  ;;  %9681 = vmatprep.mubr.msk.bf16.mxu0 %vm10190_vm2, %v16371_v27  ;;  %v16377_v27 = vld [vmem:[#allocation36_spill] sm:$0xff] }
 0x3de   :  { %5470 = vmatprep.mubr.bf16.mxu1 %v16372_v39  ;;  %6267 = vmatpush1.bf16.msra.mxu0 %v9952_v33  ;;  %v16376_v33 = vld [vmem:[#allocation118_spill] sm:$0xff] }
 0x3df   :  { %v4758_v47 = vpop.f32.mrb[24].mxu0  ;;  %6268 = vmatprep.subr.bf16.mxu0 %v15829_v51 }
 0x3e0   :  { %v4760_v6 = vpop.f32.mrb[25].mxu0  ;;  %v13190_v42 = vadd.f32 %v5047_v43, %v4758_v47  ;;  %v16378_v43 = vld [vmem:[#allocation56_spill] sm:$0xff] }
 0x3e1   :  { %v4761_v16 = vpop.f32.mrb[26].mxu0 }
 0x3e2   :  { %16373 = vst [vmem:[#allocation24_spill] sm:$0xff] %v13190_v42  ;;  %v4763_v1 = vpop.f32.mrb[27].mxu0  ;;  %6269 = vmatpush1.bf16.msra.mxu0 %v9953_v62  ;;  %v13192_v56 = vadd.f32 %v5050_v40, %v4761_v16  ;;  %v9955_v62 = vld [vmem:[#allocation9 + $0x198] sm:$0xff]  }
 0x3e3   :  { %6270 = vmatprep.subr.bf16.mxu0 %v15829_v51 }
 0x3e4   :  { %16374 = vst [vmem:[#allocation76_spill] sm:$0xff] %v13192_v56  ;;  %9682 = vmatmul.mubr.msk.bf16.gmra.mrb[132].mxu0 %vm10190_vm2, %v16375_v28 }
 0x3e5   :  { %8700 = vmatmul.mubr.msk.bf16.gmra.mrb[148].mxu1 %vm10400_vm5, %v16376_v33  ;;  %9685 = vmatprep.mubr.msk.bf16.mxu0 %vm10190_vm2, %v16377_v27 }
 0x3e6   :  { %5478 = vmatprep.mubr.bf16.mxu1 %v16378_v43  ;;  %6271 = vmatpush1.bf16.msra.mxu0 %v9954_v4  ;;  %v16381_v4 = vld [vmem:[#allocation120_spill] sm:$0xff] }
 0x3e7   :  { %v4766_v40 = vpop.f32.mrb[28].mxu0  ;;  %6272 = vmatprep.subr.bf16.mxu0 %v15829_v51 }
 0x3e8   :  { %v13206_v47 = vpop.f32.mrb[84].mxu1  ;;  %v4768_v6 = vpop.f32.mrb[29].mxu0  ;;  %v13208_v16 = vadd.f32 %v9611_v58, %v4766_v40  ;;  %v16383_v58 = vld [vmem:[#allocation40_spill] sm:$0xff] }
 0x3e9   :  { %v5079_v1 = vpop.f32.mrb[85].mxu1  ;;  %v4769_v56 = vpop.f32.mrb[30].mxu0 }
 0x3ea   :  { %16379 = vst [vmem:[#allocation77_spill] sm:$0xff] %v13208_v16  ;;  %v13210_v42 = vpop.f32.mrb[86].mxu1  ;;  %v4771_v28 = vpop.f32.mrb[31].mxu0  ;;  %6273 = vmatpush1.bf16.msra.mxu0 %v9955_v62  ;;  %v13212_v27 = vadd.f32 %v9612_v63, %v4769_v56  ;;  %v9958_v63 = vld [vmem:[#allocation9 + $0x1a8] sm:$0xff]   ;;  %v9959_v16 = vld [vmem:[#allocation9 + $0x1b0] sm:$0xff]  }
 0x3eb   :  { %v5082_v20 = vpop.f32.mrb[87].mxu1  ;;  %6274 = vmatprep.subr.bf16.mxu0 %v15829_v51  ;;  %v16384_v28 = vld [vmem:[#allocation121_spill] sm:$0xff] }
 0x3ec   :  { %16380 = vst [vmem:[#allocation111_spill] sm:$0xff] %v13212_v27  ;;  %9686 = vmatmul.mubr.msk.bf16.gmra.mrb[136].mxu0 %vm10190_vm2, %v16381_v4 }
 0x3ed   :  { %8704 = vmatmul.mubr.msk.bf16.gmra.mrb[152].mxu1 %vm10400_vm5, %v16382_v31  ;;  %9689 = vmatprep.mubr.msk.bf16.mxu0 %vm10190_vm2, %v16383_v58  ;;  %v16389_v58 = vld [vmem:[#allocation68_spill] sm:$0xff] }
 0x3ee   :  { %5486 = vmatprep.mubr.bf16.mxu1 %v16384_v28  ;;  %6275 = vmatpush1.bf16.msra.mxu0 %v9957_v7  ;;  %v16388_v7 = vld [vmem:[#allocation100_spill] sm:$0xff] }
 0x3ef   :  { %v4774_v56 = vpop.f32.mrb[32].mxu0  ;;  %6276 = vmatprep.subr.bf16.mxu0 %v15829_v51 }
 0x3f0   :  { %v4776_v62 = vpop.f32.mrb[33].mxu0  ;;  %v13226_v40 = vadd.f32 %v5063_v45, %v4774_v56  ;;  %v16390_v45 = vld [vmem:[#allocation122_spill] sm:$0xff] }
 0x3f1   :  { %v4777_v6 = vpop.f32.mrb[34].mxu0  ;;  %v9972_v62 = vld [vmem:[#allocation9 + $0x228] sm:$0xff]  }
 0x3f2   :  { %16385 = vst [vmem:[#allocation82_spill] sm:$0xff] %v13226_v40  ;;  %v4779_v27 = vpop.f32.mrb[35].mxu0  ;;  %6277 = vmatpush1.bf16.msra.mxu0 %v9958_v63  ;;  %v13228_v4 = vadd.f32 %v5066_v53, %v4777_v6  ;;  %9751 = vmatprep.subr.bf16.mxu1 %v9972_v62 }
 0x3f3   :  { %6278 = vmatprep.subr.bf16.mxu0 %v15829_v51  ;;  %v9960_v27 = vld [vmem:[#allocation9 + $0x1b8] sm:$0xff]   ;;  %9752 = vmatpush3.bf16.msra.mxu1 %v9972_v62 }
 0x3f4   :  { %16386 = vst [vmem:[#allocation23_spill] sm:$0xff] %v13228_v4  ;;  %9690 = vmatmul.mubr.msk.bf16.gmra.mrb[140].mxu0 %vm10190_vm2, %v16387_v54 }
 0x3f5   :  { %8708 = vmatmul.mubr.msk.bf16.gmra.mrb[156].mxu1 %vm10400_vm5, %v16388_v7  ;;  %9693 = vmatprep.mubr.msk.bf16.mxu0 %vm10190_vm2, %v16389_v58  ;;  %v9962_v58 = vld [vmem:[#allocation9 + $0x1c0] sm:$0xff]  }
 0x3f6   :  { %5494 = vmatprep.mubr.bf16.mxu1 %v16390_v45  ;;  %6279 = vmatpush1.bf16.msra.mxu0 %v9959_v16 }
 0x3f7   :  { %v4782_v53 = vpop.f32.mrb[36].mxu0  ;;  %6280 = vmatprep.subr.bf16.mxu0 %v15829_v51 }
 0x3f8   :  { %v13242_v63 = vpop.f32.mrb[88].mxu1  ;;  %v4784_v56 = vpop.f32.mrb[37].mxu0  ;;  %v13245_v6 = vadd.f32 %v13171_v9, %v4782_v53  ;;  %v16394_v9 = vld [vmem:[#allocation44_spill] sm:$0xff]  ;;  %v16395_v53 = vld [vmem:[#allocation50_spill] sm:$0xff] }
 0x3f9   :  { %v5095_v4 = vpop.f32.mrb[89].mxu1  ;;  %v4785_v40 = vpop.f32.mrb[38].mxu0  ;;  %v16393_v56 = vld [vmem:[#allocation67_spill] sm:$0xff] }
 0x3fa   :  { %16391 = vst [vmem:[#allocation112_spill] sm:$0xff] %v13245_v6  ;;  %v13247_v54 = vpop.f32.mrb[90].mxu1  ;;  %v4787_v3 = vpop.f32.mrb[39].mxu0  ;;  %6281 = vmatpush1.bf16.msra.mxu0 %v9960_v27  ;;  %v13250_v16 = vadd.f32 %v13175_v24, %v4785_v40  ;;  %v9963_v24 = vld [vmem:[#allocation9 + $0x1c8] sm:$0xff]  }
 0x3fb   :  { %v5098_v25 = vpop.f32.mrb[91].mxu1  ;;  %6282 = vmatprep.subr.bf16.mxu0 %v15829_v51  ;;  %v16396_v3 = vld [vmem:[#allocation62_spill] sm:$0xff] }
 0x3fc   :  { %16392 = vst [vmem:[#allocation18_spill] sm:$0xff] %v13250_v16  ;;  %9694 = vmatmul.mubr.msk.bf16.gmra.mrb[144].mxu0 %vm10190_vm2, %v16393_v56  ;;  %v9964_v56 = vld [vmem:[#allocation9 + $0x1d0] sm:$0xff]  }
 0x3fd   :  { %8712 = vmatmul.mubr.msk.bf16.gmra.mrb[160].mxu1 %vm10400_vm5, %v16394_v9  ;;  %9697 = vmatprep.mubr.msk.bf16.mxu0 %vm10190_vm2, %v16395_v53  ;;  %v16401_v53 = vld [vmem:[#allocation54_spill] sm:$0xff] }
 0x3fe   :  { %5502 = vmatprep.mubr.bf16.mxu1 %v16396_v3  ;;  %6283 = vmatpush1.bf16.msra.mxu0 %v9962_v58  ;;  %v16400_v58 = vld [vmem:[#allocation73_spill] sm:$0xff] }
 0x3ff   :  { %v4790_v40 = vpop.f32.mrb[40].mxu0  ;;  %6284 = vmatprep.subr.bf16.mxu0 %v15829_v51 }
 0x400   :  { %v4792_v27 = vpop.f32.mrb[41].mxu0  ;;  %v13264_v62 = vadd.f32 %v5079_v1, %v4790_v40  ;;  %v16402_v1 = vld [vmem:[#allocation86_spill] sm:$0xff] }
 0x401   :  { %v4793_v16 = vpop.f32.mrb[42].mxu0 }
 0x402   :  { %16397 = vst [vmem:[#allocation113_spill] sm:$0xff] %v13264_v62  ;;  %v4795_v6 = vpop.f32.mrb[43].mxu0  ;;  %6285 = vmatpush1.bf16.msra.mxu0 %v9963_v24  ;;  %v13266_v32 = vadd.f32 %v5082_v20, %v4793_v16 }
 0x403   :  { %6286 = vmatprep.subr.bf16.mxu0 %v15829_v51  ;;  %v9965_v6 = vld [vmem:[#allocation9 + $0x1d8] sm:$0xff]  }
 0x404   :  { %16398 = vst [vmem:[#allocation27_spill] sm:$0xff] %v13266_v32  ;;  %9698 = vmatmul.mubr.msk.bf16.gmra.mrb[148].mxu0 %vm10190_vm2, %v16399_v14 }
 0x405   :  { %8716 = vmatmul.mubr.msk.bf16.gmra.mrb[164].mxu1 %vm10400_vm5, %v16400_v58  ;;  %9701 = vmatprep.mubr.msk.bf16.mxu0 %vm10190_vm2, %v16401_v53  ;;  %v9967_v53 = vld [vmem:[#allocation9 + $0x1e0] sm:$0xff]   ;;  %v16405_v58 = vld [vmem:[#allocation84_spill] sm:$0xff] }
 0x406   :  { %5510 = vmatprep.mubr.bf16.mxu1 %v16402_v1  ;;  %6287 = vmatpush1.bf16.msra.mxu0 %v9964_v56 }
 0x407   :  { %v4798_v20 = vpop.f32.mrb[44].mxu0  ;;  %6288 = vmatprep.subr.bf16.mxu0 %v15829_v51 }
 0x408   :  { %v13280_v16 = vpop.f32.mrb[92].mxu1  ;;  %v4800_v24 = vpop.f32.mrb[45].mxu0  ;;  %v13283_v40 = vadd.f32 %v13206_v47, %v4798_v20  ;;  %v16407_v47 = vld [vmem:[#allocation90_spill] sm:$0xff] }
 0x409   :  { %v5111_v27 = vpop.f32.mrb[93].mxu1  ;;  %v4801_v32 = vpop.f32.mrb[46].mxu0  ;;  %v16406_v24 = vld [vmem:[#allocation87_spill] sm:$0xff] }
 0x40a   :  { %16403 = vst [vmem:[#allocation21_spill] sm:$0xff] %v13283_v40  ;;  %v13285_v62 = vpop.f32.mrb[94].mxu1  ;;  %v4803_v14 = vpop.f32.mrb[47].mxu0  ;;  %6289 = vmatpush1.bf16.msra.mxu0 %v9965_v6  ;;  %v13288_v1 = vadd.f32 %v13210_v42, %v4801_v32  ;;  %v9968_v32 = vld [vmem:[#allocation9 + $0x1e8] sm:$0xff]  }
 0x40b   :  { %v5114_v56 = vpop.f32.mrb[95].mxu1  ;;  %6290 = vmatprep.subr.bf16.mxu0 %v15829_v51  ;;  %v16408_v14 = vld [vmem:[#allocation51_spill] sm:$0xff] }
 0x40c   :  { %16404 = vst [vmem:[#allocation114_spill] sm:$0xff] %v13288_v1  ;;  %9702 = vmatmul.mubr.msk.bf16.gmra.mrb[152].mxu0 %vm10190_vm2, %v16405_v58  ;;  %v9969_v58 = vld [vmem:[#allocation9 + $0x1f0] sm:$0xff]  }
 0x40d   :  { %8720 = vmatmul.mubr.msk.bf16.gmra.mrb[168].mxu1 %vm10400_vm5, %v16406_v24  ;;  %9705 = vmatprep.mubr.msk.bf16.mxu0 %vm10190_vm2, %v16407_v47  ;;  %v16411_v24 = vld [vmem:[#allocation60_spill] sm:$0xff] }
 0x40e   :  { %5518 = vmatprep.mubr.bf16.mxu1 %v16408_v14  ;;  %6291 = vmatpush1.bf16.msra.mxu0 %v9967_v53  ;;  %v16412_v53 = vld [vmem:[#allocation79_spill] sm:$0xff] }
 0x40f   :  { %v4806_v42 = vpop.f32.mrb[48].mxu0  ;;  %6292 = vmatprep.subr.bf16.mxu0 %v15829_v51 }
 0x410   :  { %v4808_v6 = vpop.f32.mrb[49].mxu0  ;;  %v13302_v20 = vadd.f32 %v5095_v4, %v4806_v42  ;;  %v16413_v4 = vld [vmem:[#allocation80_spill] sm:$0xff] }
 0x411   :  { %v4809_v1 = vpop.f32.mrb[50].mxu0 }
 0x412   :  { %16409 = vst [vmem:[#allocation29_spill] sm:$0xff] %v13302_v20  ;;  %v4811_v40 = vpop.f32.mrb[51].mxu0  ;;  %6293 = vmatpush1.bf16.msra.mxu0 %v9968_v32  ;;  %v13304_v3 = vadd.f32 %v5098_v25, %v4809_v1  ;;  %v9973_v20 = vld [vmem:[#allocation9 + $0x230] sm:$0xff]  }
 0x413   :  { %6294 = vmatprep.subr.bf16.mxu0 %v15829_v51  ;;  %v9970_v40 = vld [vmem:[#allocation9 + $0x1f8] sm:$0xff]   ;;  %9753 = vmatprep.subr.bf16.mxu1 %v9973_v20 }
 0x414   :  { %16410 = vst [vmem:[#allocation55_spill] sm:$0xff] %v13304_v3  ;;  %9706 = vmatmul.mubr.msk.bf16.gmra.mrb[156].mxu0 %vm10190_vm2, %v16411_v24  ;;  %9754 = vmatpush3.bf16.msra.mxu1 %v9973_v20  ;;  %v16422_v20 = vld [vmem:[#allocation42_spill] sm:$0xff] }
 0x415   :  { %8724 = vmatmul.mubr.msk.bf16.gmra.mrb[172].mxu1 %vm10400_vm5, %v16412_v53  ;;  %9709 = vmatprep.mubr.bf16.mxu0 %v15829_v51 }
 0x416   :  { %5526 = vmatprep.mubr.bf16.mxu1 %v16413_v4  ;;  %6295 = vmatpush1.bf16.msra.mxu0 %v9969_v58  ;;  %v16416_v58 = vld [vmem:[#allocation74_spill] sm:$0xff] }
 0x417   :  { %v4814_v32 = vpop.f32.mrb[52].mxu0  ;;  %6296 = vmatprep.subr.bf16.mxu0 %v15829_v51 }
 0x418   :  { %v9631_v25 = vpop.f32.mrb[96].mxu1  ;;  %v4816_v1 = vpop.f32.mrb[53].mxu0  ;;  %v13317_v42 = vadd.f32 %v13242_v63, %v4814_v32  ;;  %v16417_v63 = vld [vmem:[#allocation66_spill] sm:$0xff] }
 0x419   :  { %v5127_v6 = vpop.f32.mrb[97].mxu1  ;;  %v4817_v3 = vpop.f32.mrb[54].mxu0 }
 0x41a   :  { %16414 = vst [vmem:[#allocation22_spill] sm:$0xff] %v13317_v42  ;;  %v9632_v24 = vpop.f32.mrb[98].mxu1  ;;  %v4819_v47 = vpop.f32.mrb[55].mxu0  ;;  %6297 = vmatpush1.bf16.msra.mxu0 %v9970_v40  ;;  %v13320_v53 = vadd.f32 %v13247_v54, %v4817_v3 }
 0x41b   :  { %v5130_v4 = vpop.f32.mrb[99].mxu1  ;;  %v16418_v47 = vld [vmem:[#allocation57_spill] sm:$0xff] }
 0x41c   :  { %16415 = vst [vmem:[#allocation31_spill] sm:$0xff] %v13320_v53  ;;  %9710 = vmatmul.mubr.msk.bf16.gmra.mrb[160].mxu0 %vm10190_vm2, %v12773_v18  ;;  %v16421_v18 = vld [vmem:[#allocation85_spill] sm:$0xff] }
 0x41d   :  { %8728 = vmatmul.mubr.msk.bf16.gmra.mrb[176].mxu1 %vm10400_vm5, %v16416_v58  ;;  %9713 = vmatprep.mubr.msk.bf16.mxu0 %vm10190_vm2, %v16417_v63 }
 0x41e   :  { %5534 = vmatprep.mubr.bf16.mxu1 %v16418_v47 }
 0x41f   :  { %v4822_v40 = vpop.f32.mrb[56].mxu0 }
 0x420   :  { %v4824_v54 = vpop.f32.mrb[57].mxu0  ;;  %v13332_v3 = vadd.f32 %v5111_v27, %v4822_v40 }
 0x421   :  { %v4825_v32 = vpop.f32.mrb[58].mxu0 }
 0x422   :  { %16419 = vst [vmem:[#allocation25_spill] sm:$0xff] %v13332_v3  ;;  %v4827_v1 = vpop.f32.mrb[59].mxu0  ;;  %v13334_v53 = vadd.f32 %v5114_v56, %v4825_v32 }
 0x424   :  { %16420 = vst [vmem:[#allocation115_spill] sm:$0xff] %v13334_v53  ;;  %9714 = vmatmul.mubr.msk.bf16.gmra.mrb[164].mxu0 %vm10190_vm2, %v12839_v12 }
 0x425   :  { %8732 = vmatmul.mubr.msk.bf16.gmra.mrb[180].mxu1 %vm10400_vm5, %v16421_v18  ;;  %9717 = vmatprep.mubr.msk.bf16.mxu0 %vm10190_vm2, %v12860_v34  ;;  %v16425_v34 = vld [vmem:[#allocation34_spill] sm:$0xff] }
 0x426   :  { %5542 = vmatprep.mubr.bf16.mxu1 %v16422_v20 }
 0x427   :  { %v4830_v27 = vpop.f32.mrb[60].mxu0 }
 0x428   :  { %v9635_v40 = vpop.f32.mrb[100].mxu1  ;;  %v4832_v54 = vpop.f32.mrb[61].mxu0  ;;  %v13347_v56 = vadd.f32 %v13280_v16, %v4830_v27  ;;  %v16426_v16 = vld [vmem:[#allocation91_spill] sm:$0xff] }
 0x429   :  { %v5143_v32 = vpop.f32.mrb[101].mxu1  ;;  %v4833_v1 = vpop.f32.mrb[62].mxu0 }
 0x42a   :  { %16423 = vst [vmem:[#allocation28_spill] sm:$0xff] %v13347_v56  ;;  %v9636_v53 = vpop.f32.mrb[102].mxu1  ;;  %v4835_v3 = vpop.f32.mrb[63].mxu0  ;;  %v13350_v12 = vadd.f32 %v13285_v62, %v4833_v1 }
 0x42b   :  { %v5146_v42 = vpop.f32.mrb[103].mxu1 }
 0x42c   :  { %16424 = vst [vmem:[#allocation26_spill] sm:$0xff] %v13350_v12  ;;  %9718 = vmatmul.mubr.msk.bf16.gmra.mrb[168].mxu0 %vm10190_vm2, %v12884_v5 }
 0x42d   :  { %8736 = vmatmul.mubr.msk.bf16.gmra.mrb[184].mxu1 %vm10400_vm5, %v16425_v34  ;;  %9721 = vmatprep.mubr.msk.bf16.mxu0 %vm10190_vm2, %v12905_v36 }
 0x42e   :  { %5550 = vmatprep.mubr.bf16.mxu1 %v16426_v16 }
 0x42f   :  { %v4838_v27 = vpop.f32.mrb[64].mxu0 }
 0x430   :  { %v13362_v3 = vadd.f32 %v5127_v6, %v4838_v27  ;;  %v4840_v62 = vpop.f32.mrb[65].mxu0 }
 0x431   :  { %v4841_v54 = vpop.f32.mrb[66].mxu0 }
 0x432   :  { %16427 = vst [vmem:[#allocation35_spill] sm:$0xff] %v13362_v3  ;;  %v13364_v1 = vadd.f32 %v5130_v4, %v4841_v54  ;;  %v4843_v12 = vpop.f32.mrb[67].mxu0 }
 0x434   :  { %16428 = vst [vmem:[#allocation116_spill] sm:$0xff] %v13364_v1  ;;  %9722 = vmatmul.mubr.msk.bf16.gmra.mrb[172].mxu0 %vm10190_vm2, %v12926_v2  ;;  %v9974_v1 = vld [vmem:[#allocation9 + $0x238] sm:$0xff]  }
 0x435   :  { %8740 = vmatmul.mubr.msk.bf16.gmra.mrb[188].mxu1 %vm10400_vm5, %v12710_v30  ;;  %9725 = vmatprep.mubr.msk.bf16.mxu0 %vm10190_vm2, %v12947_v29 }
 0x436   :  { %5558 = vmatprep.mubr.bf16.mxu1 %v15829_v51  ;;  %9755 = vmatprep.subr.bf16.mxu1 %v9974_v1 }
 0x437   :  { %v4846_v6 = vpop.f32.mrb[68].mxu0  ;;  %9756 = vmatpush3.bf16.msra.mxu1 %v9974_v1 }
 0x438   :  { %v13376_v27 = vadd.f32 %v9631_v25, %v4846_v6  ;;  %v9639_v4 = vpop.f32.mrb[104].mxu1  ;;  %v4848_v62 = vpop.f32.mrb[69].mxu0 }
 0x439   :  { %v5159_v12 = vpop.f32.mrb[105].mxu1  ;;  %v4849_v54 = vpop.f32.mrb[70].mxu0 }
 0x43a   :  { %v13378_v3 = vadd.f32 %v9632_v24, %v4849_v54  ;;  %v9640_v2 = vpop.f32.mrb[106].mxu1  ;;  %v4851_v56 = vpop.f32.mrb[71].mxu0 }
 0x43b   :  { %v5162_v36 = vpop.f32.mrb[107].mxu1 }
 0x43c   :  { %9726 = vmatmul.mubr.msk.bf16.gmra.mrb[176].mxu0 %vm10190_vm2, %v12968_v57 }
 0x43d   :  { %5559 = vmatmul.mubr.bf16.gmra.mrb[192].mxu1 %v15829_v51  ;;  %9729 = vmatprep.mubr.msk.bf16.mxu0 %vm10190_vm2, %v12989_v60 }
 0x43e   :  { %5566 = vmatprep.mubr.bf16.mxu1 %v12765_v59 }
 0x43f   :  { %v4854_v25 = vpop.f32.mrb[72].mxu0 }
 0x440   :  { %v13388_v24 = vadd.f32 %v5143_v32, %v4854_v25  ;;  %v4856_v6 = vpop.f32.mrb[73].mxu0 }
 0x441   :  { %v4857_v56 = vpop.f32.mrb[74].mxu0 }
 0x442   :  { %16429 = vst [vmem:[#allocation61_spill] sm:$0xff] %v13388_v24  ;;  %v13390_v62 = vadd.f32 %v5146_v42, %v4857_v56  ;;  %v4859_v54 = vpop.f32.mrb[75].mxu0 }
 0x444   :  { %16430 = vst [vmem:[#allocation30_spill] sm:$0xff] %v13390_v62  ;;  %9730 = vmatmul.mubr.msk.bf16.gmra.mrb[180].mxu0 %vm10190_vm2, %v13010_v48 }
 0x445   :  { %8744 = vmatmul.mubr.msk.bf16.gmra.mrb[196].mxu1 %vm10400_vm5, %v12771_v49  ;;  %9733 = vmatprep.mubr.msk.bf16.mxu0 %vm10190_vm2, %v13031_v38 }
 0x446   :  { %5574 = vmatprep.mubr.bf16.mxu1 %v12796_v21 }
 0x447   :  { %v4862_v59 = vpop.f32.mrb[76].mxu0 }
 0x448   :  { %v13402_v32 = vadd.f32 %v9635_v40, %v4862_v59  ;;  %v9643_v42 = vpop.f32.mrb[108].mxu1  ;;  %v4864_v1 = vpop.f32.mrb[77].mxu0 }
 0x449   :  { %v5175_v25 = vpop.f32.mrb[109].mxu1  ;;  %v4865_v6 = vpop.f32.mrb[78].mxu0 }
 0x44a   :  { %16431 = vst [vmem:[#allocation39_spill] sm:$0xff] %v13402_v32  ;;  %v13404_v56 = vadd.f32 %v9636_v53, %v4865_v6  ;;  %v9644_v54 = vpop.f32.mrb[110].mxu1  ;;  %v4867_v62 = vpop.f32.mrb[79].mxu0  ;;  %v16435_v6 = vld [vmem:[#allocation52_spill] sm:$0xff]  ;;  %v16463_v32 = vld [vmem:[#allocation73_spill] sm:$0xff] }
 0x44b   :  { %v5178_v24 = vpop.f32.mrb[111].mxu1 }
 0x44c   :  { %16432 = vst [vmem:[#allocation32_spill] sm:$0xff] %v13404_v56  ;;  %9734 = vmatmul.mubr.msk.bf16.gmra.mrb[184].mxu0 %vm10190_vm2, %v13052_v8 }
 0x44d   :  { %8748 = vmatmul.mubr.msk.bf16.gmra.mrb[200].mxu1 %vm10400_vm5, %v12807_v10  ;;  %9737 = vmatprep.mubr.msk.bf16.mxu0 %vm10190_vm2, %v13073_v44 }
 0x44e   :  { %5582 = vmatprep.mubr.bf16.mxu1 %v12831_v13 }
 0x44f   :  { %v4870_v49 = vpop.f32.mrb[80].mxu0 }
 0x450   :  { %v13416_v53 = vadd.f32 %v5159_v12, %v4870_v49  ;;  %v4872_v40 = vpop.f32.mrb[81].mxu0 }
 0x451   :  { %v4873_v62 = vpop.f32.mrb[82].mxu0 }
 0x452   :  { %16433 = vst [vmem:[#allocation38_spill] sm:$0xff] %v13416_v53  ;;  %v13418_v59 = vadd.f32 %v5162_v36, %v4873_v62  ;;  %v4875_v1 = vpop.f32.mrb[83].mxu0 }
 0x454   :  { %16434 = vst [vmem:[#allocation119_spill] sm:$0xff] %v13418_v59  ;;  %9738 = vmatmul.mubr.msk.bf16.gmra.mrb[188].mxu0 %vm10190_vm2, %v13094_v52 }
 0x455   :  { %8752 = vmatmul.mubr.msk.bf16.gmra.mrb[204].mxu1 %vm10400_vm5, %v12837_v17  ;;  %6298 = vmatprep.mubr.bf16.mxu0 %v16361_v0  ;;  %v16438_v0 = vld [vmem:[#allocation72_spill] sm:$0xff] }
 0x456   :  { %5590 = vmatprep.mubr.bf16.mxu1 %v16435_v6 }
 0x457   :  { %v4878_v56 = vpop.f32.mrb[84].mxu0 }
 0x458   :  { %v13428_v12 = vadd.f32 %v9639_v4, %v4878_v56  ;;  %v9647_v49 = vpop.f32.mrb[112].mxu1  ;;  %v4880_v40 = vpop.f32.mrb[85].mxu0 }
 0x459   :  { %v5191_v36 = vpop.f32.mrb[113].mxu1  ;;  %v4881_v62 = vpop.f32.mrb[86].mxu0 }
 0x45a   :  { %16436 = vst [vmem:[#allocation117_spill] sm:$0xff] %v13428_v12  ;;  %v13430_v1 = vadd.f32 %v9640_v2, %v4881_v62  ;;  %v9648_v59 = vpop.f32.mrb[114].mxu1  ;;  %v4883_v53 = vpop.f32.mrb[87].mxu0 }
 0x45b   :  { %v5194_v52 = vpop.f32.mrb[115].mxu1 }
 0x45c   :  { %16437 = vst [vmem:[#allocation45_spill] sm:$0xff] %v13430_v1  ;;  %8894 = vmatmul.mubr.msk.bf16.vlgmr.msra.gmra.mrb[192].mxu0 %vm10400_vm5, %v12370_v55  ;;  %v16441_v55 = vld [vmem:[#allocation75_spill] sm:$0xff]  ;;  %v16462_v1 = vld [vmem:[#allocation16_spill] sm:$0xff] }
 0x45d   :  { %8756 = vmatmul.mubr.msk.bf16.gmra.mrb[208].mxu1 %vm10400_vm5, %v12858_v11  ;;  %6306 = vmatprep.mubr.bf16.mxu0 %v12424_v61 }
 0x45e   :  { %5598 = vmatprep.mubr.bf16.mxu1 %v16438_v0 }
 0x45f   :  { %v4886_v4 = vpop.f32.mrb[88].mxu0 }
 0x460   :  { %v13440_v56 = vadd.f32 %v5175_v25, %v4886_v4  ;;  %v4888_v2 = vpop.f32.mrb[89].mxu0 }
 0x461   :  { %v4889_v40 = vpop.f32.mrb[90].mxu0 }
 0x462   :  { %16439 = vst [vmem:[#allocation49_spill] sm:$0xff] %v13440_v56  ;;  %v13442_v62 = vadd.f32 %v5178_v24, %v4889_v40  ;;  %v4891_v53 = vpop.f32.mrb[91].mxu0 }
 0x464   :  { %16440 = vst [vmem:[#allocation118_spill] sm:$0xff] %v13442_v62  ;;  %8898 = vmatmul.mubr.msk.bf16.gmra.mrb[196].mxu0 %vm10400_vm5, %v12418_v22 }
 0x465   :  { %8760 = vmatmul.mubr.msk.bf16.gmra.mrb[212].mxu1 %vm10400_vm5, %v12882_v37  ;;  %6314 = vmatprep.mubr.bf16.mxu0 %v16366_v46  ;;  %v16444_v46 = vld [vmem:[#allocation81_spill] sm:$0xff] }
 0x466   :  { %5606 = vmatprep.mubr.bf16.mxu1 %v16441_v55 }
 0x467   :  { %v4894_v61 = vpop.f32.mrb[92].mxu0 }
 0x468   :  { %v13452_v25 = vadd.f32 %v9643_v42, %v4894_v61  ;;  %v9651_v4 = vpop.f32.mrb[116].mxu1  ;;  %v4896_v2 = vpop.f32.mrb[93].mxu0 }
 0x469   :  { %v5207_v24 = vpop.f32.mrb[117].mxu1  ;;  %v4897_v40 = vpop.f32.mrb[94].mxu0 }
 0x46a   :  { %16442 = vst [vmem:[#allocation56_spill] sm:$0xff] %v13452_v25  ;;  %v13454_v53 = vadd.f32 %v9644_v54, %v4897_v40  ;;  %v9652_v62 = vpop.f32.mrb[118].mxu1  ;;  %v4899_v56 = vpop.f32.mrb[95].mxu0 }
 0x46b   :  { %v5210_v22 = vpop.f32.mrb[119].mxu1 }
 0x46c   :  { %16443 = vst [vmem:[#allocation48_spill] sm:$0xff] %v13454_v53  ;;  %8902 = vmatmul.mubr.msk.bf16.gmra.mrb[200].mxu0 %vm10400_vm5, %v16370_v26  ;;  %v16447_v26 = vld [vmem:[#allocation14_spill] sm:$0xff] }
 0x46d   :  { %8764 = vmatmul.mubr.msk.bf16.gmra.mrb[216].mxu1 %vm10400_vm5, %v12903_v50  ;;  %6322 = vmatprep.mubr.bf16.mxu0 %v16372_v39 }
 0x46e   :  { %5614 = vmatprep.mubr.bf16.mxu1 %v16444_v46 }
 0x46f   :  { %v4902_v42 = vpop.f32.mrb[96].mxu0 }
 0x470   :  { %v13464_v61 = vadd.f32 %v5191_v36, %v4902_v42  ;;  %v4904_v54 = vpop.f32.mrb[97].mxu0 }
 0x471   :  { %v4905_v2 = vpop.f32.mrb[98].mxu0 }
 0x472   :  { %16445 = vst [vmem:[#allocation121_spill] sm:$0xff] %v13464_v61  ;;  %v13466_v40 = vadd.f32 %v5194_v52, %v4905_v2  ;;  %v4907_v56 = vpop.f32.mrb[99].mxu0 }
 0x474   :  { %16446 = vst [vmem:[#allocation100_spill] sm:$0xff] %v13466_v40  ;;  %8906 = vmatmul.mubr.msk.bf16.gmra.mrb[204].mxu0 %vm10400_vm5, %v16376_v33 }
 0x475   :  { %8768 = vmatmul.mubr.msk.bf16.gmra.mrb[220].mxu1 %vm10400_vm5, %v12924_v23  ;;  %6330 = vmatprep.mubr.bf16.mxu0 %v16378_v43  ;;  %v16450_v43 = vld [vmem:[#allocation108_spill] sm:$0xff] }
 0x476   :  { %5622 = vmatprep.mubr.bf16.mxu1 %v16447_v26 }
 0x477   :  { %v4910_v39 = vpop.f32.mrb[100].mxu0 }
 0x478   :  { %v13476_v36 = vadd.f32 %v9647_v49, %v4910_v39  ;;  %v9655_v42 = vpop.f32.mrb[120].mxu1  ;;  %v4912_v54 = vpop.f32.mrb[101].mxu0 }
 0x479   :  { %v5223_v52 = vpop.f32.mrb[121].mxu1  ;;  %v4913_v2 = vpop.f32.mrb[102].mxu0 }
 0x47a   :  { %16448 = vst [vmem:[#allocation122_spill] sm:$0xff] %v13476_v36  ;;  %v13478_v56 = vadd.f32 %v9648_v59, %v4913_v2  ;;  %v9656_v40 = vpop.f32.mrb[122].mxu1  ;;  %v4915_v61 = vpop.f32.mrb[103].mxu0 }
 0x47b   :  { %v5226_v33 = vpop.f32.mrb[123].mxu1  ;;  %v16586_v35 = vld [vmem:[#allocation100_spill] sm:$0xff] }
 0x47c   :  { %16449 = vst [vmem:[#allocation44_spill] sm:$0xff] %v13478_v56  ;;  %8910 = vmatmul.mubr.msk.bf16.gmra.mrb[208].mxu0 %vm10400_vm5, %v16382_v31  ;;  %v16453_v31 = vld [vmem:[#allocation107_spill] sm:$0xff]  ;;  %v16456_v56 = vld [vmem:[#allocation33_spill] sm:$0xff] }
 0x47d   :  { %8772 = vmatmul.mubr.msk.bf16.gmra.mrb[224].mxu1 %vm10400_vm5, %v12945_v15  ;;  %6338 = vmatprep.mubr.bf16.mxu0 %v16384_v28 }
 0x47e   :  { %5630 = vmatprep.mubr.bf16.mxu1 %v16450_v43 }
 0x47f   :  { %v4918_v49 = vpop.f32.mrb[104].mxu0 }
 0x480   :  { %v13488_v39 = vadd.f32 %v5207_v24, %v4918_v49  ;;  %v4920_v59 = vpop.f32.mrb[105].mxu0 }
 0x481   :  { %v4921_v54 = vpop.f32.mrb[106].mxu0 }
 0x482   :  { %16451 = vst [vmem:[#allocation51_spill] sm:$0xff] %v13488_v39  ;;  %v13490_v2 = vadd.f32 %v5210_v22, %v4921_v54  ;;  %v4923_v61 = vpop.f32.mrb[107].mxu0 }
 0x484   :  { %16452 = vst [vmem:[#allocation74_spill] sm:$0xff] %v13490_v2  ;;  %8914 = vmatmul.mubr.msk.bf16.gmra.mrb[212].mxu0 %vm10400_vm5, %v16388_v7 }
 0x485   :  { %8776 = vmatmul.mubr.msk.bf16.gmra.mrb[228].mxu1 %vm10400_vm5, %v12966_v41  ;;  %6346 = vmatprep.mubr.bf16.mxu0 %v16390_v45  ;;  %v16457_v45 = vld [vmem:[#allocation62_spill] sm:$0xff] }
 0x486   :  { %5638 = vmatprep.mubr.bf16.mxu1 %v16453_v31 }
 0x487   :  { %v4926_v28 = vpop.f32.mrb[108].mxu0 }
 0x488   :  { %v13500_v24 = vadd.f32 %v9651_v4, %v4926_v28  ;;  %v9659_v49 = vpop.f32.mrb[124].mxu1  ;;  %v4928_v59 = vpop.f32.mrb[109].mxu0  ;;  %v16458_v4 = vld [vmem:[#allocation41_spill] sm:$0xff] }
 0x489   :  { %v5239_v22 = vpop.f32.mrb[125].mxu1  ;;  %v4929_v54 = vpop.f32.mrb[110].mxu0 }
 0x48a   :  { %16454 = vst [vmem:[#allocation66_spill] sm:$0xff] %v13500_v24  ;;  %v13502_v61 = vadd.f32 %v9652_v62, %v4929_v54  ;;  %v9660_v2 = vpop.f32.mrb[126].mxu1  ;;  %v4931_v39 = vpop.f32.mrb[111].mxu0 }
 0x48b   :  { %v5242_v7 = vpop.f32.mrb[127].mxu1 }
 0x48c   :  { %16455 = vst [vmem:[#allocation57_spill] sm:$0xff] %v13502_v61  ;;  %8918 = vmatmul.mubr.msk.bf16.gmra.mrb[216].mxu0 %vm10400_vm5, %v16394_v9  ;;  %v16460_v61 = vld [vmem:[#allocation58_spill] sm:$0xff] }
 0x48d   :  { %8780 = vmatmul.mubr.msk.bf16.gmra.mrb[232].mxu1 %vm10400_vm5, %v16456_v56  ;;  %6354 = vmatprep.mubr.bf16.mxu0 %v16457_v45 }
 0x48e   :  { %5646 = vmatprep.mubr.bf16.mxu1 %v16458_v4 }
 0x48f   :  { %v4934_v28 = vpop.f32.mrb[112].mxu0 }
 0x490   :  { %v13512_v59 = vadd.f32 %v5223_v52, %v4934_v28  ;;  %v5432_v62 = vpop.f32.mrb[128].mxu1  ;;  %v4936_v54 = vpop.f32.mrb[113].mxu0  ;;  %v16464_v52 = vld [vmem:[#allocation92_spill] sm:$0xff] }
 0x491   :  { %v13515_v39 = vadd.f32 %v5432_v62, %v16460_v61  ;;  %v5434_v24 = vpop.f32.mrb[129].mxu1  ;;  %v4937_v36 = vpop.f32.mrb[114].mxu0  ;;  %v16465_v61 = vld [vmem:[#allocation86_spill] sm:$0xff] }
 0x492   :  { %16459 = vst [vmem:[#allocation85_spill] sm:$0xff] %v13512_v59  ;;  %v13517_v53 = vadd.f32 %v5226_v33, %v4937_v36  ;;  %v5435_v9 = vpop.f32.mrb[130].mxu1  ;;  %v4939_v25 = vpop.f32.mrb[115].mxu0  ;;  %v16466_v24 = vld [vmem:[#allocation93_spill] sm:$0xff]  ;;  %v16470_v59 = vld [vmem:[#allocation64_spill] sm:$0xff] }
 0x493   :  { %v13520_v12 = vadd.f32 %v5435_v9, %v16462_v1  ;;  %v5437_v45 = vpop.f32.mrb[131].mxu1  ;;  %v16468_v1 = vld [vmem:[#allocation59_spill] sm:$0xff] }
 0x494   :  { %16461 = vst [vmem:[#allocation42_spill] sm:$0xff] %v13517_v53  ;;  %8922 = vmatmul.mubr.msk.bf16.gmra.mrb[220].mxu0 %vm10400_vm5, %v16463_v32 }
 0x495   :  { %8784 = vmatmul.mubr.msk.bf16.gmra.mrb[236].mxu1 %vm10400_vm5, %v16464_v52  ;;  %6362 = vmatprep.mubr.bf16.mxu0 %v16465_v61  ;;  %v16471_v52 = vld [vmem:[#allocation87_spill] sm:$0xff]  ;;  %v16472_v61 = vld [vmem:[#allocation94_spill] sm:$0xff] }
 0x496   :  { %5654 = vmatprep.mubr.bf16.mxu1 %v16466_v24 }
 0x497   :  { %v4942_v36 = vpop.f32.mrb[116].mxu0 }
 0x498   :  { %v13530_v33 = vadd.f32 %v9655_v42, %v4942_v36  ;;  %v5440_v25 = vpop.f32.mrb[132].mxu1  ;;  %v4944_v28 = vpop.f32.mrb[117].mxu0  ;;  %v16473_v42 = vld [vmem:[#allocation95_spill] sm:$0xff] }
 0x499   :  { %v5441_v62 = vadd.f32 %v5440_v25, %v16468_v1  ;;  %v5442_v54 = vpop.f32.mrb[133].mxu1  ;;  %v4945_v9 = vpop.f32.mrb[118].mxu0  ;;  %v16475_v28 = vld [vmem:[#allocation65_spill] sm:$0xff] }
 0x49a   :  { %16467 = vst [vmem:[#allocation34_spill] sm:$0xff] %v13530_v33  ;;  %v13533_v45 = vadd.f32 %v9656_v40, %v4945_v9  ;;  %v5443_v32 = vpop.f32.mrb[134].mxu1  ;;  %v4947_v53 = vpop.f32.mrb[119].mxu0 }
 0x49b   :  { %v5444_v44 = vadd.f32 %v5443_v32, %v16470_v59  ;;  %v5445_v8 = vpop.f32.mrb[135].mxu1  ;;  %v16477_v32 = vld [vmem:[#allocation109_spill] sm:$0xff] }
 0x49c   :  { %16469 = vst [vmem:[#allocation91_spill] sm:$0xff] %v13533_v45  ;;  %8926 = vmatmul.mubr.msk.bf16.gmra.mrb[224].mxu0 %vm10400_vm5, %v16471_v52 }
 0x49d   :  { %8788 = vmatmul.mubr.msk.bf16.gmra.mrb[240].mxu1 %vm10400_vm5, %v16472_v61  ;;  %6370 = vmatprep.mubr.bf16.mxu0 %v16408_v14  ;;  %v16478_v61 = vld [vmem:[#allocation79_spill] sm:$0xff]  ;;  %v16479_v14 = vld [vmem:[#allocation96_spill] sm:$0xff] }
 0x49e   :  { %5662 = vmatprep.mubr.bf16.mxu1 %v16473_v42 }
 0x49f   :  { %v4950_v36 = vpop.f32.mrb[120].mxu0 }
 0x4a0   :  { %v13544_v40 = vadd.f32 %v5239_v22, %v4950_v36  ;;  %v5448_v25 = vpop.f32.mrb[136].mxu1  ;;  %v4952_v53 = vpop.f32.mrb[121].mxu0  ;;  %v16480_v22 = vld [vmem:[#allocation80_spill] sm:$0xff]  ;;  %v16481_v36 = vld [vmem:[#allocation98_spill] sm:$0xff] }
 0x4a1   :  { %v5449_v59 = vadd.f32 %v5448_v25, %v16475_v28  ;;  %v5450_v8 = vpop.f32.mrb[137].mxu1  ;;  %v4953_v1 = vpop.f32.mrb[122].mxu0 }
 0x4a2   :  { %16474 = vst [vmem:[#allocation52_spill] sm:$0xff] %v13544_v40  ;;  %v13547_v54 = vadd.f32 %v5242_v7, %v4953_v1  ;;  %v5451_v52 = vpop.f32.mrb[138].mxu1  ;;  %v4955_v9 = vpop.f32.mrb[123].mxu0  ;;  %v16483_v8 = vld [vmem:[#allocation110_spill] sm:$0xff] }
 0x4a3   :  { %v5452_v45 = vadd.f32 %v5451_v52, %v16477_v32  ;;  %v5453_v33 = vpop.f32.mrb[139].mxu1 }
 0x4a4   :  { %16476 = vst [vmem:[#allocation72_spill] sm:$0xff] %v13547_v54  ;;  %8930 = vmatmul.mubr.msk.bf16.gmra.mrb[228].mxu0 %vm10400_vm5, %v16478_v61  ;;  %v16485_v54 = vld [vmem:[#allocation17_spill] sm:$0xff] }
 0x4a5   :  { %8792 = vmatmul.mubr.msk.bf16.gmra.mrb[244].mxu1 %vm10400_vm5, %v16479_v14  ;;  %6378 = vmatprep.mubr.bf16.mxu0 %v16480_v22  ;;  %v16486_v22 = vld [vmem:[#allocation99_spill] sm:$0xff] }
 0x4a6   :  { %5670 = vmatprep.mubr.bf16.mxu1 %v16481_v36 }
 0x4a7   :  { %v4958_v25 = vpop.f32.mrb[124].mxu0 }
 0x4a8   :  { %v13558_v7 = vadd.f32 %v9659_v49, %v4958_v25  ;;  %v5456_v53 = vpop.f32.mrb[140].mxu1  ;;  %v4960_v28 = vpop.f32.mrb[125].mxu0  ;;  %v16487_v49 = vld [vmem:[#allocation102_spill] sm:$0xff] }
 0x4a9   :  { %v5457_v1 = vadd.f32 %v5456_v53, %v16483_v8  ;;  %v5458_v33 = vpop.f32.mrb[141].mxu1  ;;  %v4961_v52 = vpop.f32.mrb[126].mxu0  ;;  %v16488_v8 = vld [vmem:[#allocation70_spill] sm:$0xff] }
 0x4aa   :  { %16482 = vst [vmem:[#allocation75_spill] sm:$0xff] %v13558_v7  ;;  %v13561_v9 = vadd.f32 %v9660_v2, %v4961_v52  ;;  %v5459_v61 = vpop.f32.mrb[142].mxu1  ;;  %v4963_v32 = vpop.f32.mrb[127].mxu0 }
 0x4ab   :  { %v5460_v40 = vadd.f32 %v5459_v61, %v16485_v54  ;;  %v5461_v14 = vpop.f32.mrb[143].mxu1 }
 0x4ac   :  { %16484 = vst [vmem:[#allocation81_spill] sm:$0xff] %v13561_v9  ;;  %8934 = vmatmul.mubr.msk.bf16.gmra.mrb[232].mxu0 %vm10400_vm5, %v16416_v58  ;;  %v16490_v9 = vld [vmem:[#allocation19_spill] sm:$0xff] }
 0x4ad   :  { %8796 = vmatmul.mubr.msk.bf16.gmra.mrb[248].mxu1 %vm10400_vm5, %v16486_v22  ;;  %6386 = vmatprep.mubr.bf16.mxu0 %v16418_v47 }
 0x4ae   :  { %5678 = vmatprep.mubr.bf16.mxu1 %v16487_v49 }
 0x4af   :  { %v9679_v25 = vpop.f32.mrb[128].mxu0 }
 0x4b0   :  { %v5464_v2 = vpop.f32.mrb[144].mxu1  ;;  %v13572_v53 = vadd.f32 %v9679_v25, %v5441_v62  ;;  %v5721_v28 = vpop.f32.mrb[129].mxu0  ;;  %v16492_v62 = vld [vmem:[#allocation103_spill] sm:$0xff] }
 0x4b1   :  { %v5465_v54 = vadd.f32 %v5464_v2, %v16488_v8  ;;  %v5466_v14 = vpop.f32.mrb[145].mxu1  ;;  %v13576_v33 = vadd.f32 %v5721_v28, %v13515_v39  ;;  %v9680_v58 = vpop.f32.mrb[130].mxu0  ;;  %v16493_v39 = vld [vmem:[#allocation37_spill] sm:$0xff]  ;;  %v16494_v25 = vld [vmem:[#allocation71_spill] sm:$0xff] }
 0x4b2   :  { %v5467_v52 = vpop.f32.mrb[146].mxu1  ;;  %v13578_v61 = vadd.f32 %v9680_v58, %v5444_v44  ;;  %v5724_v32 = vpop.f32.mrb[131].mxu0 }
 0x4b3   :  { %v5468_v47 = vadd.f32 %v5467_v52, %v16490_v9  ;;  %v5469_v7 = vpop.f32.mrb[147].mxu1  ;;  %v13582_v49 = vadd.f32 %v5724_v32, %v13520_v12 }
 0x4b4   :  { %16489 = vst [vmem:[#allocation14_spill] sm:$0xff] %v13578_v61  ;;  %8938 = vmatmul.mubr.msk.bf16.gmra.mrb[236].mxu0 %vm10400_vm5, %v16421_v18 }
 0x4b5   :  { %16491 = vst [vmem:[#allocation108_spill] sm:$0xff] %v13582_v49  ;;  %8800 = vmatmul.mubr.msk.bf16.gmra.mrb[252].mxu1 %vm10400_vm5, %v16492_v62  ;;  %6394 = vmatprep.mubr.bf16.mxu0 %v16422_v20  ;;  %v16495_v20 = vld [vmem:[#allocation20_spill] sm:$0xff] }
 0x4b6   :  { %9757 = vmatprep.mubr.msk.bf16.mxu1 %vm10190_vm2, %v16493_v39 }
 0x4b7   :  { %v9683_v44 = vpop.f32.mrb[132].mxu0 }
 0x4b8   :  { %v5472_v9 = vpop.f32.mrb[148].mxu1  ;;  %v13594_v7 = vadd.f32 %v9683_v44, %v5457_v1  ;;  %v5737_v12 = vpop.f32.mrb[133].mxu0  ;;  %v16496_v1 = vld [vmem:[#allocation47_spill] sm:$0xff] }
 0x4b9   :  { %v5473_v2 = vadd.f32 %v5472_v9, %v16494_v25  ;;  %v5474_v28 = vpop.f32.mrb[149].mxu1  ;;  %v13597_v8 = vadd.f32 %v5737_v12, %v5449_v59  ;;  %v9684_v18 = vpop.f32.mrb[134].mxu0  ;;  %v16497_v59 = vld [vmem:[#allocation36_spill] sm:$0xff] }
 0x4ba   :  { %v5475_v14 = vpop.f32.mrb[150].mxu1  ;;  %v13599_v58 = vadd.f32 %v9684_v18, %v5460_v40  ;;  %v5740_v52 = vpop.f32.mrb[135].mxu0 }
 0x4bb   :  { %v5476_v32 = vadd.f32 %v5475_v14, %v16495_v20  ;;  %v5477_v49 = vpop.f32.mrb[151].mxu1  ;;  %v13602_v61 = vadd.f32 %v5740_v52, %v5452_v45 }
 0x4bc   :  { %8942 = vmatmul.mubr.msk.bf16.gmra.mrb[240].mxu0 %vm10400_vm5, %v16425_v34  ;;  %v16498_v49 = vld [vmem:[#allocation24_spill] sm:$0xff] }
 0x4bd   :  { %9758 = vmatmul.mubr.msk.bf16.vlgmr.msra.gmra.mrb[0].mxu1 %vm10190_vm2, %v16496_v1  ;;  %6402 = vmatprep.mubr.bf16.mxu0 %v16426_v16  ;;  %v16499_v16 = vld [vmem:[#allocation76_spill] sm:$0xff] }
 0x4be   :  { %9761 = vmatprep.mubr.msk.bf16.mxu1 %vm10190_vm2, %v16497_v59  ;;  %v16503_v59 = vld [vmem:[#allocation40_spill] sm:$0xff] }
 0x4bf   :  { %v9687_v40 = vpop.f32.mrb[136].mxu0 }
 0x4c0   :  { %v5480_v39 = vpop.f32.mrb[152].mxu1  ;;  %v13614_v44 = vadd.f32 %v9687_v40, %v5473_v2  ;;  %v5753_v45 = vpop.f32.mrb[137].mxu0  ;;  %v16501_v2 = vld [vmem:[#allocation120_spill] sm:$0xff] }
 0x4c1   :  { %v5481_v9 = vadd.f32 %v5480_v39, %v16498_v49  ;;  %v5482_v12 = vpop.f32.mrb[153].mxu1  ;;  %v13617_v25 = vadd.f32 %v5753_v45, %v5465_v54  ;;  %v9688_v34 = vpop.f32.mrb[138].mxu0  ;;  %v16502_v54 = vld [vmem:[#allocation63_spill] sm:$0xff]  ;;  %v16504_v45 = vld [vmem:[#allocation77_spill] sm:$0xff] }
 0x4c2   :  { %v5483_v28 = vpop.f32.mrb[154].mxu1  ;;  %v13619_v18 = vadd.f32 %v9688_v34, %v5476_v32  ;;  %v5756_v14 = vpop.f32.mrb[139].mxu0 }
 0x4c3   :  { %v5484_v52 = vadd.f32 %v5483_v28, %v16499_v16  ;;  %v5485_v20 = vpop.f32.mrb[155].mxu1  ;;  %v13622_v1 = vadd.f32 %v5756_v14, %v5468_v47  ;;  %v16505_v16 = vld [vmem:[#allocation111_spill] sm:$0xff] }
 0x4c4   :  { %8946 = vmatmul.mubr.msk.bf16.gmra.mrb[244].mxu0 %vm10400_vm5, %v12710_v30 }
 0x4c5   :  { %16500 = vst [vmem:[#allocation107_spill] sm:$0xff] %v13622_v1  ;;  %9762 = vmatmul.mubr.msk.bf16.gmra.mrb[4].mxu1 %vm10190_vm2, %v16501_v2  ;;  %6410 = vmatprep.mubr.bf16.mxu0 %v16502_v54  ;;  %v16507_v1 = vld [vmem:[#allocation46_spill] sm:$0xff] }
 0x4c6   :  { %9765 = vmatprep.mubr.msk.bf16.mxu1 %vm10190_vm2, %v16503_v59 }
 0x4c7   :  { %v9691_v32 = vpop.f32.mrb[140].mxu0 }
 0x4c8   :  { %v5488_v40 = vpop.f32.mrb[156].mxu1  ;;  %v5769_v39 = vpop.f32.mrb[141].mxu0 }
 0x4c9   :  { %v5489_v47 = vadd.f32 %v5488_v40, %v16504_v45  ;;  %v5490_v49 = vpop.f32.mrb[157].mxu1  ;;  %v13635_v12 = vadd.f32 %v5769_v39, %v5481_v9  ;;  %v9692_v34 = vpop.f32.mrb[142].mxu0  ;;  %v16508_v40 = vld [vmem:[#allocation43_spill] sm:$0xff]  ;;  %v16509_v9 = vld [vmem:[#allocation68_spill] sm:$0xff]  ;;  %v16510_v45 = vld [vmem:[#allocation82_spill] sm:$0xff] }
 0x4ca   :  { %v5491_v30 = vpop.f32.mrb[158].mxu1  ;;  %v5772_v28 = vpop.f32.mrb[143].mxu0 }
 0x4cb   :  { %v13637_v14 = vadd.f32 %v9691_v32, %v5489_v47  ;;  %v5492_v20 = vadd.f32 %v5491_v30, %v16505_v16  ;;  %v5493_v2 = vpop.f32.mrb[159].mxu1  ;;  %v13640_v54 = vadd.f32 %v5772_v28, %v5484_v52  ;;  %v16512_v16 = vld [vmem:[#allocation23_spill] sm:$0xff] }
 0x4cc   :  { %8950 = vmatmul.mubr.msk.bf16.gmra.mrb[248].mxu0 %vm10400_vm5, %v16507_v1 }
 0x4cd   :  { %16506 = vst [vmem:[#allocation33_spill] sm:$0xff] %v13640_v54  ;;  %v13645_v59 = vadd.f32 %v9692_v34, %v5492_v20  ;;  %9766 = vmatmul.mubr.msk.bf16.gmra.mrb[8].mxu1 %vm10190_vm2, %v16508_v40  ;;  %6418 = vmatprep.mubr.bf16.mxu0 %v15829_v51  ;;  %v16514_v54 = vld [vmem:[#allocation67_spill] sm:$0xff] }
 0x4ce   :  { %9769 = vmatprep.mubr.msk.bf16.mxu1 %vm10190_vm2, %v16509_v9  ;;  %v16515_v9 = vld [vmem:[#allocation50_spill] sm:$0xff] }
 0x4cf   :  { %v9695_v32 = vpop.f32.mrb[144].mxu0 }
 0x4d0   :  { %v5496_v39 = vpop.f32.mrb[160].mxu1  ;;  %v5785_v52 = vpop.f32.mrb[145].mxu0 }
 0x4d1   :  { %v5497_v47 = vadd.f32 %v5496_v39, %v16510_v45  ;;  %v5498_v49 = vpop.f32.mrb[161].mxu1  ;;  %v9696_v30 = vpop.f32.mrb[146].mxu0 }
 0x4d2   :  { %v5499_v1 = vpop.f32.mrb[162].mxu1  ;;  %v5788_v34 = vpop.f32.mrb[147].mxu0 }
 0x4d3   :  { %v13655_v28 = vadd.f32 %v5785_v52, %v5497_v47  ;;  %v5500_v20 = vadd.f32 %v5499_v1, %v16512_v16  ;;  %v5501_v2 = vpop.f32.mrb[163].mxu1  ;;  %v16516_v47 = vld [vmem:[#allocation112_spill] sm:$0xff] }
 0x4d4   :  { %6419 = vmatmul.mubr.bf16.gmra.mrb[252].mxu0 %v15829_v51 }
 0x4d5   :  { %16511 = vst [vmem:[#allocation62_spill] sm:$0xff] %v13655_v28  ;;  %v13659_v40 = vadd.f32 %v5788_v34, %v5500_v20  ;;  %9770 = vmatmul.mubr.msk.bf16.gmra.mrb[12].mxu1 %vm10190_vm2, %v16514_v54  ;;  %6426 = vmatprep.mubr.bf16.mxu0 %v12796_v21 }
 0x4d6   :  { %9773 = vmatprep.mubr.msk.bf16.mxu1 %vm10190_vm2, %v16515_v9  ;;  %v16520_v9 = vld [vmem:[#allocation105_spill] sm:$0xff] }
 0x4d7   :  { %16513 = vst [vmem:[#allocation41_spill] sm:$0xff] %v13659_v40  ;;  %v9699_v39 = vpop.f32.mrb[148].mxu0  ;;  %v16518_v40 = vld [vmem:[#allocation18_spill] sm:$0xff] }
 0x4d8   :  { %v5504_v52 = vpop.f32.mrb[164].mxu1  ;;  %v5801_v45 = vpop.f32.mrb[149].mxu0 }
 0x4d9   :  { %v5505_v49 = vadd.f32 %v5504_v52, %v16516_v47  ;;  %v5506_v1 = vpop.f32.mrb[165].mxu1  ;;  %v9700_v16 = vpop.f32.mrb[150].mxu0  ;;  %v16521_v52 = vld [vmem:[#allocation54_spill] sm:$0xff] }
 0x4da   :  { %v5507_v2 = vpop.f32.mrb[166].mxu1  ;;  %v5804_v34 = vpop.f32.mrb[151].mxu0 }
 0x4db   :  { %v13669_v20 = vadd.f32 %v9695_v32, %v5505_v49  ;;  %v5508_v28 = vadd.f32 %v5507_v2, %v16518_v40  ;;  %v5509_v54 = vpop.f32.mrb[167].mxu1  ;;  %v16522_v49 = vld [vmem:[#allocation113_spill] sm:$0xff] }
 0x4dc   :  { %8954 = vmatmul.mubr.msk.bf16.gmra.mrb[0].mxu0 %vm10400_vm5, %v12807_v10 }
 0x4dd   :  { %16517 = vst [vmem:[#allocation58_spill] sm:$0xff] %v13669_v20  ;;  %v13675_v21 = vadd.f32 %v9696_v30, %v5508_v28  ;;  %9774 = vmatmul.mubr.msk.bf16.gmra.mrb[16].mxu1 %vm10190_vm2, %v16520_v9  ;;  %6434 = vmatprep.mubr.bf16.mxu0 %v12831_v13 }
 0x4de   :  { %9777 = vmatprep.mubr.msk.bf16.mxu1 %vm10190_vm2, %v16521_v52  ;;  %v16526_v52 = vld [vmem:[#allocation84_spill] sm:$0xff] }
 0x4df   :  { %16519 = vst [vmem:[#allocation16_spill] sm:$0xff] %v13675_v21  ;;  %v9703_v32 = vpop.f32.mrb[152].mxu0  ;;  %v16524_v21 = vld [vmem:[#allocation27_spill] sm:$0xff] }
 0x4e0   :  { %v5512_v47 = vpop.f32.mrb[168].mxu1  ;;  %v5817_v40 = vpop.f32.mrb[153].mxu0 }
 0x4e1   :  { %v5513_v1 = vadd.f32 %v5512_v47, %v16522_v49  ;;  %v5514_v2 = vpop.f32.mrb[169].mxu1  ;;  %v9704_v54 = vpop.f32.mrb[154].mxu0  ;;  %v16527_v47 = vld [vmem:[#allocation90_spill] sm:$0xff] }
 0x4e2   :  { %v5515_v10 = vpop.f32.mrb[170].mxu1  ;;  %v5820_v30 = vpop.f32.mrb[155].mxu0 }
 0x4e3   :  { %v13685_v28 = vadd.f32 %v5801_v45, %v5513_v1  ;;  %v5516_v20 = vadd.f32 %v5515_v10, %v16524_v21  ;;  %v5517_v9 = vpop.f32.mrb[171].mxu1  ;;  %v16528_v1 = vld [vmem:[#allocation21_spill] sm:$0xff] }
 0x4e4   :  { %8958 = vmatmul.mubr.msk.bf16.gmra.mrb[4].mxu0 %vm10400_vm5, %v12837_v17 }
 0x4e5   :  { %16523 = vst [vmem:[#allocation73_spill] sm:$0xff] %v13685_v28  ;;  %v13691_v13 = vadd.f32 %v5804_v34, %v5516_v20  ;;  %9778 = vmatmul.mubr.msk.bf16.gmra.mrb[20].mxu1 %vm10190_vm2, %v16526_v52  ;;  %6442 = vmatprep.mubr.bf16.mxu0 %v16435_v6  ;;  %v16529_v52 = vld [vmem:[#allocation114_spill] sm:$0xff]  ;;  %v16531_v28 = vld [vmem:[#allocation60_spill] sm:$0xff] }
 0x4e6   :  { %9781 = vmatprep.mubr.msk.bf16.mxu1 %vm10190_vm2, %v16527_v47 }
 0x4e7   :  { %16525 = vst [vmem:[#allocation86_spill] sm:$0xff] %v13691_v13  ;;  %v13700_v45 = vpop.f32.mrb[156].mxu0 }
 0x4e8   :  { %v5520_v21 = vpop.f32.mrb[172].mxu1  ;;  %v5833_v49 = vpop.f32.mrb[157].mxu0 }
 0x4e9   :  { %v5521_v2 = vadd.f32 %v5520_v21, %v16528_v1  ;;  %v5522_v10 = vpop.f32.mrb[173].mxu1  ;;  %v13703_v17 = vpop.f32.mrb[158].mxu0  ;;  %v16532_v21 = vld [vmem:[#allocation15_spill] sm:$0xff] }
 0x4ea   :  { %v5523_v34 = vpop.f32.mrb[174].mxu1  ;;  %v5836_v20 = vpop.f32.mrb[159].mxu0  ;;  %v16533_v10 = vld [vmem:[#allocation29_spill] sm:$0xff] }
 0x4eb   :  { %v13705_v9 = vadd.f32 %v9699_v39, %v5521_v2  ;;  %v5524_v13 = vadd.f32 %v5523_v34, %v16529_v52  ;;  %v5525_v6 = vpop.f32.mrb[175].mxu1 }
 0x4ec   :  { %8962 = vmatmul.mubr.msk.bf16.gmra.mrb[8].mxu0 %vm10400_vm5, %v12858_v11 }
 0x4ed   :  { %v13711_v47 = vadd.f32 %v9700_v16, %v5524_v13  ;;  %9782 = vmatmul.mubr.msk.bf16.gmra.mrb[24].mxu1 %vm10190_vm2, %v16531_v28  ;;  %6450 = vmatprep.mubr.bf16.mxu0 %v16438_v0  ;;  %v16535_v0 = vld [vmem:[#allocation55_spill] sm:$0xff] }
 0x4ee   :  { %9785 = vmatprep.mubr.msk.bf16.mxu1 %vm10190_vm2, %v16532_v21 }
 0x4ef   :  { %16530 = vst [vmem:[#allocation93_spill] sm:$0xff] %v13711_v47  ;;  %v13720_v39 = vpop.f32.mrb[160].mxu0 }
 0x4f0   :  { %v5528_v1 = vpop.f32.mrb[176].mxu1  ;;  %v13722_v2 = vpop.f32.mrb[161].mxu0 }
 0x4f1   :  { %v5529_v34 = vadd.f32 %v5528_v1, %v16533_v10  ;;  %v5530_v11 = vpop.f32.mrb[177].mxu1  ;;  %v13725_v16 = vpop.f32.mrb[162].mxu0 }
 0x4f2   :  { %v5531_v13 = vpop.f32.mrb[178].mxu1  ;;  %v13727_v52 = vpop.f32.mrb[163].mxu0 }
 0x4f3   :  { %v13729_v28 = vadd.f32 %v5817_v40, %v5529_v34  ;;  %v5532_v6 = vadd.f32 %v5531_v13, %v16535_v0  ;;  %v5533_v47 = vpop.f32.mrb[179].mxu1 }
 0x4f4   :  { %8966 = vmatmul.mubr.msk.bf16.gmra.mrb[12].mxu0 %vm10400_vm5, %v12882_v37  ;;  %v16537_v47 = vld [vmem:[#allocation22_spill] sm:$0xff] }
 0x4f5   :  { %16534 = vst [vmem:[#allocation59_spill] sm:$0xff] %v13729_v28  ;;  %v13735_v21 = vadd.f32 %v5820_v30, %v5532_v6  ;;  %9786 = vmatmul.mubr.bf16.gmra.mrb[28].mxu1 %v15829_v51  ;;  %6458 = vmatprep.mubr.bf16.mxu0 %v16441_v55  ;;  %v16538_v55 = vld [vmem:[#allocation31_spill] sm:$0xff]  ;;  %v16540_v28 = vld [vmem:[#allocation69_spill] sm:$0xff] }
 0x4f6   :  { %9789 = vmatprep.mubr.msk.bf16.mxu1 %vm10190_vm2, %v16417_v63 }
 0x4f7   :  { %16536 = vst [vmem:[#allocation64_spill] sm:$0xff] %v13735_v21  ;;  %v13742_v1 = vpop.f32.mrb[164].mxu0 }
 0x4f8   :  { %v5536_v40 = vpop.f32.mrb[180].mxu1  ;;  %v13744_v10 = vpop.f32.mrb[165].mxu0 }
 0x4f9   :  { %v5537_v34 = vadd.f32 %v5536_v40, %v16537_v47  ;;  %v5538_v11 = vpop.f32.mrb[181].mxu1  ;;  %v13747_v13 = vpop.f32.mrb[166].mxu0  ;;  %v16541_v40 = vld [vmem:[#allocation53_spill] sm:$0xff] }
 0x4fa   :  { %v5539_v37 = vpop.f32.mrb[182].mxu1  ;;  %v13749_v30 = vpop.f32.mrb[167].mxu0 }
 0x4fb   :  { %v13751_v0 = vadd.f32 %v9703_v32, %v5537_v34  ;;  %v5540_v6 = vadd.f32 %v5539_v37, %v16538_v55  ;;  %v5541_v21 = vpop.f32.mrb[183].mxu1  ;;  %v16542_v34 = vld [vmem:[#allocation25_spill] sm:$0xff] }
 0x4fc   :  { %8970 = vmatmul.mubr.msk.bf16.gmra.mrb[16].mxu0 %vm10400_vm5, %v12903_v50 }
 0x4fd   :  { %v13757_v63 = vadd.f32 %v9704_v54, %v5540_v6  ;;  %9790 = vmatmul.mubr.msk.bf16.gmra.mrb[32].mxu1 %vm10190_vm2, %v16540_v28  ;;  %6466 = vmatprep.mubr.bf16.mxu0 %v16444_v46  ;;  %v16543_v46 = vld [vmem:[#allocation115_spill] sm:$0xff] }
 0x4fe   :  { %9793 = vmatprep.mubr.msk.bf16.mxu1 %vm10190_vm2, %v16541_v40 }
 0x4ff   :  { %16539 = vst [vmem:[#allocation87_spill] sm:$0xff] %v13757_v63  ;;  %v13766_v32 = vpop.f32.mrb[168].mxu0 }
 0x500   :  { %v5544_v47 = vpop.f32.mrb[184].mxu1  ;;  %v13768_v21 = vpop.f32.mrb[169].mxu0 }
 0x501   :  { %v5545_v11 = vadd.f32 %v5544_v47, %v16542_v34  ;;  %v5546_v50 = vpop.f32.mrb[185].mxu1  ;;  %v13771_v54 = vpop.f32.mrb[170].mxu0  ;;  %v16545_v47 = vld [vmem:[#allocation78_spill] sm:$0xff] }
 0x502   :  { %v5547_v37 = vpop.f32.mrb[186].mxu1  ;;  %v13773_v55 = vpop.f32.mrb[171].mxu0 }
 0x503   :  { %v13775_v28 = vadd.f32 %v5833_v49, %v5545_v11  ;;  %v5548_v6 = vadd.f32 %v5547_v37, %v16543_v46  ;;  %v5549_v63 = vpop.f32.mrb[187].mxu1  ;;  %v16546_v11 = vld [vmem:[#allocation28_spill] sm:$0xff] }
 0x504   :  { %8974 = vmatmul.mubr.msk.bf16.gmra.mrb[20].mxu0 %vm10400_vm5, %v12924_v23 }
 0x505   :  { %v13781_v40 = vadd.f32 %v5836_v20, %v5548_v6  ;;  %9794 = vmatmul.mubr.msk.bf16.gmra.mrb[36].mxu1 %vm10190_vm2, %v12884_v5  ;;  %6474 = vmatprep.mubr.bf16.mxu0 %v16447_v26  ;;  %v16547_v26 = vld [vmem:[#allocation26_spill] sm:$0xff] }
 0x506   :  { %9797 = vmatprep.mubr.msk.bf16.mxu1 %vm10190_vm2, %v16545_v47 }
 0x507   :  { %16544 = vst [vmem:[#allocation95_spill] sm:$0xff] %v13781_v40  ;;  %v13790_v49 = vpop.f32.mrb[172].mxu0 }
 0x508   :  { %v5552_v34 = vpop.f32.mrb[188].mxu1  ;;  %v13792_v63 = vpop.f32.mrb[173].mxu0 }
 0x509   :  { %v5553_v50 = vadd.f32 %v5552_v34, %v16546_v11  ;;  %v5554_v23 = vpop.f32.mrb[189].mxu1  ;;  %v13795_v20 = vpop.f32.mrb[174].mxu0  ;;  %v16549_v34 = vld [vmem:[#allocation83_spill] sm:$0xff] }
 0x50a   :  { %v5555_v37 = vpop.f32.mrb[190].mxu1  ;;  %v13797_v46 = vpop.f32.mrb[175].mxu0 }
 0x50b   :  { %v13800_v5 = vadd.f32 %v13700_v45, %v5553_v50  ;;  %v5556_v6 = vadd.f32 %v5555_v37, %v16547_v26  ;;  %v5557_v40 = vpop.f32.mrb[191].mxu1  ;;  %v16550_v50 = vld [vmem:[#allocation35_spill] sm:$0xff] }
 0x50c   :  { %8978 = vmatmul.mubr.msk.bf16.gmra.mrb[24].mxu0 %vm10400_vm5, %v12945_v15 }
 0x50d   :  { %v13807_v47 = vadd.f32 %v13703_v17, %v5556_v6  ;;  %9798 = vmatmul.mubr.msk.bf16.gmra.mrb[40].mxu1 %vm10190_vm2, %v16549_v34  ;;  %6482 = vmatprep.mubr.bf16.mxu0 %v16450_v43  ;;  %v16551_v43 = vld [vmem:[#allocation116_spill] sm:$0xff] }
 0x50e   :  { %9801 = vmatprep.mubr.msk.bf16.mxu1 %vm10190_vm2, %v12947_v29 }
 0x50f   :  { %16548 = vst [vmem:[#allocation65_spill] sm:$0xff] %v13807_v47  ;;  %v13816_v45 = vpop.f32.mrb[176].mxu0 }
 0x510   :  { %v5560_v40 = vpop.f32.mrb[192].mxu1  ;;  %v13818_v11 = vpop.f32.mrb[177].mxu0 }
 0x511   :  { %v5561_v15 = vadd.f32 %v5560_v40, %v16550_v50  ;;  %v5562_v23 = vpop.f32.mrb[193].mxu1  ;;  %v13821_v17 = vpop.f32.mrb[178].mxu0 }
 0x512   :  { %v5563_v37 = vpop.f32.mrb[194].mxu1  ;;  %v13823_v26 = vpop.f32.mrb[179].mxu0 }
 0x513   :  { %v13826_v6 = vadd.f32 %v13722_v2, %v5561_v15  ;;  %v5564_v34 = vadd.f32 %v5563_v37, %v16551_v43  ;;  %v5565_v47 = vpop.f32.mrb[195].mxu1  ;;  %v16553_v43 = vld [vmem:[#allocation61_spill] sm:$0xff] }
 0x514   :  { %8982 = vmatmul.mubr.msk.bf16.gmra.mrb[28].mxu0 %vm10400_vm5, %v12966_v41 }
 0x515   :  { %v13833_v29 = vadd.f32 %v13727_v52, %v5564_v34  ;;  %9802 = vmatmul.mubr.msk.bf16.gmra.mrb[44].mxu1 %vm10190_vm2, %v12968_v57  ;;  %6490 = vmatprep.mubr.bf16.mxu0 %v16453_v31 }
 0x516   :  { %9805 = vmatprep.mubr.msk.bf16.mxu1 %vm10190_vm2, %v12989_v60 }
 0x517   :  { %16552 = vst [vmem:[#allocation109_spill] sm:$0xff] %v13833_v29  ;;  %v13842_v2 = vpop.f32.mrb[180].mxu0  ;;  %v16569_v29 = vld [vmem:[#allocation96_spill] sm:$0xff] }
 0x518   :  { %v5568_v47 = vpop.f32.mrb[196].mxu1  ;;  %v13844_v40 = vpop.f32.mrb[181].mxu0 }
 0x519   :  { %v5569_v41 = vadd.f32 %v5568_v47, %v13376_v27  ;;  %v5570_v50 = vpop.f32.mrb[197].mxu1  ;;  %v13847_v52 = vpop.f32.mrb[182].mxu0 }
 0x51a   :  { %v5571_v15 = vpop.f32.mrb[198].mxu1  ;;  %v13849_v23 = vpop.f32.mrb[183].mxu0 }
 0x51b   :  { %v13852_v57 = vadd.f32 %v13720_v39, %v5569_v41  ;;  %v5572_v31 = vadd.f32 %v5571_v15, %v13378_v3  ;;  %v5573_v37 = vpop.f32.mrb[199].mxu1 }
 0x51c   :  { %8986 = vmatmul.mubr.msk.bf16.gmra.mrb[32].mxu0 %vm10400_vm5, %v16456_v56  ;;  %v16558_v37 = vld [vmem:[#allocation97_spill] sm:$0xff] }
 0x51d   :  { %v13859_v60 = vadd.f32 %v13725_v16, %v5572_v31  ;;  %9806 = vmatmul.mubr.msk.bf16.gmra.mrb[48].mxu1 %vm10190_vm2, %v13010_v48  ;;  %6498 = vmatprep.mubr.bf16.mxu0 %v16458_v4  ;;  %v16555_v4 = vld [vmem:[#allocation30_spill] sm:$0xff] }
 0x51e   :  { %9809 = vmatprep.mubr.msk.bf16.mxu1 %vm10190_vm2, %v13031_v38  ;;  %v16556_v38 = vld [vmem:[#allocation92_spill] sm:$0xff] }
 0x51f   :  { %v13868_v27 = vpop.f32.mrb[184].mxu0 }
 0x520   :  { %v5576_v3 = vpop.f32.mrb[200].mxu1  ;;  %v13870_v39 = vpop.f32.mrb[185].mxu0 }
 0x521   :  { %v5577_v56 = vadd.f32 %v5576_v3, %v16553_v43  ;;  %v5578_v34 = vpop.f32.mrb[201].mxu1  ;;  %v13873_v16 = vpop.f32.mrb[186].mxu0  ;;  %v16559_v3 = vld [vmem:[#allocation101_spill] sm:$0xff] }
 0x522   :  { %v5579_v47 = vpop.f32.mrb[202].mxu1  ;;  %v13875_v41 = vpop.f32.mrb[187].mxu0  ;;  %v16560_v34 = vld [vmem:[#allocation39_spill] sm:$0xff] }
 0x523   :  { %v13878_v48 = vadd.f32 %v13744_v10, %v5577_v56  ;;  %v5580_v50 = vadd.f32 %v5579_v47, %v16555_v4  ;;  %v5581_v15 = vpop.f32.mrb[203].mxu1 }
 0x524   :  { %8990 = vmatmul.mubr.msk.bf16.gmra.mrb[36].mxu0 %vm10400_vm5, %v16556_v38 }
 0x525   :  { %16554 = vst [vmem:[#allocation79_spill] sm:$0xff] %v13878_v48  ;;  %v13885_v31 = vadd.f32 %v13749_v30, %v5580_v50  ;;  %9810 = vmatmul.mubr.msk.bf16.gmra.mrb[52].mxu1 %vm10190_vm2, %v16558_v37  ;;  %6506 = vmatprep.mubr.bf16.mxu0 %v16466_v24  ;;  %v16562_v24 = vld [vmem:[#allocation32_spill] sm:$0xff] }
 0x526   :  { %9813 = vmatprep.mubr.msk.bf16.mxu1 %vm10190_vm2, %v16559_v3  ;;  %v16563_v3 = vld [vmem:[#allocation94_spill] sm:$0xff] }
 0x527   :  { %16557 = vst [vmem:[#allocation80_spill] sm:$0xff] %v13885_v31  ;;  %v13894_v10 = vpop.f32.mrb[188].mxu0 }
 0x528   :  { %v5584_v43 = vpop.f32.mrb[204].mxu1  ;;  %v13896_v56 = vpop.f32.mrb[189].mxu0 }
 0x529   :  { %v5585_v47 = vadd.f32 %v5584_v43, %v16560_v34  ;;  %v5586_v4 = vpop.f32.mrb[205].mxu1  ;;  %v13899_v30 = vpop.f32.mrb[190].mxu0  ;;  %v16565_v43 = vld [vmem:[#allocation104_spill] sm:$0xff]  ;;  %v16566_v34 = vld [vmem:[#allocation89_spill] sm:$0xff] }
 0x52a   :  { %v5587_v50 = vpop.f32.mrb[206].mxu1  ;;  %v13901_v15 = vpop.f32.mrb[191].mxu0  ;;  %v16567_v4 = vld [vmem:[#allocation38_spill] sm:$0xff] }
 0x52b   :  { %v13904_v38 = vadd.f32 %v13742_v1, %v5585_v47  ;;  %v5588_v37 = vadd.f32 %v5587_v50, %v16562_v24  ;;  %v5589_v31 = vpop.f32.mrb[207].mxu1 }
 0x52c   :  { %8994 = vmatmul.mubr.msk.bf16.gmra.mrb[40].mxu0 %vm10400_vm5, %v16563_v3 }
 0x52d   :  { %16561 = vst [vmem:[#allocation98_spill] sm:$0xff] %v13904_v38  ;;  %v13911_v48 = vadd.f32 %v13747_v13, %v5588_v37  ;;  %9814 = vmatmul.mubr.msk.bf16.gmra.mrb[56].mxu1 %vm10190_vm2, %v16565_v43  ;;  %6514 = vmatprep.mubr.bf16.mxu0 %v16473_v42  ;;  %v16568_v43 = vld [vmem:[#allocation119_spill] sm:$0xff] }
 0x52e   :  { %9817 = vmatprep.mubr.msk.bf16.mxu1 %vm10190_vm2, %v16566_v34 }
 0x52f   :  { %16564 = vst [vmem:[#allocation110_spill] sm:$0xff] %v13911_v48  ;;  %v13920_v1 = vpop.f32.mrb[192].mxu0 }
 0x530   :  { %v5592_v31 = vpop.f32.mrb[208].mxu1  ;;  %v6302_v47 = vpop.f32.mrb[193].mxu0 }
 0x531   :  { %v5593_v50 = vadd.f32 %v5592_v31, %v16567_v4  ;;  %v5594_v24 = vpop.f32.mrb[209].mxu1  ;;  %v13923_v3 = vpop.f32.mrb[194].mxu0 }
 0x532   :  { %v5595_v13 = vpop.f32.mrb[210].mxu1  ;;  %v6305_v37 = vpop.f32.mrb[195].mxu0 }
 0x533   :  { %v13926_v48 = vadd.f32 %v13768_v21, %v5593_v50  ;;  %v5596_v42 = vadd.f32 %v5595_v13, %v16568_v43  ;;  %v5597_v38 = vpop.f32.mrb[211].mxu1  ;;  %v16571_v21 = vld [vmem:[#allocation117_spill] sm:$0xff] }
 0x534   :  { %8998 = vmatmul.mubr.msk.bf16.gmra.mrb[44].mxu0 %vm10400_vm5, %v16569_v29 }
 0x535   :  { %v13933_v19 = vadd.f32 %v13773_v55, %v5596_v42  ;;  %6522 = vmatprep.mubr.bf16.mxu0 %v16481_v36  ;;  %9818 = vmatmul.mubr.bf16.gmra.mrb[60].mxu1 %v15829_v51  ;;  %v16572_v55 = vld [vmem:[#allocation45_spill] sm:$0xff]  ;;  %v16573_v42 = vld [vmem:[#allocation102_spill] sm:$0xff] }
 0x537   :  { %16570 = vst [vmem:[#allocation17_spill] sm:$0xff] %v13933_v19  ;;  %v13937_v34 = vpop.f32.mrb[196].mxu0 }
 0x538   :  { %v5600_v31 = vpop.f32.mrb[212].mxu1  ;;  %v6310_v47 = vpop.f32.mrb[197].mxu0 }
 0x539   :  { %v5601_v4 = vadd.f32 %v5600_v31, %v16571_v21  ;;  %v5602_v50 = vpop.f32.mrb[213].mxu1  ;;  %v13940_v24 = vpop.f32.mrb[198].mxu0 }
 0x53a   :  { %v5603_v38 = vpop.f32.mrb[214].mxu1  ;;  %v6313_v13 = vpop.f32.mrb[199].mxu0  ;;  %v16574_v50 = vld [vmem:[#allocation49_spill] sm:$0xff] }
 0x53b   :  { %v13943_v29 = vadd.f32 %v13766_v32, %v5601_v4  ;;  %v5604_v37 = vadd.f32 %v5603_v38, %v16572_v55  ;;  %v5605_v43 = vpop.f32.mrb[215].mxu1 }
 0x53c   :  { %9002 = vmatmul.mubr.msk.bf16.gmra.mrb[48].mxu0 %vm10400_vm5, %v16486_v22  ;;  %v16576_v22 = vld [vmem:[#allocation118_spill] sm:$0xff] }
 0x53d   :  { %v13950_v36 = vadd.f32 %v13771_v54, %v5604_v37  ;;  %6530 = vmatprep.mubr.bf16.mxu0 %v16573_v42  ;;  %v16578_v42 = vld [vmem:[#allocation106_spill] sm:$0xff] }
 0x53f   :  { %v13953_v31 = vpop.f32.mrb[200].mxu0 }
 0x540   :  { %v5608_v47 = vpop.f32.mrb[216].mxu1  ;;  %v6318_v21 = vpop.f32.mrb[201].mxu0 }
 0x541   :  { %v5609_v13 = vadd.f32 %v5608_v47, %v16574_v50  ;;  %v5610_v32 = vpop.f32.mrb[217].mxu1  ;;  %v13956_v4 = vpop.f32.mrb[202].mxu0 }
 0x542   :  { %v5611_v38 = vpop.f32.mrb[218].mxu1  ;;  %v6321_v55 = vpop.f32.mrb[203].mxu0  ;;  %v16579_v32 = vld [vmem:[#allocation56_spill] sm:$0xff] }
 0x543   :  { %v13959_v43 = vadd.f32 %v13792_v63, %v5609_v13  ;;  %v5612_v19 = vadd.f32 %v5611_v38, %v16576_v22  ;;  %v5613_v54 = vpop.f32.mrb[219].mxu1 }
 0x544   :  { %9006 = vmatmul.mubr.msk.bf16.gmra.mrb[52].mxu0 %vm10400_vm5, %v16492_v62  ;;  %v16581_v62 = vld [vmem:[#allocation48_spill] sm:$0xff] }
 0x545   :  { %16575 = vst [vmem:[#allocation99_spill] sm:$0xff] %v13959_v43  ;;  %v13966_v37 = vadd.f32 %v13797_v46, %v5612_v19  ;;  %6538 = vmatprep.mubr.bf16.mxu0 %v16578_v42  ;;  %v16582_v19 = vld [vmem:[#allocation88_spill] sm:$0xff] }
 0x547   :  { %16577 = vst [vmem:[#allocation70_spill] sm:$0xff] %v13966_v37  ;;  %v13969_v47 = vpop.f32.mrb[204].mxu0 }
 0x548   :  { %v5616_v21 = vpop.f32.mrb[220].mxu1  ;;  %v6326_v50 = vpop.f32.mrb[205].mxu0 }
 0x549   :  { %v5617_v55 = vadd.f32 %v5616_v21, %v16579_v32  ;;  %v5618_v63 = vpop.f32.mrb[221].mxu1  ;;  %v13972_v13 = vpop.f32.mrb[206].mxu0 }
 0x54a   :  { %v5619_v38 = vpop.f32.mrb[222].mxu1  ;;  %v6329_v22 = vpop.f32.mrb[207].mxu0  ;;  %v16584_v63 = vld [vmem:[#allocation121_spill] sm:$0xff] }
 0x54b   :  { %v13975_v54 = vadd.f32 %v13790_v49, %v5617_v55  ;;  %v5620_v43 = vadd.f32 %v5619_v38, %v16581_v62  ;;  %v5621_v46 = vpop.f32.mrb[223].mxu1 }
 0x54c   :  { %9010 = vmatmul.mubr.msk.bf16.gmra.mrb[56].mxu0 %vm10400_vm5, %v16582_v19 }
 0x54d   :  { %16580 = vst [vmem:[#allocation19_spill] sm:$0xff] %v13975_v54  ;;  %v13982_v42 = vadd.f32 %v13795_v20, %v5620_v43  ;;  %6546 = vmatprep.mubr.bf16.mxu0 %v15829_v51 }
 0x54f   :  { %16583 = vst [vmem:[#allocation103_spill] sm:$0xff] %v13982_v42  ;;  %v13985_v21 = vpop.f32.mrb[208].mxu0 }
 0x550   :  { %v5624_v50 = vpop.f32.mrb[224].mxu1  ;;  %v6334_v32 = vpop.f32.mrb[209].mxu0 }
 0x551   :  { %v5625_v22 = vadd.f32 %v5624_v50, %v16584_v63  ;;  %v5626_v49 = vpop.f32.mrb[225].mxu1  ;;  %v13988_v55 = vpop.f32.mrb[210].mxu0  ;;  %v16588_v63 = vld [vmem:[#allocation122_spill] sm:$0xff] }
 0x552   :  { %v5627_v38 = vpop.f32.mrb[226].mxu1  ;;  %v6337_v62 = vpop.f32.mrb[211].mxu0 }
 0x553   :  { %v13991_v46 = vadd.f32 %v13818_v11, %v5625_v22  ;;  %v5628_v19 = vadd.f32 %v5627_v38, %v16586_v35  ;;  %v5629_v20 = vpop.f32.mrb[227].mxu1  ;;  %v16590_v38 = vld [vmem:[#allocation44_spill] sm:$0xff] }
 0x554   :  { %6547 = vmatmul.mubr.bf16.gmra.mrb[60].mxu0 %v15829_v51 }
 0x555   :  { %16585 = vst [vmem:[#allocation37_spill] sm:$0xff] %v13991_v46  ;;  %v13996_v43 = vadd.f32 %v13823_v26, %v5628_v19 }
 0x557   :  { %16587 = vst [vmem:[#allocation71_spill] sm:$0xff] %v13996_v43  ;;  %v13998_v37 = vpop.f32.mrb[212].mxu0  ;;  %v16592_v43 = vld [vmem:[#allocation51_spill] sm:$0xff] }
 0x558   :  { %v5632_v32 = vpop.f32.mrb[228].mxu1  ;;  %v6342_v50 = vpop.f32.mrb[213].mxu0 }
 0x559   :  { %v5633_v49 = vadd.f32 %v5632_v32, %v16588_v63  ;;  %v5634_v42 = vpop.f32.mrb[229].mxu1  ;;  %v14001_v54 = vpop.f32.mrb[214].mxu0 }
 0x55a   :  { %v5635_v62 = vpop.f32.mrb[230].mxu1  ;;  %v6345_v11 = vpop.f32.mrb[215].mxu0 }
 0x55b   :  { %v14004_v22 = vadd.f32 %v13816_v45, %v5633_v49  ;;  %v5636_v35 = vadd.f32 %v5635_v62, %v16590_v38  ;;  %v5637_v51 = vpop.f32.mrb[231].mxu1  ;;  %v16594_v49 = vld [vmem:[#allocation74_spill] sm:$0xff] }
 0x55d   :  { %16589 = vst [vmem:[#allocation20_spill] sm:$0xff] %v14004_v22  ;;  %v14008_v26 = vadd.f32 %v13821_v17, %v5636_v35 }
 0x55f   :  { %16591 = vst [vmem:[#allocation47_spill] sm:$0xff] %v14008_v26  ;;  %v14010_v19 = vpop.f32.mrb[216].mxu0  ;;  %v16596_v26 = vld [vmem:[#allocation66_spill] sm:$0xff] }
 0x560   :  { %v5640_v20 = vpop.f32.mrb[232].mxu1  ;;  %v6350_v50 = vpop.f32.mrb[217].mxu0 }
 0x561   :  { %v5641_v32 = vadd.f32 %v5640_v20, %v16592_v43  ;;  %v5642_v42 = vpop.f32.mrb[233].mxu1  ;;  %v14013_v63 = vpop.f32.mrb[218].mxu0 }
 0x562   :  { %v5643_v46 = vpop.f32.mrb[234].mxu1  ;;  %v6353_v11 = vpop.f32.mrb[219].mxu0 }
 0x563   :  { %v14016_v45 = vadd.f32 %v13844_v40, %v5641_v32  ;;  %v5644_v62 = vadd.f32 %v5643_v46, %v16594_v49  ;;  %v5645_v38 = vpop.f32.mrb[235].mxu1  ;;  %v16598_v32 = vld [vmem:[#allocation57_spill] sm:$0xff] }
 0x565   :  { %16593 = vst [vmem:[#allocation36_spill] sm:$0xff] %v14016_v45  ;;  %v14020_v17 = vadd.f32 %v13849_v23, %v5644_v62 }
 0x567   :  { %16595 = vst [vmem:[#allocation24_spill] sm:$0xff] %v14020_v17  ;;  %v14022_v35 = vpop.f32.mrb[220].mxu0  ;;  %v16600_v17 = vld [vmem:[#allocation85_spill] sm:$0xff] }
 0x568   :  { %v5648_v51 = vpop.f32.mrb[236].mxu1  ;;  %v6358_v50 = vpop.f32.mrb[221].mxu0 }
 0x569   :  { %v5649_v43 = vadd.f32 %v5648_v51, %v16596_v26  ;;  %v5650_v20 = vpop.f32.mrb[237].mxu1  ;;  %v14025_v42 = vpop.f32.mrb[222].mxu0 }
 0x56a   :  { %v5651_v22 = vpop.f32.mrb[238].mxu1  ;;  %v6361_v11 = vpop.f32.mrb[223].mxu0 }
 0x56b   :  { %v14028_v40 = vadd.f32 %v13842_v2, %v5649_v43  ;;  %v5652_v46 = vadd.f32 %v5651_v22, %v16598_v32  ;;  %v5653_v49 = vpop.f32.mrb[239].mxu1  ;;  %v16602_v43 = vld [vmem:[#allocation42_spill] sm:$0xff] }
 0x56d   :  { %16597 = vst [vmem:[#allocation76_spill] sm:$0xff] %v14028_v40  ;;  %v14032_v23 = vadd.f32 %v13847_v52, %v5652_v46 }
 0x56f   :  { %16599 = vst [vmem:[#allocation120_spill] sm:$0xff] %v14032_v23  ;;  %v14034_v62 = vpop.f32.mrb[224].mxu0  ;;  %v16604_v23 = vld [vmem:[#allocation34_spill] sm:$0xff] }
 0x570   :  { %v5656_v38 = vpop.f32.mrb[240].mxu1  ;;  %v6366_v50 = vpop.f32.mrb[225].mxu0 }
 0x571   :  { %v5657_v26 = vadd.f32 %v5656_v38, %v16600_v17  ;;  %v5658_v51 = vpop.f32.mrb[241].mxu1  ;;  %v14037_v20 = vpop.f32.mrb[226].mxu0 }
 0x572   :  { %v5659_v45 = vpop.f32.mrb[242].mxu1  ;;  %v6369_v11 = vpop.f32.mrb[227].mxu0 }
 0x573   :  { %v14040_v2 = vadd.f32 %v13870_v39, %v5657_v26  ;;  %v5660_v22 = vadd.f32 %v5659_v45, %v16602_v43  ;;  %v5661_v32 = vpop.f32.mrb[243].mxu1  ;;  %v16606_v26 = vld [vmem:[#allocation91_spill] sm:$0xff] }
 0x575   :  { %16601 = vst [vmem:[#allocation63_spill] sm:$0xff] %v14040_v2  ;;  %v14044_v52 = vadd.f32 %v13875_v41, %v5660_v22 }
 0x577   :  { %16603 = vst [vmem:[#allocation40_spill] sm:$0xff] %v14044_v52  ;;  %v14046_v46 = vpop.f32.mrb[228].mxu0  ;;  %v16608_v52 = vld [vmem:[#allocation52_spill] sm:$0xff] }
 0x578   :  { %v5664_v49 = vpop.f32.mrb[244].mxu1  ;;  %v6374_v50 = vpop.f32.mrb[229].mxu0 }
 0x579   :  { %v5665_v17 = vadd.f32 %v5664_v49, %v16604_v23  ;;  %v5666_v38 = vpop.f32.mrb[245].mxu1  ;;  %v14049_v51 = vpop.f32.mrb[230].mxu0 }
 0x57a   :  { %v5667_v40 = vpop.f32.mrb[246].mxu1  ;;  %v6377_v11 = vpop.f32.mrb[231].mxu0 }
 0x57b   :  { %v14052_v39 = vadd.f32 %v13868_v27, %v5665_v17  ;;  %v5668_v45 = vadd.f32 %v5667_v40, %v16606_v26  ;;  %v5669_v43 = vpop.f32.mrb[247].mxu1  ;;  %v16609_v17 = vld [vmem:[#allocation72_spill] sm:$0xff] }
 0x57d   :  { %16605 = vst [vmem:[#allocation77_spill] sm:$0xff] %v14052_v39  ;;  %v14056_v41 = vadd.f32 %v13873_v16, %v5668_v45 }
 0x57f   :  { %16607 = vst [vmem:[#allocation111_spill] sm:$0xff] %v14056_v41  ;;  %v14058_v22 = vpop.f32.mrb[232].mxu0  ;;  %v16611_v41 = vld [vmem:[#allocation75_spill] sm:$0xff] }
 0x580   :  { %v5672_v32 = vpop.f32.mrb[248].mxu1  ;;  %v6382_v50 = vpop.f32.mrb[233].mxu0 }
 0x581   :  { %v5673_v23 = vadd.f32 %v5672_v32, %v16608_v52  ;;  %v5674_v49 = vpop.f32.mrb[249].mxu1  ;;  %v14061_v38 = vpop.f32.mrb[234].mxu0 }
 0x582   :  { %v5675_v2 = vpop.f32.mrb[250].mxu1  ;;  %v6385_v11 = vpop.f32.mrb[235].mxu0 }
 0x583   :  { %v14064_v27 = vadd.f32 %v13896_v56, %v5673_v23  ;;  %v5676_v40 = vadd.f32 %v5675_v2, %v16609_v17  ;;  %v5677_v26 = vpop.f32.mrb[251].mxu1  ;;  %v16612_v23 = vld [vmem:[#allocation81_spill] sm:$0xff] }
 0x585   :  { %v14068_v16 = vadd.f32 %v13901_v15, %v5676_v40 }
 0x587   :  { %16610 = vst [vmem:[#allocation46_spill] sm:$0xff] %v14068_v16  ;;  %v14070_v45 = vpop.f32.mrb[236].mxu0 }
 0x588   :  { %v5680_v43 = vpop.f32.mrb[252].mxu1  ;;  %v6390_v50 = vpop.f32.mrb[237].mxu0 }
 0x589   :  { %v5681_v52 = vadd.f32 %v5680_v43, %v16611_v41  ;;  %v5682_v32 = vpop.f32.mrb[253].mxu1  ;;  %v14073_v49 = vpop.f32.mrb[238].mxu0 }
 0x58a   :  { %v5683_v39 = vpop.f32.mrb[254].mxu1  ;;  %v6393_v11 = vpop.f32.mrb[239].mxu0 }
 0x58b   :  { %v14076_v56 = vadd.f32 %v13894_v10, %v5681_v52  ;;  %v5684_v2 = vadd.f32 %v5683_v39, %v16612_v23  ;;  %v5685_v17 = vpop.f32.mrb[255].mxu1 }
 0x58c   :  { %v16614_v17 = vld [vmem:[#allocation14_spill] sm:$0xff] }
 0x58d   :  { %v14080_v15 = vadd.f32 %v13899_v30, %v5684_v2  ;;  %v14092_v30 = vld [vmem:[%s15417_s4] ss:$0 sm:$0xff] }
 0x58f   :  { %16613 = vst [vmem:[#allocation43_spill] sm:$0xff] %v14080_v15  ;;  %v14082_v40 = vpop.f32.mrb[240].mxu0 }
 0x590   :  { %v9759_v26 = vpop.f32.mrb[0].mxu1  ;;  %v6398_v50 = vpop.f32.mrb[241].mxu0 }
 0x591   :  { %v6598_v41 = vadd.f32 %v9759_v26, %v13937_v34  ;;  %v6589_v43 = vpop.f32.mrb[1].mxu1  ;;  %v14085_v32 = vpop.f32.mrb[242].mxu0  ;;  %v16615_v50 = vld [vmem:[#allocation108_spill] sm:$0xff] }
 0x592   :  { %v6590_v11 = vadd.f32 %v6589_v43, %v13920_v1  ;;  %v9760_v16 = vpop.f32.mrb[2].mxu1  ;;  %v6401_v10 = vpop.f32.mrb[243].mxu0 }
 0x593   :  { %v6846_v52 = vadd.f32 %v6598_v41, %v13572_v53  ;;  %v6601_v39 = vadd.f32 %v9760_v16, %v13940_v24  ;;  %v6592_v23 = vpop.f32.mrb[3].mxu1 }
 0x594   :  { %v6844_v2 = vadd.f32 %v6590_v11, %v13576_v33  ;;  %v6593_v34 = vadd.f32 %v6592_v23, %v13923_v3 }
 0x595   :  { %v6847_v26 = vadd.f32 %v6601_v39, %v16614_v17  ;;  %v14105_v41 = vadd.f32 %v14092_v30, %v6846_v52 }
 0x596   :  { %v14099_v1 = vadd.f32 %v14092_v30, %v6844_v2  ;;  %v6845_v43 = vadd.f32 %v6593_v34, %v16615_v50 }
 0x597   :  { %v14102_v53 = vpop.f32.mrb[244].mxu0  ;;  %v14115_v23 = vadd.f32 %v14092_v30, %v6847_v26 }
 0x598   :  { %v14108_v10 = vadd.f32 %v14092_v30, %v6845_v43  ;;  %v9763_v24 = vpop.f32.mrb[4].mxu1  ;;  %v6406_v16 = vpop.f32.mrb[245].mxu0  ;;  %v15714_v39 = vmax.f32 %v14099_v1, 0.0 }
 0x599   :  { %v6614_v33 = vadd.f32 %v9763_v24, %v13969_v47  ;;  %v6605_v3 = vpop.f32.mrb[5].mxu1  ;;  %v14111_v11 = vpop.f32.mrb[246].mxu0  ;;  %v15703_v47 = vmax.f32 %v14105_v41, 0.0 }
 0x59a   :  { %v15704_v2 = vmax.f32 %v14108_v10, 0.0  ;;  %v6606_v52 = vadd.f32 %v6605_v3, %v13953_v31  ;;  %v9764_v34 = vpop.f32.mrb[6].mxu1  ;;  %v6409_v17 = vpop.f32.mrb[247].mxu0  ;;  %v15702_v3 = vmax.f32 %v14115_v23, 0.0 }
 0x59b   :  { %v6850_v50 = vadd.f32 %v6614_v33, %v13594_v7  ;;  %v6617_v43 = vadd.f32 %v9764_v34, %v13972_v13  ;;  %v6608_v16 = vpop.f32.mrb[7].mxu1 }
 0x59c   :  { %v7171_v24 = vadd.f32 %v15704_v2, %v15714_v39  ;;  %v6848_v26 = vadd.f32 %v6606_v52, %v13597_v8  ;;  %v6609_v15 = vadd.f32 %v6608_v16, %v13956_v4 }
 0x59d   :  { %v6851_v31 = vadd.f32 %v6617_v43, %v13599_v58  ;;  %v14141_v8 = vadd.f32 %v14092_v30, %v6850_v50 }
 0x59e   :  { %v7172_v7 = vadd.f32 %v7171_v24, %v15703_v47  ;;  %v14133_v13 = vadd.f32 %v14092_v30, %v6848_v26  ;;  %v6849_v33 = vadd.f32 %v6609_v15, %v13602_v61 }
 0x59f   :  { %v14136_v34 = vpop.f32.mrb[248].mxu0  ;;  %v14153_v15 = vadd.f32 %v14092_v30, %v6851_v31 }
 0x5a0   :  { %v7173_v17 = vadd.f32 %v7172_v7, %v15702_v3  ;;  %v15705_v58 = vmax.f32 %v14133_v13, 0.0  ;;  %v14145_v4 = vadd.f32 %v14092_v30, %v6849_v33  ;;  %v9767_v52 = vpop.f32.mrb[8].mxu1  ;;  %v6414_v43 = vpop.f32.mrb[249].mxu0 }
 0x5a1   :  { %v6630_v16 = vadd.f32 %v9767_v52, %v13998_v37  ;;  %v6621_v24 = vpop.f32.mrb[9].mxu1  ;;  %v14148_v26 = vpop.f32.mrb[250].mxu0  ;;  %v15707_v52 = vmax.f32 %v14141_v8, 0.0 }
 0x5a2   :  { %v7174_v61 = vadd.f32 %v7173_v17, %v15705_v58  ;;  %v15713_v50 = vmax.f32 %v14145_v4, 0.0  ;;  %v6622_v7 = vadd.f32 %v6621_v24, %v13985_v21  ;;  %v9768_v3 = vpop.f32.mrb[10].mxu1  ;;  %v6417_v33 = vpop.f32.mrb[251].mxu0  ;;  %v15706_v21 = vmax.f32 %v14153_v15, 0.0 }
 0x5a3   :  { %v6854_v47 = vadd.f32 %v6630_v16, %v13614_v44  ;;  %v6633_v43 = vadd.f32 %v9768_v3, %v14001_v54  ;;  %v6624_v37 = vpop.f32.mrb[11].mxu1  ;;  %v16616_v54 = vld [vmem:[#allocation107_spill] sm:$0xff] }
 0x5a4   :  { %v7175_v2 = vadd.f32 %v7174_v61, %v15713_v50  ;;  %v6852_v17 = vadd.f32 %v6622_v7, %v13617_v25  ;;  %v6625_v31 = vadd.f32 %v6624_v37, %v13988_v55  ;;  %v16620_v50 = vld [vmem:[#allocation16_spill] sm:$0xff] }
 0x5a5   :  { %v6855_v58 = vadd.f32 %v6633_v43, %v13619_v18  ;;  %v14177_v25 = vadd.f32 %v14092_v30, %v6854_v47 }
 0x5a6   :  { %v7176_v24 = vadd.f32 %v7175_v2, %v15707_v52  ;;  %v14169_v44 = vadd.f32 %v14092_v30, %v6852_v17  ;;  %v6853_v3 = vadd.f32 %v6625_v31, %v16616_v54 }
 0x5a7   :  { %v14172_v16 = vpop.f32.mrb[252].mxu0  ;;  %v14189_v31 = vadd.f32 %v14092_v30, %v6855_v58 }
 0x5a8   :  { %v7177_v61 = vadd.f32 %v7176_v24, %v15706_v21  ;;  %v15708_v18 = vmax.f32 %v14169_v44, 0.0  ;;  %v14181_v55 = vadd.f32 %v14092_v30, %v6853_v3  ;;  %v9771_v7 = vpop.f32.mrb[12].mxu1  ;;  %v6422_v2 = vpop.f32.mrb[253].mxu0 }
 0x5a9   :  { %v6646_v33 = vadd.f32 %v9771_v7, %v14022_v35  ;;  %v6637_v43 = vpop.f32.mrb[13].mxu1  ;;  %v14184_v37 = vpop.f32.mrb[254].mxu0  ;;  %v15710_v7 = vmax.f32 %v14177_v25, 0.0 }
 0x5aa   :  { %v7178_v17 = vadd.f32 %v7177_v61, %v15708_v18  ;;  %v15711_v47 = vmax.f32 %v14181_v55, 0.0  ;;  %v6638_v24 = vadd.f32 %v6637_v43, %v14010_v19  ;;  %v9772_v54 = vpop.f32.mrb[14].mxu1  ;;  %v6425_v3 = vpop.f32.mrb[255].mxu0  ;;  %v15709_v19 = vmax.f32 %v14189_v31, 0.0 }
 0x5ab   :  { %v6858_v21 = vadd.f32 %v6646_v33, %v13637_v14  ;;  %v6649_v2 = vadd.f32 %v9772_v54, %v14025_v42  ;;  %v6640_v35 = vpop.f32.mrb[15].mxu1  ;;  %v16617_v42 = vld [vmem:[#allocation33_spill] sm:$0xff] }
 0x5ac   :  { %v7179_v52 = vadd.f32 %v7178_v17, %v15711_v47  ;;  %v6856_v61 = vadd.f32 %v6638_v24, %v13635_v12  ;;  %v6641_v58 = vadd.f32 %v6640_v35, %v14013_v63 }
 0x5ad   :  { %v6859_v18 = vadd.f32 %v6649_v2, %v13645_v59  ;;  %v14213_v12 = vadd.f32 %v14092_v30, %v6858_v21 }
 0x5ae   :  { %v7180_v43 = vadd.f32 %v7179_v52, %v15710_v7  ;;  %v14205_v14 = vadd.f32 %v14092_v30, %v6856_v61  ;;  %v6857_v33 = vadd.f32 %v6641_v58, %v16617_v42 }
 0x5af   :  { %v14208_v54 = vpop.f32.mrb[0].mxu0  ;;  %v14225_v58 = vadd.f32 %v14092_v30, %v6859_v18 }
 0x5b0   :  { %v7181_v17 = vadd.f32 %v7180_v43, %v15709_v19  ;;  %v15712_v59 = vmax.f32 %v14205_v14, 0.0  ;;  %v14217_v63 = vadd.f32 %v14092_v30, %v6857_v33  ;;  %v9775_v24 = vpop.f32.mrb[16].mxu1  ;;  %v6430_v52 = vpop.f32.mrb[1].mxu0  ;;  %v16618_v19 = vld [vmem:[#allocation58_spill] sm:$0xff] }
 0x5b1   :  { %v6662_v3 = vadd.f32 %v9775_v24, %v14046_v46  ;;  %v6653_v2 = vpop.f32.mrb[17].mxu1  ;;  %v14220_v35 = vpop.f32.mrb[2].mxu0  ;;  %v15716_v24 = vmax.f32 %v14213_v12, 0.0 }
 0x5b2   :  { %v7182_v61 = vadd.f32 %v7181_v17, %v15712_v59  ;;  %v15718_v21 = vmax.f32 %v14217_v63, 0.0  ;;  %v6654_v43 = vadd.f32 %v6653_v2, %v14034_v62  ;;  %v9776_v42 = vpop.f32.mrb[18].mxu1  ;;  %v6433_v33 = vpop.f32.mrb[3].mxu0  ;;  %v16619_v17 = vld [vmem:[#allocation62_spill] sm:$0xff]  ;;  %v15715_v62 = vmax.f32 %v14225_v58, 0.0 }
 0x5b3   :  { %v6862_v7 = vadd.f32 %v6662_v3, %v16618_v19  ;;  %v6665_v52 = vadd.f32 %v9776_v42, %v14049_v51  ;;  %v6656_v46 = vpop.f32.mrb[19].mxu1  ;;  %v16622_v51 = vld [vmem:[#allocation41_spill] sm:$0xff] }
 0x5b4   :  { %v7183_v47 = vadd.f32 %v7182_v61, %v15718_v21  ;;  %v6860_v59 = vadd.f32 %v6654_v43, %v16619_v17  ;;  %v6657_v18 = vadd.f32 %v6656_v46, %v14037_v20  ;;  %v16624_v21 = vld [vmem:[#allocation93_spill] sm:$0xff] }
 0x5b5   :  { %v6863_v39 = vadd.f32 %v6665_v52, %v16620_v50  ;;  %v14249_v43 = vadd.f32 %v14092_v30, %v6862_v7 }
 0x5b6   :  { %v7184_v2 = vadd.f32 %v7183_v47, %v15716_v24  ;;  %v14241_v19 = vadd.f32 %v14092_v30, %v6860_v59  ;;  %v6861_v3 = vadd.f32 %v6657_v18, %v16622_v51 }
 0x5b7   :  { %v14244_v42 = vpop.f32.mrb[4].mxu0  ;;  %v14261_v18 = vadd.f32 %v14092_v30, %v6863_v39 }
 0x5b8   :  { %16621 = vst [vmem:[#allocation68_spill] sm:$0xff] %v14241_v19  ;;  %v7185_v61 = vadd.f32 %v7184_v2, %v15715_v62  ;;  %v15717_v20 = vmax.f32 %v14241_v19, 0.0  ;;  %v14253_v50 = vadd.f32 %v14092_v30, %v6861_v3  ;;  %v9779_v33 = vpop.f32.mrb[20].mxu1  ;;  %v6438_v47 = vpop.f32.mrb[5].mxu0 }
 0x5b9   :  { %v6678_v59 = vadd.f32 %v9779_v33, %v14070_v45  ;;  %v6669_v52 = vpop.f32.mrb[21].mxu1  ;;  %v14256_v46 = vpop.f32.mrb[6].mxu0  ;;  %v15721_v33 = vmax.f32 %v14249_v43, 0.0 }
 0x5ba   :  { %v7186_v17 = vadd.f32 %v7185_v61, %v15717_v20  ;;  %v15723_v7 = vmax.f32 %v14253_v50, 0.0  ;;  %v6670_v2 = vadd.f32 %v6669_v52, %v14058_v22  ;;  %v9780_v51 = vpop.f32.mrb[22].mxu1  ;;  %v6441_v3 = vpop.f32.mrb[7].mxu0  ;;  %v16623_v61 = vld [vmem:[#allocation73_spill] sm:$0xff]  ;;  %v15720_v22 = vmax.f32 %v14261_v18, 0.0 }
 0x5bb   :  { %v6866_v62 = vadd.f32 %v6678_v59, %v13705_v9  ;;  %v6681_v47 = vadd.f32 %v9780_v51, %v14073_v49  ;;  %v6672_v45 = vpop.f32.mrb[23].mxu1  ;;  %v16626_v49 = vld [vmem:[#allocation86_spill] sm:$0xff] }
 0x5bc   :  { %v7187_v24 = vadd.f32 %v7186_v17, %v15723_v7  ;;  %v6864_v20 = vadd.f32 %v6670_v2, %v16623_v61  ;;  %v6673_v39 = vadd.f32 %v6672_v45, %v14061_v38  ;;  %v16628_v7 = vld [vmem:[#allocation87_spill] sm:$0xff] }
 0x5bd   :  { %v6867_v19 = vadd.f32 %v6681_v47, %v16624_v21  ;;  %v14285_v2 = vadd.f32 %v14092_v30, %v6866_v62 }
 0x5be   :  { %v7188_v52 = vadd.f32 %v7187_v24, %v15721_v33  ;;  %v14277_v9 = vadd.f32 %v14092_v30, %v6864_v20  ;;  %v6865_v59 = vadd.f32 %v6673_v39, %v16626_v49 }
 0x5bf   :  { %v14280_v51 = vpop.f32.mrb[8].mxu0  ;;  %v14297_v39 = vadd.f32 %v14092_v30, %v6867_v19 }
 0x5c0   :  { %16625 = vst [vmem:[#allocation82_spill] sm:$0xff] %v14277_v9  ;;  %v7189_v17 = vadd.f32 %v7188_v52, %v15720_v22  ;;  %v15722_v38 = vmax.f32 %v14277_v9, 0.0  ;;  %v14289_v21 = vadd.f32 %v14092_v30, %v6865_v59  ;;  %v9783_v3 = vpop.f32.mrb[24].mxu1  ;;  %v6446_v24 = vpop.f32.mrb[9].mxu0 }
 0x5c1   :  { %v6694_v20 = vadd.f32 %v9783_v3, %v14102_v53  ;;  %v6685_v47 = vpop.f32.mrb[25].mxu1  ;;  %v14292_v45 = vpop.f32.mrb[10].mxu0  ;;  %v15726_v3 = vmax.f32 %v14285_v2, 0.0 }
 0x5c2   :  { %v7190_v61 = vadd.f32 %v7189_v17, %v15722_v38  ;;  %v15728_v62 = vmax.f32 %v14289_v21, 0.0  ;;  %v6686_v52 = vadd.f32 %v6685_v47, %v14082_v40  ;;  %v9784_v49 = vpop.f32.mrb[26].mxu1  ;;  %v6449_v59 = vpop.f32.mrb[11].mxu0  ;;  %v16627_v17 = vld [vmem:[#allocation59_spill] sm:$0xff]  ;;  %v15725_v40 = vmax.f32 %v14297_v39, 0.0 }
 0x5c3   :  { %v6870_v22 = vadd.f32 %v6694_v20, %v13751_v0  ;;  %v6697_v24 = vadd.f32 %v9784_v49, %v14111_v11  ;;  %v6688_v53 = vpop.f32.mrb[27].mxu1  ;;  %v16629_v11 = vld [vmem:[#allocation64_spill] sm:$0xff] }
 0x5c4   :  { %v7191_v33 = vadd.f32 %v7190_v61, %v15728_v62  ;;  %v6868_v38 = vadd.f32 %v6686_v52, %v16627_v17  ;;  %v6689_v19 = vadd.f32 %v6688_v53, %v14085_v32 }
 0x5c5   :  { %v6871_v9 = vadd.f32 %v6697_v24, %v16628_v7  ;;  %v14319_v61 = vadd.f32 %v14092_v30, %v6870_v22 }
 0x5c6   :  { %v7192_v47 = vadd.f32 %v7191_v33, %v15726_v3  ;;  %v14313_v0 = vadd.f32 %v14092_v30, %v6868_v38  ;;  %v6869_v20 = vadd.f32 %v6689_v19, %v16629_v11 }
 0x5c7   :  { %v14316_v49 = vpop.f32.mrb[12].mxu0  ;;  %v14333_v22 = vadd.f32 %v14092_v30, %v6871_v9 }
 0x5c8   :  { %v15727_v52 = vmax.f32 %v14313_v0, 0.0  ;;  %v7193_v32 = vadd.f32 %v7192_v47, %v15725_v40  ;;  %v14325_v7 = vadd.f32 %v14092_v30, %v6869_v20  ;;  %v9787_v59 = vpop.f32.mrb[28].mxu1  ;;  %v6454_v33 = vpop.f32.mrb[13].mxu0 }
 0x5c9   :  { %v6710_v38 = vadd.f32 %v9787_v59, %v14172_v16  ;;  %v6701_v24 = vpop.f32.mrb[29].mxu1  ;;  %v14328_v53 = vpop.f32.mrb[14].mxu0  ;;  %v15730_v59 = vmax.f32 %v14319_v61, 0.0 }
 0x5ca   :  { %v7194_v17 = vadd.f32 %v7193_v32, %v15727_v52  ;;  %v15736_v19 = vmax.f32 %v14325_v7, 0.0  ;;  %v6702_v47 = vadd.f32 %v6701_v24, %v14136_v34  ;;  %v9788_v11 = vpop.f32.mrb[30].mxu1  ;;  %v6457_v20 = vpop.f32.mrb[15].mxu0  ;;  %v16630_v52 = vld [vmem:[#allocation65_spill] sm:$0xff]  ;;  %v15729_v34 = vmax.f32 %v14333_v22, 0.0 }
 0x5cb   :  { %v6874_v40 = vadd.f32 %v6710_v38, %v13800_v5  ;;  %v6713_v33 = vadd.f32 %v9788_v11, %v14184_v37  ;;  %v6704_v16 = vpop.f32.mrb[31].mxu1  ;;  %v16631_v37 = vld [vmem:[#allocation95_spill] sm:$0xff] }
 0x5cc   :  { %v7195_v3 = vadd.f32 %v7194_v17, %v15736_v19  ;;  %v6872_v32 = vadd.f32 %v6702_v47, %v13775_v28  ;;  %v6705_v9 = vadd.f32 %v6704_v16, %v14148_v26  ;;  %v16639_v19 = vld [vmem:[#allocation110_spill] sm:$0xff] }
 0x5cd   :  { %v6875_v62 = vadd.f32 %v6713_v33, %v16630_v52  ;;  %v14355_v17 = vadd.f32 %v14092_v30, %v6874_v40 }
 0x5ce   :  { %v7196_v24 = vadd.f32 %v7195_v3, %v15730_v59  ;;  %v14349_v5 = vadd.f32 %v14092_v30, %v6872_v32  ;;  %v6873_v38 = vadd.f32 %v6705_v9, %v16631_v37 }
 0x5cf   :  { %v14352_v11 = vpop.f32.mrb[16].mxu0  ;;  %v14369_v40 = vadd.f32 %v14092_v30, %v6875_v62 }
 0x5d0   :  { %v15731_v28 = vmax.f32 %v14349_v5, 0.0  ;;  %v7197_v26 = vadd.f32 %v7196_v24, %v15729_v34  ;;  %v14361_v52 = vadd.f32 %v14092_v30, %v6873_v38  ;;  %v9791_v47 = vpop.f32.mrb[32].mxu1  ;;  %v6462_v3 = vpop.f32.mrb[17].mxu0 }
 0x5d1   :  { %v6726_v20 = vadd.f32 %v9791_v47, %v14244_v42  ;;  %v6717_v33 = vpop.f32.mrb[33].mxu1  ;;  %v14364_v16 = vpop.f32.mrb[18].mxu0  ;;  %v15733_v47 = vmax.f32 %v14355_v17, 0.0 }
 0x5d2   :  { %v7198_v32 = vadd.f32 %v7197_v26, %v15731_v28  ;;  %v15734_v9 = vmax.f32 %v14361_v52, 0.0  ;;  %v6718_v24 = vadd.f32 %v6717_v33, %v14208_v54  ;;  %v9792_v37 = vpop.f32.mrb[34].mxu1  ;;  %v6465_v38 = vpop.f32.mrb[19].mxu0  ;;  %v15732_v54 = vmax.f32 %v14369_v40, 0.0 }
 0x5d3   :  { %v6878_v34 = vadd.f32 %v6726_v20, %v13852_v57  ;;  %v6729_v3 = vadd.f32 %v9792_v37, %v14256_v46  ;;  %v6720_v42 = vpop.f32.mrb[35].mxu1  ;;  %v16633_v46 = vld [vmem:[#allocation109_spill] sm:$0xff] }
 0x5d4   :  { %v7199_v59 = vadd.f32 %v7198_v32, %v15734_v9  ;;  %v6876_v26 = vadd.f32 %v6718_v24, %v13826_v6  ;;  %v6721_v62 = vadd.f32 %v6720_v42, %v14220_v35 }
 0x5d5   :  { %v6879_v28 = vadd.f32 %v6729_v3, %v13859_v60  ;;  %v14389_v38 = vadd.f32 %v14092_v30, %v6878_v34 }
 0x5d6   :  { %v7200_v33 = vadd.f32 %v7199_v59, %v15733_v47  ;;  %v14385_v57 = vadd.f32 %v14092_v30, %v6876_v26  ;;  %v6877_v20 = vadd.f32 %v6721_v62, %v16633_v46 }
 0x5d7   :  { %v6468_v37 = vpop.f32.mrb[20].mxu0  ;;  %16634 = vst [vmem:[#allocation67_spill] sm:$0xff] %v14389_v38  ;;  %v14401_v34 = vadd.f32 %v14092_v30, %v6879_v28 }
 0x5d8   :  { %16632 = vst [vmem:[#allocation23_spill] sm:$0xff] %v14385_v57  ;;  %v15735_v6 = vmax.f32 %v14385_v57, 0.0  ;;  %v7201_v35 = vadd.f32 %v7200_v33, %v15732_v54  ;;  %v14395_v60 = vadd.f32 %v14092_v30, %v6877_v20  ;;  %v9795_v32 = vpop.f32.mrb[36].mxu1  ;;  %v6470_v24 = vpop.f32.mrb[21].mxu0  ;;  %v16637_v20 = vld [vmem:[#allocation98_spill] sm:$0xff] }
 0x5d9   :  { %v6742_v59 = vadd.f32 %v9795_v32, %v14316_v49  ;;  %v6733_v3 = vpop.f32.mrb[37].mxu1  ;;  %v6471_v42 = vpop.f32.mrb[22].mxu0  ;;  %16636 = vst [vmem:[#allocation112_spill] sm:$0xff] %v14401_v34  ;;  %v15738_v49 = vmax.f32 %v14389_v38, 0.0 }
 0x5da   :  { %16635 = vst [vmem:[#allocation50_spill] sm:$0xff] %v14395_v60  ;;  %v7202_v26 = vadd.f32 %v7201_v35, %v15735_v6  ;;  %v15740_v62 = vmax.f32 %v14395_v60, 0.0  ;;  %v6734_v46 = vadd.f32 %v6733_v3, %v14280_v51  ;;  %v9796_v33 = vpop.f32.mrb[38].mxu1  ;;  %v6473_v54 = vpop.f32.mrb[23].mxu0  ;;  %v16638_v35 = vld [vmem:[#allocation79_spill] sm:$0xff]  ;;  %v15739_v51 = vmax.f32 %v14401_v34, 0.0 }
 0x5db   :  { %v6882_v47 = vadd.f32 %v6742_v59, %v16637_v20  ;;  %v6745_v24 = vadd.f32 %v9796_v33, %v14328_v53  ;;  %v6736_v9 = vpop.f32.mrb[39].mxu1  ;;  %v16641_v53 = vld [vmem:[#allocation80_spill] sm:$0xff]  ;;  %v16674_v60 = vld [vmem:[#allocation77_spill] sm:$0xff] }
 0x5dc   :  { %v7203_v32 = vadd.f32 %v7202_v26, %v15740_v62  ;;  %v6880_v6 = vadd.f32 %v6734_v46, %v16638_v35  ;;  %v6737_v28 = vadd.f32 %v6736_v9, %v14292_v45 }
 0x5dd   :  { %v6883_v57 = vadd.f32 %v6745_v24, %v16639_v19  ;;  %v14421_v20 = vadd.f32 %v14092_v30, %v6882_v47 }
 0x5de   :  { %v7204_v54 = vadd.f32 %v7203_v32, %v15738_v49  ;;  %v14417_v59 = vadd.f32 %v14092_v30, %v6880_v6  ;;  %v6881_v3 = vadd.f32 %v6737_v28, %v16641_v53 }
 0x5df   :  { %v6476_v33 = vpop.f32.mrb[24].mxu0  ;;  %16642 = vst [vmem:[#allocation105_spill] sm:$0xff] %v14421_v20  ;;  %v14432_v28 = vadd.f32 %v14092_v30, %v6883_v57 }
 0x5e0   :  { %16640 = vst [vmem:[#allocation18_spill] sm:$0xff] %v14417_v59  ;;  %v15741_v26 = vmax.f32 %v14417_v59, 0.0  ;;  %v7205_v45 = vadd.f32 %v7204_v54, %v15739_v51  ;;  %v14427_v19 = vadd.f32 %v14092_v30, %v6881_v3  ;;  %v9799_v9 = vpop.f32.mrb[40].mxu1  ;;  %v6478_v46 = vpop.f32.mrb[25].mxu0 }
 0x5e1   :  { %v6758_v24 = vadd.f32 %v9799_v9, %v6468_v37  ;;  %v6749_v32 = vpop.f32.mrb[41].mxu1  ;;  %v6479_v6 = vpop.f32.mrb[26].mxu0  ;;  %16644 = vst [vmem:[#allocation113_spill] sm:$0xff] %v14432_v28  ;;  %v15742_v37 = vmax.f32 %v14421_v20, 0.0 }
 0x5e2   :  { %16643 = vst [vmem:[#allocation54_spill] sm:$0xff] %v14427_v19  ;;  %v7206_v35 = vadd.f32 %v7205_v45, %v15741_v26  ;;  %v15744_v47 = vmax.f32 %v14427_v19, 0.0  ;;  %v6750_v53 = vadd.f32 %v6749_v32, %v14352_v11  ;;  %v9800_v49 = vpop.f32.mrb[42].mxu1  ;;  %v6481_v54 = vpop.f32.mrb[27].mxu0  ;;  %v15743_v26 = vmax.f32 %v14432_v28, 0.0 }
 0x5e3   :  { %v6886_v3 = vadd.f32 %v6758_v24, %v13943_v29  ;;  %v6761_v51 = vadd.f32 %v9800_v49, %v6471_v42  ;;  %v6752_v62 = vpop.f32.mrb[43].mxu1  ;;  %v16646_v42 = vld [vmem:[#allocation17_spill] sm:$0xff] }
 0x5e4   :  { %v7207_v9 = vadd.f32 %v7206_v35, %v15744_v47  ;;  %v6884_v45 = vadd.f32 %v6750_v53, %v13926_v48  ;;  %v6753_v57 = vadd.f32 %v6752_v62, %v14364_v16 }
 0x5e5   :  { %v6887_v46 = vadd.f32 %v6761_v51, %v13950_v36  ;;  %v14451_v32 = vadd.f32 %v14092_v30, %v6886_v3 }
 0x5e6   :  { %v7208_v11 = vadd.f32 %v7207_v9, %v15742_v37  ;;  %v14447_v29 = vadd.f32 %v14092_v30, %v6884_v45  ;;  %v6885_v49 = vadd.f32 %v6753_v57, %v16646_v42 }
 0x5e7   :  { %v6484_v24 = vpop.f32.mrb[28].mxu0  ;;  %16647 = vst [vmem:[#allocation84_spill] sm:$0xff] %v14451_v32  ;;  %v14462_v45 = vadd.f32 %v14092_v30, %v6887_v46 }
 0x5e8   :  { %16645 = vst [vmem:[#allocation27_spill] sm:$0xff] %v14447_v29  ;;  %v15746_v48 = vmax.f32 %v14447_v29, 0.0  ;;  %v7209_v16 = vadd.f32 %v7208_v11, %v15743_v26  ;;  %v14457_v36 = vadd.f32 %v14092_v30, %v6885_v49  ;;  %v9803_v62 = vpop.f32.mrb[44].mxu1  ;;  %v6486_v51 = vpop.f32.mrb[29].mxu0  ;;  %v16650_v11 = vld [vmem:[#allocation19_spill] sm:$0xff] }
 0x5e9   :  { %v6774_v35 = vadd.f32 %v9803_v62, %v6484_v24  ;;  %v6765_v53 = vpop.f32.mrb[45].mxu1  ;;  %v6487_v54 = vpop.f32.mrb[30].mxu0  ;;  %16649 = vst [vmem:[#allocation21_spill] sm:$0xff] %v14462_v45  ;;  %v15748_v51 = vmax.f32 %v14451_v32, 0.0  ;;  %v16651_v62 = vld [vmem:[#allocation99_spill] sm:$0xff]  ;;  %v15749_v28 = vmax.f32 %v14462_v45, 0.0 }
 0x5ea   :  { %16648 = vst [vmem:[#allocation90_spill] sm:$0xff] %v14457_v36  ;;  %v7210_v9 = vadd.f32 %v7209_v16, %v15746_v48  ;;  %v15750_v3 = vmax.f32 %v14457_v36, 0.0  ;;  %v6766_v57 = vadd.f32 %v6765_v53, %v6476_v33  ;;  %v9804_v42 = vpop.f32.mrb[46].mxu1  ;;  %v6489_v37 = vpop.f32.mrb[31].mxu0  ;;  %v16652_v48 = vld [vmem:[#allocation103_spill] sm:$0xff] }
 0x5eb   :  { %v6890_v26 = vadd.f32 %v6774_v35, %v16650_v11  ;;  %v6777_v49 = vadd.f32 %v9804_v42, %v6487_v54  ;;  %v6768_v47 = vpop.f32.mrb[47].mxu1  ;;  %v16654_v35 = vld [vmem:[#allocation70_spill] sm:$0xff] }
 0x5ec   :  { %v7211_v24 = vadd.f32 %v7210_v9, %v15750_v3  ;;  %v6888_v29 = vadd.f32 %v6766_v57, %v16651_v62  ;;  %v6769_v16 = vadd.f32 %v6768_v47, %v6479_v6 }
 0x5ed   :  { %v6891_v46 = vadd.f32 %v6777_v49, %v16652_v48  ;;  %v14479_v54 = vadd.f32 %v14092_v30, %v6890_v26 }
 0x5ee   :  { %v7212_v33 = vadd.f32 %v7211_v24, %v15748_v51  ;;  %v14475_v37 = vadd.f32 %v14092_v30, %v6888_v29  ;;  %v6889_v53 = vadd.f32 %v6769_v16, %v16654_v35 }
 0x5ef   :  { %16655 = vst [vmem:[#allocation60_spill] sm:$0xff] %v14479_v54  ;;  %v6492_v42 = vpop.f32.mrb[32].mxu0  ;;  %v15757_v35 = vmax.f32 %v14479_v54, 0.0 }
 0x5f0   :  { %16653 = vst [vmem:[#allocation114_spill] sm:$0xff] %v14475_v37  ;;  %v15751_v9 = vmax.f32 %v14475_v37, 0.0  ;;  %v7213_v6 = vadd.f32 %v7212_v33, %v15749_v28  ;;  %v14485_v47 = vadd.f32 %v14092_v30, %v6889_v53  ;;  %v9807_v48 = vpop.f32.mrb[48].mxu1  ;;  %v6494_v57 = vpop.f32.mrb[33].mxu0  ;;  %v14492_v33 = vadd.f32 %v14092_v30, %v6891_v46 }
 0x5f1   :  { %v6781_v11 = vpop.f32.mrb[49].mxu1  ;;  %v6495_v49 = vpop.f32.mrb[34].mxu0  ;;  %v16658_v57 = vld [vmem:[#allocation37_spill] sm:$0xff] }
 0x5f2   :  { %16656 = vst [vmem:[#allocation15_spill] sm:$0xff] %v14485_v47  ;;  %v7214_v29 = vadd.f32 %v7213_v6, %v15751_v9  ;;  %v15756_v24 = vmax.f32 %v14485_v47, 0.0  ;;  %v6782_v26 = vadd.f32 %v6781_v11, %v6492_v42  ;;  %v9808_v62 = vpop.f32.mrb[50].mxu1  ;;  %v6497_v16 = vpop.f32.mrb[35].mxu0  ;;  %16657 = vst [vmem:[#allocation29_spill] sm:$0xff] %v14492_v33  ;;  %v16660_v42 = vld [vmem:[#allocation71_spill] sm:$0xff] }
 0x5f3   :  { %v6784_v51 = vpop.f32.mrb[51].mxu1  ;;  %v15759_v37 = vmax.f32 %v14492_v33, 0.0 }
 0x5f4   :  { %v7215_v53 = vadd.f32 %v7214_v29, %v15756_v24  ;;  %v6892_v28 = vadd.f32 %v6782_v26, %v16658_v57  ;;  %v6785_v3 = vadd.f32 %v6784_v51, %v6495_v49 }
 0x5f6   :  { %v7216_v6 = vadd.f32 %v7215_v53, %v15757_v35  ;;  %v14500_v9 = vadd.f32 %v14092_v30, %v6892_v28  ;;  %v6893_v11 = vadd.f32 %v6785_v3, %v16660_v42  ;;  %v16662_v28 = vld [vmem:[#allocation20_spill] sm:$0xff] }
 0x5f7   :  { %v6500_v16 = vpop.f32.mrb[36].mxu0 }
 0x5f8   :  { %16659 = vst [vmem:[#allocation55_spill] sm:$0xff] %v14500_v9  ;;  %v6790_v45 = vadd.f32 %v9807_v48, %v6500_v16  ;;  %v9811_v46 = vpop.f32.mrb[52].mxu1  ;;  %v6502_v32 = vpop.f32.mrb[37].mxu0  ;;  %v15761_v47 = vmax.f32 %v14500_v9, 0.0  ;;  %v7217_v51 = vadd.f32 %v7216_v6, %v15759_v37  ;;  %v14508_v49 = vadd.f32 %v14092_v30, %v6893_v11 }
 0x5f9   :  { %v6797_v29 = vpop.f32.mrb[53].mxu1  ;;  %v6503_v24 = vpop.f32.mrb[38].mxu0  ;;  %v16664_v32 = vld [vmem:[#allocation47_spill] sm:$0xff] }
 0x5fa   :  { %16661 = vst [vmem:[#allocation22_spill] sm:$0xff] %v14508_v49  ;;  %v6894_v26 = vadd.f32 %v6790_v45, %v16662_v28  ;;  %v6793_v53 = vadd.f32 %v9808_v62, %v6503_v24  ;;  %v9812_v3 = vpop.f32.mrb[54].mxu1  ;;  %v6505_v57 = vpop.f32.mrb[39].mxu0  ;;  %v7218_v35 = vadd.f32 %v7217_v51, %v15761_v47  ;;  %v15766_v33 = vmax.f32 %v14508_v49, 0.0 }
 0x5fb   :  { %v6800_v42 = vpop.f32.mrb[55].mxu1 }
 0x5fc   :  { %v14512_v48 = vadd.f32 %v14092_v30, %v6894_v26  ;;  %v6895_v16 = vadd.f32 %v6793_v53, %v16664_v32  ;;  %v7219_v26 = vadd.f32 %v7218_v35, %v15766_v33  ;;  %v16666_v53 = vld [vmem:[#allocation36_spill] sm:$0xff] }
 0x5fe   :  { %16663 = vst [vmem:[#allocation31_spill] sm:$0xff] %v14512_v48  ;;  %v15765_v11 = vmax.f32 %v14512_v48, 0.0  ;;  %v14520_v37 = vadd.f32 %v14092_v30, %v6895_v16 }
 0x5ff   :  { %v6508_v6 = vpop.f32.mrb[40].mxu0 }
 0x600   :  { %16665 = vst [vmem:[#allocation69_spill] sm:$0xff] %v14520_v37  ;;  %v6798_v45 = vadd.f32 %v6797_v29, %v6508_v6  ;;  %v9815_v24 = vpop.f32.mrb[56].mxu1  ;;  %v6510_v62 = vpop.f32.mrb[41].mxu0  ;;  %v7220_v36 = vadd.f32 %v7219_v26, %v15765_v11  ;;  %v15773_v16 = vmax.f32 %v14520_v37, 0.0  ;;  %v16668_v6 = vld [vmem:[#allocation24_spill] sm:$0xff] }
 0x601   :  { %v6813_v28 = vpop.f32.mrb[57].mxu1  ;;  %v6511_v57 = vpop.f32.mrb[42].mxu0 }
 0x602   :  { %v6896_v32 = vadd.f32 %v6798_v45, %v16666_v53  ;;  %v6801_v9 = vadd.f32 %v6800_v42, %v6511_v57  ;;  %v9816_v51 = vpop.f32.mrb[58].mxu1  ;;  %v6513_v47 = vpop.f32.mrb[43].mxu0 }
 0x603   :  { %v6816_v54 = vpop.f32.mrb[59].mxu1  ;;  %v7221_v47 = vadd.f32 %v7220_v36, %v15773_v16  ;;  %v16671_v36 = vld [vmem:[#allocation120_spill] sm:$0xff] }
 0x604   :  { %v14529_v29 = vadd.f32 %v14092_v30, %v6896_v32  ;;  %v6897_v62 = vadd.f32 %v6801_v9, %v16668_v6  ;;  %v16670_v9 = vld [vmem:[#allocation76_spill] sm:$0xff] }
 0x606   :  { %16667 = vst [vmem:[#allocation53_spill] sm:$0xff] %v14529_v29  ;;  %v15771_v20 = vmax.f32 %v14529_v29, 0.0  ;;  %v14534_v35 = vadd.f32 %v14092_v30, %v6897_v62 }
 0x607   :  { %v6516_v45 = vpop.f32.mrb[44].mxu0 }
 0x608   :  { %16669 = vst [vmem:[#allocation25_spill] sm:$0xff] %v14534_v35  ;;  %v6806_v42 = vadd.f32 %v9811_v46, %v6516_v45  ;;  %v6518_v57 = vpop.f32.mrb[45].mxu0  ;;  %v9819_v53 = vpop.f32.mrb[60].mxu1  ;;  %v7222_v32 = vadd.f32 %v7221_v47, %v15771_v20  ;;  %v15772_v33 = vmax.f32 %v14534_v35, 0.0 }
 0x609   :  { %v6519_v26 = vpop.f32.mrb[46].mxu0  ;;  %v6829_v11 = vpop.f32.mrb[61].mxu1 }
 0x60a   :  { %v6898_v6 = vadd.f32 %v6806_v42, %v16670_v9  ;;  %v6809_v48 = vadd.f32 %v9812_v3, %v6519_v26  ;;  %v6521_v49 = vpop.f32.mrb[47].mxu0  ;;  %v9820_v62 = vpop.f32.mrb[62].mxu1  ;;  %v7223_v45 = vadd.f32 %v7222_v32, %v15772_v33 }
 0x60b   :  { %v6832_v19 = vpop.f32.mrb[63].mxu1 }
 0x60c   :  { %v14543_v59 = vadd.f32 %v14092_v30, %v6898_v6  ;;  %v6899_v46 = vadd.f32 %v6809_v48, %v16671_v36  ;;  %v16672_v6 = vld [vmem:[#allocation63_spill] sm:$0xff] }
 0x60e   :  { %v15777_v57 = vmax.f32 %v14543_v59, 0.0  ;;  %v14550_v47 = vadd.f32 %v14092_v30, %v6899_v46  ;;  %v16673_v46 = vld [vmem:[#allocation40_spill] sm:$0xff] }
 0x60f   :  { %v6524_v20 = vpop.f32.mrb[48].mxu0 }
 0x610   :  { %v7224_v3 = vadd.f32 %v7223_v45, %v15777_v57  ;;  %v15781_v49 = vmax.f32 %v14550_v47, 0.0  ;;  %v6814_v42 = vadd.f32 %v6813_v28, %v6524_v20  ;;  %v6526_v26 = vpop.f32.mrb[49].mxu0 }
 0x611   :  { %v6527_v9 = vpop.f32.mrb[50].mxu0 }
 0x612   :  { %v7225_v48 = vadd.f32 %v7224_v3, %v15781_v49  ;;  %v6900_v36 = vadd.f32 %v6814_v42, %v16672_v6  ;;  %v6817_v32 = vadd.f32 %v6816_v54, %v6527_v9  ;;  %v6529_v33 = vpop.f32.mrb[51].mxu0 }
 0x613   :  { %v16675_v33 = vld [vmem:[#allocation111_spill] sm:$0xff] }
 0x614   :  { %v6971_v16 = vadd.f32 %v14092_v30, %v6900_v36  ;;  %v6901_v35 = vadd.f32 %v6817_v32, %v16673_v46 }
 0x616   :  { %v7035_v29 = vmax.f32 %v6971_v16, 0.0  ;;  %v6972_v37 = vadd.f32 %v14092_v30, %v6901_v35 }
 0x617   :  { %v6532_v45 = vpop.f32.mrb[52].mxu0 }
 0x618   :  { %v7226_v57 = vadd.f32 %v7225_v48, %v7035_v29  ;;  %v7036_v34 = vmax.f32 %v6972_v37, 0.0  ;;  %v6822_v20 = vadd.f32 %v9815_v24, %v6532_v45  ;;  %v6534_v28 = vpop.f32.mrb[53].mxu0 }
 0x619   :  { %v6535_v26 = vpop.f32.mrb[54].mxu0 }
 0x61a   :  { %v7227_v38 = vadd.f32 %v7226_v57, %v7036_v34  ;;  %v6902_v3 = vadd.f32 %v6822_v20, %v16674_v60  ;;  %v6825_v49 = vadd.f32 %v9816_v51, %v6535_v26  ;;  %v6537_v42 = vpop.f32.mrb[55].mxu0  ;;  %v16676_v20 = vld [vmem:[#allocation46_spill] sm:$0xff] }
 0x61c   :  { %v6973_v54 = vadd.f32 %v14092_v30, %v6902_v3  ;;  %v6903_v9 = vadd.f32 %v6825_v49, %v16675_v33 }
 0x61e   :  { %v7037_v6 = vmax.f32 %v6973_v54, 0.0  ;;  %v6974_v16 = vadd.f32 %v14092_v30, %v6903_v9 }
 0x61f   :  { %v6540_v36 = vpop.f32.mrb[56].mxu0 }
 0x620   :  { %v7228_v35 = vadd.f32 %v7227_v38, %v7037_v6  ;;  %v7038_v32 = vmax.f32 %v6974_v16, 0.0  ;;  %v6830_v48 = vadd.f32 %v6829_v11, %v6540_v36  ;;  %v6542_v37 = vpop.f32.mrb[57].mxu0 }
 0x621   :  { %v6543_v24 = vpop.f32.mrb[58].mxu0 }
 0x622   :  { %v7229_v46 = vadd.f32 %v7228_v35, %v7038_v32  ;;  %v6904_v57 = vadd.f32 %v6830_v48, %v14064_v27  ;;  %v6833_v45 = vadd.f32 %v6832_v19, %v6543_v24  ;;  %v6545_v60 = vpop.f32.mrb[59].mxu0  ;;  %v16677_v35 = vld [vmem:[#allocation43_spill] sm:$0xff] }
 0x624   :  { %v6975_v51 = vadd.f32 %v14092_v30, %v6904_v57  ;;  %v6905_v28 = vadd.f32 %v6833_v45, %v16676_v20 }
 0x626   :  { %v7039_v26 = vmax.f32 %v6975_v51, 0.0  ;;  %v6976_v49 = vadd.f32 %v14092_v30, %v6905_v28 }
 0x627   :  { %v6548_v3 = vpop.f32.mrb[60].mxu0 }
 0x628   :  { %v7230_v42 = vadd.f32 %v7229_v46, %v7039_v26  ;;  %v7040_v54 = vmax.f32 %v6976_v49, 0.0  ;;  %v6838_v38 = vadd.f32 %v9819_v53, %v6548_v3  ;;  %v6550_v33 = vpop.f32.mrb[61].mxu0 }
 0x629   :  { %v6551_v11 = vpop.f32.mrb[62].mxu0 }
 0x62a   :  { %v7231_v9 = vadd.f32 %v7230_v42, %v7040_v54  ;;  %v6906_v16 = vadd.f32 %v6838_v38, %v14076_v56  ;;  %v6841_v36 = vadd.f32 %v9820_v62, %v6551_v11  ;;  %v6553_v27 = vpop.f32.mrb[63].mxu0  ;;  %v16678_v56 = vmax.f32 %v14543_v59, 0.0 }
 0x62b   :  { %v16679_v42 = vmax.f32 %v14550_v47, 0.0 }
 0x62c   :  { %v6977_v19 = vadd.f32 %v14092_v30, %v6906_v16  ;;  %v6907_v48 = vadd.f32 %v6841_v36, %v16677_v35 }
 0x62e   :  { %v7041_v37 = vmax.f32 %v6977_v19, 0.0  ;;  %v6978_v24 = vadd.f32 %v14092_v30, %v6907_v48 }
 0x630   :  { %v7232_v57 = vadd.f32 %v7231_v9, %v7041_v37  ;;  %v7042_v45 = vmax.f32 %v6978_v24, 0.0  ;;  %v16691_v24 = vmax.f32 %v14145_v4, 0.0 }
 0x632   :  { %v7233_v60 = vadd.f32 %v7232_v57, %v7042_v45 }
 0x634   :  { %v7234_v46 = vrot.slane %v7233_v60, 4 }
 0x636   :  { %v7235_v51 = vadd.f32 %v7234_v46, %v7233_v60  ;;  %v16692_v60 = vmax.f32 %v14141_v8, 0.0 }
 0x638   :  { %v7236_v53 = vrot.slane %v7235_v51, 2 }
 0x63a   :  { %v7237_v20 = vadd.f32 %v7236_v53, %v7235_v51  ;;  %v16693_v53 = vmax.f32 %v14153_v15, 0.0 }
 0x63c   :  { %v7238_v28 = vrot.slane %v7237_v20, 1 }
 0x63e   :  { %v7239_v49 = vadd.f32 %v7238_v28, %v7237_v20 }
 0x640   :  { %v14573_v3 = vmul.f32 0.001953125, %v7239_v49  ;;  %v16694_v49 = vmax.f32 %v14169_v44, 0.0 }
 0x642   :  { %v14578_v62 = vsub.f32 %v16678_v56, %v14573_v3  ;;  %v14583_v30 = vsub.f32 %v16679_v42, %v14573_v3  ;;  %v14586_v38 = vsub.f32 %v7035_v29, %v14573_v3  ;;  %v14589_v33 = vsub.f32 %v7036_v34, %v14573_v3 }
 0x643   :  { %v14592_v11 = vsub.f32 %v7037_v6, %v14573_v3  ;;  %v14595_v9 = vsub.f32 %v7038_v32, %v14573_v3  ;;  %v14598_v59 = vsub.f32 %v7039_v26, %v14573_v3  ;;  %v14601_v16 = vsub.f32 %v7040_v54, %v14573_v3 }
 0x644   :  { %16680 = vst [vmem:[#allocation115_spill] sm:$0xff] %v14589_v33  ;;  %v14604_v47 = vsub.f32 %v7041_v37, %v14573_v3  ;;  %v14607_v29 = vsub.f32 %v7042_v45, %v14573_v3  ;;  %v16686_v34 = vmax.f32 %v14099_v1, 0.0  ;;  %v16687_v32 = vmax.f32 %v14108_v10, 0.0 }
 0x645   :  { %16681 = vst [vmem:[#allocation78_spill] sm:$0xff] %v14592_v11  ;;  %16682 = vst [vmem:[#allocation28_spill] sm:$0xff] %v14595_v9  ;;  %v16688_v26 = vmax.f32 %v14105_v41, 0.0  ;;  %v16689_v1 = vmax.f32 %v14115_v23, 0.0  ;;  %v16690_v10 = vmax.f32 %v14133_v13, 0.0  ;;  %v14643_v57 = vsub.f32 %v16691_v24, %v14573_v3 }
 0x646   :  { %16683 = vst [vmem:[#allocation26_spill] sm:$0xff] %v14598_v59  ;;  %16684 = vst [vmem:[#allocation83_spill] sm:$0xff] %v14601_v16  ;;  %v14612_v6 = vsub.f32 %v16686_v34, %v14573_v3  ;;  %v14617_v36 = vsub.f32 %v16687_v32, %v14573_v3  ;;  %v14650_v46 = vsub.f32 %v16692_v60, %v14573_v3  ;;  %v16695_v34 = vmax.f32 %v14181_v55, 0.0 }
 0x647   :  { %16685 = vst [vmem:[#allocation35_spill] sm:$0xff] %v14604_v47  ;;  %v14622_v54 = vsub.f32 %v16688_v26, %v14573_v3  ;;  %v14631_v35 = vsub.f32 %v16689_v1, %v14573_v3  ;;  %v14636_v48 = vsub.f32 %v16690_v10, %v14573_v3  ;;  %v14657_v20 = vsub.f32 %v16693_v53, %v14573_v3 }
 0x648   :  { %v7305_v27 = vmul.f32 %v14612_v6, %v14612_v6  ;;  %v7306_v19 = vmul.f32 %v14617_v36, %v14617_v36  ;;  %v7310_v4 = vmul.f32 %v14643_v57, %v14643_v57  ;;  %v14664_v56 = vsub.f32 %v16694_v49, %v14573_v3 }
 0x649   :  { %v7307_v41 = vmul.f32 %v14622_v54, %v14622_v54  ;;  %v7308_v45 = vmul.f32 %v14631_v35, %v14631_v35  ;;  %v7309_v13 = vmul.f32 %v14636_v48, %v14636_v48  ;;  %v7311_v8 = vmul.f32 %v14650_v46, %v14650_v46 }
 0x64a   :  { %v7369_v37 = vadd.f32 %v7306_v19, %v7305_v27  ;;  %v14671_v32 = vsub.f32 %v16695_v34, %v14573_v3  ;;  %v7312_v15 = vmul.f32 %v14657_v20, %v14657_v20  ;;  %v16696_v27 = vmax.f32 %v14177_v25, 0.0  ;;  %v16702_v34 = vld [vmem:[#allocation68_spill] sm:$0xff] }
 0x64b   :  { %v7313_v44 = vmul.f32 %v14664_v56, %v14664_v56  ;;  %v16697_v10 = vmax.f32 %v14189_v31, 0.0  ;;  %v16698_v24 = vmax.f32 %v14205_v14, 0.0  ;;  %v16699_v60 = vmax.f32 %v14217_v63, 0.0 }
 0x64c   :  { %v7370_v23 = vadd.f32 %v7369_v37, %v7307_v41  ;;  %v14678_v19 = vsub.f32 %v16696_v27, %v14573_v3  ;;  %v7314_v55 = vmul.f32 %v14671_v32, %v14671_v32  ;;  %v16700_v53 = vmax.f32 %v14213_v12, 0.0 }
 0x64d   :  { %v14685_v41 = vsub.f32 %v16697_v10, %v14573_v3  ;;  %v16701_v49 = vmax.f32 %v14225_v58, 0.0 }
 0x64e   :  { %v7371_v51 = vadd.f32 %v7370_v23, %v7308_v45  ;;  %v14692_v45 = vsub.f32 %v16698_v24, %v14573_v3  ;;  %v7315_v25 = vmul.f32 %v14678_v19, %v14678_v19 }
 0x64f   :  { %v7316_v31 = vmul.f32 %v14685_v41, %v14685_v41 }
 0x650   :  { %v7372_v28 = vadd.f32 %v7371_v51, %v7309_v13  ;;  %v14699_v13 = vsub.f32 %v16699_v60, %v14573_v3  ;;  %v7317_v14 = vmul.f32 %v14692_v45, %v14692_v45 }
 0x652   :  { %v7373_v42 = vadd.f32 %v7372_v28, %v7310_v4  ;;  %v14706_v4 = vsub.f32 %v16700_v53, %v14573_v3  ;;  %v7318_v63 = vmul.f32 %v14699_v13, %v14699_v13 }
 0x654   :  { %v7374_v26 = vadd.f32 %v7373_v42, %v7311_v8  ;;  %v14713_v8 = vsub.f32 %v16701_v49, %v14573_v3  ;;  %v7319_v12 = vmul.f32 %v14706_v4, %v14706_v4  ;;  %v16709_v49 = vmax.f32 %v14289_v21, 0.0 }
 0x656   :  { %v7375_v1 = vadd.f32 %v7374_v26, %v7312_v15  ;;  %v16703_v15 = vmax.f32 %v16702_v34, 0.0  ;;  %v7320_v58 = vmul.f32 %v14713_v8, %v14713_v8  ;;  %v16710_v34 = vmax.f32 %v14285_v2, 0.0 }
 0x658   :  { %v7376_v37 = vadd.f32 %v7375_v1, %v7313_v44  ;;  %v14720_v26 = vsub.f32 %v16703_v15, %v14573_v3  ;;  %v16704_v44 = vmax.f32 %v14253_v50, 0.0  ;;  %v14762_v15 = vsub.f32 %v16710_v34, %v14573_v3 }
 0x65a   :  { %v7377_v23 = vadd.f32 %v7376_v37, %v7314_v55  ;;  %v14727_v1 = vsub.f32 %v16704_v44, %v14573_v3  ;;  %v16705_v55 = vmax.f32 %v14249_v43, 0.0  ;;  %v7321_v24 = vmul.f32 %v14720_v26, %v14720_v26 }
 0x65b   :  { %v16711_v44 = vmax.f32 %v14297_v39, 0.0  ;;  %v7327_v2 = vmul.f32 %v14762_v15, %v14762_v15 }
 0x65c   :  { %v7378_v51 = vadd.f32 %v7377_v23, %v7315_v25  ;;  %v14734_v37 = vsub.f32 %v16705_v55, %v14573_v3  ;;  %v16706_v23 = vmax.f32 %v14261_v18, 0.0  ;;  %v7322_v50 = vmul.f32 %v14727_v1, %v14727_v1 }
 0x65d   :  { %v16712_v55 = vmax.f32 %v14313_v0, 0.0 }
 0x65e   :  { %v7379_v28 = vadd.f32 %v7378_v51, %v7316_v31  ;;  %v14741_v60 = vsub.f32 %v16706_v23, %v14573_v3  ;;  %v16707_v51 = vld [vmem:[#allocation82_spill] sm:$0xff]  ;;  %v7323_v43 = vmul.f32 %v14734_v37, %v14734_v37  ;;  %v16713_v23 = vmax.f32 %v14325_v7, 0.0 }
 0x65f   :  { %v16708_v53 = vmax.f32 %v16707_v51, 0.0  ;;  %v16714_v51 = vmax.f32 %v14319_v61, 0.0 }
 0x660   :  { %v7380_v42 = vadd.f32 %v7379_v28, %v7317_v14  ;;  %v7324_v18 = vmul.f32 %v14741_v60, %v14741_v60 }
 0x661   :  { %v14748_v14 = vsub.f32 %v16708_v53, %v14573_v3  ;;  %v14790_v53 = vsub.f32 %v16714_v51, %v14573_v3 }
 0x662   :  { %v7381_v27 = vadd.f32 %v7380_v42, %v7318_v63  ;;  %v14755_v63 = vsub.f32 %v16709_v49, %v14573_v3 }
 0x663   :  { %v7331_v61 = vmul.f32 %v14790_v53, %v14790_v53 }
 0x664   :  { %v7382_v10 = vadd.f32 %v7381_v27, %v7319_v12  ;;  %v7325_v12 = vmul.f32 %v14748_v14, %v14748_v14  ;;  %v7326_v21 = vmul.f32 %v14755_v63, %v14755_v63 }
 0x666   :  { %v7383_v25 = vadd.f32 %v7382_v10, %v7320_v58  ;;  %v14769_v58 = vsub.f32 %v16711_v44, %v14573_v3 }
 0x668   :  { %v7384_v31 = vadd.f32 %v7383_v25, %v7321_v24  ;;  %v14776_v24 = vsub.f32 %v16712_v55, %v14573_v3  ;;  %v7328_v39 = vmul.f32 %v14769_v58, %v14769_v58 }
 0x66a   :  { %v7385_v28 = vadd.f32 %v7384_v31, %v7322_v50  ;;  %v14783_v50 = vsub.f32 %v16713_v23, %v14573_v3  ;;  %v7329_v0 = vmul.f32 %v14776_v24, %v14776_v24 }
 0x66c   :  { %v7386_v42 = vadd.f32 %v7385_v28, %v7323_v43  ;;  %v16715_v28 = vmax.f32 %v14333_v22, 0.0  ;;  %v7330_v7 = vmul.f32 %v14783_v50, %v14783_v50 }
 0x66e   :  { %v7387_v27 = vadd.f32 %v7386_v42, %v7324_v18  ;;  %v14797_v49 = vsub.f32 %v16715_v28, %v14573_v3  ;;  %v16716_v42 = vmax.f32 %v14349_v5, 0.0  ;;  %v16722_v28 = vld [vmem:[#allocation50_spill] sm:$0xff] }
 0x670   :  { %v7388_v10 = vadd.f32 %v7387_v27, %v7325_v12  ;;  %v14804_v34 = vsub.f32 %v16716_v42, %v14573_v3  ;;  %v16717_v27 = vmax.f32 %v14361_v52, 0.0  ;;  %v7332_v22 = vmul.f32 %v14797_v49, %v14797_v49 }
 0x672   :  { %v7389_v25 = vadd.f32 %v7388_v10, %v7326_v21  ;;  %v14811_v44 = vsub.f32 %v16717_v27, %v14573_v3  ;;  %v16718_v10 = vmax.f32 %v14355_v17, 0.0  ;;  %v7333_v5 = vmul.f32 %v14804_v34, %v14804_v34 }
 0x674   :  { %v7390_v31 = vadd.f32 %v7389_v25, %v7327_v2  ;;  %v14818_v55 = vsub.f32 %v16718_v10, %v14573_v3  ;;  %v16719_v25 = vmax.f32 %v14369_v40, 0.0  ;;  %v7334_v52 = vmul.f32 %v14811_v44, %v14811_v44  ;;  %v16726_v10 = vld [vmem:[#allocation112_spill] sm:$0xff] }
 0x676   :  { %v7391_v43 = vadd.f32 %v7390_v31, %v7328_v39  ;;  %v14825_v23 = vsub.f32 %v16719_v25, %v14573_v3  ;;  %v16720_v31 = vld [vmem:[#allocation23_spill] sm:$0xff]  ;;  %v7335_v17 = vmul.f32 %v14818_v55, %v14818_v55 }
 0x677   :  { %v16721_v51 = vmax.f32 %v16720_v31, 0.0 }
 0x678   :  { %v7392_v18 = vadd.f32 %v7391_v43, %v7329_v0  ;;  %v7336_v40 = vmul.f32 %v14825_v23, %v14825_v23 }
 0x679   :  { %v14832_v0 = vsub.f32 %v16721_v51, %v14573_v3 }
 0x67a   :  { %v7393_v12 = vadd.f32 %v7392_v18, %v7330_v7  ;;  %v16723_v7 = vmax.f32 %v16722_v28, 0.0  ;;  %v16731_v28 = vld [vmem:[#allocation54_spill] sm:$0xff] }
 0x67c   :  { %v7394_v21 = vadd.f32 %v7393_v12, %v7331_v61  ;;  %v14839_v18 = vsub.f32 %v16723_v7, %v14573_v3  ;;  %v16724_v61 = vld [vmem:[#allocation67_spill] sm:$0xff]  ;;  %v16732_v7 = vmax.f32 %v16731_v28, 0.0 }
 0x67d   :  { %v16725_v12 = vmax.f32 %v16724_v61, 0.0 }
 0x67e   :  { %v7395_v2 = vadd.f32 %v7394_v21, %v7332_v22  ;;  %v7337_v22 = vmul.f32 %v14832_v0, %v14832_v0  ;;  %v7338_v25 = vmul.f32 %v14839_v18, %v14839_v18 }
 0x67f   :  { %v14846_v27 = vsub.f32 %v16725_v12, %v14573_v3  ;;  %v16734_v12 = vld [vmem:[#allocation105_spill] sm:$0xff] }
 0x680   :  { %v7396_v39 = vadd.f32 %v7395_v2, %v7333_v5  ;;  %v16727_v5 = vmax.f32 %v16726_v10, 0.0 }
 0x682   :  { %v7397_v43 = vadd.f32 %v7396_v39, %v7334_v52  ;;  %v14853_v2 = vsub.f32 %v16727_v5, %v14573_v3  ;;  %v16728_v39 = vld [vmem:[#allocation18_spill] sm:$0xff] }
 0x683   :  { %v16729_v31 = vmax.f32 %v16728_v39, 0.0 }
 0x684   :  { %v7398_v42 = vadd.f32 %v7397_v43, %v7335_v17  ;;  %v7339_v17 = vmul.f32 %v14846_v27, %v14846_v27 }
 0x685   :  { %v14860_v51 = vsub.f32 %v16729_v31, %v14573_v3 }
 0x686   :  { %v7399_v21 = vadd.f32 %v7398_v42, %v7336_v40  ;;  %v14867_v40 = vsub.f32 %v16732_v7, %v14573_v3  ;;  %v7340_v42 = vmul.f32 %v14853_v2, %v14853_v2 }
 0x687   :  { %16730 = vst [vmem:[#allocation116_spill] sm:$0xff] %v14860_v51  ;;  %v7341_v10 = vmul.f32 %v14860_v51, %v14860_v51 }
 0x688   :  { %v7400_v52 = vadd.f32 %v7399_v21, %v7337_v22  ;;  %16733 = vst [vmem:[#allocation61_spill] sm:$0xff] %v14867_v40  ;;  %v16735_v22 = vmax.f32 %v16734_v12, 0.0  ;;  %v7342_v31 = vmul.f32 %v14867_v40, %v14867_v40 }
 0x68a   :  { %v7401_v43 = vadd.f32 %v7400_v52, %v7338_v25  ;;  %v14874_v21 = vsub.f32 %v16735_v22, %v14573_v3  ;;  %v16737_v25 = vld [vmem:[#allocation113_spill] sm:$0xff] }
 0x68b   :  { %v16738_v52 = vmax.f32 %v16737_v25, 0.0 }
 0x68c   :  { %v7402_v61 = vadd.f32 %v7401_v43, %v7339_v17  ;;  %16736 = vst [vmem:[#allocation30_spill] sm:$0xff] %v14874_v21  ;;  %v16740_v17 = vld [vmem:[#allocation27_spill] sm:$0xff]  ;;  %v7343_v12 = vmul.f32 %v14874_v21, %v14874_v21 }
 0x68d   :  { %v14881_v39 = vsub.f32 %v16738_v52, %v14573_v3  ;;  %v16741_v43 = vmax.f32 %v16740_v17, 0.0 }
 0x68e   :  { %v7403_v5 = vadd.f32 %v7402_v61, %v7340_v42  ;;  %v16743_v42 = vld [vmem:[#allocation90_spill] sm:$0xff] }
 0x68f   :  { %16739 = vst [vmem:[#allocation92_spill] sm:$0xff] %v14881_v39  ;;  %v14888_v7 = vsub.f32 %v16741_v43, %v14573_v3  ;;  %v16744_v61 = vmax.f32 %v16743_v42, 0.0  ;;  %v7344_v25 = vmul.f32 %v14881_v39, %v14881_v39 }
 0x690   :  { %v7404_v28 = vadd.f32 %v7403_v5, %v7341_v10  ;;  %v16746_v10 = vld [vmem:[#allocation84_spill] sm:$0xff] }
 0x691   :  { %16742 = vst [vmem:[#allocation97_spill] sm:$0xff] %v14888_v7  ;;  %v14895_v51 = vsub.f32 %v16744_v61, %v14573_v3  ;;  %v16747_v5 = vmax.f32 %v16746_v10, 0.0  ;;  %v7345_v17 = vmul.f32 %v14888_v7, %v14888_v7 }
 0x692   :  { %v7405_v22 = vadd.f32 %v7404_v28, %v7342_v31  ;;  %v16749_v31 = vld [vmem:[#allocation21_spill] sm:$0xff] }
 0x693   :  { %16745 = vst [vmem:[#allocation101_spill] sm:$0xff] %v14895_v51  ;;  %v14902_v40 = vsub.f32 %v16747_v5, %v14573_v3  ;;  %v16750_v28 = vmax.f32 %v16749_v31, 0.0  ;;  %v7346_v42 = vmul.f32 %v14895_v51, %v14895_v51 }
 0x694   :  { %v7406_v52 = vadd.f32 %v7405_v22, %v7343_v12  ;;  %v16752_v12 = vld [vmem:[#allocation114_spill] sm:$0xff] }
 0x695   :  { %16748 = vst [vmem:[#allocation39_spill] sm:$0xff] %v14902_v40  ;;  %v14909_v21 = vsub.f32 %v16750_v28, %v14573_v3  ;;  %v16753_v22 = vmax.f32 %v16752_v12, 0.0  ;;  %v7347_v10 = vmul.f32 %v14902_v40, %v14902_v40 }
 0x696   :  { %v7407_v43 = vadd.f32 %v7406_v52, %v7344_v25  ;;  %v16755_v25 = vld [vmem:[#allocation15_spill] sm:$0xff] }
 0x697   :  { %16751 = vst [vmem:[#allocation32_spill] sm:$0xff] %v14909_v21  ;;  %v14916_v39 = vsub.f32 %v16753_v22, %v14573_v3  ;;  %v16756_v52 = vmax.f32 %v16755_v25, 0.0  ;;  %v7348_v31 = vmul.f32 %v14909_v21, %v14909_v21 }
 0x698   :  { %v7408_v61 = vadd.f32 %v7407_v43, %v7345_v17  ;;  %v16758_v17 = vld [vmem:[#allocation60_spill] sm:$0xff] }
 0x699   :  { %16754 = vst [vmem:[#allocation94_spill] sm:$0xff] %v14916_v39  ;;  %v14923_v7 = vsub.f32 %v16756_v52, %v14573_v3  ;;  %v16759_v43 = vmax.f32 %v16758_v17, 0.0  ;;  %v7349_v12 = vmul.f32 %v14916_v39, %v14916_v39 }
 0x69a   :  { %v7409_v5 = vadd.f32 %v7408_v61, %v7346_v42  ;;  %v16761_v42 = vld [vmem:[#allocation29_spill] sm:$0xff] }
 0x69b   :  { %16757 = vst [vmem:[#allocation104_spill] sm:$0xff] %v14923_v7  ;;  %v14930_v51 = vsub.f32 %v16759_v43, %v14573_v3  ;;  %v16762_v61 = vmax.f32 %v16761_v42, 0.0  ;;  %v7350_v25 = vmul.f32 %v14923_v7, %v14923_v7 }
 0x69c   :  { %v7410_v28 = vadd.f32 %v7409_v5, %v7347_v10  ;;  %v16764_v10 = vld [vmem:[#allocation55_spill] sm:$0xff] }
 0x69d   :  { %16760 = vst [vmem:[#allocation89_spill] sm:$0xff] %v14930_v51  ;;  %v14937_v40 = vsub.f32 %v16762_v61, %v14573_v3  ;;  %v16765_v5 = vmax.f32 %v16764_v10, 0.0  ;;  %v7351_v17 = vmul.f32 %v14930_v51, %v14930_v51 }
 0x69e   :  { %v7411_v22 = vadd.f32 %v7410_v28, %v7348_v31  ;;  %v16767_v31 = vld [vmem:[#allocation22_spill] sm:$0xff] }
 0x69f   :  { %16763 = vst [vmem:[#allocation38_spill] sm:$0xff] %v14937_v40  ;;  %v14944_v21 = vsub.f32 %v16765_v5, %v14573_v3  ;;  %v16768_v28 = vmax.f32 %v16767_v31, 0.0  ;;  %v7352_v42 = vmul.f32 %v14937_v40, %v14937_v40 }
 0x6a0   :  { %v7412_v52 = vadd.f32 %v7411_v22, %v7349_v12  ;;  %v16769_v12 = vld [vmem:[#allocation31_spill] sm:$0xff] }
 0x6a1   :  { %16766 = vst [vmem:[#allocation119_spill] sm:$0xff] %v14944_v21  ;;  %v14951_v39 = vsub.f32 %v16768_v28, %v14573_v3  ;;  %v16770_v22 = vmax.f32 %v16769_v12, 0.0  ;;  %v7353_v10 = vmul.f32 %v14944_v21, %v14944_v21 }
 0x6a2   :  { %v7413_v43 = vadd.f32 %v7412_v52, %v7350_v25  ;;  %v16771_v25 = vld [vmem:[#allocation69_spill] sm:$0xff] }
 0x6a3   :  { %v14958_v7 = vsub.f32 %v16770_v22, %v14573_v3  ;;  %v16772_v52 = vmax.f32 %v16771_v25, 0.0  ;;  %v7354_v31 = vmul.f32 %v14951_v39, %v14951_v39 }
 0x6a4   :  { %v7414_v61 = vadd.f32 %v7413_v43, %v7351_v17  ;;  %v16773_v17 = vld [vmem:[#allocation53_spill] sm:$0xff] }
 0x6a5   :  { %v14965_v51 = vsub.f32 %v16772_v52, %v14573_v3  ;;  %v16774_v43 = vmax.f32 %v16773_v17, 0.0  ;;  %v7355_v12 = vmul.f32 %v14958_v7, %v14958_v7 }
 0x6a6   :  { %v7415_v5 = vadd.f32 %v7414_v61, %v7352_v42  ;;  %v16775_v42 = vld [vmem:[#allocation25_spill] sm:$0xff] }
 0x6a7   :  { %v14972_v40 = vsub.f32 %v16774_v43, %v14573_v3  ;;  %v16776_v61 = vmax.f32 %v16775_v42, 0.0  ;;  %v7356_v25 = vmul.f32 %v14965_v51, %v14965_v51 }
 0x6a8   :  { %v7416_v28 = vadd.f32 %v7415_v5, %v7353_v10 }
 0x6a9   :  { %v14979_v21 = vsub.f32 %v16776_v61, %v14573_v3  ;;  %v7357_v10 = vmul.f32 %v14972_v40, %v14972_v40  ;;  %v7360_v3 = vmul.f32 %v14583_v30, %v14583_v30  ;;  %v7361_v61 = vmul.f32 %v14586_v38, %v14586_v38 }
 0x6aa   :  { %v7417_v22 = vadd.f32 %v7416_v28, %v7354_v31  ;;  %v7359_v31 = vmul.f32 %v14578_v62, %v14578_v62 }
 0x6ab   :  { %v7358_v17 = vmul.f32 %v14979_v21, %v14979_v21 }
 0x6ac   :  { %v7418_v52 = vadd.f32 %v7417_v22, %v7355_v12  ;;  %v7362_v22 = vmul.f32 %v14589_v33, %v14589_v33 }
 0x6ae   :  { %v7419_v5 = vadd.f32 %v7418_v52, %v7356_v25  ;;  %v7363_v52 = vmul.f32 %v14592_v11, %v14592_v11 }
 0x6b0   :  { %v7420_v43 = vadd.f32 %v7419_v5, %v7357_v10  ;;  %v7364_v5 = vmul.f32 %v14595_v9, %v14595_v9 }
 0x6b2   :  { %v7421_v28 = vadd.f32 %v7420_v43, %v7358_v17  ;;  %v7365_v43 = vmul.f32 %v14598_v59, %v14598_v59 }
 0x6b4   :  { %v7422_v42 = vadd.f32 %v7421_v28, %v7359_v31  ;;  %v7366_v28 = vmul.f32 %v14601_v16, %v14601_v16  ;;  %v7444_v16 = vlaneseq }
 0x6b6   :  { %v7423_v12 = vadd.f32 %v7422_v42, %v7360_v3  ;;  %v7367_v42 = vmul.f32 %v14604_v47, %v14604_v47 }
 0x6b8   :  { %v7424_v25 = vadd.f32 %v7423_v12, %v7361_v61  ;;  %v7368_v12 = vmul.f32 %v14607_v29, %v14607_v29 }
 0x6ba   :  { %v7425_v10 = vadd.f32 %v7424_v25, %v7362_v22 }
 0x6bc   :  { %v7426_v17 = vadd.f32 %v7425_v10, %v7363_v52 }
 0x6be   :  { %v7427_v31 = vadd.f32 %v7426_v17, %v7364_v5 }
 0x6c0   :  { %v7428_v3 = vadd.f32 %v7427_v31, %v7365_v43  ;;  %v7445_v43 = vshrl.u32 %v7444_v16, 7  ;;  %v7439_v31 = vld [vmem:[%s15418_s5] sm:$0x1]  ;;  %s10085_s5 = smov [#allocation10]  }
 0x6c2   :  { %v7429_v61 = vadd.f32 %v7428_v3, %v7366_v28  ;;  %v7446_v28 = vsub.s32 0, %v7445_v43  ;;  %v16783_v43 = vld [vmem:[#allocation39_spill] sm:$0xff] }
 0x6c4   :  { %v7430_v22 = vadd.f32 %v7429_v61, %v7367_v42 }
 0x6c6   :  { %v7431_v25 = vadd.f32 %v7430_v22, %v7368_v12  ;;  %v16777_v12 = vld [vmem:[#allocation116_spill] sm:$0xff]  ;;  %v16778_v22 = vld [vmem:[#allocation61_spill] sm:$0xff] }
 0x6c8   :  { %v7432_v11 = vrot.slane %v7431_v25, 4 }
 0x6ca   :  { %v7433_v9 = vadd.f32 %v7432_v11, %v7431_v25  ;;  %v15015_v11 = vld [vmem:[%s15419_s6] ss:$0 sm:$0xff]  ;;  %s7653_s6 = sshll.u32 %s10085_s5, 4  ;;  %s7654_s6 = int_to_ptr.vmem [resolvable:$true] %s7653_s6 }
 0x6cb   :  { %v16779_v25 = vld [vmem:[#allocation30_spill] sm:$0xff]  ;;  %s10048_s23 = scalar_lea.vmem %s7654_s6, 8192  ;;  %p10053_p11 = scmp.lt.s32.totalorder %s7654_s6, %s7654_s6 }
 0x6cc   :  { %v7434_v52 = vrot.slane %v7433_v9, 2  ;;  %p10049_p10 = scmp.ne.s32.totalorder %s7654_s6, %s10048_s23  ;;  %p10054_p12 = scmp.lt.s32.totalorder %s10048_s23, %s10048_s23 }
 0x6ce   :  { %v7435_v10 = vadd.f32 %v7434_v52, %v7433_v9  ;;  %v16780_v52 = vld [vmem:[#allocation92_spill] sm:$0xff]  ;;  %p10055_p13 = por %p10054_p12, %p10053_p11 }
 0x6d0   :  { %v7436_v33 = vrot.slane %v7435_v10, 1  ;;  %p10056_p0 = pnand %p10055_p13, %p10049_p10 }
 0x6d2   :  { %v7437_v59 = vadd.f32 %v7436_v33, %v7435_v10  ;;  %v16781_v10 = vld [vmem:[#allocation97_spill] sm:$0xff] }
 0x6d4   :  { %v7438_v5 = vmul.f32 0.001953125, %v7437_v59 }
 0x6d6   :  { %v7440_v17 = vadd.f32 1e-05, %v7438_v5  ;;  %v16782_v5 = vld [vmem:[#allocation101_spill] sm:$0xff] }
 0x6d8   :  { %9975 = vrsqrt.f32 %v7440_v17 }
 0x6e2   :  { %v9976_v3 = vpop.eup %9975 }
 0x6e3   :  { %v7442_v47 = vmul.f32 %v9976_v3, %v7439_v31 }
 0x6e5   :  { %v15010_v42 = vrot.slane %v7442_v47, %v7446_v28  ;;  %v16784_v28 = vld [vmem:[#allocation32_spill] sm:$0xff] }
 0x6e7   :  { %v7512_v33 = vmul.f32 %v15010_v42, %v14607_v29  ;;  %v15021_v9 = vmul.f32 %v15010_v42, %v14612_v6  ;;  %v15025_v59 = vmul.f32 %v15010_v42, %v14617_v36  ;;  %v15029_v16 = vmul.f32 %v15010_v42, %v14622_v54 }
 0x6e8   :  { %v15033_v47 = vmul.f32 %v15010_v42, %v14631_v35  ;;  %v15037_v61 = vmul.f32 %v15010_v42, %v14636_v48  ;;  %v15041_v29 = vmul.f32 %v15010_v42, %v14643_v57  ;;  %v15045_v6 = vmul.f32 %v15010_v42, %v14650_v46 }
 0x6e9   :  { %v7583_v36 = vadd.f32 %v15015_v11, %v7512_v33  ;;  %v15050_v54 = vmul.f32 %v15010_v42, %v14657_v20  ;;  %v15054_v35 = vmul.f32 %v15010_v42, %v14664_v56  ;;  %v15058_v48 = vmul.f32 %v15010_v42, %v14671_v32  ;;  %v16785_v33 = vld [vmem:[#allocation94_spill] sm:$0xff] }
 0x6ea   :  { %v15062_v57 = vmul.f32 %v15010_v42, %v14678_v19  ;;  %v15066_v46 = vmul.f32 %v15010_v42, %v14685_v41  ;;  %v15070_v20 = vmul.f32 %v15010_v42, %v14692_v45  ;;  %v15074_v56 = vmul.f32 %v15010_v42, %v14699_v13 }
 0x6eb   :  { %7647 = vst [vmem:[#allocation10 + $0x1f8] sm:$0xff] %v7583_v36  ;;  %v15078_v32 = vmul.f32 %v15010_v42, %v14706_v4  ;;  %v15082_v19 = vmul.f32 %v15010_v42, %v14713_v8  ;;  %v15086_v41 = vmul.f32 %v15010_v42, %v14720_v26  ;;  %v15090_v45 = vmul.f32 %v15010_v42, %v14727_v1 }
 0x6ec   :  { %v15094_v13 = vmul.f32 %v15010_v42, %v14734_v37  ;;  %v15098_v4 = vmul.f32 %v15010_v42, %v14741_v60  ;;  %v15102_v8 = vmul.f32 %v15010_v42, %v14748_v14  ;;  %v15106_v26 = vmul.f32 %v15010_v42, %v14755_v63 }
 0x6ed   :  { %v15110_v1 = vmul.f32 %v15010_v42, %v14762_v15  ;;  %v15114_v37 = vmul.f32 %v15010_v42, %v14769_v58  ;;  %v15118_v60 = vmul.f32 %v15010_v42, %v14776_v24  ;;  %v15122_v14 = vmul.f32 %v15010_v42, %v14783_v50 }
 0x6ee   :  { %v15126_v63 = vmul.f32 %v15010_v42, %v14790_v53  ;;  %v15130_v15 = vmul.f32 %v15010_v42, %v14797_v49  ;;  %v15134_v58 = vmul.f32 %v15010_v42, %v14804_v34  ;;  %v15138_v24 = vmul.f32 %v15010_v42, %v14811_v44 }
 0x6ef   :  { %v15142_v50 = vmul.f32 %v15010_v42, %v14818_v55  ;;  %v15146_v53 = vmul.f32 %v15010_v42, %v14825_v23  ;;  %v15150_v49 = vmul.f32 %v15010_v42, %v14832_v0  ;;  %v15154_v34 = vmul.f32 %v15010_v42, %v14839_v18 }
 0x6f0   :  { %v15158_v44 = vmul.f32 %v15010_v42, %v14846_v27  ;;  %v15162_v55 = vmul.f32 %v15010_v42, %v14853_v2  ;;  %v15166_v23 = vmul.f32 %v15010_v42, %v16777_v12  ;;  %v15170_v0 = vmul.f32 %v15010_v42, %v16778_v22  ;;  %v16786_v12 = vld [vmem:[#allocation104_spill] sm:$0xff] }
 0x6f1   :  { %v15174_v18 = vmul.f32 %v15010_v42, %v16779_v25  ;;  %v15178_v27 = vmul.f32 %v15010_v42, %v16780_v52  ;;  %v15182_v2 = vmul.f32 %v15010_v42, %v16781_v10  ;;  %v15186_v17 = vmul.f32 %v15010_v42, %v16782_v5  ;;  %v16787_v25 = vld [vmem:[#allocation89_spill] sm:$0xff]  ;;  %v16788_v10 = vld [vmem:[#allocation38_spill] sm:$0xff] }
 0x6f2   :  { %v15190_v31 = vmul.f32 %v15010_v42, %v16783_v43  ;;  %v15194_v3 = vmul.f32 %v15010_v42, %v16784_v28  ;;  %v15198_v36 = vmul.f32 %v15010_v42, %v16785_v33  ;;  %v15202_v22 = vmul.f32 %v15010_v42, %v16786_v12  ;;  %v16789_v43 = vld [vmem:[#allocation119_spill] sm:$0xff] }
 0x6f3   :  { %v15206_v52 = vmul.f32 %v15010_v42, %v16787_v25  ;;  %v15210_v5 = vmul.f32 %v15010_v42, %v16788_v10  ;;  %v15214_v28 = vmul.f32 %v15010_v42, %v16789_v43  ;;  %v15218_v33 = vmul.f32 %v15010_v42, %v14951_v39 }
 0x6f4   :  { %v15222_v12 = vmul.f32 %v15010_v42, %v14958_v7  ;;  %v15226_v25 = vmul.f32 %v15010_v42, %v14965_v51  ;;  %v15230_v10 = vmul.f32 %v15010_v42, %v14972_v40  ;;  %v15234_v43 = vmul.f32 %v15010_v42, %v14979_v21 }
 0x6f5   :  { %v15238_v39 = vmul.f32 %v15010_v42, %v14578_v62  ;;  %v15242_v7 = vmul.f32 %v15010_v42, %v14583_v30  ;;  %v15246_v51 = vmul.f32 %v15010_v42, %v14586_v38 }
 0x6f6   :  { %16790 = vst [vmem:[#allocation96_spill] sm:$0xff] %v15226_v25  ;;  %16791 = vst [vmem:[#allocation117_spill] sm:$0xff] %v15230_v10  ;;  %v16796_v25 = vld [vmem:[#allocation115_spill] sm:$0xff]  ;;  %v16797_v10 = vld [vmem:[#allocation78_spill] sm:$0xff] }
 0x6f7   :  { %16792 = vst [vmem:[#allocation45_spill] sm:$0xff] %v15234_v43  ;;  %16793 = vst [vmem:[#allocation102_spill] sm:$0xff] %v15238_v39  ;;  %v15250_v40 = vmul.f32 %v15010_v42, %v16796_v25  ;;  %v15254_v21 = vmul.f32 %v15010_v42, %v16797_v10  ;;  %v16799_v43 = vld [vmem:[#allocation28_spill] sm:$0xff]  ;;  %v16800_v39 = vld [vmem:[#allocation26_spill] sm:$0xff]  ;;  %v7520_v10 = vadd.f32 %v15015_v11, %v15021_v9 }
 0x6f8   :  { %16794 = vst [vmem:[#allocation49_spill] sm:$0xff] %v15242_v7  ;;  %16795 = vst [vmem:[#allocation118_spill] sm:$0xff] %v15246_v51  ;;  %v15258_v62 = vmul.f32 %v15010_v42, %v16799_v43  ;;  %v15262_v30 = vmul.f32 %v15010_v42, %v16800_v39  ;;  %v16801_v7 = vld [vmem:[#allocation83_spill] sm:$0xff]  ;;  %v7522_v43 = vadd.f32 %v15015_v11, %v15029_v16 }
 0x6f9   :  { %16798 = vst [vmem:[#allocation106_spill] sm:$0xff] %v15254_v21  ;;  %v15266_v38 = vmul.f32 %v15010_v42, %v16801_v7  ;;  %v16803_v51 = vld [vmem:[#allocation35_spill] sm:$0xff]  ;;  %v7521_v21 = vadd.f32 %v15015_v11, %v15025_v59  ;;  %v7523_v39 = vadd.f32 %v15015_v11, %v15033_v47  ;;  %v7524_v7 = vadd.f32 %v15015_v11, %v15037_v61 }
 0x6fa   :  { %v15270_v25 = vmul.f32 %v15010_v42, %v16803_v51  ;;  %v7526_v42 = vadd.f32 %v15015_v11, %v15045_v6  ;;  %v7527_v9 = vadd.f32 %v15015_v11, %v15050_v54  ;;  %v7528_v59 = vadd.f32 %v15015_v11, %v15054_v35  ;;  %7584 = vst [vmem:[#allocation10] sm:$0xff] %v7520_v10 }
 0x6fb   :  { %16802 = vst [vmem:[#allocation56_spill] sm:$0xff] %v15266_v38  ;;  %v7525_v38 = vadd.f32 %v15015_v11, %v15041_v29  ;;  %v7529_v16 = vadd.f32 %v15015_v11, %v15058_v48  ;;  %v7530_v47 = vadd.f32 %v15015_v11, %v15062_v57  ;;  %7585 = vst [vmem:[#allocation10 + $0x8] sm:$0xff] %v7521_v21 }
 0x6fc   :  { %7586 = vst [vmem:[#allocation10 + $0x10] sm:$0xff] %v7522_v43  ;;  %v7531_v61 = vadd.f32 %v15015_v11, %v15066_v46  ;;  %v7532_v29 = vadd.f32 %v15015_v11, %v15070_v20  ;;  %v7533_v6 = vadd.f32 %v15015_v11, %v15074_v56  ;;  %v7534_v54 = vadd.f32 %v15015_v11, %v15078_v32 }
 0x6fd   :  { %7587 = vst [vmem:[#allocation10 + $0x18] sm:$0xff] %v7523_v39  ;;  %7588 = vst [vmem:[#allocation10 + $0x20] sm:$0xff] %v7524_v7  ;;  %v7535_v35 = vadd.f32 %v15015_v11, %v15082_v19  ;;  %v7536_v48 = vadd.f32 %v15015_v11, %v15086_v41  ;;  %v7537_v57 = vadd.f32 %v15015_v11, %v15090_v45 }
 0x6fe   :  { %7589 = vst [vmem:[#allocation10 + $0x28] sm:$0xff] %v7525_v38  ;;  %7590 = vst [vmem:[#allocation10 + $0x30] sm:$0xff] %v7526_v42  ;;  %v7538_v46 = vadd.f32 %v15015_v11, %v15094_v13  ;;  %v7539_v20 = vadd.f32 %v15015_v11, %v15098_v4  ;;  %v7540_v56 = vadd.f32 %v15015_v11, %v15102_v8  ;;  %v16806_v51 = vld [vmem:[#allocation45_spill] sm:$0xff]  ;;  %v16807_v21 = vld [vmem:[#allocation102_spill] sm:$0xff] }
 0x6ff   :  { %7591 = vst [vmem:[#allocation10 + $0x38] sm:$0xff] %v7527_v9  ;;  %7592 = vst [vmem:[#allocation10 + $0x40] sm:$0xff] %v7528_v59  ;;  %v7541_v32 = vadd.f32 %v15015_v11, %v15106_v26  ;;  %v7542_v19 = vadd.f32 %v15015_v11, %v15110_v1  ;;  %v7543_v41 = vadd.f32 %v15015_v11, %v15114_v37  ;;  %v16809_v10 = vld [vmem:[#allocation118_spill] sm:$0xff] }
 0x700   :  { %7593 = vst [vmem:[#allocation10 + $0x48] sm:$0xff] %v7529_v16  ;;  %7594 = vst [vmem:[#allocation10 + $0x50] sm:$0xff] %v7530_v47  ;;  %v7544_v45 = vadd.f32 %v15015_v11, %v15118_v60  ;;  %v7545_v13 = vadd.f32 %v15015_v11, %v15122_v14  ;;  %v7546_v4 = vadd.f32 %v15015_v11, %v15126_v63  ;;  %v16810_v7 = vld [vmem:[#allocation106_spill] sm:$0xff] }
 0x701   :  { %7595 = vst [vmem:[#allocation10 + $0x58] sm:$0xff] %v7531_v61  ;;  %7596 = vst [vmem:[#allocation10 + $0x60] sm:$0xff] %v7532_v29  ;;  %v7547_v8 = vadd.f32 %v15015_v11, %v15130_v15  ;;  %v7548_v26 = vadd.f32 %v15015_v11, %v15134_v58  ;;  %v7549_v1 = vadd.f32 %v15015_v11, %v15138_v24 }
 0x702   :  { %7597 = vst [vmem:[#allocation10 + $0x68] sm:$0xff] %v7533_v6  ;;  %7598 = vst [vmem:[#allocation10 + $0x70] sm:$0xff] %v7534_v54  ;;  %v7550_v37 = vadd.f32 %v15015_v11, %v15142_v50  ;;  %v7551_v60 = vadd.f32 %v15015_v11, %v15146_v53  ;;  %v7552_v14 = vadd.f32 %v15015_v11, %v15150_v49  ;;  %v16811_v16 = vld [vmem:[#allocation56_spill] sm:$0xff] }
 0x703   :  { %7599 = vst [vmem:[#allocation10 + $0x78] sm:$0xff] %v7535_v35  ;;  %7600 = vst [vmem:[#allocation10 + $0x80] sm:$0xff] %v7536_v48  ;;  %v7553_v63 = vadd.f32 %v15015_v11, %v15154_v34  ;;  %v7554_v15 = vadd.f32 %v15015_v11, %v15158_v44  ;;  %v7555_v58 = vadd.f32 %v15015_v11, %v15162_v55 }
 0x704   :  { %7601 = vst [vmem:[#allocation10 + $0x88] sm:$0xff] %v7537_v57  ;;  %7602 = vst [vmem:[#allocation10 + $0x90] sm:$0xff] %v7538_v46  ;;  %v7556_v24 = vadd.f32 %v15015_v11, %v15166_v23  ;;  %v7557_v50 = vadd.f32 %v15015_v11, %v15170_v0  ;;  %v7558_v53 = vadd.f32 %v15015_v11, %v15174_v18 }
 0x705   :  { %7603 = vst [vmem:[#allocation10 + $0x98] sm:$0xff] %v7539_v20  ;;  %7604 = vst [vmem:[#allocation10 + $0xa0] sm:$0xff] %v7540_v56  ;;  %v7559_v49 = vadd.f32 %v15015_v11, %v15178_v27  ;;  %v7560_v34 = vadd.f32 %v15015_v11, %v15182_v2  ;;  %v7561_v44 = vadd.f32 %v15015_v11, %v15186_v17 }
 0x706   :  { %7605 = vst [vmem:[#allocation10 + $0xa8] sm:$0xff] %v7541_v32  ;;  %7606 = vst [vmem:[#allocation10 + $0xb0] sm:$0xff] %v7542_v19  ;;  %v7562_v55 = vadd.f32 %v15015_v11, %v15190_v31  ;;  %v7563_v23 = vadd.f32 %v15015_v11, %v15194_v3  ;;  %v7564_v0 = vadd.f32 %v15015_v11, %v15198_v36  ;;  %v16804_v36 = vld [vmem:[#allocation96_spill] sm:$0xff] }
 0x707   :  { %7607 = vst [vmem:[#allocation10 + $0xb8] sm:$0xff] %v7543_v41  ;;  %7608 = vst [vmem:[#allocation10 + $0xc0] sm:$0xff] %v7544_v45  ;;  %v7565_v18 = vadd.f32 %v15015_v11, %v15202_v22  ;;  %v7566_v27 = vadd.f32 %v15015_v11, %v15206_v52  ;;  %v7567_v2 = vadd.f32 %v15015_v11, %v15210_v5  ;;  %v16805_v52 = vld [vmem:[#allocation117_spill] sm:$0xff] }
 0x708   :  { %7609 = vst [vmem:[#allocation10 + $0xc8] sm:$0xff] %v7545_v13  ;;  %7610 = vst [vmem:[#allocation10 + $0xd0] sm:$0xff] %v7546_v4  ;;  %v7568_v17 = vadd.f32 %v15015_v11, %v15214_v28  ;;  %v7569_v31 = vadd.f32 %v15015_v11, %v15218_v33  ;;  %v7570_v3 = vadd.f32 %v15015_v11, %v15222_v12  ;;  %v16808_v12 = vld [vmem:[#allocation49_spill] sm:$0xff] }
 0x709   :  { %7611 = vst [vmem:[#allocation10 + $0xd8] sm:$0xff] %v7547_v8  ;;  %7612 = vst [vmem:[#allocation10 + $0xe0] sm:$0xff] %v7548_v26  ;;  %v7571_v22 = vadd.f32 %v15015_v11, %v16804_v36  ;;  %v7572_v5 = vadd.f32 %v15015_v11, %v16805_v52  ;;  %v7573_v28 = vadd.f32 %v15015_v11, %v16806_v51 }
 0x70a   :  { %7613 = vst [vmem:[#allocation10 + $0xe8] sm:$0xff] %v7549_v1  ;;  %7614 = vst [vmem:[#allocation10 + $0xf0] sm:$0xff] %v7550_v37  ;;  %v7574_v33 = vadd.f32 %v15015_v11, %v16807_v21  ;;  %v7575_v38 = vadd.f32 %v15015_v11, %v16808_v12  ;;  %v7576_v43 = vadd.f32 %v15015_v11, %v16809_v10 }
 0x70b   :  { %7615 = vst [vmem:[#allocation10 + $0xf8] sm:$0xff] %v7551_v60  ;;  %7616 = vst [vmem:[#allocation10 + $0x100] sm:$0xff] %v7552_v14  ;;  %v7577_v39 = vadd.f32 %v15015_v11, %v15250_v40  ;;  %v7578_v42 = vadd.f32 %v15015_v11, %v16810_v7  ;;  %v7579_v9 = vadd.f32 %v15015_v11, %v15258_v62 }
 0x70c   :  { %7617 = vst [vmem:[#allocation10 + $0x108] sm:$0xff] %v7553_v63  ;;  %7618 = vst [vmem:[#allocation10 + $0x110] sm:$0xff] %v7554_v15  ;;  %v7580_v59 = vadd.f32 %v15015_v11, %v15262_v30  ;;  %v7581_v47 = vadd.f32 %v15015_v11, %v16811_v16  ;;  %v7582_v61 = vadd.f32 %v15015_v11, %v15270_v25 }
 0x70d   :  { %7619 = vst [vmem:[#allocation10 + $0x118] sm:$0xff] %v7555_v58  ;;  %7620 = vst [vmem:[#allocation10 + $0x120] sm:$0xff] %v7556_v24 }
 0x70e   :  { %7621 = vst [vmem:[#allocation10 + $0x128] sm:$0xff] %v7557_v50  ;;  %7622 = vst [vmem:[#allocation10 + $0x130] sm:$0xff] %v7558_v53 }
 0x70f   :  { %7623 = vst [vmem:[#allocation10 + $0x138] sm:$0xff] %v7559_v49  ;;  %7624 = vst [vmem:[#allocation10 + $0x140] sm:$0xff] %v7560_v34 }
 0x710   :  { %7625 = vst [vmem:[#allocation10 + $0x148] sm:$0xff] %v7561_v44  ;;  %7626 = vst [vmem:[#allocation10 + $0x150] sm:$0xff] %v7562_v55 }
 0x711   :  { %7627 = vst [vmem:[#allocation10 + $0x158] sm:$0xff] %v7563_v23  ;;  %7628 = vst [vmem:[#allocation10 + $0x160] sm:$0xff] %v7564_v0 }
 0x712   :  { %7629 = vst [vmem:[#allocation10 + $0x168] sm:$0xff] %v7565_v18  ;;  %7630 = vst [vmem:[#allocation10 + $0x170] sm:$0xff] %v7566_v27 }
 0x713   :  { %7631 = vst [vmem:[#allocation10 + $0x178] sm:$0xff] %v7567_v2  ;;  %7632 = vst [vmem:[#allocation10 + $0x180] sm:$0xff] %v7568_v17 }
 0x714   :  { %7633 = vst [vmem:[#allocation10 + $0x188] sm:$0xff] %v7569_v31  ;;  %7634 = vst [vmem:[#allocation10 + $0x190] sm:$0xff] %v7570_v3 }
 0x715   :  { %7635 = vst [vmem:[#allocation10 + $0x198] sm:$0xff] %v7571_v22  ;;  %7636 = vst [vmem:[#allocation10 + $0x1a0] sm:$0xff] %v7572_v5 }
 0x716   :  { %7637 = vst [vmem:[#allocation10 + $0x1a8] sm:$0xff] %v7573_v28  ;;  %7638 = vst [vmem:[#allocation10 + $0x1b0] sm:$0xff] %v7574_v33 }
 0x717   :  { %7639 = vst [vmem:[#allocation10 + $0x1b8] sm:$0xff] %v7575_v38  ;;  %7640 = vst [vmem:[#allocation10 + $0x1c0] sm:$0xff] %v7576_v43 }
 0x718   :  { %7641 = vst [vmem:[#allocation10 + $0x1c8] sm:$0xff] %v7577_v39  ;;  %7642 = vst [vmem:[#allocation10 + $0x1d0] sm:$0xff] %v7578_v42 }
 0x719   :  { %7643 = vst [vmem:[#allocation10 + $0x1d8] sm:$0xff] %v7579_v9  ;;  %7644 = vst [vmem:[#allocation10 + $0x1e0] sm:$0xff] %v7580_v59 }
 0x71a   :  { %7645 = vst [vmem:[#allocation10 + $0x1e8] sm:$0xff] %v7581_v47  ;;  %7646 = vst [vmem:[#allocation10 + $0x1f0] sm:$0xff] %v7582_v61 }
 0x71b   :  { %10059 = shalt.err (!%p10056_p0)
}
 0x71c   :  { %s10060_s27 = scalar_lea.hbm %s15420_s7, 8192 }
 0x71d   :  { %p10061_p1 = scmp.ne.s32.totalorder %s15420_s7, %s10060_s27  ;;  %p10064_p2 = scmp.lt.u32.totalorder %s10060_s27, %s15420_s7 }
 0x71f   :  { %p10066_p3 = pnand %p10064_p2, %p10061_p1 }
 0x721   :  { %10069 = shalt.err (!%p10066_p3)
}
 0x722   :  { %7659 = dma.vmem_to_hbm [thread:$0]  %s7654_s6, 8192, %s15420_s7, [#allocation6], %s10080_s1, %s10080_s1, %s10081_s25  }
 0x723   :  { %10074 = dma.done.wait [#allocation6], 8192  }
 0x724   :  { %10075 = vsyncadd [#allocation6], 4294959104 }
 0x725   :  { %7663 = vsyncpa [#allocation5], 1 }
 0x726   :  { %7664 = vsyncpa [#allocation8], 1 }
 0x727   :  { %7665 = vsyncpa [#allocation6], 1 }

</bundles_post_ra>
